<compile_context>
chip_gen: v5e
topology: v5e:2x2
jax: 0.10.0
libtpu: 0.0.40
codegen_flags: <defaults>
</compile_context>

<pallas_src>
import jax
import jax.numpy as jnp
from jax.experimental import pallas as pl
from jax.experimental.pallas import tpu as pltpu


def _round_up(x, m):
    return ((x + m - 1) // m) * m


# ---------------------------------------------------------------------------
# Standalone QuadraticActivation kernel (used only for >= ~2 MiB tensors; the
# MLP path below fuses the activation into the network kernel instead).
# ---------------------------------------------------------------------------

_SUBLANE = 8                        # f32 sublane tiling (16 for bf16, 32 for int8/fp8)
_BLOCK_BYTES = 2 * 1024 * 1024      # ~2 MiB per block buffer; in+out double
                                    # buffered -> ~8 MiB live VMEM, safe under the
                                    # ~16 MiB default scoped VMEM on v5e (and the
                                    # ~32 MiB default scoped limit on v6e/v7x).
_PALLAS_ACT_MIN_BYTES = 2 * 1024 * 1024   # below this, let XLA fuse the elementwise


def _quadratic_act_kernel(a_ref, x_ref, o_ref):
    """o = 1 / (1 + (a*x)^2) on one (TM, TN) VMEM tile. a_ref is (1,1) in SMEM."""
    a = a_ref[0, 0]
    a2 = a * a                                   # hoisted scalar
    x = x_ref[...].astype(jnp.float32)
    # Exact divide: the kernel is HBM-bound, the divide is free and keeps the
    # result bit-faithful to the reference 1/(1+(a*x)^2).
    o_ref[...] = (1.0 / (1.0 + a2 * (x * x))).astype(o_ref.dtype)


def _choose_layout(n):
    """Pick (TN, TM, rows) for the flattened input.

    Lane-dense TN (multiple of 128) dividing n exactly when possible (zero
    padding); TM sized for ~2 MiB blocks, and at least two row blocks for
    sizeable inputs so the 'parallel' grid axis can shard across both
    TensorCores of a v7x chip.
    """
    for tn in (2048, 1024, 512, 256, 128):
        if n % tn == 0:
            rows = n // tn
            break
    else:                               # rare fallback: pad by < 128 elements
        tn = 128
        rows = pl.cdiv(n, tn)
    max_tm = max(_SUBLANE, ((_BLOCK_BYTES // 4) // tn) // _SUBLANE * _SUBLANE)
    tm = min(rows, max_tm)
    if tm == rows and rows >= 2 * _SUBLANE:
        # Would be a single block: split so grid >= 2 (v7x 2-TC evenness).
        tm = _round_up(pl.cdiv(rows, 2), _SUBLANE)
    return tn, tm, rows


def quadratic_activation(x, a):
    """y = 1 / (1 + (a*x)^2).

    Small tensors: pure jnp (XLA fuses it into the producer, e.g. a matmul).
    Large tensors: tiled, lane-dense Pallas kernel at the HBM roofline.
    """
    a_arr = jnp.asarray(a, dtype=jnp.float32)
    a0 = a_arr.reshape(-1)[0]
    n = x.size
    if n * x.dtype.itemsize < _PALLAS_ACT_MIN_BYTES:
        xf = x.astype(jnp.float32)
        return (1.0 / (1.0 + (a0 * xf) ** 2)).astype(x.dtype)

    orig_shape = x.shape
    orig_dtype = x.dtype
    tn, tm, rows = _choose_layout(n)
    n_pad = rows * tn

    x_flat = jnp.ravel(x)
    padded = n_pad != n
    if padded:
        # TODO(synk): replace pad + slice-back with a masked final block; only
        #             triggers when no multiple of 128 divides n (pad < 128 elems).
        x_flat = jnp.pad(x_flat, (0, n_pad - n))
    x2d = x_flat.reshape(rows, tn)

    a_smem = a_arr.reshape(1, 1)
    itemsize = orig_dtype.itemsize
    cost = pl.CostEstimate(
        flops=4 * n_pad,
        transcendentals=n_pad,
        bytes_accessed=2 * n_pad * itemsize,
    )

    out2d = pl.pallas_call(
        _quadratic_act_kernel,
        out_shape=jax.ShapeDtypeStruct((rows, tn), orig_dtype),
        grid_spec=pltpu.PrefetchScalarGridSpec(
            num_scalar_prefetch=0,
            grid=(pl.cdiv(rows, tm),),
            in_specs=[
                pl.BlockSpec((1, 1), lambda i: (0, 0), memory_space=pltpu.SMEM),
                pl.BlockSpec((tm, tn), lambda i: (i, 0)),
            ],
            out_specs=pl.BlockSpec((tm, tn), lambda i: (i, 0)),
        ),
        compiler_params=pltpu.CompilerParams(
            dimension_semantics=("parallel",),
        ),
        cost_estimate=cost,
    )(a_smem, x2d)

    if padded:
        return out2d.reshape(-1)[:n].reshape(orig_shape)
    return out2d.reshape(orig_shape)


# ---------------------------------------------------------------------------
# Fused whole-network MLP forward (single Pallas kernel).
# ---------------------------------------------------------------------------

def _make_fused_mlp_kernel(tm, hidden, n_hidden, in_features, out_features):
    """Builds a kernel computing the full layer chain for one (tm, *) row block;
    all weights are VMEM-resident (constant index_map -> DMA'd once)."""

    def kernel(a_ref, x_ref, w0t_ref, b0_ref, wh_ref, bh_ref, wo_ref, bo_ref, o_ref):
        a = a_ref[0, 0]
        a2 = a * a

        def act(h):
            # QuadraticActivation: 1 / (1 + (a*h)^2), exact divide.
            return 1.0 / (1.0 + a2 * (h * h))

        x = x_ref[...].astype(jnp.float32)

        # ---- first layer: x (tm, K) @ W0^T (K, H) + b0 ----------------------
        if in_features <= 8:
            # Degenerate K: VPU broadcast / outer product, no MXU involvement.
            h = jnp.broadcast_to(b0_ref[...], (tm, hidden))
            for k in range(in_features):
                xk = jnp.broadcast_to(x[:, k:k + 1], (tm, hidden))
                wk = jnp.broadcast_to(w0t_ref[k:k + 1, :], (tm, hidden))
                h = h + xk * wk
        else:
            h = jnp.dot(x, w0t_ref[...],
                        preferred_element_type=jnp.float32) + b0_ref[...]
        h = act(h)

        # ---- hidden layers: (tm, H) @ (H, H) + b on the MXU ------------------
        for i in range(n_hidden):
            h = jnp.dot(h, wh_ref[i],
                        preferred_element_type=jnp.float32) + bh_ref[i]
            h = act(h)

        # ---- output layer (outermost_linear=True: no activation) -------------
        if out_features == 1:
            # Degenerate N=1: XLU lane reduction instead of an N=1 MXU matmul.
            wo = jnp.broadcast_to(wo_ref[...], (tm, hidden))
            y = jnp.sum(h * wo, axis=-1, keepdims=True) + bo_ref[0, 0]
        else:
            y = jnp.dot(h, wo_ref[...],
                        preferred_element_type=jnp.float32) + bo_ref[...]
        o_ref[...] = y.astype(o_ref.dtype)

    return kernel


def mlp_forward(x, params, a):
    """MLP(act='quadratic', outermost_linear=True) forward as ONE Pallas kernel.

    params: list of (weight, bias) in torch Linear layout (out_f, in_f).
    x: (..., in_features). Returns (..., out_features).
    """
    # TODO(synk): batched (hypernetwork-produced) BatchLinear weights are not
    #             supported; this implements the module's default shared-weight path.
    w0, b0 = params[0]
    wo, bo = params[-1]
    hidden, in_features = w0.shape
    out_features = wo.shape[0]
    n_hidden = len(params) - 2

    orig_shape = x.shape
    x2d = x.reshape(-1, in_features).astype(jnp.float32)
    m = x2d.shape[0]

    # Row tile: 128-256 rows feeds the MXU at full width; pad rows to a tile multiple.
    tm = min(256, _round_up(m, _SUBLANE))
    m_pad = _round_up(m, tm)
    if m_pad != m:
        x2d = jnp.pad(x2d, ((0, m_pad - m), (0, 0)))   # padded rows compute garbage, sliced off

    w0t = jnp.asarray(w0, jnp.float32).T                     # (in_f, H)
    b0r = jnp.asarray(b0, jnp.float32).reshape(1, hidden)

    if n_hidden > 0:
        wh = jnp.stack([jnp.asarray(w, jnp.float32).T for w, _ in params[1:-1]])
        bh = jnp.stack([jnp.asarray(b, jnp.float32).reshape(1, hidden)
                        for _, b in params[1:-1]])
    else:
        # Dummy (unused) stack so the kernel signature stays fixed.
        wh = jnp.zeros((1, hidden, hidden), jnp.float32)
        bh = jnp.zeros((1, 1, hidden), jnp.float32)
    l_stack = wh.shape[0]

    if out_features == 1:
        wo_arg = jnp.asarray(wo, jnp.float32).reshape(1, hidden)
        bo_arg = jnp.asarray(bo, jnp.float32).reshape(1, 1)
        bo_spec = pl.BlockSpec((1, 1), lambda i: (0, 0), memory_space=pltpu.SMEM)
    else:
        wo_arg = jnp.asarray(wo, jnp.float32).T               # (H, out_f)
        bo_arg = jnp.asarray(bo, jnp.float32).reshape(1, out_features)
        bo_spec = pl.BlockSpec((1, out_features), lambda i: (0, 0))

    a_smem = jnp.asarray(a, jnp.float32).reshape(1, 1)

    kernel = _make_fused_mlp_kernel(tm, hidden, n_hidden, in_features, out_features)

    flops = (2 * m_pad * (in_features * hidden
                          + n_hidden * hidden * hidden
                          + hidden * out_features)
             + 4 * m_pad * hidden * (n_hidden + 1))
    weight_bytes = 4 * (w0t.size + b0r.size + wh.size + bh.size
                        + wo_arg.size + bo_arg.size)
    cost = pl.CostEstimate(
        flops=flops,
        transcendentals=m_pad * hidden * (n_hidden + 1),
        bytes_accessed=4 * (m_pad * in_features + m_pad * out_features) + weight_bytes,
    )

    out = pl.pallas_call(
        kernel,
        out_shape=jax.ShapeDtypeStruct((m_pad, out_features), jnp.float32),
        grid_spec=pltpu.PrefetchScalarGridSpec(
            num_scalar_prefetch=0,
            grid=(m_pad // tm,),
            in_specs=[
                pl.BlockSpec((1, 1), lambda i: (0, 0), memory_space=pltpu.SMEM),  # a
                pl.BlockSpec((tm, in_features), lambda i: (i, 0)),                # x rows
                # Weights/biases: same block index every step -> DMA'd once,
                # VMEM-resident across the whole row grid (~1.3 MiB for H=256).
                pl.BlockSpec((in_features, hidden), lambda i: (0, 0)),            # W0^T
                pl.BlockSpec((1, hidden), lambda i: (0, 0)),                      # b0
                pl.BlockSpec((l_stack, hidden, hidden), lambda i: (0, 0, 0)),     # hidden W^T
                pl.BlockSpec((l_stack, 1, hidden), lambda i: (0, 0, 0)),          # hidden b
                pl.BlockSpec(wo_arg.shape, lambda i: (0, 0)),                     # W_out
                bo_spec,                                                          # b_out
            ],
            out_specs=pl.BlockSpec((tm, out_features), lambda i: (i, 0)),
        ),
        compiler_params=pltpu.CompilerParams(
            # Row blocks are independent -> megacore-parallel on v7x, free elsewhere.
            dimension_semantics=("parallel",),
        ),
        cost_estimate=cost,
    )(a_smem, x2d, w0t, b0r, wh, bh, wo_arg, bo_arg)

    out = out[:m]
    return out.reshape(orig_shape[:-1] + (out_features,))


# ---------------------------------------------------------------------------
# Parameter init (init_weights_normal = Kaiming normal fan_in) and reference.
# ---------------------------------------------------------------------------

def init_mlp_params(key, in_features=1, out_features=1, hidden_layers=4,
                    hidden_features=256):
    dims = [in_features] + [hidden_features] * (hidden_layers + 1) + [out_features]
    params = []
    for i in range(len(dims) - 1):
        fan_in, fan_out = dims[i], dims[i + 1]
        key, wk, bk = jax.random.split(key, 3)
        std = (2.0 / fan_in) ** 0.5                                   # kaiming_normal, relu
        w = std * jax.random.normal(wk, (fan_out, fan_in), dtype=jnp.float32)
        bound = 1.0 / (fan_in ** 0.5)                                 # torch Linear bias default
        b = jax.random.uniform(bk, (fan_out,), jnp.float32, -bound, bound)
        params.append((w, b))
    return params


def mlp_reference(x, params, a):
    a0 = jnp.asarray(a, jnp.float32).reshape(-1)[0]
    h = x.astype(jnp.float32)
    last = len(params) - 1
    for i, (w, b) in enumerate(params):
        h = jnp.dot(h, jnp.asarray(w, jnp.float32).T,
                    precision=jax.lax.Precision.HIGHEST) + b
        if i != last:
            h = 1.0 / (1.0 + (a0 * h) ** 2)
    return h


if __name__ == "__main__":
    key = jax.random.PRNGKey(0)
    a_param = jnp.full((1,), 0.8, dtype=jnp.float32)       # QuadraticActivation(a=0.8)

    key, k1, k2, k3, k4 = jax.random.split(key, 5)

    # 1) QuadraticActivation, small input -> XLA-fused bypass path.
    x_small = jax.random.normal(k1, (2, 4, 16, 16), dtype=jnp.float32)
    y_small = jax.block_until_ready(quadratic_activation(x_small, a_param))
    ref_small = 1.0 / (1.0 + (a_param[0] * x_small) ** 2)
    assert y_small.shape == x_small.shape
    assert jnp.allclose(y_small, ref_small, atol=1e-5, rtol=1e-5), "act small mismatch"

    # 2) QuadraticActivation, 2 MiB input -> tiled Pallas path with grid >= 2.
    x_big = jax.random.normal(k2, (8, 16, 64, 64), dtype=jnp.float32)
    y_big = jax.block_until_ready(quadratic_activation(x_big, a_param))
    ref_big = 1.0 / (1.0 + (a_param[0] * x_big) ** 2)
    assert jnp.allclose(y_big, ref_big, atol=1e-5, rtol=1e-5), "act big mismatch"

    # 3) Fused single-kernel MLP forward (in=1, out=1, hidden_layers=4, H=256).
    params = init_mlp_params(k3, in_features=1, out_features=1,
                             hidden_layers=4, hidden_features=256)
    x_mlp = jax.random.normal(k4, (2, 64, 1), dtype=jnp.float32)
    y_mlp = jax.block_until_ready(mlp_forward(x_mlp, params, a_param))
    ref_mlp = mlp_reference(x_mlp, params, a_param)
    assert y_mlp.shape == (2, 64, 1)
    # Tolerance covers f32 matmul multi-pass rounding differences between the
    # Mosaic MXU path and the XLA reference dot.
    assert jnp.allclose(y_mlp, ref_mlp, atol=5e-3, rtol=5e-3), "mlp mismatch"

    # 4) Larger batch -> multi-block row grid (grid=4) + padded tail rows.
    x_mlp2 = jax.random.normal(key, (4, 200, 1), dtype=jnp.float32)
    y_mlp2 = jax.block_until_ready(mlp_forward(x_mlp2, params, a_param))
    ref_mlp2 = mlp_reference(x_mlp2, params, a_param)
    assert y_mlp2.shape == (4, 200, 1)
    assert jnp.allclose(y_mlp2, ref_mlp2, atol=5e-3, rtol=5e-3), "mlp big mismatch"

    print("KERNEL_OK")
</pallas_src>

<mosaic_0001>
module attributes {stable_mosaic.version = 11 : i64} {
  func.func @_quadratic_act_kernel(%arg0: i32, %arg1: memref<1x1xf32, #tpu.memory_space<smem>>, %arg2: memref<128x2048xf32, #tpu.memory_space<vmem>>, %arg3: memref<128x2048xf32, #tpu.memory_space<vmem>>) attributes {dimension_semantics = [#tpu.dimension_semantics<parallel>], iteration_bounds = array<i64: 2>, scalar_prefetch = 0 : i64, scratch_operands = 0 : i64, tpu.core_type = #tpu.core_type<tc>, window_params = [{transform_indices = @transform_0, window_bounds = array<i64: 1, 1>}, {transform_indices = @transform_1, window_bounds = array<i64: 128, 2048>}, {transform_indices = @transform_2, window_bounds = array<i64: 128, 2048>}]} {
    %c0 = arith.constant 0 : index
    %c0_0 = arith.constant 0 : index
    %0 = memref.load %arg1[%c0, %c0_0] : memref<1x1xf32, #tpu.memory_space<smem>>
    %1 = arith.mulf %0, %0 : f32
    %c0_1 = arith.constant 0 : index
    %c0_2 = arith.constant 0 : index
    %2 = vector.load %arg2[%c0_1, %c0_2] : memref<128x2048xf32, #tpu.memory_space<vmem>>, vector<128x2048xf32>
    %3 = arith.mulf %2, %2 : vector<128x2048xf32>
    %4 = vector.broadcast %1 : f32 to vector<128x2048xf32>
    %5 = arith.mulf %4, %3 : vector<128x2048xf32>
    %cst = arith.constant 1.000000e+00 : f32
    %6 = vector.broadcast %cst : f32 to vector<128x2048xf32>
    %7 = arith.addf %6, %5 : vector<128x2048xf32>
    %cst_3 = arith.constant 1.000000e+00 : f32
    %8 = vector.broadcast %cst_3 : f32 to vector<128x2048xf32>
    %9 = arith.divf %8, %7 : vector<128x2048xf32>
    %c0_4 = arith.constant 0 : index
    %c0_5 = arith.constant 0 : index
    %10 = vector.load %arg3[%c0_4, %c0_5] : memref<128x2048xf32, #tpu.memory_space<vmem>>, vector<128x2048xf32>
    tpu.vector_store %arg3[%c0_4, %c0_5], %9 {strides = array<i32>} : memref<128x2048xf32, #tpu.memory_space<vmem>>, vector<128x2048xf32>,
    return
  }
  func.func @transform_0(%arg0: i32) -> (i32, i32) {
    %c0_i32 = arith.constant 0 : i32
    %c0_i32_0 = arith.constant 0 : i32
    %c0_i32_1 = arith.constant 0 : i32
    return %c0_i32, %c0_i32_0 : i32, i32
  }
  func.func @transform_1(%arg0: i32) -> (i32, i32) {
    %c0_i32 = arith.constant 0 : i32
    %c0_i32_0 = arith.constant 0 : i32
    return %arg0, %c0_i32 : i32, i32
  }
  func.func @transform_2(%arg0: i32) -> (i32, i32) {
    %c0_i32 = arith.constant 0 : i32
    %c0_i32_0 = arith.constant 0 : i32
    return %arg0, %c0_i32 : i32, i32
  }
}

</mosaic_0001>

<bundles_post_ra>
// kernel: tpu_custom_call.1
= control target key start
LH: loop header
LB: loop body
LE: loop exit
PB: predicated region body
PF: predicated region fallthrough
CT: control target
= control target key end

     0   :  { %s12345_s0 = inlined_call_operand.<no memory space> [shape: f32[1,1], index: 0, kind: input, shape index: {}]   ;;  %s12346_s1 = inlined_call_operand.hbm [shape: f32[256,2048], index: 1, kind: input, shape index: {}]   ;;  %s12347_s2 = inlined_call_operand.hbm [shape: f32[256,2048], index: 2, kind: output, shape index: {}]  }
   0x1   :  { %7 = sst [smem:[#allocation2]] %s12345_s0 }
   0x2   :  { %8 = vsyncpa [#allocation4], 0 }
   0x3   :  { %10 = vsyncpa [#allocation4 + $0x1], 0 }
   0x4   :  { %11 = vsyncpa [#allocation5], 0 }
   0x5   :  { %13 = vsyncpa [#allocation5 + $0x1], 0  ;;  %s6083_s11 = smov 0   ;;  %s6085_s12 = smov 0  }
   0x6   :  { %s6087_s13 = smov 0   ;;  %s6089_s14 = smov 0  }
   0x7 LB: > { %s6104_s0 = sadd.s32 4294967295, %s6059_s14   ;;  %s5381_s15 = sadd.s32 4294967294, %s6059_s14   ;;  %s6059_s14 = sphi %s6089_s14, %s13362_s14   ;;  %s6055_s13 = sphi %s6087_s13, %s13361_s13   ;;  %s6051_s12 = sphi %s6085_s12, %s13360_s12   ;;  %s6047_s11 = sphi %s6083_s11, %s13359_s11  }
   0x8   : > { %s6108_s16 = sadd.s32 1, %s6059_s14   ;;  %s47_s17 = sadd.s32 1, %s6055_s13 }
   0x9   : > { %s44_s18 = ssub.s32 %s6059_s14, %s6108_s16  ;;  %p54_p0 = scmp.ne.s32.totalorder %s6055_s13, %s6051_s12 }
   0xa   : > { %p45_p1 = scmp.eq.s32.totalorder %s44_s18, 0  ;;  %p55_p2 = scmp.eq.s32.totalorder %s6059_s14, 0 }
   0xb   : > { %p60_p3 = scmp.ne.s32.totalorder %s6051_s12, %s6047_s11  ;;  %p61_p4 = scmp.eq.s32.totalorder %s6104_s0, 0 }
   0xc   : > { %s6120_s19 = scalar_select %p45_p1, %s6055_s13, %s47_s17  }
   0xd   : > { %p6122_p5 = por %p55_p2, %p54_p0  ;;  %p6126_p6 = por %p61_p4, %p60_p3 }
   0xe   : > { %p84_p7 = scmp.eq.s32.totalorder %s6104_s0, 1  ;;  %p90_p8 = scmp.eq.s32.totalorder %s5381_s15, 1 }
   0xf   : > { %p5413_p10 = scmp.lt.s32.totalorder %s6059_s14, 2  ;;  %s113_s24 = sand.u32 1, %s6055_s13  }
  0x10   : > { %p6133_p11 = por %p84_p7, %p54_p0  ;;  %p6137_p12 = por %p90_p8, %p60_p3 }
  0x11   : > { %s5398_s25 = sshll.u32 %s6059_s14, 11  ;;  %s5384_s26 = sshll.u32 %s113_s24, 11 }
  0x12   : > { %s123_s29 = scalar_lea.hbm %s12346_s1, %s5398_s25  ;;  %s117_s3 = scalar_lea.vmem [#allocation3], %s5384_s26 }
  0x13   : > { %s124_s30 = sshll.u32 %s123_s29, 4  ;;  %s126_s4 = sshll.u32 %s117_s3, 4  ;;  %s125_s30 = int_to_ptr.hbm [resolvable:$true] %s124_s30  ;;  %s127_s4 = int_to_ptr.vmem [resolvable:$true] %s126_s4 }
  0x14   : > { %p6148_p13 = pnand %p5413_p10, %p6122_p5  ;;  %p5388_p0 = scmp.ge.s32.totalorder %s6059_s14, 1 }
  0x15   : > { %p134_p1 = scmp.lt.s32.totalorder %s6059_s14, 3  ;;  %s114_s6 = scalar_lea.sflag [#allocation4], %s113_s24 }
  0x16   : > { %s5963_s7 = sshra.s32 %s125_s30, 4  ;;  %p5967_p3 = pneg %p6148_p13  ;;  %s5964_s7 = int_to_ptr.hbm [resolvable:$true] %s5963_s7 }
  0x17   : > { %s5965_s8 = scalar_lea.hbm %s5964_s7, 2048  ;;  %s5970_s15 = scalar_lea.hbm %s12346_s1, 4096 }
  0x18   : > { %p5966_p2 = scmp.ne.s32.totalorder %s5964_s7, %s5965_s8  ;;  %p5971_p5 = scmp.lt.s32.totalorder %s5964_s7, %s12346_s1 }
  0x19   : > { %p5972_p8 = scmp.lt.s32.totalorder %s5970_s15, %s5965_s8 }
  0x1a   : > { %p5968_p4 = pnand %p5967_p3, %p5966_p2 }
  0x1b   : > { %p5973_p10 = por %p5972_p8, %p5971_p5 }
  0x1c   : > { %p5969_p7 = pneg %p5968_p4 }
  0x1e   : > { %p5974_p9 = pnand %p5973_p10, %p5969_p7 }
  0x20   : > { %5977 = shalt.err (!%p5974_p9)
}
  0x21   : > { %s6061_s20 = smov 2048   ;;  %s6062_s24 = smov 128  }
  0x22   : > { %5408 = dma.hbm_to_vmem [thread:$0]  (!%p6148_p13), %s125_s30, 32768, %s127_s4, %s114_s6, %s6061_s20, %s6061_s20, %s6062_s24  }
  0x23   : > { %p135_p2 = pnand %p5388_p0, %p134_p1 }
  0x24   : > { %s6169_s25 = sand.u32 (!%p135_p2), 1, %s6051_s12  }
  0x25   : > { %138 = sbr.rel (%p135_p2) target bundleno = 1083 (0x43b), region = 28  ;;  %s5389_s26 = sshll.u32 (!%p135_p2), %s6169_s25, 11 }
  0x26   : > { %s141_s27 = scalar_lea.sflag (!%p135_p2), [#allocation4], %s6169_s25  ;;  %s6175_s28 = scalar_lea.vmem (!%p135_p2), [#allocation3], %s5389_s26 }
  0x2a   : > { %6038 = dma.done.wait (%p6126_p6), %s141_s27, 32768  }
  0x2b   : > { %6040 = vsyncadd (%p6126_p6), %s141_s27, 4294934528  ;;  %s168_s29 = sld [smem:[#allocation2]]  ;;  %v170_v0 = vld [vmem:[%s6175_s28] sm:$0xff]  ;;  %v171_v1 = vld [vmem:[%s6175_s28 + $0x8] sm:$0xff]  ;;  %s6292_s21 = scalar_lea.vmem [#allocation6], %s5389_s26 }
  0x2c   : > { %v172_v2 = vld [vmem:[%s6175_s28 + $0x10] sm:$0xff]  ;;  %v426_v3 = vmul.f32 %v170_v0, %v170_v0  ;;  %v427_v4 = vmul.f32 %v171_v1, %v171_v1  ;;  %v173_v6 = vld [vmem:[%s6175_s28 + $0x18] sm:$0xff]  ;;  %v174_v7 = vld [vmem:[%s6175_s28 + $0x20] sm:$0xff]  ;;  %s5400_s3 = sshll.u32 %s6104_s0, 11  ;;  %s5305_s6 = sshll.u32 %s6292_s21, 4  ;;  %s5306_s6 = int_to_ptr.vmem [resolvable:$true] %s5305_s6 }
  0x2d   : > { %v428_v5 = vmul.f32 %v172_v2, %v172_v2  ;;  %v175_v8 = vld [vmem:[%s6175_s28 + $0x28] sm:$0xff]  ;;  %v429_v10 = vmul.f32 %v173_v6, %v173_v6  ;;  %v430_v11 = vmul.f32 %v174_v7, %v174_v7  ;;  %v176_v13 = vld [vmem:[%s6175_s28 + $0x30] sm:$0xff]  ;;  %v177_v17 = vld [vmem:[%s6175_s28 + $0x38] sm:$0xff]  ;;  %s5304_s5 = scalar_lea.hbm %s12347_s2, %s5400_s3  ;;  %s5292_s8 = scalar_lea.sflag [#allocation5], %s6169_s25 }
  0x2e   : > { %v431_v12 = vmul.f32 %v175_v8, %v175_v8  ;;  %v432_v23 = vmul.f32 %v176_v13, %v176_v13  ;;  %v433_v25 = vmul.f32 %v177_v17, %v177_v17  ;;  %v180_v42 = vld [vmem:[%s6175_s28 + $0x50] sm:$0xff]  ;;  %s5307_s7 = sshll.u32 %s5304_s5, 4  ;;  %s6013_s18 = scalar_lea.hbm %s12347_s2, 4096  ;;  %s5308_s7 = int_to_ptr.hbm [resolvable:$true] %s5307_s7 }
  0x2f   : > { %s6007_s9 = sshra.s32 %s5308_s7, 4  ;;  %s6008_s9 = int_to_ptr.hbm [resolvable:$true] %s6007_s9 }
  0x30   : > { %s6009_s10 = scalar_lea.hbm %s6008_s9, 2048  ;;  %p6014_p0 = scmp.lt.s32.totalorder %s6008_s9, %s12347_s2 }
  0x31   : > { %s169_s30 = smul.f32 %s168_s29, %s168_s29  ;;  %p6010_p6 = scmp.ne.s32.totalorder %s6008_s9, %s6009_s10 }
  0x32   : > { %p6015_p1 = scmp.lt.s32.totalorder %s6013_s18, %s6009_s10 }
  0x33   : > { %v6187_v9 = vstv %s169_s30  ;;  %p6011_p9 = pnand %p6010_p6, %p6133_p11 }
  0x34   : > { %v683_v14 = vmul.f32 %v6187_v9, %v426_v3  ;;  %v684_v15 = vmul.f32 %v6187_v9, %v427_v4  ;;  %v685_v16 = vmul.f32 %v6187_v9, %v428_v5  ;;  %v686_v18 = vmul.f32 %v6187_v9, %v429_v10  ;;  %p6016_p3 = por %p6015_p1, %p6014_p0 }
  0x35   : > { %v687_v19 = vmul.f32 %v6187_v9, %v430_v11  ;;  %v688_v24 = vmul.f32 %v6187_v9, %v431_v12  ;;  %v689_v32 = vmul.f32 %v6187_v9, %v432_v23  ;;  %v690_v36 = vmul.f32 %v6187_v9, %v433_v25  ;;  %p6012_p13 = pneg %p6011_p9 }
  0x36   : > { %v939_v20 = vadd.f32 1.0, %v683_v14  ;;  %v6196_v21 = vadd.f32 1.0, %v684_v15  ;;  %v6198_v22 = vadd.f32 1.0, %v685_v16  ;;  %v6201_v26 = vadd.f32 1.0, %v686_v18 }
  0x37   : > { %v6204_v29 = vadd.f32 1.0, %v687_v19  ;;  %v6212_v35 = vadd.f32 1.0, %v688_v24  ;;  %v6250_v0 = vadd.f32 1.0, %v689_v32  ;;  %v6259_v4 = vadd.f32 1.0, %v690_v36  ;;  %p6017_p4 = pnand %p6016_p3, %p6012_p13 }
  0x38   : > { %5451 = vrcp.f32 %v939_v20  ;;  %v1204_v27 = vand.u32 2147483647, %v939_v20  ;;  %v1206_v28 = vand.u32 2147483648, %v939_v20  ;;  %v1219_v30 = vand.u32 2147483647, %v6196_v21 }
  0x39   : > { %5453 = vrcp.f32 %v6196_v21  ;;  %v1221_v31 = vand.u32 2147483648, %v6196_v21  ;;  %v1234_v33 = vand.u32 2147483647, %v6198_v22  ;;  %v1236_v34 = vand.u32 2147483648, %v6198_v22 }
  0x3a   : > { %5455 = vrcp.f32 %v6198_v22  ;;  %vm1200_vm0 = vweird.f32 %v939_v20  ;;  %vm1215_vm1 = vweird.f32 %v6196_v21  ;;  %v1251_v37 = vand.u32 2147483648, %v6201_v26 }
  0x3b   : > { %5457 = vrcp.f32 %v6201_v26  ;;  %vm6218_vm2 = vcmp.eq.f32.partialorder %v1204_v27, 8.507059e+37  ;;  %v1207_v39 = vor.u32 1.1754944e-38, %v1206_v28  ;;  %vm1230_vm3 = vweird.f32 %v6198_v22 }
  0x3c   : > { %v1249_v40 = vand.u32 2147483647, %v6201_v26  ;;  %5459 = vrcp.f32 %v6204_v29  ;;  %vm6225_vm4 = vcmp.eq.f32.partialorder %v1219_v30, 8.507059e+37  ;;  %v1222_v43 = vor.u32 1.1754944e-38, %v1221_v31 }
  0x3d   : > { %v1237_v44 = vor.u32 1.1754944e-38, %v1236_v34  ;;  %vm1245_vm5 = vweird.f32 %v6201_v26  ;;  %vm6230_vm6 = vcmp.eq.f32.partialorder %v1234_v33, 8.507059e+37  ;;  %v6234_v48 = vor.u32 1.1754944e-38, %v1251_v37  ;;  %v178_v34 = vld [vmem:[%s6175_s28 + $0x40] sm:$0xff] }
  0x3e   : > { %v5452_v41 = vpop.eup %5451  ;;  %vm1260_vm7 = vweird.f32 %v6204_v29  ;;  %5461 = vrcp.f32 %v6212_v35  ;;  %v1264_v51 = vand.u32 2147483647, %v6204_v29  ;;  %v1266_v52 = vand.u32 2147483648, %v6204_v29 }
  0x3f   : > { %v5454_v45 = vpop.eup %5453  ;;  %v1196_v46 = vmul.f32 %v5452_v41, %v939_v20  ;;  %vm1201_vm8 = vweird.f32 %v5452_v41  ;;  %vm6242_vm10 = vcmp.eq.f32.partialorder %v1249_v40, 8.507059e+37  ;;  %v1279_v58 = vand.u32 2147483647, %v6212_v35 }
  0x40   : > { %v5456_v49 = vpop.eup %5455  ;;  %v1211_v50 = vmul.f32 %v5454_v45, %v6196_v21  ;;  %vm1216_vm9 = vweird.f32 %v5454_v45  ;;  %v1281_v59 = vand.u32 2147483648, %v6212_v35  ;;  %vm6254_vm13 = vmor %vm1200_vm0, %vm1201_vm8  ;;  %5463 = vrcp.f32 %v6250_v0 }
  0x41   : > { %v1197_v53 = vsub.f32 1.0, %v1196_v46  ;;  %v1226_v54 = vmul.f32 %v5456_v49, %v6198_v22  ;;  %v5458_v56 = vpop.eup %5457  ;;  %vm1231_vm12 = vweird.f32 %v5456_v49  ;;  %vm6264_vm15 = vmor %vm1215_vm1, %vm1216_vm9  ;;  %v1267_v27 = vor.u32 1.1754944e-38, %v1266_v52 }
  0x42   : > { %v1212_v57 = vsub.f32 1.0, %v1211_v50  ;;  %v5460_v60 = vpop.eup %5459  ;;  %v1241_v63 = vmul.f32 %v5458_v56, %v6201_v26  ;;  %vm1246_vm14 = vweird.f32 %v5458_v56  ;;  %vm6271_vm8 = vmor %vm1230_vm3, %vm1231_vm12  ;;  %vm1265_vm3 = vcmp.eq.f32.partialorder %v1264_v51, 8.507059e+37 }
  0x43   : > { %v1198_v61 = vmul.f32 %v5452_v41, %v1197_v53  ;;  %v1227_v62 = vsub.f32 1.0, %v1226_v54  ;;  %v1256_v3 = vmul.f32 %v5460_v60, %v6204_v29  ;;  %vm1261_vm0 = vweird.f32 %v5460_v60  ;;  %vm6286_vm1 = vmor %vm1245_vm5, %vm1246_vm14  ;;  %v182_v54 = vld [vmem:[%s6175_s28 + $0x60] sm:$0xff] }
  0x44   : > { %v1213_v2 = vmul.f32 %v5454_v45, %v1212_v57  ;;  %v5462_v5 = vpop.eup %5461  ;;  %v1242_v10 = vsub.f32 1.0, %v1241_v63  ;;  %v1282_v33 = vor.u32 1.1754944e-38, %v1281_v59  ;;  %5465 = vrcp.f32 %v6259_v4 }
  0x45   : > { %v1199_v6 = vadd.f32 %v5452_v41, %v1198_v61  ;;  %v1228_v8 = vmul.f32 %v5456_v49, %v1227_v62  ;;  %v1257_v13 = vsub.f32 1.0, %v1256_v3  ;;  %v1271_v14 = vmul.f32 %v5462_v5, %v6212_v35 }
  0x46   : > { %v1214_v11 = vadd.f32 %v5454_v45, %v1213_v2  ;;  %vm1276_vm11 = vweird.f32 %v5462_v5  ;;  %v1243_v17 = vmul.f32 %v5458_v56, %v1242_v10  ;;  %v1296_v46 = vand.u32 2147483648, %v6250_v0 }
  0x47   : > { %v1203_v15 = vsel %vm6254_vm13, %v5452_v41, %v1199_v6  ;;  %v1229_v16 = vadd.f32 %v5456_v49, %v1228_v8  ;;  %v1258_v21 = vmul.f32 %v5460_v60, %v1257_v13  ;;  %v1272_v22 = vsub.f32 1.0, %v1271_v14  ;;  %v183_v6 = vld [vmem:[%s6175_s28 + $0x68] sm:$0xff] }
  0x48   : > { %v1208_v18 = vsel %vm6218_vm2, %v1207_v39, %v1203_v15  ;;  %v1218_v19 = vsel %vm6264_vm15, %v5454_v45, %v1214_v11  ;;  %v1244_v25 = vadd.f32 %v5458_v56, %v1243_v17  ;;  %vm6302_vm2 = vmor %vm1260_vm7, %vm1261_vm0  ;;  %v5464_v39 = vpop.eup %5463  ;;  %vm1290_vm7 = vweird.f32 %v6250_v0  ;;  %v184_v11 = vld [vmem:[%s6175_s28 + $0x70] sm:$0xff] }
  0x49   : > { %5035 = vst [vmem:[%s6292_s21] sm:$0xff] %v1208_v18  ;;  %v1223_v23 = vsel %vm6225_vm4, %v1222_v43, %v1218_v19  ;;  %v1233_v24 = vsel %vm6271_vm8, %v5456_v49, %v1229_v16  ;;  %v1259_v30 = vadd.f32 %v5460_v60, %v1258_v21  ;;  %v1273_v31 = vmul.f32 %v5462_v5, %v1272_v22  ;;  %v181_v43 = vld [vmem:[%s6175_s28 + $0x58] sm:$0xff]  ;;  %v191_v19 = vld [vmem:[%s6175_s28 + $0xa8] sm:$0xff] }
  0x4a   : > { %5036 = vst [vmem:[%s6292_s21 + $0x8] sm:$0xff] %v1223_v23  ;;  %v1238_v28 = vsel %vm6230_vm6, %v1237_v44, %v1233_v24  ;;  %v1248_v32 = vsel %vm6286_vm1, %v5458_v56, %v1244_v25  ;;  %vm12371_vm4 = vweird.f32 %v6212_v35  ;;  %vm1280_vm6 = vcmp.eq.f32.partialorder %v1279_v58, 8.507059e+37  ;;  %v179_v35 = vld [vmem:[%s6175_s28 + $0x48] sm:$0xff]  ;;  %v5466_v55 = vpop.eup %5465 }
  0x4b   : > { %5037 = vst [vmem:[%s6292_s21 + $0x10] sm:$0xff] %v1238_v28  ;;  %vm6315_vm5 = vmor %vm12371_vm4, %vm1276_vm11  ;;  %v1253_v36 = vsel %vm6242_vm10, %v6234_v48, %v1248_v32  ;;  %v1263_v37 = vsel %vm6302_vm2, %v5460_v60, %v1259_v30  ;;  %v1274_v38 = vadd.f32 %v5462_v5, %v1273_v31  ;;  %v1294_v41 = vand.u32 2147483647, %v6250_v0 }
  0x4c   : > { %5038 = vst [vmem:[%s6292_s21 + $0x18] sm:$0xff] %v1253_v36  ;;  %v1268_v40 = vsel %vm1265_vm3, %v1267_v27, %v1263_v37  ;;  %v1286_v45 = vmul.f32 %v5464_v39, %v6250_v0  ;;  %v434_v47 = vmul.f32 %v178_v34, %v178_v34  ;;  %vm1291_vm9 = vweird.f32 %v5464_v39 }
  0x4d   : > { %5039 = vst [vmem:[%s6292_s21 + $0x20] sm:$0xff] %v1268_v40  ;;  %v1278_v44 = vsel %vm6315_vm5, %v5462_v5, %v1274_v38  ;;  %vm1305_vm10 = vweird.f32 %v6259_v4  ;;  %v435_v49 = vmul.f32 %v179_v35, %v179_v35  ;;  %v436_v52 = vmul.f32 %v180_v42, %v180_v42  ;;  %vm6354_vm12 = vmor %vm1290_vm7, %vm1291_vm9 }
  0x4e   : > { %v1283_v48 = vsel %vm1280_vm6, %v1282_v33, %v1278_v44  ;;  %v1287_v50 = vsub.f32 1.0, %v1286_v45  ;;  %v691_v51 = vmul.f32 %v6187_v9, %v434_v47  ;;  %v437_v53 = vmul.f32 %v181_v43, %v181_v43 }
  0x4f   : > { %5040 = vst [vmem:[%s6292_s21 + $0x28] sm:$0xff] %v1283_v48  ;;  %vm6341_vm11 = vcmp.eq.f32.partialorder %v1294_v41, 8.507059e+37  ;;  %v1309_v57 = vand.u32 2147483647, %v6259_v4  ;;  %v1311_v58 = vand.u32 2147483648, %v6259_v4  ;;  %v692_v59 = vmul.f32 %v6187_v9, %v435_v49 }
  0x50   : > { %v1288_v60 = vmul.f32 %v5464_v39, %v1287_v50  ;;  %v1297_v61 = vor.u32 1.1754944e-38, %v1296_v46  ;;  %v1301_v62 = vmul.f32 %v5466_v55, %v6259_v4  ;;  %v6349_v63 = vadd.f32 1.0, %v691_v51 }
  0x51   : > { %vm1306_vm13 = vweird.f32 %v5466_v55  ;;  %v6358_v2 = vadd.f32 1.0, %v692_v59  ;;  %v693_v3 = vmul.f32 %v6187_v9, %v436_v52  ;;  %v438_v5 = vmul.f32 %v182_v54, %v182_v54 }
  0x52   : > { %v1289_v7 = vadd.f32 %v5464_v39, %v1288_v60  ;;  %v1302_v8 = vsub.f32 1.0, %v1301_v62  ;;  %5467 = vrcp.f32 %v6349_v63  ;;  %v694_v10 = vmul.f32 %v6187_v9, %v437_v53  ;;  %vm6379_vm15 = vmor %vm1305_vm10, %vm1306_vm13  ;;  %v186_v62 = vld [vmem:[%s6175_s28 + $0x80] sm:$0xff] }
  0x53   : > { %vm6365_vm14 = vcmp.eq.f32.partialorder %v1309_v57, 8.507059e+37  ;;  %v1312_v12 = vor.u32 1.1754944e-38, %v1311_v58  ;;  %v1324_v13 = vand.u32 2147483647, %v6349_v63  ;;  %5469 = vrcp.f32 %v6358_v2 }
  0x54   : > { %v1293_v14 = vsel %vm6354_vm12, %v5464_v39, %v1289_v7  ;;  %v1303_v15 = vmul.f32 %v5466_v55, %v1302_v8  ;;  %v1326_v16 = vand.u32 2147483648, %v6349_v63  ;;  %v439_v17 = vmul.f32 %v183_v6, %v183_v6 }
  0x55   : > { %v1298_v18 = vsel %vm6341_vm11, %v1297_v61, %v1293_v14  ;;  %v1339_v20 = vand.u32 2147483647, %v6358_v2  ;;  %v6384_v21 = vadd.f32 1.0, %v693_v3  ;;  %v440_v22 = vmul.f32 %v184_v11, %v184_v11  ;;  %v185_v61 = vld [vmem:[%s6175_s28 + $0x78] sm:$0xff] }
  0x56   : > { %5041 = vst [vmem:[%s6292_s21 + $0x30] sm:$0xff] %v1298_v18  ;;  %v1304_v23 = vadd.f32 %v5466_v55, %v1303_v15  ;;  %v1341_v24 = vand.u32 2147483648, %v6358_v2  ;;  %v6388_v25 = vadd.f32 1.0, %v694_v10  ;;  %v695_v26 = vmul.f32 %v6187_v9, %v438_v5 }
  0x57   : > { %vm1320_vm0 = vweird.f32 %v6349_v63  ;;  %vm6392_vm8 = vcmp.eq.f32.partialorder %v1324_v13, 8.507059e+37  ;;  %vm1335_vm1 = vweird.f32 %v6358_v2  ;;  %5471 = vrcp.f32 %v6384_v21 }
  0x58   : > { %v5468_v27 = vpop.eup %5467  ;;  %v1308_v28 = vsel %vm6379_vm15, %v5466_v55, %v1304_v23  ;;  %v1327_v30 = vor.u32 1.1754944e-38, %v1326_v16  ;;  %v1354_v31 = vand.u32 2147483647, %v6384_v21  ;;  %5473 = vrcp.f32 %v6388_v25 }
  0x59   : > { %v5470_v32 = vpop.eup %5469  ;;  %v1313_v29 = vsel %vm6365_vm14, %v1312_v12, %v1308_v28  ;;  %v1316_v33 = vmul.f32 %v5468_v27, %v6349_v63  ;;  %vm6405_vm2 = vcmp.eq.f32.partialorder %v1339_v20, 8.507059e+37  ;;  %v1356_v36 = vand.u32 2147483648, %v6384_v21 }
  0x5a   : > { %5042 = vst [vmem:[%s6292_s21 + $0x38] sm:$0xff] %v1313_v29  ;;  %v1331_v37 = vmul.f32 %v5470_v32, %v6358_v2  ;;  %v1342_v38 = vor.u32 1.1754944e-38, %v1341_v24  ;;  %vm1350_vm3 = vweird.f32 %v6384_v21  ;;  %v1369_v35 = vand.u32 2147483647, %v6388_v25  ;;  %v188_v29 = vld [vmem:[%s6175_s28 + $0x90] sm:$0xff] }
  0x5b   : > { %v1317_v39 = vsub.f32 1.0, %v1316_v33  ;;  %vm1321_vm4 = vweird.f32 %v5468_v27  ;;  %vm1365_vm5 = vweird.f32 %v6388_v25  ;;  %v6415_v40 = vadd.f32 1.0, %v695_v26 }
  0x5c   : > { %v1332_v41 = vsub.f32 1.0, %v1331_v37  ;;  %vm1336_vm6 = vweird.f32 %v5470_v32  ;;  %vm6417_vm7 = vcmp.eq.f32.partialorder %v1354_v31, 8.507059e+37  ;;  %v696_v43 = vmul.f32 %v6187_v9, %v439_v17  ;;  %vm6426_vm9 = vmor %vm1320_vm0, %vm1321_vm4 }
  0x5d   : > { %v5472_v44 = vpop.eup %5471  ;;  %v1318_v45 = vmul.f32 %v5468_v27, %v1317_v39  ;;  %v1357_v46 = vor.u32 1.1754944e-38, %v1356_v36  ;;  %5475 = vrcp.f32 %v6415_v40  ;;  %v697_v47 = vmul.f32 %v6187_v9, %v440_v22  ;;  %vm6439_vm11 = vmor %vm1335_vm1, %vm1336_vm6 }
  0x5e   : > { %v5474_v48 = vpop.eup %5473  ;;  %v1333_v50 = vmul.f32 %v5470_v32, %v1332_v41  ;;  %v1346_v51 = vmul.f32 %v5472_v44, %v6384_v21  ;;  %vm6431_vm10 = vcmp.eq.f32.partialorder %v1369_v35, 8.507059e+37  ;;  %v1371_v53 = vand.u32 2147483648, %v6388_v25 }
  0x5f   : > { %v1319_v54 = vadd.f32 %v5468_v27, %v1318_v45  ;;  %vm1351_vm12 = vweird.f32 %v5472_v44  ;;  %v1361_v56 = vmul.f32 %v5474_v48, %v6388_v25  ;;  %v1384_v57 = vand.u32 2147483647, %v6415_v40 }
  0x60   : > { %v1334_v58 = vadd.f32 %v5470_v32, %v1333_v50  ;;  %v1347_v59 = vsub.f32 1.0, %v1346_v51  ;;  %vm1366_vm13 = vweird.f32 %v5474_v48  ;;  %v6445_v60 = vadd.f32 1.0, %v696_v43  ;;  %vm6465_vm14 = vmor %vm1350_vm3, %vm1351_vm12 }
  0x61   : > { %v1323_v63 = vsel %vm6426_vm9, %v5468_v27, %v1319_v54  ;;  %v1362_v1 = vsub.f32 1.0, %v1361_v56  ;;  %v1386_v2 = vand.u32 2147483648, %v6415_v40  ;;  %v6452_v3 = vadd.f32 1.0, %v697_v47  ;;  %vm6473_vm15 = vmor %vm1365_vm5, %vm1366_vm13 }
  0x62   : > { %v1328_v5 = vsel %vm6392_vm8, %v1327_v30, %v1323_v63  ;;  %v1338_v6 = vsel %vm6439_vm11, %v5470_v32, %v1334_v58  ;;  %v1348_v7 = vmul.f32 %v5472_v44, %v1347_v59  ;;  %5477 = vrcp.f32 %v6445_v60  ;;  %v187_v32 = vld [vmem:[%s6175_s28 + $0x88] sm:$0xff]  ;;  %v190_v63 = vld [vmem:[%s6175_s28 + $0xa0] sm:$0xff] }
  0x63   : > { %v5476_v8 = vpop.eup %5475  ;;  %5043 = vst [vmem:[%s6292_s21 + $0x40] sm:$0xff] %v1328_v5  ;;  %v1343_v10 = vsel %vm6405_vm2, %v1342_v38, %v1338_v6  ;;  %v1363_v0 = vmul.f32 %v5474_v48, %v1362_v1  ;;  %v441_v12 = vmul.f32 %v185_v61, %v185_v61  ;;  %v442_v13 = vmul.f32 %v186_v62, %v186_v62  ;;  %v189_v62 = vld [vmem:[%s6175_s28 + $0x98] sm:$0xff] }
  0x64   : > { %5044 = vst [vmem:[%s6292_s21 + $0x48] sm:$0xff] %v1343_v10  ;;  %v1349_v14 = vadd.f32 %v5472_v44, %v1348_v7  ;;  %v1372_v16 = vor.u32 1.1754944e-38, %v1371_v53  ;;  %v1376_v17 = vmul.f32 %v5476_v8, %v6415_v40  ;;  %vm1380_vm0 = vweird.f32 %v6415_v40 }
  0x65   : > { %v1364_v18 = vadd.f32 %v5474_v48, %v1363_v0  ;;  %vm6479_vm8 = vcmp.eq.f32.partialorder %v1384_v57, 8.507059e+37  ;;  %v1399_v20 = vand.u32 2147483647, %v6445_v60  ;;  %5479 = vrcp.f32 %v6452_v3 }
  0x66   : > { %v1353_v21 = vsel %vm6465_vm14, %v5472_v44, %v1349_v14  ;;  %v1377_v22 = vsub.f32 1.0, %v1376_v17  ;;  %vm1381_vm1 = vweird.f32 %v5476_v8  ;;  %v1387_v23 = vor.u32 1.1754944e-38, %v1386_v2 }
  0x67   : > { %v1358_v24 = vsel %vm6417_vm7, %v1357_v46, %v1353_v21  ;;  %v1368_v25 = vsel %vm6473_vm15, %v5474_v48, %v1364_v18  ;;  %vm1395_vm2 = vweird.f32 %v6445_v60  ;;  %v698_v26 = vmul.f32 %v6187_v9, %v441_v12  ;;  %vm6504_vm3 = vmor %vm1380_vm0, %vm1381_vm1 }
  0x68   : > { %v5478_v4 = vpop.eup %5477  ;;  %5045 = vst [vmem:[%s6292_s21 + $0x50] sm:$0xff] %v1358_v24  ;;  %v1373_v27 = vsel %vm6431_vm10, %v1372_v16, %v1368_v25  ;;  %v1378_v28 = vmul.f32 %v5476_v8, %v1377_v22  ;;  %v1401_v30 = vand.u32 2147483648, %v6445_v60  ;;  %v699_v31 = vmul.f32 %v6187_v9, %v442_v13 }
  0x69   : > { %5046 = vst [vmem:[%s6292_s21 + $0x58] sm:$0xff] %v1373_v27  ;;  %v1391_v34 = vmul.f32 %v5478_v4, %v6445_v60  ;;  %vm6509_vm4 = vcmp.eq.f32.partialorder %v1399_v20, 8.507059e+37  ;;  %v1414_v37 = vand.u32 2147483647, %v6452_v3  ;;  %v6514_v38 = vadd.f32 1.0, %v698_v26 }
  0x6a   : > { %v1379_v35 = vadd.f32 %v5476_v8, %v1378_v28  ;;  %vm1396_vm5 = vweird.f32 %v5478_v4  ;;  %v1416_v39 = vand.u32 2147483648, %v6452_v3  ;;  %v6517_v40 = vadd.f32 1.0, %v699_v31  ;;  %v192_v28 = vld [vmem:[%s6175_s28 + $0xb0] sm:$0xff] }
  0x6b   : > { %v5480_v41 = vpop.eup %5479  ;;  %v1392_v42 = vsub.f32 1.0, %v1391_v34  ;;  %5481 = vrcp.f32 %v6514_v38  ;;  %v443_v43 = vmul.f32 %v187_v32, %v187_v32  ;;  %v444_v44 = vmul.f32 %v188_v29, %v188_v29  ;;  %vm6533_vm7 = vmor %vm1395_vm2, %vm1396_vm5  ;;  %v196_v34 = vld [vmem:[%s6175_s28 + $0xd0] sm:$0xff] }
  0x6c   : > { %v1383_v45 = vsel %vm6504_vm3, %v5476_v8, %v1379_v35  ;;  %v1406_v46 = vmul.f32 %v5480_v41, %v6452_v3  ;;  %v1429_v47 = vand.u32 2147483647, %v6514_v38  ;;  %v1431_v48 = vand.u32 2147483648, %v6514_v38 }
  0x6d   : > { %v1388_v49 = vsel %vm6479_vm8, %v1387_v23, %v1383_v45  ;;  %v1393_v50 = vmul.f32 %v5478_v4, %v1392_v42  ;;  %vm1410_vm6 = vweird.f32 %v6452_v3  ;;  %5483 = vrcp.f32 %v6517_v40 }
  0x6e   : > { %5047 = vst [vmem:[%s6292_s21 + $0x60] sm:$0xff] %v1388_v49  ;;  %v1402_v52 = vor.u32 1.1754944e-38, %v1401_v30  ;;  %v1407_v53 = vsub.f32 1.0, %v1406_v46  ;;  %vm1411_vm9 = vweird.f32 %v5480_v41  ;;  %vm6537_vm10 = vcmp.eq.f32.partialorder %v1414_v37, 8.507059e+37 }
  0x6f   : > { %v1394_v55 = vadd.f32 %v5478_v4, %v1393_v50  ;;  %v1417_v56 = vor.u32 1.1754944e-38, %v1416_v39  ;;  %v700_v57 = vmul.f32 %v6187_v9, %v443_v43  ;;  %v701_v58 = vmul.f32 %v6187_v9, %v444_v44  ;;  %vm6554_vm13 = vmor %vm1410_vm6, %vm1411_vm9 }
  0x70   : > { %v1408_v59 = vmul.f32 %v5480_v41, %v1407_v53  ;;  %vm1425_vm11 = vweird.f32 %v6514_v38  ;;  %vm6544_vm12 = vcmp.eq.f32.partialorder %v1429_v47, 8.507059e+37  ;;  %v1432_v61 = vor.u32 1.1754944e-38, %v1431_v48 }
  0x71   : > { %v5482_v1 = vpop.eup %5481  ;;  %v1398_v2 = vsel %vm6533_vm7, %v5478_v4, %v1394_v55  ;;  %v1444_v6 = vand.u32 2147483647, %v6517_v40  ;;  %v6559_v7 = vadd.f32 1.0, %v700_v57  ;;  %v6561_v8 = vadd.f32 1.0, %v701_v58 }
  0x72   : > { %v1403_v10 = vsel %vm6509_vm4, %v1402_v52, %v1398_v2  ;;  %v1409_v11 = vadd.f32 %v5480_v41, %v1408_v59  ;;  %v1421_v0 = vmul.f32 %v5482_v1, %v6514_v38  ;;  %v1446_v12 = vand.u32 2147483648, %v6517_v40 }
  0x73   : > { %v5484_v3 = vpop.eup %5483  ;;  %5048 = vst [vmem:[%s6292_s21 + $0x68] sm:$0xff] %v1403_v10  ;;  %vm1426_vm14 = vweird.f32 %v5482_v1  ;;  %5485 = vrcp.f32 %v6559_v7  ;;  %v445_v13 = vmul.f32 %v189_v62, %v189_v62  ;;  %v446_v14 = vmul.f32 %v190_v63, %v190_v63  ;;  %v193_v63 = vld [vmem:[%s6175_s28 + $0xb8] sm:$0xff] }
  0x74   : > { %v1413_v15 = vsel %vm6554_vm13, %v5480_v41, %v1409_v11  ;;  %v1422_v16 = vsub.f32 1.0, %v1421_v0  ;;  %v1436_v17 = vmul.f32 %v5484_v3, %v6517_v40  ;;  %v1459_v18 = vand.u32 2147483647, %v6559_v7  ;;  %vm6586_vm1 = vmor %vm1425_vm11, %vm1426_vm14 }
  0x75   : > { %v1418_v20 = vsel %vm6537_vm10, %v1417_v56, %v1413_v15  ;;  %vm1440_vm15 = vweird.f32 %v6517_v40  ;;  %vm6577_vm0 = vcmp.eq.f32.partialorder %v1444_v6, 8.507059e+37  ;;  %5487 = vrcp.f32 %v6561_v8 }
  0x76   : > { %5049 = vst [vmem:[%s6292_s21 + $0x70] sm:$0xff] %v1418_v20  ;;  %v1423_v22 = vmul.f32 %v5482_v1, %v1422_v16  ;;  %v1437_v23 = vsub.f32 1.0, %v1436_v17  ;;  %vm1441_vm8 = vweird.f32 %v5484_v3  ;;  %v1447_v24 = vor.u32 1.1754944e-38, %v1446_v12 }
  0x77   : > { %vm1455_vm2 = vweird.f32 %v6559_v7  ;;  %v702_v26 = vmul.f32 %v6187_v9, %v445_v13  ;;  %v703_v4 = vmul.f32 %v6187_v9, %v446_v14  ;;  %v447_v27 = vmul.f32 %v191_v19, %v191_v19  ;;  %vm6601_vm4 = vmor %vm1440_vm15, %vm1441_vm8  ;;  %v195_v19 = vld [vmem:[%s6175_s28 + $0xc8] sm:$0xff] }
  0x78   : > { %v1424_v30 = vadd.f32 %v5482_v1, %v1423_v22  ;;  %v1438_v31 = vmul.f32 %v5484_v3, %v1437_v23  ;;  %vm6594_vm3 = vcmp.eq.f32.partialorder %v1459_v18, 8.507059e+37  ;;  %v1461_v29 = vand.u32 2147483648, %v6559_v7  ;;  %v194_v18 = vld [vmem:[%s6175_s28 + $0xc0] sm:$0xff] }
  0x79   : > { %v5486_v33 = vpop.eup %5485  ;;  %v1474_v36 = vand.u32 2147483647, %v6561_v8  ;;  %v1476_v37 = vand.u32 2147483648, %v6561_v8  ;;  %v6607_v38 = vadd.f32 1.0, %v702_v26  ;;  %v6609_v35 = vadd.f32 1.0, %v703_v4 }
  0x7a   : > { %v1428_v39 = vsel %vm6586_vm1, %v5482_v1, %v1424_v30  ;;  %v1439_v41 = vadd.f32 %v5484_v3, %v1438_v31  ;;  %v1451_v42 = vmul.f32 %v5486_v33, %v6559_v7  ;;  %v448_v40 = vmul.f32 %v192_v28, %v192_v28 }
  0x7b   : > { %v5488_v43 = vpop.eup %5487  ;;  %v1433_v44 = vsel %vm6544_vm12, %v1432_v61, %v1428_v39  ;;  %vm1456_vm5 = vweird.f32 %v5486_v33  ;;  %5489 = vrcp.f32 %v6607_v38  ;;  %v704_v45 = vmul.f32 %v6187_v9, %v447_v27 }
  0x7c   : > { %5050 = vst [vmem:[%s6292_s21 + $0x78] sm:$0xff] %v1433_v44  ;;  %v1443_v46 = vsel %vm6601_vm4, %v5484_v3, %v1439_v41  ;;  %v1452_v47 = vsub.f32 1.0, %v1451_v42  ;;  %v1466_v48 = vmul.f32 %v5488_v43, %v6561_v8  ;;  %v1489_v49 = vand.u32 2147483647, %v6607_v38  ;;  %vm6632_vm9 = vmor %vm1455_vm2, %vm1456_vm5 }
  0x7d   : > { %v1448_v50 = vsel %vm6577_vm0, %v1447_v24, %v1443_v46  ;;  %v1462_v51 = vor.u32 1.1754944e-38, %v1461_v29  ;;  %v1491_v52 = vand.u32 2147483648, %v6607_v38  ;;  %5491 = vrcp.f32 %v6609_v35 }
  0x7e   : > { %5051 = vst [vmem:[%s6292_s21 + $0x80] sm:$0xff] %v1448_v50  ;;  %v1453_v53 = vmul.f32 %v5486_v33, %v1452_v47  ;;  %v1467_v54 = vsub.f32 1.0, %v1466_v48  ;;  %vm1470_vm6 = vweird.f32 %v6561_v8  ;;  %vm1471_vm7 = vweird.f32 %v5488_v43 }
  0x7f   : > { %vm6636_vm10 = vcmp.eq.f32.partialorder %v1474_v36, 8.507059e+37  ;;  %v1477_v57 = vor.u32 1.1754944e-38, %v1476_v37  ;;  %v6640_v58 = vadd.f32 1.0, %v704_v45  ;;  %v705_v59 = vmul.f32 %v6187_v9, %v448_v40  ;;  %vm6649_vm13 = vmor %vm1470_vm6, %vm1471_vm7 }
  0x80   : > { %v1454_v60 = vadd.f32 %v5486_v33, %v1453_v53  ;;  %v1468_v61 = vmul.f32 %v5488_v43, %v1467_v54  ;;  %vm1485_vm11 = vweird.f32 %v6607_v38  ;;  %vm6644_vm12 = vcmp.eq.f32.partialorder %v1489_v49, 8.507059e+37 }
  0x81   : > { %v5490_v1 = vpop.eup %5489  ;;  %v1492_v5 = vor.u32 1.1754944e-38, %v1491_v52  ;;  %vm1500_vm14 = vweird.f32 %v6609_v35  ;;  %v1504_v6 = vand.u32 2147483647, %v6609_v35  ;;  %5493 = vrcp.f32 %v6640_v58 }
  0x82   : > { %v1458_v7 = vsel %vm6632_vm9, %v5486_v33, %v1454_v60  ;;  %v1469_v8 = vadd.f32 %v5488_v43, %v1468_v61  ;;  %v1481_v10 = vmul.f32 %v5490_v1, %v6607_v38  ;;  %v1506_v11 = vand.u32 2147483648, %v6609_v35 }
  0x83   : > { %v5492_v0 = vpop.eup %5491  ;;  %v1463_v12 = vsel %vm6594_vm3, %v1462_v51, %v1458_v7  ;;  %v1519_v3 = vand.u32 2147483647, %v6640_v58  ;;  %v6663_v13 = vadd.f32 1.0, %v705_v59  ;;  %v449_v14 = vmul.f32 %v193_v63, %v193_v63  ;;  %v197_v63 = vld [vmem:[%s6175_s28 + $0xd8] sm:$0xff] }
  0x84   : > { %5052 = vst [vmem:[%s6292_s21 + $0x88] sm:$0xff] %v1463_v12  ;;  %v1473_v15 = vsel %vm6649_vm13, %v5488_v43, %v1469_v8  ;;  %v1482_v16 = vsub.f32 1.0, %v1481_v10  ;;  %vm1486_vm15 = vweird.f32 %v5490_v1  ;;  %v1496_v17 = vmul.f32 %v5492_v0, %v6609_v35  ;;  %v198_v8 = vld [vmem:[%s6175_s28 + $0xe0] sm:$0xff] }
  0x85   : > { %v1478_v20 = vsel %vm6636_vm10, %v1477_v57, %v1473_v15  ;;  %vm6673_vm0 = vcmp.eq.f32.partialorder %v1504_v6, 8.507059e+37  ;;  %v1521_v22 = vand.u32 2147483648, %v6640_v58  ;;  %5495 = vrcp.f32 %v6663_v13  ;;  %vm6682_vm1 = vmor %vm1485_vm11, %vm1486_vm15 }
  0x86   : > { %5053 = vst [vmem:[%s6292_s21 + $0x90] sm:$0xff] %v1478_v20  ;;  %v1483_v23 = vmul.f32 %v5490_v1, %v1482_v16  ;;  %v1497_v24 = vsub.f32 1.0, %v1496_v17  ;;  %vm1501_vm8 = vweird.f32 %v5492_v0  ;;  %v1507_v25 = vor.u32 1.1754944e-38, %v1506_v11 }
  0x87   : > { %v5494_v26 = vpop.eup %5493  ;;  %vm1515_vm2 = vweird.f32 %v6640_v58  ;;  %v706_v27 = vmul.f32 %v6187_v9, %v449_v14  ;;  %v450_v28 = vmul.f32 %v194_v18, %v194_v18  ;;  %v451_v30 = vmul.f32 %v195_v19, %v195_v19  ;;  %vm6696_vm4 = vmor %vm1500_vm14, %vm1501_vm8  ;;  %v199_v18 = vld [vmem:[%s6175_s28 + $0xe8] sm:$0xff] }
  0x88   : > { %v1484_v31 = vadd.f32 %v5490_v1, %v1483_v23  ;;  %v1498_v32 = vmul.f32 %v5492_v0, %v1497_v24  ;;  %v1511_v29 = vmul.f32 %v5494_v26, %v6640_v58  ;;  %vm6689_vm3 = vcmp.eq.f32.partialorder %v1519_v3, 8.507059e+37 }
  0x89   : > { %vm1516_vm5 = vweird.f32 %v5494_v26  ;;  %v1522_v37 = vor.u32 1.1754944e-38, %v1521_v22  ;;  %v6700_v38 = vadd.f32 1.0, %v706_v27  ;;  %v707_v39 = vmul.f32 %v6187_v9, %v450_v28 }
  0x8a   : > { %v1488_v41 = vsel %vm6682_vm1, %v5490_v1, %v1484_v31  ;;  %v1499_v42 = vadd.f32 %v5492_v0, %v1498_v32  ;;  %v1512_v40 = vsub.f32 1.0, %v1511_v29  ;;  %v708_v43 = vmul.f32 %v6187_v9, %v451_v30  ;;  %vm6720_vm7 = vmor %vm1515_vm2, %vm1516_vm5 }
  0x8b   : > { %v5496_v44 = vpop.eup %5495  ;;  %v1493_v35 = vsel %vm6644_vm12, %v1492_v5, %v1488_v41  ;;  %vm1530_vm6 = vweird.f32 %v6663_v13  ;;  %5497 = vrcp.f32 %v6700_v38  ;;  %v452_v45 = vmul.f32 %v196_v34, %v196_v34 }
  0x8c   : > { %5054 = vst [vmem:[%s6292_s21 + $0x98] sm:$0xff] %v1493_v35  ;;  %v1503_v46 = vsel %vm6696_vm4, %v5492_v0, %v1499_v42  ;;  %v1513_v47 = vmul.f32 %v5494_v26, %v1512_v40  ;;  %v1526_v48 = vmul.f32 %v5496_v44, %v6663_v13  ;;  %v1534_v49 = vand.u32 2147483647, %v6663_v13  ;;  %v200_v40 = vld [vmem:[%s6175_s28 + $0xf0] sm:$0xff] }
  0x8d   : > { %v1508_v50 = vsel %vm6673_vm0, %v1507_v25, %v1503_v46  ;;  %v1536_v52 = vand.u32 2147483648, %v6663_v13  ;;  %v1549_v53 = vand.u32 2147483647, %v6700_v38  ;;  %v6726_v54 = vadd.f32 1.0, %v707_v39 }
  0x8e   : > { %5055 = vst [vmem:[%s6292_s21 + $0xa0] sm:$0xff] %v1508_v50  ;;  %v1514_v55 = vadd.f32 %v5494_v26, %v1513_v47  ;;  %v1527_v56 = vsub.f32 1.0, %v1526_v48  ;;  %vm1531_vm9 = vweird.f32 %v5496_v44  ;;  %v6729_v57 = vadd.f32 1.0, %v708_v43 }
  0x8f   : > { %v1551_v58 = vand.u32 2147483648, %v6700_v38  ;;  %5499 = vrcp.f32 %v6726_v54  ;;  %v709_v59 = vmul.f32 %v6187_v9, %v452_v45  ;;  %vm6736_vm10 = vcmp.eq.f32.partialorder %v1534_v49, 8.507059e+37  ;;  %vm6746_vm11 = vmor %vm1530_vm6, %vm1531_vm9 }
  0x90   : > { %v1518_v60 = vsel %vm6720_vm7, %v5494_v26, %v1514_v55  ;;  %v1528_v61 = vmul.f32 %v5496_v44, %v1527_v56  ;;  %5501 = vrcp.f32 %v6729_v57  ;;  %v1537_v6 = vor.u32 1.1754944e-38, %v1536_v52 }
  0x91   : > { %v5498_v1 = vpop.eup %5497  ;;  %v1523_v2 = vsel %vm6689_vm3, %v1522_v37, %v1518_v60  ;;  %vm1545_vm12 = vweird.f32 %v6700_v38  ;;  %v1564_v7 = vand.u32 2147483647, %v6726_v54  ;;  %vm6755_vm13 = vcmp.eq.f32.partialorder %v1549_v53, 8.507059e+37 }
  0x92   : > { %5056 = vst [vmem:[%s6292_s21 + $0xa8] sm:$0xff] %v1523_v2  ;;  %v1529_v10 = vadd.f32 %v5496_v44, %v1528_v61  ;;  %v1541_v11 = vmul.f32 %v5498_v1, %v6700_v38  ;;  %v1566_v12 = vand.u32 2147483648, %v6726_v54  ;;  %v1552_v3 = vor.u32 1.1754944e-38, %v1551_v58  ;;  %v202_v2 = vld [vmem:[%s6175_s28 + $0x100] sm:$0xff] }
  0x93   : > { %vm1560_vm14 = vweird.f32 %v6726_v54  ;;  %v6761_v13 = vadd.f32 1.0, %v709_v59  ;;  %v453_v14 = vmul.f32 %v197_v63, %v197_v63  ;;  %vm1546_vm15 = vweird.f32 %v5498_v1 }
  0x94   : > { %v1533_v15 = vsel %vm6746_vm11, %v5496_v44, %v1529_v10  ;;  %v1542_v16 = vsub.f32 1.0, %v1541_v11  ;;  %v454_v17 = vmul.f32 %v198_v8, %v198_v8  ;;  %vm6768_vm0 = vcmp.eq.f32.partialorder %v1564_v7, 8.507059e+37  ;;  %vm6779_vm1 = vmor %vm1545_vm12, %vm1546_vm15 }
  0x95   : > { %v5500_v19 = vpop.eup %5499  ;;  %v1538_v20 = vsel %vm6736_vm10, %v1537_v6, %v1533_v15  ;;  %v1579_v22 = vand.u32 2147483647, %v6729_v57  ;;  %5503 = vrcp.f32 %v6761_v13  ;;  %v1567_v26 = vor.u32 1.1754944e-38, %v1566_v12 }
  0x96   : > { %v5502_v23 = vpop.eup %5501  ;;  %5057 = vst [vmem:[%s6292_s21 + $0xb0] sm:$0xff] %v1538_v20  ;;  %v1543_v24 = vmul.f32 %v5498_v1, %v1542_v16  ;;  %v1556_v25 = vmul.f32 %v5500_v19, %v6726_v54  ;;  %vm1575_vm8 = vweird.f32 %v6729_v57  ;;  %v1581_v28 = vand.u32 2147483648, %v6729_v57  ;;  %v203_v20 = vld [vmem:[%s6175_s28 + $0x108] sm:$0xff] }
  0x97   : > { %v1571_v27 = vmul.f32 %v5502_v23, %v6729_v57  ;;  %v710_v30 = vmul.f32 %v6187_v9, %v453_v14  ;;  %v455_v31 = vmul.f32 %v199_v18, %v199_v18  ;;  %vm1561_vm2 = vweird.f32 %v5500_v19 }
  0x98   : > { %v1544_v32 = vadd.f32 %v5498_v1, %v1543_v24  ;;  %v1557_v29 = vsub.f32 1.0, %v1556_v25  ;;  %v711_v33 = vmul.f32 %v6187_v9, %v454_v17  ;;  %vm1576_vm3 = vweird.f32 %v5502_v23  ;;  %vm6803_vm5 = vmor %vm1560_vm14, %vm1561_vm2 }
  0x99   : > { %v1572_v34 = vsub.f32 1.0, %v1571_v27  ;;  %vm6787_vm4 = vcmp.eq.f32.partialorder %v1579_v22, 8.507059e+37  ;;  %v6791_v37 = vadd.f32 1.0, %v710_v30  ;;  %v1594_v41 = vand.u32 2147483647, %v6761_v13  ;;  %vm6813_vm6 = vmor %vm1575_vm8, %vm1576_vm3 }
  0x9a   : > { %v1548_v38 = vsel %vm6779_vm1, %v5498_v1, %v1544_v32  ;;  %v1558_v39 = vmul.f32 %v5500_v19, %v1557_v29  ;;  %v6796_v42 = vadd.f32 1.0, %v711_v33  ;;  %v1596_v46 = vand.u32 2147483648, %v6761_v13  ;;  %v201_v1 = vld [vmem:[%s6175_s28 + $0xf8] sm:$0xff] }
  0x9b   : > { %v5504_v43 = vpop.eup %5503  ;;  %v1553_v44 = vsel %vm6755_vm13, %v1552_v3, %v1548_v38  ;;  %v1573_v45 = vmul.f32 %v5502_v23, %v1572_v34  ;;  %5505 = vrcp.f32 %v6791_v37  ;;  %v1582_v49 = vor.u32 1.1754944e-38, %v1581_v28 }
  0x9c   : > { %5058 = vst [vmem:[%s6292_s21 + $0xb8] sm:$0xff] %v1553_v44  ;;  %v1559_v47 = vadd.f32 %v5500_v19, %v1558_v39  ;;  %v1586_v50 = vmul.f32 %v5504_v43, %v6761_v13  ;;  %v712_v51 = vmul.f32 %v6187_v9, %v455_v31  ;;  %vm1590_vm7 = vweird.f32 %v6761_v13 }
  0x9d   : > { %v1574_v52 = vadd.f32 %v5502_v23, %v1573_v45  ;;  %5507 = vrcp.f32 %v6796_v42  ;;  %v456_v53 = vmul.f32 %v200_v40, %v200_v40  ;;  %vm1591_vm9 = vweird.f32 %v5504_v43  ;;  %v204_v40 = vld [vmem:[%s6175_s28 + $0x110] sm:$0xff] }
  0x9e   : > { %v1563_v54 = vsel %vm6803_vm5, %v5500_v19, %v1559_v47  ;;  %v1587_v55 = vsub.f32 1.0, %v1586_v50  ;;  %vm6823_vm10 = vcmp.eq.f32.partialorder %v1594_v41, 8.507059e+37  ;;  %v1597_v59 = vor.u32 1.1754944e-38, %v1596_v46  ;;  %vm6844_vm12 = vmor %vm1590_vm7, %vm1591_vm9 }
  0x9f   : > { %v1568_v57 = vsel %vm6768_vm0, %v1567_v26, %v1563_v54  ;;  %v1578_v58 = vsel %vm6813_vm6, %v5502_v23, %v1574_v52  ;;  %v1609_v60 = vand.u32 2147483647, %v6791_v37  ;;  %vm1605_vm11 = vweird.f32 %v6791_v37 }
  0xa0   : > { %5059 = vst [vmem:[%s6292_s21 + $0xc0] sm:$0xff] %v1568_v57  ;;  %v1583_v61 = vsel %vm6787_vm4, %v1582_v49, %v1578_v58  ;;  %v1588_v62 = vmul.f32 %v5504_v43, %v1587_v55  ;;  %v6836_v63 = vadd.f32 1.0, %v712_v51  ;;  %v1611_v7 = vand.u32 2147483648, %v6791_v37  ;;  %v205_v55 = vld [vmem:[%s6175_s28 + $0x118] sm:$0xff] }
  0xa1   : > { %v5506_v5 = vpop.eup %5505  ;;  %5060 = vst [vmem:[%s6292_s21 + $0xc8] sm:$0xff] %v1583_v61  ;;  %vm1620_vm13 = vweird.f32 %v6796_v42  ;;  %v1624_v8 = vand.u32 2147483647, %v6796_v42  ;;  %v713_v10 = vmul.f32 %v6187_v9, %v456_v53  ;;  %v1626_v12 = vand.u32 2147483648, %v6796_v42 }
  0xa2   : > { %v1589_v11 = vadd.f32 %v5504_v43, %v1588_v62  ;;  %v1601_v0 = vmul.f32 %v5506_v5, %v6791_v37  ;;  %5509 = vrcp.f32 %v6836_v63  ;;  %vm6855_vm14 = vcmp.eq.f32.partialorder %v1609_v60, 8.507059e+37 }
  0xa3   : > { %v5508_v3 = vpop.eup %5507  ;;  %v6859_v14 = vadd.f32 1.0, %v713_v10  ;;  %v457_v15 = vmul.f32 %v201_v1, %v201_v1  ;;  %v458_v16 = vmul.f32 %v202_v2, %v202_v2  ;;  %vm1606_vm15 = vweird.f32 %v5506_v5 }
  0xa4   : > { %v1593_v17 = vsel %vm6844_vm12, %v5504_v43, %v1589_v11  ;;  %v1602_v18 = vsub.f32 1.0, %v1601_v0  ;;  %v1616_v19 = vmul.f32 %v5508_v3, %v6796_v42  ;;  %v1612_v22 = vor.u32 1.1754944e-38, %v1611_v7  ;;  %vm6875_vm1 = vmor %vm1605_vm11, %vm1606_vm15  ;;  %v209_v7 = vld [vmem:[%s6175_s28 + $0x138] sm:$0xff] }
  0xa5   : > { %v1598_v21 = vsel %vm6823_vm10, %v1597_v59, %v1593_v17  ;;  %vm6867_vm0 = vcmp.eq.f32.partialorder %v1624_v8, 8.507059e+37  ;;  %5511 = vrcp.f32 %v6859_v14  ;;  %vm1621_vm8 = vweird.f32 %v5508_v3  ;;  %v210_v8 = vld [vmem:[%s6175_s28 + $0x140] sm:$0xff] }
  0xa6   : > { %5061 = vst [vmem:[%s6292_s21 + $0xd0] sm:$0xff] %v1598_v21  ;;  %v1603_v24 = vmul.f32 %v5506_v5, %v1602_v18  ;;  %v1617_v25 = vsub.f32 1.0, %v1616_v19  ;;  %v1627_v26 = vor.u32 1.1754944e-38, %v1626_v12  ;;  %vm1635_vm2 = vweird.f32 %v6836_v63  ;;  %vm6886_vm3 = vmor %vm1620_vm13, %vm1621_vm8  ;;  %v207_v21 = vld [vmem:[%s6175_s28 + $0x128] sm:$0xff] }
  0xa7   : > { %v714_v27 = vmul.f32 %v6187_v9, %v457_v15  ;;  %v715_v28 = vmul.f32 %v6187_v9, %v458_v16  ;;  %v459_v30 = vmul.f32 %v203_v20, %v203_v20  ;;  %v1639_v33 = vand.u32 2147483647, %v6836_v63  ;;  %v206_v20 = vld [vmem:[%s6175_s28 + $0x120] sm:$0xff] }
  0xa8   : > { %v5510_v31 = vpop.eup %5509  ;;  %v1604_v32 = vadd.f32 %v5506_v5, %v1603_v24  ;;  %v1618_v29 = vmul.f32 %v5508_v3, %v1617_v25  ;;  %v1641_v34 = vand.u32 2147483648, %v6836_v63  ;;  %v1654_v38 = vand.u32 2147483647, %v6859_v14 }
  0xa9   : > { %v1631_v37 = vmul.f32 %v5510_v31, %v6836_v63  ;;  %v1656_v39 = vand.u32 2147483648, %v6859_v14  ;;  %v6893_v41 = vadd.f32 1.0, %v714_v27  ;;  %vm1636_vm4 = vweird.f32 %v5510_v31 }
  0xaa   : > { %v1608_v43 = vsel %vm6875_vm1, %v5506_v5, %v1604_v32  ;;  %v1619_v44 = vadd.f32 %v5508_v3, %v1618_v29  ;;  %v6898_v42 = vadd.f32 1.0, %v715_v28  ;;  %v716_v47 = vmul.f32 %v6187_v9, %v459_v30  ;;  %vm6921_vm6 = vmor %vm1635_vm2, %vm1636_vm4 }
  0xab   : > { %v5512_v35 = vpop.eup %5511  ;;  %v1613_v45 = vsel %vm6855_vm14, %v1612_v22, %v1608_v43  ;;  %v1632_v46 = vsub.f32 1.0, %v1631_v37  ;;  %5513 = vrcp.f32 %v6893_v41  ;;  %vm6907_vm5 = vcmp.eq.f32.partialorder %v1639_v33, 8.507059e+37 }
  0xac   : > { %5062 = vst [vmem:[%s6292_s21 + $0xd8] sm:$0xff] %v1613_v45  ;;  %v1623_v48 = vsel %vm6886_vm3, %v5508_v3, %v1619_v44  ;;  %v1646_v50 = vmul.f32 %v5512_v35, %v6859_v14  ;;  %v460_v51 = vmul.f32 %v204_v40, %v204_v40  ;;  %v1669_v54 = vand.u32 2147483647, %v6893_v41 }
  0xad   : > { %v1628_v52 = vsel %vm6867_vm0, %v1627_v26, %v1623_v48  ;;  %v1633_v53 = vmul.f32 %v5510_v31, %v1632_v46  ;;  %5515 = vrcp.f32 %v6898_v42  ;;  %v1642_v57 = vor.u32 1.1754944e-38, %v1641_v34 }
  0xae   : > { %5063 = vst [vmem:[%s6292_s21 + $0xe0] sm:$0xff] %v1628_v52  ;;  %v1647_v58 = vsub.f32 1.0, %v1646_v50  ;;  %vm1650_vm7 = vweird.f32 %v6859_v14  ;;  %vm1651_vm9 = vweird.f32 %v5512_v35  ;;  %vm6926_vm10 = vcmp.eq.f32.partialorder %v1654_v38, 8.507059e+37  ;;  %v208_v52 = vld [vmem:[%s6175_s28 + $0x130] sm:$0xff] }
  0xaf   : > { %v1634_v59 = vadd.f32 %v5510_v31, %v1633_v53  ;;  %v1657_v61 = vor.u32 1.1754944e-38, %v1656_v39  ;;  %v6930_v62 = vadd.f32 1.0, %v716_v47  ;;  %vm1665_vm11 = vweird.f32 %v6893_v41  ;;  %vm6936_vm12 = vmor %vm1650_vm7, %vm1651_vm9 }
  0xb0   : > { %v1648_v1 = vmul.f32 %v5512_v35, %v1647_v58  ;;  %v717_v63 = vmul.f32 %v6187_v9, %v460_v51  ;;  %v461_v2 = vmul.f32 %v205_v55, %v205_v55  ;;  %vm6940_vm13 = vcmp.eq.f32.partialorder %v1669_v54, 8.507059e+37 }
  0xb1   : > { %v5514_v5 = vpop.eup %5513  ;;  %v1638_v6 = vsel %vm6921_vm6, %v5510_v31, %v1634_v59  ;;  %v1671_v10 = vand.u32 2147483648, %v6893_v41  ;;  %5517 = vrcp.f32 %v6930_v62  ;;  %vm1680_vm14 = vweird.f32 %v6898_v42 }
  0xb2   : > { %v1643_v11 = vsel %vm6907_vm5, %v1642_v57, %v1638_v6  ;;  %v1649_v0 = vadd.f32 %v5512_v35, %v1648_v1  ;;  %v1661_v12 = vmul.f32 %v5514_v5, %v6893_v41  ;;  %v1684_v13 = vand.u32 2147483647, %v6898_v42 }
  0xb3   : > { %v5516_v3 = vpop.eup %5515  ;;  %5064 = vst [vmem:[%s6292_s21 + $0xe8] sm:$0xff] %v1643_v11  ;;  %v1686_v14 = vand.u32 2147483648, %v6898_v42  ;;  %v6953_v15 = vadd.f32 1.0, %v717_v63  ;;  %v718_v16 = vmul.f32 %v6187_v9, %v461_v2  ;;  %vm1666_vm15 = vweird.f32 %v5514_v5 }
  0xb4   : > { %v1653_v17 = vsel %vm6936_vm12, %v5512_v35, %v1649_v0  ;;  %v1662_v18 = vsub.f32 1.0, %v1661_v12  ;;  %v1676_v19 = vmul.f32 %v5516_v3, %v6898_v42  ;;  %v1699_v23 = vand.u32 2147483647, %v6930_v62  ;;  %vm6969_vm8 = vmor %vm1665_vm11, %vm1666_vm15 }
  0xb5   : > { %v1658_v22 = vsel %vm6926_vm10, %v1657_v61, %v1653_v17  ;;  %v1701_v24 = vand.u32 2147483648, %v6930_v62  ;;  %5519 = vrcp.f32 %v6953_v15  ;;  %v1672_v26 = vor.u32 1.1754944e-38, %v1671_v10 }
  0xb6   : > { %5065 = vst [vmem:[%s6292_s21 + $0xf0] sm:$0xff] %v1658_v22  ;;  %v1663_v25 = vmul.f32 %v5514_v5, %v1662_v18  ;;  %v1677_v4 = vsub.f32 1.0, %v1676_v19  ;;  %vm1681_vm0 = vweird.f32 %v5516_v3  ;;  %vm6973_vm1 = vcmp.eq.f32.partialorder %v1684_v13, 8.507059e+37 }
  0xb7   : > { %v5518_v27 = vpop.eup %5517  ;;  %v6977_v31 = vadd.f32 1.0, %v718_v16  ;;  %v462_v32 = vmul.f32 %v206_v20, %v206_v20  ;;  %v463_v29 = vmul.f32 %v207_v21, %v207_v21  ;;  %v1687_v36 = vor.u32 1.1754944e-38, %v1686_v14  ;;  %vm6982_vm2 = vmor %vm1680_vm14, %vm1681_vm0  ;;  %v211_v21 = vld [vmem:[%s6175_s28 + $0x148] sm:$0xff] }
  0xb8   : > { %v1664_v33 = vadd.f32 %v5514_v5, %v1663_v25  ;;  %v1678_v34 = vmul.f32 %v5516_v3, %v1677_v4  ;;  %v1691_v37 = vmul.f32 %v5518_v27, %v6930_v62  ;;  %vm1695_vm3 = vweird.f32 %v6930_v62  ;;  %v214_v25 = vld [vmem:[%s6175_s28 + $0x160] sm:$0xff] }
  0xb9   : > { %vm6987_vm4 = vcmp.eq.f32.partialorder %v1699_v23, 8.507059e+37  ;;  %v1702_v41 = vor.u32 1.1754944e-38, %v1701_v24  ;;  %5521 = vrcp.f32 %v6977_v31  ;;  %vm1696_vm5 = vweird.f32 %v5518_v27 }
  0xba   : > { %v1668_v40 = vsel %vm6969_vm8, %v5514_v5, %v1664_v33  ;;  %v1679_v43 = vadd.f32 %v5516_v3, %v1678_v34  ;;  %v1692_v44 = vsub.f32 1.0, %v1691_v37  ;;  %v1714_v45 = vand.u32 2147483647, %v6953_v15  ;;  %vm7009_vm6 = vmor %vm1695_vm3, %vm1696_vm5 }
  0xbb   : > { %v5520_v42 = vpop.eup %5519  ;;  %v1673_v35 = vsel %vm6940_vm13, %v1672_v26, %v1668_v40  ;;  %v719_v46 = vmul.f32 %v6187_v9, %v462_v32  ;;  %v720_v47 = vmul.f32 %v6187_v9, %v463_v29  ;;  %v1716_v51 = vand.u32 2147483648, %v6953_v15 }
  0xbc   : > { %5066 = vst [vmem:[%s6292_s21 + $0xf8] sm:$0xff] %v1673_v35  ;;  %v1683_v48 = vsel %vm6982_vm2, %v5516_v3, %v1679_v43  ;;  %v1693_v49 = vmul.f32 %v5518_v27, %v1692_v44  ;;  %v1706_v50 = vmul.f32 %v5520_v42, %v6953_v15  ;;  %vm1710_vm7 = vweird.f32 %v6953_v15 }
  0xbd   : > { %v1688_v53 = vsel %vm6973_vm1, %v1687_v36, %v1683_v48  ;;  %v1729_v55 = vand.u32 2147483647, %v6977_v31  ;;  %v7015_v56 = vadd.f32 1.0, %v719_v46  ;;  %vm1711_vm9 = vweird.f32 %v5520_v42  ;;  %v217_v46 = vld [vmem:[%s6175_s28 + $0x178] sm:$0xff] }
  0xbe   : > { %5067 = vst [vmem:[%s6292_s21 + $0x100] sm:$0xff] %v1688_v53  ;;  %v1694_v57 = vadd.f32 %v5518_v27, %v1693_v49  ;;  %v1707_v58 = vsub.f32 1.0, %v1706_v50  ;;  %v7018_v59 = vadd.f32 1.0, %v720_v47  ;;  %vm7020_vm10 = vcmp.eq.f32.partialorder %v1714_v45, 8.507059e+37  ;;  %vm7035_vm11 = vmor %vm1710_vm7, %vm1711_vm9 }
  0xbf   : > { %v5522_v60 = vpop.eup %5521  ;;  %v1731_v62 = vand.u32 2147483648, %v6977_v31  ;;  %5523 = vrcp.f32 %v7015_v56  ;;  %v464_v1 = vmul.f32 %v208_v52, %v208_v52  ;;  %v1717_v5 = vor.u32 1.1754944e-38, %v1716_v51 }
  0xc0   : > { %v1698_v63 = vsel %vm7009_vm6, %v5518_v27, %v1694_v57  ;;  %v1708_v2 = vmul.f32 %v5520_v42, %v1707_v58  ;;  %v1721_v6 = vmul.f32 %v5522_v60, %v6977_v31  ;;  %vm1725_vm12 = vweird.f32 %v6977_v31  ;;  %v213_v57 = vld [vmem:[%s6175_s28 + $0x158] sm:$0xff] }
  0xc1   : > { %v1703_v10 = vsel %vm6987_vm4, %v1702_v41, %v1698_v63  ;;  %v1744_v0 = vand.u32 2147483647, %v7015_v56  ;;  %5525 = vrcp.f32 %v7018_v59  ;;  %vm1726_vm13 = vweird.f32 %v5522_v60 }
  0xc2   : > { %5068 = vst [vmem:[%s6292_s21 + $0x108] sm:$0xff] %v1703_v10  ;;  %v1709_v12 = vadd.f32 %v5520_v42, %v1708_v2  ;;  %v1722_v3 = vsub.f32 1.0, %v1721_v6  ;;  %vm7043_vm14 = vcmp.eq.f32.partialorder %v1729_v55, 8.507059e+37  ;;  %v1732_v14 = vor.u32 1.1754944e-38, %v1731_v62  ;;  %vm7057_vm0 = vmor %vm1725_vm12, %vm1726_vm13 }
  0xc3   : > { %v721_v15 = vmul.f32 %v6187_v9, %v464_v1  ;;  %v465_v16 = vmul.f32 %v209_v7, %v209_v7  ;;  %v466_v17 = vmul.f32 %v210_v8, %v210_v8  ;;  %vm1740_vm15 = vweird.f32 %v7015_v56 }
  0xc4   : > { %v1713_v18 = vsel %vm7035_vm11, %v5520_v42, %v1709_v12  ;;  %v1723_v19 = vmul.f32 %v5522_v60, %v1722_v3  ;;  %v1746_v20 = vand.u32 2147483648, %v7015_v56  ;;  %vm7061_vm8 = vcmp.eq.f32.partialorder %v1744_v0, 8.507059e+37 }
  0xc5   : > { %v5524_v22 = vpop.eup %5523  ;;  %v1718_v23 = vsel %vm7020_vm10, %v1717_v5, %v1713_v18  ;;  %v7065_v26 = vadd.f32 1.0, %v721_v15  ;;  %v722_v4 = vmul.f32 %v6187_v9, %v465_v16  ;;  %vm1755_vm1 = vweird.f32 %v7018_v59 }
  0xc6   : > { %5069 = vst [vmem:[%s6292_s21 + $0x110] sm:$0xff] %v1718_v23  ;;  %v1724_v27 = vadd.f32 %v5522_v60, %v1723_v19  ;;  %v1736_v28 = vmul.f32 %v5524_v22, %v7015_v56  ;;  %v723_v30 = vmul.f32 %v6187_v9, %v466_v17  ;;  %v1759_v32 = vand.u32 2147483647, %v7018_v59  ;;  %v212_v56 = vld [vmem:[%s6175_s28 + $0x150] sm:$0xff] }
  0xc7   : > { %v5526_v31 = vpop.eup %5525  ;;  %v1761_v29 = vand.u32 2147483648, %v7018_v59  ;;  %5527 = vrcp.f32 %v7065_v26  ;;  %v467_v33 = vmul.f32 %v211_v21, %v211_v21  ;;  %vm1741_vm2 = vweird.f32 %v5524_v22 }
  0xc8   : > { %v1728_v34 = vsel %vm7057_vm0, %v5522_v60, %v1724_v27  ;;  %v1737_v36 = vsub.f32 1.0, %v1736_v28  ;;  %v1751_v37 = vmul.f32 %v5526_v31, %v7018_v59  ;;  %v1774_v39 = vand.u32 2147483647, %v7065_v26  ;;  %vm7089_vm4 = vmor %vm1740_vm15, %vm1741_vm2 }
  0xc9   : > { %v1733_v38 = vsel %vm7043_vm14, %v1732_v14, %v1728_v34  ;;  %v1776_v41 = vand.u32 2147483648, %v7065_v26  ;;  %v7082_v40 = vadd.f32 1.0, %v722_v4  ;;  %vm1756_vm3 = vweird.f32 %v5526_v31 }
  0xca   : > { %5070 = vst [vmem:[%s6292_s21 + $0x118] sm:$0xff] %v1733_v38  ;;  %v1738_v43 = vmul.f32 %v5524_v22, %v1737_v36  ;;  %v1752_v44 = vsub.f32 1.0, %v1751_v37  ;;  %v7085_v42 = vadd.f32 1.0, %v723_v30  ;;  %v1747_v45 = vor.u32 1.1754944e-38, %v1746_v20  ;;  %vm7102_vm6 = vmor %vm1755_vm1, %vm1756_vm3  ;;  %v215_v30 = vld [vmem:[%s6175_s28 + $0x168] sm:$0xff] }
  0xcb   : > { %vm7093_vm5 = vcmp.eq.f32.partialorder %v1759_v32, 8.507059e+37  ;;  %5529 = vrcp.f32 %v7082_v40  ;;  %v724_v47 = vmul.f32 %v6187_v9, %v467_v33  ;;  %v1762_v50 = vor.u32 1.1754944e-38, %v1761_v29 }
  0xcc   : > { %v1739_v48 = vadd.f32 %v5524_v22, %v1738_v43  ;;  %v1753_v49 = vmul.f32 %v5526_v31, %v1752_v44  ;;  %5531 = vrcp.f32 %v7085_v42  ;;  %vm1770_vm7 = vweird.f32 %v7065_v26 }
  0xcd   : > { %v5528_v51 = vpop.eup %5527  ;;  %vm7107_vm9 = vcmp.eq.f32.partialorder %v1774_v39, 8.507059e+37  ;;  %v1777_v54 = vor.u32 1.1754944e-38, %v1776_v41  ;;  %v1789_v55 = vand.u32 2147483647, %v7082_v40  ;;  %v1791_v61 = vand.u32 2147483648, %v7082_v40 }
  0xce   : > { %v1743_v58 = vsel %vm7089_vm4, %v5524_v22, %v1739_v48  ;;  %v1754_v59 = vadd.f32 %v5526_v31, %v1753_v49  ;;  %v1766_v60 = vmul.f32 %v5528_v51, %v7065_v26  ;;  %vm1771_vm10 = vweird.f32 %v5528_v51 }
  0xcf   : > { %v1748_v62 = vsel %vm7061_vm8, %v1747_v45, %v1743_v58  ;;  %v1804_v1 = vand.u32 2147483647, %v7085_v42  ;;  %v7121_v63 = vadd.f32 1.0, %v724_v47  ;;  %v468_v6 = vmul.f32 %v212_v56, %v212_v56  ;;  %vm7141_vm14 = vmor %vm1770_vm7, %vm1771_vm10 }
  0xd0   : > { %5071 = vst [vmem:[%s6292_s21 + $0x120] sm:$0xff] %v1748_v62  ;;  %v1758_v2 = vsel %vm7102_vm6, %v5526_v31, %v1754_v59  ;;  %v1767_v5 = vsub.f32 1.0, %v1766_v60  ;;  %v469_v7 = vmul.f32 %v213_v57, %v213_v57  ;;  %vm1785_vm11 = vweird.f32 %v7082_v40  ;;  %v216_v31 = vld [vmem:[%s6175_s28 + $0x170] sm:$0xff] }
  0xd1   : > { %v5530_v8 = vpop.eup %5529  ;;  %v1763_v10 = vsel %vm7093_vm5, %v1762_v50, %v1758_v2  ;;  %v1806_v11 = vand.u32 2147483648, %v7085_v42  ;;  %5533 = vrcp.f32 %v7121_v63  ;;  %vm7133_vm12 = vcmp.eq.f32.partialorder %v1789_v55, 8.507059e+37 }
  0xd2   : > { %v5532_v0 = vpop.eup %5531  ;;  %5072 = vst [vmem:[%s6292_s21 + $0x128] sm:$0xff] %v1763_v10  ;;  %v1768_v12 = vmul.f32 %v5528_v51, %v1767_v5  ;;  %v1781_v3 = vmul.f32 %v5530_v8, %v7082_v40  ;;  %vm1800_vm13 = vweird.f32 %v7085_v42  ;;  %v1792_v15 = vor.u32 1.1754944e-38, %v1791_v61 }
  0xd3   : > { %v1796_v16 = vmul.f32 %v5532_v0, %v7085_v42  ;;  %vm7146_vm15 = vcmp.eq.f32.partialorder %v1804_v1, 8.507059e+37  ;;  %v725_v18 = vmul.f32 %v6187_v9, %v468_v6  ;;  %vm1786_vm0 = vweird.f32 %v5530_v8 }
  0xd4   : > { %v1769_v19 = vadd.f32 %v5528_v51, %v1768_v12  ;;  %v1782_v20 = vsub.f32 1.0, %v1781_v3  ;;  %v726_v21 = vmul.f32 %v6187_v9, %v469_v7  ;;  %vm1801_vm8 = vweird.f32 %v5532_v0  ;;  %vm7167_vm1 = vmor %vm1785_vm11, %vm1786_vm0 }
  0xd5   : > { %v1797_v22 = vsub.f32 1.0, %v1796_v16  ;;  %v1807_v23 = vor.u32 1.1754944e-38, %v1806_v11  ;;  %v7152_v24 = vadd.f32 1.0, %v725_v18  ;;  %v1819_v27 = vand.u32 2147483647, %v7121_v63  ;;  %vm7177_vm2 = vmor %vm1800_vm13, %vm1801_vm8  ;;  %v218_v11 = vld [vmem:[%s6175_s28 + $0x180] sm:$0xff] }
  0xd6   : > { %v1773_v26 = vsel %vm7141_vm14, %v5528_v51, %v1769_v19  ;;  %v1783_v4 = vmul.f32 %v5530_v8, %v1782_v20  ;;  %v7158_v28 = vadd.f32 1.0, %v726_v21  ;;  %v1821_v36 = vand.u32 2147483648, %v7121_v63 }
  0xd7   : > { %v5534_v32 = vpop.eup %5533  ;;  %v1778_v29 = vsel %vm7107_vm9, %v1777_v54, %v1773_v26  ;;  %v1798_v34 = vmul.f32 %v5532_v0, %v1797_v22  ;;  %5535 = vrcp.f32 %v7152_v24  ;;  %vm1815_vm3 = vweird.f32 %v7121_v63  ;;  %v219_v26 = vld [vmem:[%s6175_s28 + $0x188] sm:$0xff] }
  0xd8   : > { %5073 = vst [vmem:[%s6292_s21 + $0x130] sm:$0xff] %v1778_v29  ;;  %v1784_v37 = vadd.f32 %v5530_v8, %v1783_v4  ;;  %v1811_v39 = vmul.f32 %v5534_v32, %v7121_v63  ;;  %v470_v41 = vmul.f32 %v214_v25, %v214_v25  ;;  %5537 = vrcp.f32 %v7158_v28 }
  0xd9   : > { %v1799_v40 = vadd.f32 %v5532_v0, %v1798_v34  ;;  %v471_v43 = vmul.f32 %v215_v30, %v215_v30  ;;  %v472_v44 = vmul.f32 %v216_v31, %v216_v31  ;;  %vm1816_vm4 = vweird.f32 %v5534_v32 }
  0xda   : > { %v1788_v35 = vsel %vm7167_vm1, %v5530_v8, %v1784_v37  ;;  %v1812_v42 = vsub.f32 1.0, %v1811_v39  ;;  %vm7186_vm5 = vcmp.eq.f32.partialorder %v1819_v27, 8.507059e+37  ;;  %v1822_v49 = vor.u32 1.1754944e-38, %v1821_v36  ;;  %vm7204_vm7 = vmor %vm1815_vm3, %vm1816_vm4 }
  0xdb   : > { %v1793_v47 = vsel %vm7133_vm12, %v1792_v15, %v1788_v35  ;;  %v1803_v48 = vsel %vm7177_vm2, %v5532_v0, %v1799_v40  ;;  %vm1830_vm6 = vweird.f32 %v7152_v24  ;;  %v1834_v52 = vand.u32 2147483647, %v7152_v24 }
  0xdc   : > { %5074 = vst [vmem:[%s6292_s21 + $0x138] sm:$0xff] %v1793_v47  ;;  %v1808_v50 = vsel %vm7146_vm15, %v1807_v23, %v1803_v48  ;;  %v1813_v51 = vmul.f32 %v5534_v32, %v1812_v42  ;;  %v727_v53 = vmul.f32 %v6187_v9, %v470_v41  ;;  %v1836_v56 = vand.u32 2147483648, %v7152_v24 }
  0xdd   : > { %v5536_v54 = vpop.eup %5535  ;;  %5075 = vst [vmem:[%s6292_s21 + $0x140] sm:$0xff] %v1808_v50  ;;  %v728_v57 = vmul.f32 %v6187_v9, %v471_v43  ;;  %v729_v58 = vmul.f32 %v6187_v9, %v472_v44  ;;  %v473_v59 = vmul.f32 %v217_v46, %v217_v46  ;;  %vm1845_vm9 = vweird.f32 %v7158_v28 }
  0xde   : > { %v1814_v60 = vadd.f32 %v5534_v32, %v1813_v51  ;;  %v1826_v61 = vmul.f32 %v5536_v54, %v7152_v24  ;;  %v7213_v62 = vadd.f32 1.0, %v727_v53  ;;  %v5538_v1 = vpop.eup %5537  ;;  %vm1831_vm10 = vweird.f32 %v5536_v54  ;;  %v220_v53 = vld [vmem:[%s6175_s28 + $0x190] sm:$0xff] }
  0xdf   : > { %v1849_v63 = vand.u32 2147483647, %v7158_v28  ;;  %v1851_v2 = vand.u32 2147483648, %v7158_v28  ;;  %v7217_v5 = vadd.f32 1.0, %v728_v57  ;;  %v1841_v8 = vmul.f32 %v5538_v1, %v7158_v28  ;;  %vm7235_vm12 = vmor %vm1830_vm6, %vm1831_vm10 }
  0xe0   : > { %v1818_v6 = vsel %vm7204_vm7, %v5534_v32, %v1814_v60  ;;  %v1827_v7 = vsub.f32 1.0, %v1826_v61  ;;  %v7222_v10 = vadd.f32 1.0, %v729_v58  ;;  %vm1846_vm11 = vweird.f32 %v5538_v1  ;;  %v221_v61 = vld [vmem:[%s6175_s28 + $0x198] sm:$0xff] }
  0xe1   : > { %v1823_v0 = vsel %vm7186_vm5, %v1822_v49, %v1818_v6  ;;  %5539 = vrcp.f32 %v7213_v62  ;;  %v730_v12 = vmul.f32 %v6187_v9, %v473_v59  ;;  %v1842_v13 = vsub.f32 1.0, %v1841_v8  ;;  %vm7245_vm14 = vmor %vm1845_vm9, %vm1846_vm11 }
  0xe2   : > { %5076 = vst [vmem:[%s6292_s21 + $0x148] sm:$0xff] %v1823_v0  ;;  %v1828_v3 = vmul.f32 %v5536_v54, %v1827_v7  ;;  %v1864_v14 = vand.u32 2147483647, %v7213_v62  ;;  %5541 = vrcp.f32 %v7217_v5  ;;  %v1837_v16 = vor.u32 1.1754944e-38, %v1836_v56  ;;  %v226_v7 = vld [vmem:[%s6175_s28 + $0x1c0] sm:$0xff] }
  0xe3   : > { %v1866_v17 = vand.u32 2147483648, %v7213_v62  ;;  %v1879_v18 = vand.u32 2147483647, %v7217_v5  ;;  %v474_v19 = vmul.f32 %v218_v11, %v218_v11  ;;  %vm1835_vm13 = vcmp.eq.f32.partialorder %v1834_v52, 8.507059e+37 }
  0xe4   : > { %v1829_v20 = vadd.f32 %v5536_v54, %v1828_v3  ;;  %v1843_v21 = vmul.f32 %v5538_v1, %v1842_v13  ;;  %5543 = vrcp.f32 %v7222_v10  ;;  %vm7249_vm15 = vcmp.eq.f32.partialorder %v1849_v63, 8.507059e+37 }
  0xe5   : > { %v1852_v24 = vor.u32 1.1754944e-38, %v1851_v2  ;;  %vm1860_vm0 = vweird.f32 %v7213_v62  ;;  %v1881_v25 = vand.u32 2147483648, %v7217_v5  ;;  %vm7258_vm8 = vcmp.eq.f32.partialorder %v1864_v14, 8.507059e+37 }
  0xe6   : > { %v1833_v4 = vsel %vm7235_vm12, %v5536_v54, %v1829_v20  ;;  %v1844_v27 = vadd.f32 %v5538_v1, %v1843_v21  ;;  %vm1875_vm1 = vweird.f32 %v7217_v5  ;;  %v7263_v30 = vadd.f32 1.0, %v730_v12  ;;  %v222_v21 = vld [vmem:[%s6175_s28 + $0x1a0] sm:$0xff] }
  0xe7   : > { %v5540_v31 = vpop.eup %5539  ;;  %v1838_v32 = vsel %vm1835_vm13, %v1837_v16, %v1833_v4  ;;  %v1867_v29 = vor.u32 1.1754944e-38, %v1866_v17  ;;  %vm7265_vm2 = vcmp.eq.f32.partialorder %v1879_v18, 8.507059e+37  ;;  %v731_v34 = vmul.f32 %v6187_v9, %v474_v19 }
  0xe8   : > { %v5542_v36 = vpop.eup %5541  ;;  %5077 = vst [vmem:[%s6292_s21 + $0x150] sm:$0xff] %v1838_v32  ;;  %v1848_v37 = vsel %vm7245_vm14, %v5538_v1, %v1844_v27  ;;  %v1856_v38 = vmul.f32 %v5540_v31, %v7213_v62  ;;  %v1894_v39 = vand.u32 2147483647, %v7222_v10  ;;  %v475_v41 = vmul.f32 %v219_v26, %v219_v26 }
  0xe9   : > { %v1853_v40 = vsel %vm7249_vm15, %v1852_v24, %v1848_v37  ;;  %v1871_v43 = vmul.f32 %v5542_v36, %v7217_v5  ;;  %v1882_v44 = vor.u32 1.1754944e-38, %v1881_v25  ;;  %5545 = vrcp.f32 %v7263_v30  ;;  %v223_v25 = vld [vmem:[%s6175_s28 + $0x1a8] sm:$0xff] }
  0xea   : > { %v5544_v35 = vpop.eup %5543  ;;  %5078 = vst [vmem:[%s6292_s21 + $0x158] sm:$0xff] %v1853_v40  ;;  %v1857_v42 = vsub.f32 1.0, %v1856_v38  ;;  %vm1861_vm3 = vweird.f32 %v5540_v31  ;;  %vm1890_vm4 = vweird.f32 %v7222_v10  ;;  %v1896_v45 = vand.u32 2147483648, %v7222_v10 }
  0xeb   : > { %v1872_v46 = vsub.f32 1.0, %v1871_v43  ;;  %vm1876_vm5 = vweird.f32 %v5542_v36  ;;  %v1886_v47 = vmul.f32 %v5544_v35, %v7222_v10  ;;  %v7283_v48 = vadd.f32 1.0, %v731_v34  ;;  %vm7294_vm7 = vmor %vm1860_vm0, %vm1861_vm3 }
  0xec   : > { %v1858_v49 = vmul.f32 %v5540_v31, %v1857_v42  ;;  %vm7285_vm6 = vcmp.eq.f32.partialorder %v1894_v39, 8.507059e+37  ;;  %v1909_v51 = vand.u32 2147483647, %v7263_v30  ;;  %v732_v52 = vmul.f32 %v6187_v9, %v475_v41  ;;  %vm7301_vm10 = vmor %vm1875_vm1, %vm1876_vm5  ;;  %v228_v42 = vld [vmem:[%s6175_s28 + $0x1d0] sm:$0xff] }
  0xed   : > { %v1873_v55 = vmul.f32 %v5542_v36, %v1872_v46  ;;  %v1887_v56 = vsub.f32 1.0, %v1886_v47  ;;  %vm1891_vm9 = vweird.f32 %v5544_v35  ;;  %5547 = vrcp.f32 %v7283_v48  ;;  %v225_v46 = vld [vmem:[%s6175_s28 + $0x1b8] sm:$0xff] }
  0xee   : > { %v1859_v57 = vadd.f32 %v5540_v31, %v1858_v49  ;;  %v1897_v59 = vor.u32 1.1754944e-38, %v1896_v45  ;;  %vm1905_vm11 = vweird.f32 %v7263_v30  ;;  %v7306_v60 = vadd.f32 1.0, %v732_v52  ;;  %vm7314_vm12 = vmor %vm1890_vm4, %vm1891_vm9  ;;  %v224_v45 = vld [vmem:[%s6175_s28 + $0x1b0] sm:$0xff] }
  0xef   : > { %v5546_v62 = vpop.eup %5545  ;;  %v1874_v1 = vadd.f32 %v5542_v36, %v1873_v55  ;;  %v1888_v63 = vmul.f32 %v5544_v35, %v1887_v56  ;;  %v1911_v2 = vand.u32 2147483648, %v7263_v30  ;;  %v476_v6 = vmul.f32 %v220_v53, %v220_v53 }
  0xf0   : > { %v1863_v5 = vsel %vm7294_vm7, %v5540_v31, %v1859_v57  ;;  %v1901_v8 = vmul.f32 %v5546_v62, %v7263_v30  ;;  %vm7319_vm13 = vcmp.eq.f32.partialorder %v1909_v51, 8.507059e+37  ;;  %v1924_v0 = vand.u32 2147483647, %v7283_v48 }
  0xf1   : > { %v1868_v12 = vsel %vm7258_vm8, %v1867_v29, %v1863_v5  ;;  %v1878_v3 = vsel %vm7301_vm10, %v5542_v36, %v1874_v1  ;;  %v1889_v10 = vadd.f32 %v5544_v35, %v1888_v63  ;;  %v477_v13 = vmul.f32 %v221_v61, %v221_v61 }
  0xf2   : > { %5079 = vst [vmem:[%s6292_s21 + $0x160] sm:$0xff] %v1868_v12  ;;  %v1883_v14 = vsel %vm7265_vm2, %v1882_v44, %v1878_v3  ;;  %v1902_v15 = vsub.f32 1.0, %v1901_v8  ;;  %vm1906_vm14 = vweird.f32 %v5546_v62  ;;  %5549 = vrcp.f32 %v7306_v60 }
  0xf3   : > { %v5548_v16 = vpop.eup %5547  ;;  %5080 = vst [vmem:[%s6292_s21 + $0x168] sm:$0xff] %v1883_v14  ;;  %v1893_v17 = vsel %vm7314_vm12, %v5544_v35, %v1889_v10  ;;  %v1912_v18 = vor.u32 1.1754944e-38, %v1911_v2  ;;  %v1926_v19 = vand.u32 2147483648, %v7283_v48  ;;  %v733_v20 = vmul.f32 %v6187_v9, %v476_v6  ;;  %vm7347_vm0 = vmor %vm1905_vm11, %vm1906_vm14 }
  0xf4   : > { %v1898_v22 = vsel %vm7285_vm6, %v1897_v59, %v1893_v17  ;;  %v1903_v23 = vmul.f32 %v5546_v62, %v1902_v15  ;;  %v1916_v24 = vmul.f32 %v5548_v16, %v7283_v48  ;;  %vm1920_vm15 = vweird.f32 %v7283_v48 }
  0xf5   : > { %5081 = vst [vmem:[%s6292_s21 + $0x170] sm:$0xff] %v1898_v22  ;;  %vm7351_vm8 = vcmp.eq.f32.partialorder %v1924_v0, 8.507059e+37  ;;  %v1939_v27 = vand.u32 2147483647, %v7306_v60  ;;  %v7356_v28 = vadd.f32 1.0, %v733_v20  ;;  %v734_v31 = vmul.f32 %v6187_v9, %v477_v13 }
  0xf6   : > { %v1904_v32 = vadd.f32 %v5546_v62, %v1903_v23  ;;  %v1917_v29 = vsub.f32 1.0, %v1916_v24  ;;  %vm1921_vm1 = vweird.f32 %v5548_v16  ;;  %v478_v33 = vmul.f32 %v222_v21, %v222_v21 }
  0xf7   : > { %v1927_v30 = vor.u32 1.1754944e-38, %v1926_v19  ;;  %v1941_v34 = vand.u32 2147483648, %v7306_v60  ;;  %5551 = vrcp.f32 %v7356_v28  ;;  %v479_v36 = vmul.f32 %v223_v25, %v223_v25  ;;  %vm7370_vm2 = vmor %vm1920_vm15, %vm1921_vm1 }
  0xf8   : > { %v5550_v37 = vpop.eup %5549  ;;  %v1908_v38 = vsel %vm7347_vm0, %v5546_v62, %v1904_v32  ;;  %v1918_v39 = vmul.f32 %v5548_v16, %v1917_v29  ;;  %v7363_v41 = vadd.f32 1.0, %v734_v31  ;;  %v735_v40 = vmul.f32 %v6187_v9, %v478_v33 }
  0xf9   : > { %v1913_v43 = vsel %vm7319_vm13, %v1912_v18, %v1908_v38  ;;  %v1931_v35 = vmul.f32 %v5550_v37, %v7306_v60  ;;  %vm1935_vm3 = vweird.f32 %v7306_v60  ;;  %vm7376_vm4 = vcmp.eq.f32.partialorder %v1939_v27, 8.507059e+37 }
  0xfa   : > { %5082 = vst [vmem:[%s6292_s21 + $0x178] sm:$0xff] %v1913_v43  ;;  %v1919_v47 = vadd.f32 %v5548_v16, %v1918_v39  ;;  %v1954_v49 = vand.u32 2147483647, %v7356_v28  ;;  %v1956_v48 = vand.u32 2147483648, %v7356_v28  ;;  %5553 = vrcp.f32 %v7363_v41  ;;  %v232_v39 = vld [vmem:[%s6175_s28 + $0x1f0] sm:$0xff] }
  0xfb   : > { %v1932_v50 = vsub.f32 1.0, %v1931_v35  ;;  %vm1936_vm5 = vweird.f32 %v5550_v37  ;;  %v1942_v51 = vor.u32 1.1754944e-38, %v1941_v34  ;;  %v7386_v52 = vadd.f32 1.0, %v735_v40  ;;  %v227_v35 = vld [vmem:[%s6175_s28 + $0x1c8] sm:$0xff] }
  0xfc   : > { %v1923_v53 = vsel %vm7370_vm2, %v5548_v16, %v1919_v47  ;;  %v736_v54 = vmul.f32 %v6187_v9, %v479_v36  ;;  %v480_v55 = vmul.f32 %v224_v45, %v224_v45  ;;  %v481_v56 = vmul.f32 %v225_v46, %v225_v46  ;;  %vm7398_vm7 = vmor %vm1935_vm3, %vm1936_vm5 }
  0xfd   : > { %v5552_v57 = vpop.eup %5551  ;;  %v1928_v58 = vsel %vm7351_vm8, %v1927_v30, %v1923_v53  ;;  %v1933_v59 = vmul.f32 %v5550_v37, %v1932_v50  ;;  %vm1950_vm6 = vweird.f32 %v7356_v28  ;;  %v1969_v61 = vand.u32 2147483647, %v7363_v41 }
  0xfe   : > { %5083 = vst [vmem:[%s6292_s21 + $0x180] sm:$0xff] %v1928_v58  ;;  %v1946_v1 = vmul.f32 %v5552_v57, %v7356_v28  ;;  %vm7403_vm9 = vcmp.eq.f32.partialorder %v1954_v49, 8.507059e+37  ;;  %v1957_v2 = vor.u32 1.1754944e-38, %v1956_v48  ;;  %5555 = vrcp.f32 %v7386_v52  ;;  %v229_v48 = vld [vmem:[%s6175_s28 + $0x1d8] sm:$0xff] }
  0xff   : > { %v1934_v6 = vadd.f32 %v5550_v37, %v1933_v59  ;;  %vm1965_vm10 = vweird.f32 %v7363_v41  ;;  %v1971_v5 = vand.u32 2147483648, %v7363_v41  ;;  %v7410_v60 = vadd.f32 1.0, %v736_v54 }
 0x100   : > { %v5554_v8 = vpop.eup %5553  ;;  %v1947_v11 = vsub.f32 1.0, %v1946_v1  ;;  %vm1951_vm11 = vweird.f32 %v5552_v57  ;;  %v737_v0 = vmul.f32 %v6187_v9, %v480_v55  ;;  %v738_v12 = vmul.f32 %v6187_v9, %v481_v56 }
 0x101   : > { %v1938_v3 = vsel %vm7398_vm7, %v5550_v37, %v1934_v6  ;;  %v1961_v10 = vmul.f32 %v5554_v8, %v7363_v41  ;;  %vm7418_vm12 = vcmp.eq.f32.partialorder %v1969_v61, 8.507059e+37  ;;  %v1984_v14 = vand.u32 2147483647, %v7386_v52  ;;  %vm7429_vm13 = vmor %vm1950_vm6, %vm1951_vm11 }
 0x102   : > { %v1943_v15 = vsel %vm7376_vm4, %v1942_v51, %v1938_v3  ;;  %v1948_v16 = vmul.f32 %v5552_v57, %v1947_v11  ;;  %5557 = vrcp.f32 %v7410_v60  ;;  %v482_v17 = vmul.f32 %v226_v7, %v226_v7 }
 0x103   : > { %5084 = vst [vmem:[%s6292_s21 + $0x188] sm:$0xff] %v1943_v15  ;;  %v1962_v19 = vsub.f32 1.0, %v1961_v10  ;;  %vm1966_vm14 = vweird.f32 %v5554_v8  ;;  %v1972_v20 = vor.u32 1.1754944e-38, %v1971_v5  ;;  %v1986_v21 = vand.u32 2147483648, %v7386_v52 }
 0x104   : > { %v5556_v22 = vpop.eup %5555  ;;  %v1949_v23 = vadd.f32 %v5552_v57, %v1948_v16  ;;  %v1999_v24 = vand.u32 2147483647, %v7410_v60  ;;  %v7435_v25 = vadd.f32 1.0, %v737_v0  ;;  %v7437_v26 = vadd.f32 1.0, %v738_v12  ;;  %vm7446_vm0 = vmor %vm1965_vm10, %vm1966_vm14 }
 0x105   : > { %v1963_v4 = vmul.f32 %v5554_v8, %v1962_v19  ;;  %v1976_v27 = vmul.f32 %v5556_v22, %v7386_v52  ;;  %vm1980_vm15 = vweird.f32 %v7386_v52  ;;  %v2001_v28 = vand.u32 2147483648, %v7410_v60 }
 0x106   : > { %v1953_v31 = vsel %vm7429_vm13, %v5552_v57, %v1949_v23  ;;  %vm7450_vm8 = vcmp.eq.f32.partialorder %v1984_v14, 8.507059e+37  ;;  %5559 = vrcp.f32 %v7435_v25  ;;  %v739_v33 = vmul.f32 %v6187_v9, %v482_v17  ;;  %v230_v23 = vld [vmem:[%s6175_s28 + $0x1e0] sm:$0xff] }
 0x107   : > { %v1958_v30 = vsel %vm7403_vm9, %v1957_v2, %v1953_v31  ;;  %v1964_v34 = vadd.f32 %v5554_v8, %v1963_v4  ;;  %v1977_v36 = vsub.f32 1.0, %v1976_v27  ;;  %vm1981_vm1 = vweird.f32 %v5556_v22 }
 0x108   : > { %v5558_v37 = vpop.eup %5557  ;;  %5085 = vst [vmem:[%s6292_s21 + $0x190] sm:$0xff] %v1958_v30  ;;  %v1987_v38 = vor.u32 1.1754944e-38, %v1986_v21  ;;  %vm1995_vm2 = vweird.f32 %v7410_v60  ;;  %vm7460_vm3 = vcmp.eq.f32.partialorder %v1999_v24, 8.507059e+37  ;;  %5561 = vrcp.f32 %v7437_v26  ;;  %vm7474_vm4 = vmor %vm1980_vm15, %vm1981_vm1 }
 0x109   : > { %v1968_v41 = vsel %vm7446_vm0, %v5554_v8, %v1964_v34  ;;  %v1978_v40 = vmul.f32 %v5556_v22, %v1977_v36  ;;  %v1991_v43 = vmul.f32 %v5558_v37, %v7410_v60  ;;  %v2002_v44 = vor.u32 1.1754944e-38, %v2001_v28 }
 0x10a   : > { %v1973_v45 = vsel %vm7418_vm12, %v1972_v20, %v1968_v41  ;;  %vm2010_vm5 = vweird.f32 %v7435_v25  ;;  %v2014_v47 = vand.u32 2147483647, %v7435_v25  ;;  %v2016_v49 = vand.u32 2147483648, %v7435_v25 }
 0x10b   : > { %5086 = vst [vmem:[%s6292_s21 + $0x198] sm:$0xff] %v1973_v45  ;;  %v1979_v50 = vadd.f32 %v5556_v22, %v1978_v40  ;;  %v1992_v51 = vsub.f32 1.0, %v1991_v43  ;;  %vm1996_vm6 = vweird.f32 %v5558_v37  ;;  %v7483_v53 = vadd.f32 1.0, %v739_v33 }
 0x10c   : > { %v5560_v54 = vpop.eup %5559  ;;  %vm2025_vm7 = vweird.f32 %v7437_v26  ;;  %v2029_v52 = vand.u32 2147483647, %v7437_v26  ;;  %v483_v55 = vmul.f32 %v227_v35, %v227_v35  ;;  %v484_v56 = vmul.f32 %v228_v42, %v228_v42  ;;  %vm7494_vm9 = vmor %vm1995_vm2, %vm1996_vm6 }
 0x10d   : > { %v1983_v57 = vsel %vm7474_vm4, %v5556_v22, %v1979_v50  ;;  %v1993_v58 = vmul.f32 %v5558_v37, %v1992_v51  ;;  %v2006_v59 = vmul.f32 %v5560_v54, %v7435_v25  ;;  %v485_v61 = vmul.f32 %v229_v48, %v229_v48 }
 0x10e   : > { %v5562_v62 = vpop.eup %5561  ;;  %v1988_v1 = vsel %vm7450_vm8, %v1987_v38, %v1983_v57  ;;  %vm7498_vm10 = vcmp.eq.f32.partialorder %v2014_v47, 8.507059e+37  ;;  %v2031_v6 = vand.u32 2147483648, %v7437_v26  ;;  %5563 = vrcp.f32 %v7483_v53  ;;  %v231_v38 = vld [vmem:[%s6175_s28 + $0x1e8] sm:$0xff] }
 0x10f   : > { %5087 = vst [vmem:[%s6292_s21 + $0x1a0] sm:$0xff] %v1988_v1  ;;  %v1994_v5 = vadd.f32 %v5558_v37, %v1993_v58  ;;  %v2007_v7 = vsub.f32 1.0, %v2006_v59  ;;  %vm2011_vm11 = vweird.f32 %v5560_v54  ;;  %v2021_v8 = vmul.f32 %v5562_v62, %v7437_v26 }
 0x110   : > { %v2017_v60 = vor.u32 1.1754944e-38, %v2016_v49  ;;  %vm2026_vm12 = vweird.f32 %v5562_v62  ;;  %v740_v11 = vmul.f32 %v6187_v9, %v483_v55  ;;  %v741_v0 = vmul.f32 %v6187_v9, %v484_v56  ;;  %vm7515_vm13 = vmor %vm2010_vm5, %vm2011_vm11 }
 0x111   : > { %v1998_v12 = vsel %vm7494_vm9, %v5558_v37, %v1994_v5  ;;  %v2008_v3 = vmul.f32 %v5560_v54, %v2007_v7  ;;  %v2022_v10 = vsub.f32 1.0, %v2021_v8  ;;  %v742_v13 = vmul.f32 %v6187_v9, %v485_v61  ;;  %vm7533_vm15 = vmor %vm2025_vm7, %vm2026_vm12 }
 0x112   : > { %v2003_v14 = vsel %vm7460_vm3, %v2002_v44, %v1998_v12  ;;  %vm7519_vm14 = vcmp.eq.f32.partialorder %v2029_v52, 8.507059e+37  ;;  %v2032_v17 = vor.u32 1.1754944e-38, %v2031_v6  ;;  %v7523_v18 = vadd.f32 1.0, %v740_v11 }
 0x113   : > { %5088 = vst [vmem:[%s6292_s21 + $0x1a8] sm:$0xff] %v2003_v14  ;;  %v2009_v19 = vadd.f32 %v5560_v54, %v2008_v3  ;;  %v2023_v20 = vmul.f32 %v5562_v62, %v2022_v10  ;;  %v2044_v21 = vand.u32 2147483647, %v7483_v53  ;;  %v7527_v22 = vadd.f32 1.0, %v741_v0  ;;  %v233_v3 = vld [vmem:[%s6175_s28 + $0x1f8] sm:$0xff] }
 0x114   : > { %v5564_v24 = vpop.eup %5563  ;;  %v2046_v4 = vand.u32 2147483648, %v7483_v53  ;;  %5565 = vrcp.f32 %v7523_v18  ;;  %v2059_v27 = vand.u32 2147483647, %v7523_v18  ;;  %v7540_v28 = vadd.f32 1.0, %v742_v13 }
 0x115   : > { %v2013_v31 = vsel %vm7515_vm13, %v5560_v54, %v2009_v19  ;;  %v2024_v32 = vadd.f32 %v5562_v62, %v2023_v20  ;;  %v2036_v26 = vmul.f32 %v5564_v24, %v7483_v53  ;;  %v2061_v29 = vand.u32 2147483648, %v7523_v18 }
 0x116   : > { %v2018_v33 = vsel %vm7498_vm10, %v2017_v60, %v2013_v31  ;;  %vm2040_vm0 = vweird.f32 %v7483_v53  ;;  %5567 = vrcp.f32 %v7527_v22  ;;  %v486_v30 = vmul.f32 %v230_v23, %v230_v23 }
 0x117   : > { %5089 = vst [vmem:[%s6292_s21 + $0x1b0] sm:$0xff] %v2018_v33  ;;  %v2028_v34 = vsel %vm7533_vm15, %v5562_v62, %v2024_v32  ;;  %v2037_v36 = vsub.f32 1.0, %v2036_v26  ;;  %vm2041_vm8 = vweird.f32 %v5564_v24  ;;  %vm7553_vm1 = vcmp.eq.f32.partialorder %v2044_v21, 8.507059e+37 }
 0x118   : > { %v2033_v41 = vsel %vm7519_vm14, %v2032_v17, %v2028_v34  ;;  %v2047_v40 = vor.u32 1.1754944e-38, %v2046_v4  ;;  %v2074_v43 = vand.u32 2147483647, %v7527_v22  ;;  %5569 = vrcp.f32 %v7540_v28  ;;  %vm7571_vm4 = vmor %vm2040_vm0, %vm2041_vm8 }
 0x119   : > { %5090 = vst [vmem:[%s6292_s21 + $0x1b8] sm:$0xff] %v2033_v41  ;;  %v2038_v44 = vmul.f32 %v5564_v24, %v2037_v36  ;;  %vm2055_vm2 = vweird.f32 %v7523_v18  ;;  %vm7565_vm3 = vcmp.eq.f32.partialorder %v2059_v27, 8.507059e+37  ;;  %v2062_v42 = vor.u32 1.1754944e-38, %v2061_v29  ;;  %v234_v27 = vld [vmem:[%s6175_s28 + $0x200] sm:$0xff]  ;;  %v235_v29 = vld [vmem:[%s6175_s28 + $0x208] sm:$0xff] }
 0x11a   : > { %v5566_v45 = vpop.eup %5565  ;;  %vm2070_vm5 = vweird.f32 %v7527_v22  ;;  %v743_v47 = vmul.f32 %v6187_v9, %v486_v30  ;;  %v487_v49 = vmul.f32 %v231_v38, %v231_v38  ;;  %v488_v48 = vmul.f32 %v232_v39, %v232_v39 }
 0x11b   : > { %v2039_v50 = vadd.f32 %v5564_v24, %v2038_v44  ;;  %v2051_v51 = vmul.f32 %v5566_v45, %v7523_v18  ;;  %v2076_v54 = vand.u32 2147483648, %v7527_v22  ;;  %vm2085_vm6 = vweird.f32 %v7540_v28 }
 0x11c   : > { %v5568_v52 = vpop.eup %5567  ;;  %vm7580_vm7 = vcmp.eq.f32.partialorder %v2074_v43, 8.507059e+37  ;;  %v7584_v55 = vadd.f32 1.0, %v743_v47  ;;  %v744_v56 = vmul.f32 %v6187_v9, %v487_v49  ;;  %v745_v57 = vmul.f32 %v6187_v9, %v488_v48 }
 0x11d   : > { %v2043_v58 = vsel %vm7571_vm4, %v5564_v24, %v2039_v50  ;;  %v2052_v59 = vsub.f32 1.0, %v2051_v51  ;;  %vm2056_vm9 = vweird.f32 %v5566_v45  ;;  %v2066_v61 = vmul.f32 %v5568_v52, %v7527_v22 }
 0x11e   : > { %v5570_v62 = vpop.eup %5569  ;;  %v2048_v1 = vsel %vm7553_vm1, %v2047_v40, %v2043_v58  ;;  %v2089_v63 = vand.u32 2147483647, %v7540_v28  ;;  %v2091_v2 = vand.u32 2147483648, %v7540_v28  ;;  %5571 = vrcp.f32 %v7584_v55  ;;  %vm7600_vm11 = vmor %vm2055_vm2, %vm2056_vm9 }
 0x11f   : > { %5091 = vst [vmem:[%s6292_s21 + $0x1c0] sm:$0xff] %v2048_v1  ;;  %v2053_v6 = vmul.f32 %v5566_v45, %v2052_v59  ;;  %v2067_v5 = vsub.f32 1.0, %v2066_v61  ;;  %vm2071_vm10 = vweird.f32 %v5568_v52  ;;  %v2081_v7 = vmul.f32 %v5570_v62, %v7540_v28  ;;  %v237_v1 = vld [vmem:[%s6175_s28 + $0x218] sm:$0xff] }
 0x120   : > { %v2077_v60 = vor.u32 1.1754944e-38, %v2076_v54  ;;  %v2104_v11 = vand.u32 2147483647, %v7584_v55  ;;  %v7605_v0 = vadd.f32 1.0, %v744_v56  ;;  %v7607_v12 = vadd.f32 1.0, %v745_v57  ;;  %vm7612_vm13 = vmor %vm2070_vm5, %vm2071_vm10 }
 0x121   : > { %v2054_v10 = vadd.f32 %v5566_v45, %v2053_v6  ;;  %v2068_v13 = vmul.f32 %v5568_v52, %v2067_v5  ;;  %v2082_v14 = vsub.f32 1.0, %v2081_v7  ;;  %vm2086_vm12 = vweird.f32 %v5570_v62 }
 0x122   : > { %vm7616_vm14 = vcmp.eq.f32.partialorder %v2089_v63, 8.507059e+37  ;;  %v2092_v17 = vor.u32 1.1754944e-38, %v2091_v2  ;;  %v2106_v18 = vand.u32 2147483648, %v7584_v55  ;;  %5573 = vrcp.f32 %v7605_v0  ;;  %vm7628_vm15 = vmor %vm2085_vm6, %vm2086_vm12 }
 0x123   : > { %v2058_v19 = vsel %vm7600_vm11, %v5566_v45, %v2054_v10  ;;  %v2069_v20 = vadd.f32 %v5568_v52, %v2068_v13  ;;  %v2083_v21 = vmul.f32 %v5570_v62, %v2082_v14  ;;  %v489_v22 = vmul.f32 %v233_v3, %v233_v3 }
 0x124   : > { %v5572_v23 = vpop.eup %5571  ;;  %v2063_v24 = vsel %vm7565_vm3, %v2062_v42, %v2058_v19  ;;  %vm2100_vm0 = vweird.f32 %v7584_v55  ;;  %v2119_v4 = vand.u32 2147483647, %v7605_v0  ;;  %5575 = vrcp.f32 %v7607_v12 }
 0x125   : > { %5092 = vst [vmem:[%s6292_s21 + $0x1c8] sm:$0xff] %v2063_v24  ;;  %v2073_v31 = vsel %vm7612_vm13, %v5568_v52, %v2069_v20  ;;  %v2084_v32 = vadd.f32 %v5570_v62, %v2083_v21  ;;  %v2096_v26 = vmul.f32 %v5572_v23, %v7584_v55  ;;  %vm7640_vm8 = vcmp.eq.f32.partialorder %v2104_v11, 8.507059e+37  ;;  %v236_v55 = vld [vmem:[%s6175_s28 + $0x210] sm:$0xff]  ;;  %v238_v20 = vld [vmem:[%s6175_s28 + $0x220] sm:$0xff]  ;;  %v239_v21 = vld [vmem:[%s6175_s28 + $0x228] sm:$0xff] }
 0x126   : > { %v2078_v33 = vsel %vm7580_vm7, %v2077_v60, %v2073_v31  ;;  %vm2101_vm1 = vweird.f32 %v5572_v23  ;;  %v2107_v30 = vor.u32 1.1754944e-38, %v2106_v18  ;;  %vm2115_vm2 = vweird.f32 %v7605_v0 }
 0x127   : > { %5093 = vst [vmem:[%s6292_s21 + $0x1d0] sm:$0xff] %v2078_v33  ;;  %v2088_v34 = vsel %vm7628_vm15, %v5570_v62, %v2084_v32  ;;  %v2097_v36 = vsub.f32 1.0, %v2096_v26  ;;  %v746_v37 = vmul.f32 %v6187_v9, %v489_v22  ;;  %v490_v38 = vmul.f32 %v234_v27, %v234_v27  ;;  %vm7667_vm5 = vmor %vm2100_vm0, %vm2101_vm1 }
 0x128   : > { %v5574_v39 = vpop.eup %5573  ;;  %v2093_v41 = vsel %vm7616_vm14, %v2092_v17, %v2088_v34  ;;  %vm7654_vm3 = vcmp.eq.f32.partialorder %v2119_v4, 8.507059e+37  ;;  %v2121_v43 = vand.u32 2147483648, %v7605_v0  ;;  %v491_v44 = vmul.f32 %v235_v29, %v235_v29 }
 0x129   : > { %5094 = vst [vmem:[%s6292_s21 + $0x1d8] sm:$0xff] %v2093_v41  ;;  %v2098_v35 = vmul.f32 %v5572_v23, %v2097_v36  ;;  %v2111_v42 = vmul.f32 %v5574_v39, %v7605_v0  ;;  %vm2130_vm4 = vweird.f32 %v7607_v12  ;;  %v7662_v45 = vadd.f32 1.0, %v746_v37 }
 0x12a   : > { %v5576_v46 = vpop.eup %5575  ;;  %v2134_v49 = vand.u32 2147483647, %v7607_v12  ;;  %v2136_v48 = vand.u32 2147483648, %v7607_v12  ;;  %v747_v50 = vmul.f32 %v6187_v9, %v490_v38  ;;  %v748_v51 = vmul.f32 %v6187_v9, %v491_v44 }
 0x12b   : > { %v2099_v54 = vadd.f32 %v5572_v23, %v2098_v35  ;;  %v2112_v52 = vsub.f32 1.0, %v2111_v42  ;;  %vm2116_vm6 = vweird.f32 %v5574_v39  ;;  %v2126_v53 = vmul.f32 %v5576_v46, %v7607_v12  ;;  %v240_v42 = vld [vmem:[%s6175_s28 + $0x230] sm:$0xff] }
 0x12c   : > { %vm2131_vm7 = vweird.f32 %v5576_v46  ;;  %5577 = vrcp.f32 %v7662_v45  ;;  %v2149_v56 = vand.u32 2147483647, %v7662_v45  ;;  %v2151_v57 = vand.u32 2147483648, %v7662_v45  ;;  %vm7689_vm9 = vmor %vm2115_vm2, %vm2116_vm6 }
 0x12d   : > { %v2103_v58 = vsel %vm7667_vm5, %v5572_v23, %v2099_v54  ;;  %v2113_v59 = vmul.f32 %v5574_v39, %v2112_v52  ;;  %v2127_v61 = vsub.f32 1.0, %v2126_v53  ;;  %v7682_v62 = vadd.f32 1.0, %v747_v50  ;;  %vm7704_vm11 = vmor %vm2130_vm4, %vm2131_vm7 }
 0x12e   : > { %v2108_v63 = vsel %vm7640_vm8, %v2107_v30, %v2103_v58  ;;  %v2122_v6 = vor.u32 1.1754944e-38, %v2121_v43  ;;  %v7693_v5 = vadd.f32 1.0, %v748_v51  ;;  %v492_v7 = vmul.f32 %v236_v55, %v236_v55 }
 0x12f   : > { %5095 = vst [vmem:[%s6292_s21 + $0x1e0] sm:$0xff] %v2108_v63  ;;  %v2114_v8 = vadd.f32 %v5574_v39, %v2113_v59  ;;  %v2128_v60 = vmul.f32 %v5576_v46, %v2127_v61  ;;  %vm7696_vm10 = vcmp.eq.f32.partialorder %v2134_v49, 8.507059e+37  ;;  %5579 = vrcp.f32 %v7682_v62 }
 0x130   : > { %v2137_v3 = vor.u32 1.1754944e-38, %v2136_v48  ;;  %vm2145_vm12 = vweird.f32 %v7662_v45  ;;  %5581 = vrcp.f32 %v7693_v5  ;;  %v493_v10 = vmul.f32 %v237_v1, %v237_v1 }
 0x131   : > { %v2118_v13 = vsel %vm7689_vm9, %v5574_v39, %v2114_v8  ;;  %v2129_v14 = vadd.f32 %v5576_v46, %v2128_v60  ;;  %vm7712_vm13 = vcmp.eq.f32.partialorder %v2149_v56, 8.507059e+37  ;;  %v2152_v12 = vor.u32 1.1754944e-38, %v2151_v57 }
 0x132   : > { %v5578_v16 = vpop.eup %5577  ;;  %v2123_v17 = vsel %vm7654_vm3, %v2122_v6, %v2118_v13  ;;  %vm2160_vm14 = vweird.f32 %v7682_v62  ;;  %v2164_v18 = vand.u32 2147483647, %v7682_v62  ;;  %v749_v19 = vmul.f32 %v6187_v9, %v492_v7 }
 0x133   : > { %5096 = vst [vmem:[%s6292_s21 + $0x1e8] sm:$0xff] %v2123_v17  ;;  %v2133_v22 = vsel %vm7704_vm11, %v5576_v46, %v2129_v14  ;;  %v2141_v23 = vmul.f32 %v5578_v16, %v7662_v45  ;;  %v2166_v24 = vand.u32 2147483648, %v7682_v62  ;;  %v2179_v25 = vand.u32 2147483647, %v7693_v5  ;;  %v242_v17 = vld [vmem:[%s6175_s28 + $0x240] sm:$0xff] }
 0x134   : > { %v2138_v4 = vsel %vm7696_vm10, %v2137_v3, %v2133_v22  ;;  %vm2175_vm15 = vweird.f32 %v7693_v5  ;;  %v7732_v27 = vadd.f32 1.0, %v749_v19  ;;  %v750_v31 = vmul.f32 %v6187_v9, %v493_v10  ;;  %v243_v22 = vld [vmem:[%s6175_s28 + $0x248] sm:$0xff] }
 0x135   : > { %v5580_v32 = vpop.eup %5579  ;;  %5097 = vst [vmem:[%s6292_s21 + $0x1f0] sm:$0xff] %v2138_v4  ;;  %v2142_v26 = vsub.f32 1.0, %v2141_v23  ;;  %vm2146_vm0 = vweird.f32 %v5578_v16  ;;  %v494_v28 = vmul.f32 %v238_v20, %v238_v20  ;;  %v495_v29 = vmul.f32 %v239_v21, %v239_v21 }
 0x136   : > { %v5582_v33 = vpop.eup %5581  ;;  %v2156_v30 = vmul.f32 %v5580_v32, %v7682_v62  ;;  %vm7737_vm8 = vcmp.eq.f32.partialorder %v2164_v18, 8.507059e+37  ;;  %v2181_v36 = vand.u32 2147483648, %v7693_v5  ;;  %5583 = vrcp.f32 %v7732_v27  ;;  %vm7750_vm2 = vmor %vm2145_vm12, %vm2146_vm0 }
 0x137   : > { %v2143_v37 = vmul.f32 %v5578_v16, %v2142_v26  ;;  %v2167_v38 = vor.u32 1.1754944e-38, %v2166_v24  ;;  %v2171_v39 = vmul.f32 %v5582_v33, %v7693_v5  ;;  %vm7744_vm1 = vcmp.eq.f32.partialorder %v2179_v25, 8.507059e+37 }
 0x138   : > { %v2157_v43 = vsub.f32 1.0, %v2156_v30  ;;  %vm2161_vm3 = vweird.f32 %v5580_v32  ;;  %v7754_v44 = vadd.f32 1.0, %v750_v31  ;;  %v751_v35 = vmul.f32 %v6187_v9, %v494_v28 }
 0x139   : > { %v2144_v46 = vadd.f32 %v5578_v16, %v2143_v37  ;;  %v2172_v47 = vsub.f32 1.0, %v2171_v39  ;;  %vm2176_vm4 = vweird.f32 %v5582_v33  ;;  %v752_v49 = vmul.f32 %v6187_v9, %v495_v29  ;;  %vm7765_vm5 = vmor %vm2160_vm14, %vm2161_vm3 }
 0x13a   : > { %v2158_v48 = vmul.f32 %v5580_v32, %v2157_v43  ;;  %v2182_v50 = vor.u32 1.1754944e-38, %v2181_v36  ;;  %v2194_v45 = vand.u32 2147483647, %v7732_v27  ;;  %5585 = vrcp.f32 %v7754_v44  ;;  %vm7774_vm6 = vmor %vm2175_vm15, %vm2176_vm4 }
 0x13b   : > { %v2148_v51 = vsel %vm7750_vm2, %v5578_v16, %v2144_v46  ;;  %v2173_v52 = vmul.f32 %v5582_v33, %v2172_v47  ;;  %v2196_v53 = vand.u32 2147483648, %v7732_v27  ;;  %v496_v55 = vmul.f32 %v240_v42, %v240_v42  ;;  %v241_v16 = vld [vmem:[%s6175_s28 + $0x238] sm:$0xff] }
 0x13c   : > { %v5584_v56 = vpop.eup %5583  ;;  %v2153_v57 = vsel %vm7712_vm13, %v2152_v12, %v2148_v51  ;;  %v2159_v58 = vadd.f32 %v5580_v32, %v2158_v48  ;;  %v7778_v61 = vadd.f32 1.0, %v751_v35  ;;  %v7780_v62 = vadd.f32 1.0, %v752_v49 }
 0x13d   : > { %5098 = vst [vmem:[%s6292_s21 + $0x1f8] sm:$0xff] %v2153_v57  ;;  %v2174_v1 = vadd.f32 %v5582_v33, %v2173_v52  ;;  %v2186_v63 = vmul.f32 %v5584_v56, %v7732_v27  ;;  %vm2190_vm7 = vweird.f32 %v7732_v27  ;;  %v2209_v2 = vand.u32 2147483647, %v7754_v44  ;;  %v244_v57 = vld [vmem:[%s6175_s28 + $0x250] sm:$0xff] }
 0x13e   : > { %v2163_v6 = vsel %vm7765_vm5, %v5580_v32, %v2159_v58  ;;  %vm7788_vm9 = vcmp.eq.f32.partialorder %v2194_v45, 8.507059e+37  ;;  %v2211_v7 = vand.u32 2147483648, %v7754_v44  ;;  %5587 = vrcp.f32 %v7778_v61 }
 0x13f   : > { %v2168_v8 = vsel %vm7737_vm8, %v2167_v38, %v2163_v6  ;;  %v2178_v60 = vsel %vm7774_vm6, %v5582_v33, %v2174_v1  ;;  %v2187_v11 = vsub.f32 1.0, %v2186_v63  ;;  %vm2191_vm10 = vweird.f32 %v5584_v56 }
 0x140   : > { %v5586_v0 = vpop.eup %5585  ;;  %5099 = vst [vmem:[%s6292_s21 + $0x200] sm:$0xff] %v2168_v8  ;;  %v2183_v3 = vsel %vm7744_vm1, %v2182_v50, %v2178_v60  ;;  %v2197_v10 = vor.u32 1.1754944e-38, %v2196_v53  ;;  %v2224_v13 = vand.u32 2147483647, %v7778_v61  ;;  %5589 = vrcp.f32 %v7780_v62  ;;  %vm7814_vm13 = vmor %vm2190_vm7, %vm2191_vm10 }
 0x141   : > { %5100 = vst [vmem:[%s6292_s21 + $0x208] sm:$0xff] %v2183_v3  ;;  %v2188_v14 = vmul.f32 %v5584_v56, %v2187_v11  ;;  %v2201_v15 = vmul.f32 %v5586_v0, %v7754_v44  ;;  %vm2205_vm11 = vweird.f32 %v7754_v44  ;;  %vm7806_vm12 = vcmp.eq.f32.partialorder %v2209_v2, 8.507059e+37  ;;  %v245_v3 = vld [vmem:[%s6175_s28 + $0x258] sm:$0xff] }
 0x142   : > { %v2212_v19 = vor.u32 1.1754944e-38, %v2211_v7  ;;  %vm2220_vm14 = vweird.f32 %v7778_v61  ;;  %v2226_v20 = vand.u32 2147483648, %v7778_v61  ;;  %v753_v21 = vmul.f32 %v6187_v9, %v496_v55 }
 0x143   : > { %v2189_v23 = vadd.f32 %v5584_v56, %v2188_v14  ;;  %v2202_v24 = vsub.f32 1.0, %v2201_v15  ;;  %vm2206_vm15 = vweird.f32 %v5586_v0  ;;  %vm2235_vm0 = vweird.f32 %v7780_v62 }
 0x144   : > { %v5588_v25 = vpop.eup %5587  ;;  %vm7823_vm8 = vcmp.eq.f32.partialorder %v2224_v13, 8.507059e+37  ;;  %v7827_v27 = vadd.f32 1.0, %v753_v21  ;;  %v497_v31 = vmul.f32 %v241_v16, %v241_v16  ;;  %v498_v32 = vmul.f32 %v242_v17, %v242_v17  ;;  %vm7836_vm1 = vmor %vm2205_vm11, %vm2206_vm15 }
 0x145   : > { %v2193_v26 = vsel %vm7814_vm13, %v5584_v56, %v2189_v23  ;;  %v2203_v28 = vmul.f32 %v5586_v0, %v2202_v24  ;;  %v2216_v29 = vmul.f32 %v5588_v25, %v7778_v61  ;;  %v499_v33 = vmul.f32 %v243_v22, %v243_v22 }
 0x146   : > { %v5590_v30 = vpop.eup %5589  ;;  %v2198_v34 = vsel %vm7788_vm9, %v2197_v10, %v2193_v26  ;;  %v2239_v37 = vand.u32 2147483647, %v7780_v62  ;;  %v2241_v38 = vand.u32 2147483648, %v7780_v62  ;;  %5591 = vrcp.f32 %v7827_v27  ;;  %v246_v10 = vld [vmem:[%s6175_s28 + $0x260] sm:$0xff] }
 0x147   : > { %5101 = vst [vmem:[%s6292_s21 + $0x210] sm:$0xff] %v2198_v34  ;;  %v2204_v39 = vadd.f32 %v5586_v0, %v2203_v28  ;;  %v2217_v41 = vsub.f32 1.0, %v2216_v29  ;;  %vm2221_vm2 = vweird.f32 %v5588_v25  ;;  %v2231_v40 = vmul.f32 %v5590_v30, %v7780_v62 }
 0x148   : > { %v2227_v43 = vor.u32 1.1754944e-38, %v2226_v20  ;;  %vm2236_vm3 = vweird.f32 %v5590_v30  ;;  %v754_v44 = vmul.f32 %v6187_v9, %v497_v31  ;;  %v755_v35 = vmul.f32 %v6187_v9, %v498_v32  ;;  %vm7854_vm4 = vmor %vm2220_vm14, %vm2221_vm2 }
 0x149   : > { %v2208_v42 = vsel %vm7836_vm1, %v5586_v0, %v2204_v39  ;;  %v2218_v46 = vmul.f32 %v5588_v25, %v2217_v41  ;;  %v2232_v47 = vsub.f32 1.0, %v2231_v40  ;;  %v756_v49 = vmul.f32 %v6187_v9, %v499_v33  ;;  %vm7872_vm6 = vmor %vm2235_vm0, %vm2236_vm3 }
 0x14a   : > { %v2213_v48 = vsel %vm7806_vm12, %v2212_v19, %v2208_v42  ;;  %vm7858_vm5 = vcmp.eq.f32.partialorder %v2239_v37, 8.507059e+37  ;;  %v7862_v51 = vadd.f32 1.0, %v754_v44  ;;  %v7864_v54 = vadd.f32 1.0, %v755_v35 }
 0x14b   : > { %5102 = vst [vmem:[%s6292_s21 + $0x218] sm:$0xff] %v2213_v48  ;;  %v2219_v52 = vadd.f32 %v5588_v25, %v2218_v46  ;;  %v2233_v53 = vmul.f32 %v5590_v30, %v2232_v47  ;;  %v2242_v55 = vor.u32 1.1754944e-38, %v2241_v38  ;;  %v2254_v56 = vand.u32 2147483647, %v7827_v27  ;;  %v247_v46 = vld [vmem:[%s6175_s28 + $0x268] sm:$0xff] }
 0x14c   : > { %v5592_v58 = vpop.eup %5591  ;;  %v2256_v61 = vand.u32 2147483648, %v7827_v27  ;;  %5593 = vrcp.f32 %v7862_v51  ;;  %v2269_v1 = vand.u32 2147483647, %v7862_v51  ;;  %v7879_v63 = vadd.f32 1.0, %v756_v49 }
 0x14d   : > { %v2223_v2 = vsel %vm7854_vm4, %v5588_v25, %v2219_v52  ;;  %v2234_v6 = vadd.f32 %v5590_v30, %v2233_v53  ;;  %v2246_v62 = vmul.f32 %v5592_v58, %v7827_v27  ;;  %v2271_v5 = vand.u32 2147483648, %v7862_v51 }
 0x14e   : > { %v2228_v7 = vsel %vm7823_vm8, %v2227_v43, %v2223_v2  ;;  %vm2250_vm7 = vweird.f32 %v7827_v27  ;;  %5595 = vrcp.f32 %v7864_v54  ;;  %v500_v8 = vmul.f32 %v244_v57, %v244_v57 }
 0x14f   : > { %5103 = vst [vmem:[%s6292_s21 + $0x220] sm:$0xff] %v2228_v7  ;;  %v2238_v60 = vsel %vm7872_vm6, %v5590_v30, %v2234_v6  ;;  %v2247_v11 = vsub.f32 1.0, %v2246_v62  ;;  %vm2251_vm9 = vweird.f32 %v5592_v58  ;;  %vm7892_vm10 = vcmp.eq.f32.partialorder %v2254_v56, 8.507059e+37 }
 0x150   : > { %v2243_v13 = vsel %vm7858_vm5, %v2242_v55, %v2238_v60  ;;  %v2257_v14 = vor.u32 1.1754944e-38, %v2256_v61  ;;  %v2284_v15 = vand.u32 2147483647, %v7864_v54  ;;  %5597 = vrcp.f32 %v7879_v63  ;;  %vm7910_vm13 = vmor %vm2250_vm7, %vm2251_vm9 }
 0x151   : > { %5104 = vst [vmem:[%s6292_s21 + $0x228] sm:$0xff] %v2243_v13  ;;  %v2248_v12 = vmul.f32 %v5592_v58, %v2247_v11  ;;  %vm2265_vm11 = vweird.f32 %v7862_v51  ;;  %vm7904_vm12 = vcmp.eq.f32.partialorder %v2269_v1, 8.507059e+37  ;;  %v2272_v17 = vor.u32 1.1754944e-38, %v2271_v5  ;;  %v248_v1 = vld [vmem:[%s6175_s28 + $0x270] sm:$0xff]  ;;  %v249_v5 = vld [vmem:[%s6175_s28 + $0x278] sm:$0xff] }
 0x152   : > { %v5594_v18 = vpop.eup %5593  ;;  %vm2280_vm14 = vweird.f32 %v7864_v54  ;;  %v757_v20 = vmul.f32 %v6187_v9, %v500_v8  ;;  %v501_v21 = vmul.f32 %v245_v3, %v245_v3  ;;  %v502_v22 = vmul.f32 %v246_v10, %v246_v10 }
 0x153   : > { %v2249_v23 = vadd.f32 %v5592_v58, %v2248_v12  ;;  %v2261_v24 = vmul.f32 %v5594_v18, %v7862_v51  ;;  %v2286_v25 = vand.u32 2147483648, %v7864_v54  ;;  %vm2295_vm15 = vweird.f32 %v7879_v63 }
 0x154   : > { %v5596_v4 = vpop.eup %5595  ;;  %vm7919_vm0 = vcmp.eq.f32.partialorder %v2284_v15, 8.507059e+37  ;;  %v7923_v31 = vadd.f32 1.0, %v757_v20  ;;  %v758_v32 = vmul.f32 %v6187_v9, %v501_v21  ;;  %v759_v26 = vmul.f32 %v6187_v9, %v502_v22 }
 0x155   : > { %v2253_v28 = vsel %vm7910_vm13, %v5592_v58, %v2249_v23  ;;  %v2262_v29 = vsub.f32 1.0, %v2261_v24  ;;  %vm2266_vm8 = vweird.f32 %v5594_v18  ;;  %v2276_v33 = vmul.f32 %v5596_v4, %v7864_v54 }
 0x156   : > { %v5598_v30 = vpop.eup %5597  ;;  %v2258_v34 = vsel %vm7892_vm10, %v2257_v14, %v2253_v28  ;;  %v2299_v36 = vand.u32 2147483647, %v7879_v63  ;;  %v2301_v37 = vand.u32 2147483648, %v7879_v63  ;;  %5599 = vrcp.f32 %v7923_v31  ;;  %vm7939_vm2 = vmor %vm2265_vm11, %vm2266_vm8 }
 0x157   : > { %5105 = vst [vmem:[%s6292_s21 + $0x230] sm:$0xff] %v2258_v34  ;;  %v2263_v38 = vmul.f32 %v5594_v18, %v2262_v29  ;;  %v2277_v39 = vsub.f32 1.0, %v2276_v33  ;;  %vm2281_vm1 = vweird.f32 %v5596_v4  ;;  %v2291_v41 = vmul.f32 %v5598_v30, %v7879_v63  ;;  %v251_v34 = vld [vmem:[%s6175_s28 + $0x288] sm:$0xff] }
 0x158   : > { %v2287_v43 = vor.u32 1.1754944e-38, %v2286_v25  ;;  %v2314_v44 = vand.u32 2147483647, %v7923_v31  ;;  %v7944_v35 = vadd.f32 1.0, %v758_v32  ;;  %v7946_v42 = vadd.f32 1.0, %v759_v26  ;;  %vm7951_vm4 = vmor %vm2280_vm14, %vm2281_vm1 }
 0x159   : > { %v2264_v47 = vadd.f32 %v5594_v18, %v2263_v38  ;;  %v2278_v49 = vmul.f32 %v5596_v4, %v2277_v39  ;;  %v2292_v48 = vsub.f32 1.0, %v2291_v41  ;;  %vm2296_vm3 = vweird.f32 %v5598_v30 }
 0x15a   : > { %vm7955_vm5 = vcmp.eq.f32.partialorder %v2299_v36, 8.507059e+37  ;;  %v2302_v51 = vor.u32 1.1754944e-38, %v2301_v37  ;;  %v2316_v52 = vand.u32 2147483648, %v7923_v31  ;;  %5601 = vrcp.f32 %v7944_v35  ;;  %vm7967_vm6 = vmor %vm2295_vm15, %vm2296_vm3 }
 0x15b   : > { %v2268_v53 = vsel %vm7939_vm2, %v5594_v18, %v2264_v47  ;;  %v2279_v54 = vadd.f32 %v5596_v4, %v2278_v49  ;;  %v2293_v55 = vmul.f32 %v5598_v30, %v2292_v48  ;;  %v503_v56 = vmul.f32 %v247_v46, %v247_v46 }
 0x15c   : > { %v5600_v57 = vpop.eup %5599  ;;  %v2273_v58 = vsel %vm7904_vm12, %v2272_v17, %v2268_v53  ;;  %vm2310_vm7 = vweird.f32 %v7923_v31  ;;  %v2329_v61 = vand.u32 2147483647, %v7944_v35  ;;  %5603 = vrcp.f32 %v7946_v42 }
 0x15d   : > { %5106 = vst [vmem:[%s6292_s21 + $0x238] sm:$0xff] %v2273_v58  ;;  %v2283_v2 = vsel %vm7951_vm4, %v5596_v4, %v2279_v54  ;;  %v2294_v6 = vadd.f32 %v5598_v30, %v2293_v55  ;;  %v2306_v62 = vmul.f32 %v5600_v57, %v7923_v31  ;;  %vm7979_vm9 = vcmp.eq.f32.partialorder %v2314_v44, 8.507059e+37  ;;  %v250_v31 = vld [vmem:[%s6175_s28 + $0x280] sm:$0xff]  ;;  %v252_v54 = vld [vmem:[%s6175_s28 + $0x290] sm:$0xff]  ;;  %v253_v55 = vld [vmem:[%s6175_s28 + $0x298] sm:$0xff] }
 0x15e   : > { %v2288_v7 = vsel %vm7919_vm0, %v2287_v43, %v2283_v2  ;;  %vm2311_vm10 = vweird.f32 %v5600_v57  ;;  %v2317_v8 = vor.u32 1.1754944e-38, %v2316_v52  ;;  %vm2325_vm11 = vweird.f32 %v7944_v35 }
 0x15f   : > { %5107 = vst [vmem:[%s6292_s21 + $0x240] sm:$0xff] %v2288_v7  ;;  %v2298_v60 = vsel %vm7967_vm6, %v5598_v30, %v2294_v6  ;;  %v2307_v11 = vsub.f32 1.0, %v2306_v62  ;;  %v760_v0 = vmul.f32 %v6187_v9, %v503_v56  ;;  %v504_v3 = vmul.f32 %v248_v1, %v248_v1  ;;  %vm8006_vm14 = vmor %vm2310_vm7, %vm2311_vm10 }
 0x160   : > { %v5602_v10 = vpop.eup %5601  ;;  %v2303_v13 = vsel %vm7955_vm5, %v2302_v51, %v2298_v60  ;;  %vm7993_vm12 = vcmp.eq.f32.partialorder %v2329_v61, 8.507059e+37  ;;  %v2331_v15 = vand.u32 2147483648, %v7944_v35  ;;  %v505_v12 = vmul.f32 %v249_v5, %v249_v5 }
 0x161   : > { %5108 = vst [vmem:[%s6292_s21 + $0x248] sm:$0xff] %v2303_v13  ;;  %v2308_v16 = vmul.f32 %v5600_v57, %v2307_v11  ;;  %v2321_v17 = vmul.f32 %v5602_v10, %v7944_v35  ;;  %vm2340_vm13 = vweird.f32 %v7946_v42  ;;  %v8001_v18 = vadd.f32 1.0, %v760_v0 }
 0x162   : > { %v5604_v19 = vpop.eup %5603  ;;  %v2344_v21 = vand.u32 2147483647, %v7946_v42  ;;  %v2346_v22 = vand.u32 2147483648, %v7946_v42  ;;  %v761_v23 = vmul.f32 %v6187_v9, %v504_v3  ;;  %v762_v24 = vmul.f32 %v6187_v9, %v505_v12 }
 0x163   : > { %v2309_v25 = vadd.f32 %v5600_v57, %v2308_v16  ;;  %v2322_v4 = vsub.f32 1.0, %v2321_v17  ;;  %vm2326_vm15 = vweird.f32 %v5602_v10  ;;  %v2336_v27 = vmul.f32 %v5604_v19, %v7946_v42  ;;  %v254_v17 = vld [vmem:[%s6175_s28 + $0x2a0] sm:$0xff] }
 0x164   : > { %vm2341_vm0 = vweird.f32 %v5604_v19  ;;  %5605 = vrcp.f32 %v8001_v18  ;;  %v2359_v32 = vand.u32 2147483647, %v8001_v18  ;;  %v2361_v26 = vand.u32 2147483648, %v8001_v18  ;;  %vm8028_vm8 = vmor %vm2325_vm11, %vm2326_vm15 }
 0x165   : > { %v2313_v28 = vsel %vm8006_vm14, %v5600_v57, %v2309_v25  ;;  %v2323_v29 = vmul.f32 %v5602_v10, %v2322_v4  ;;  %v2337_v33 = vsub.f32 1.0, %v2336_v27  ;;  %v8021_v30 = vadd.f32 1.0, %v761_v23  ;;  %vm8043_vm2 = vmor %vm2340_vm13, %vm2341_vm0 }
 0x166   : > { %v2318_v36 = vsel %vm7979_vm9, %v2317_v8, %v2313_v28  ;;  %v2332_v38 = vor.u32 1.1754944e-38, %v2331_v15  ;;  %v8032_v39 = vadd.f32 1.0, %v762_v24  ;;  %v506_v41 = vmul.f32 %v250_v31, %v250_v31 }
 0x167   : > { %5109 = vst [vmem:[%s6292_s21 + $0x250] sm:$0xff] %v2318_v36  ;;  %v2324_v40 = vadd.f32 %v5602_v10, %v2323_v29  ;;  %v2338_v43 = vmul.f32 %v5604_v19, %v2337_v33  ;;  %vm8035_vm1 = vcmp.eq.f32.partialorder %v2344_v21, 8.507059e+37  ;;  %5607 = vrcp.f32 %v8021_v30 }
 0x168   : > { %v2347_v46 = vor.u32 1.1754944e-38, %v2346_v22  ;;  %vm2355_vm3 = vweird.f32 %v8001_v18  ;;  %5609 = vrcp.f32 %v8032_v39  ;;  %v507_v47 = vmul.f32 %v251_v34, %v251_v34 }
 0x169   : > { %v2328_v49 = vsel %vm8028_vm8, %v5602_v10, %v2324_v40  ;;  %v2339_v48 = vadd.f32 %v5604_v19, %v2338_v43  ;;  %vm8051_vm4 = vcmp.eq.f32.partialorder %v2359_v32, 8.507059e+37  ;;  %v2362_v42 = vor.u32 1.1754944e-38, %v2361_v26 }
 0x16a   : > { %v5606_v45 = vpop.eup %5605  ;;  %v2333_v51 = vsel %vm7993_vm12, %v2332_v38, %v2328_v49  ;;  %vm2370_vm5 = vweird.f32 %v8021_v30  ;;  %v2374_v52 = vand.u32 2147483647, %v8021_v30  ;;  %v763_v53 = vmul.f32 %v6187_v9, %v506_v41 }
 0x16b   : > { %5110 = vst [vmem:[%s6292_s21 + $0x258] sm:$0xff] %v2333_v51  ;;  %v2343_v56 = vsel %vm8043_vm2, %v5604_v19, %v2339_v48  ;;  %v2351_v57 = vmul.f32 %v5606_v45, %v8001_v18  ;;  %v2376_v58 = vand.u32 2147483648, %v8021_v30  ;;  %v2389_v59 = vand.u32 2147483647, %v8032_v39  ;;  %v256_v51 = vld [vmem:[%s6175_s28 + $0x2b0] sm:$0xff] }
 0x16c   : > { %v2348_v61 = vsel %vm8035_vm1, %v2347_v46, %v2343_v56  ;;  %vm2385_vm6 = vweird.f32 %v8032_v39  ;;  %v8071_v1 = vadd.f32 1.0, %v763_v53  ;;  %v764_v2 = vmul.f32 %v6187_v9, %v507_v47  ;;  %v257_v56 = vld [vmem:[%s6175_s28 + $0x2b8] sm:$0xff] }
 0x16d   : > { %v5608_v6 = vpop.eup %5607  ;;  %5111 = vst [vmem:[%s6292_s21 + $0x260] sm:$0xff] %v2348_v61  ;;  %v2352_v62 = vsub.f32 1.0, %v2351_v57  ;;  %vm2356_vm7 = vweird.f32 %v5606_v45  ;;  %v508_v63 = vmul.f32 %v252_v54, %v252_v54  ;;  %v509_v5 = vmul.f32 %v253_v55, %v253_v55 }
 0x16e   : > { %v5610_v7 = vpop.eup %5609  ;;  %v2366_v8 = vmul.f32 %v5608_v6, %v8021_v30  ;;  %vm8076_vm9 = vcmp.eq.f32.partialorder %v2374_v52, 8.507059e+37  ;;  %v2391_v11 = vand.u32 2147483648, %v8032_v39  ;;  %5611 = vrcp.f32 %v8071_v1  ;;  %vm8089_vm11 = vmor %vm2355_vm3, %vm2356_vm7 }
 0x16f   : > { %v2353_v0 = vmul.f32 %v5606_v45, %v2352_v62  ;;  %v2377_v3 = vor.u32 1.1754944e-38, %v2376_v58  ;;  %v2381_v10 = vmul.f32 %v5610_v7, %v8032_v39  ;;  %vm8083_vm10 = vcmp.eq.f32.partialorder %v2389_v59, 8.507059e+37 }
 0x170   : > { %v2367_v15 = vsub.f32 1.0, %v2366_v8  ;;  %vm2371_vm12 = vweird.f32 %v5608_v6  ;;  %v8093_v12 = vadd.f32 1.0, %v764_v2  ;;  %v765_v16 = vmul.f32 %v6187_v9, %v508_v63 }
 0x171   : > { %v2354_v19 = vadd.f32 %v5606_v45, %v2353_v0  ;;  %v2382_v20 = vsub.f32 1.0, %v2381_v10  ;;  %vm2386_vm13 = vweird.f32 %v5610_v7  ;;  %v766_v21 = vmul.f32 %v6187_v9, %v509_v5  ;;  %vm8104_vm14 = vmor %vm2370_vm5, %vm2371_vm12 }
 0x172   : > { %v2368_v22 = vmul.f32 %v5608_v6, %v2367_v15  ;;  %v2392_v23 = vor.u32 1.1754944e-38, %v2391_v11  ;;  %v2404_v18 = vand.u32 2147483647, %v8071_v1  ;;  %5613 = vrcp.f32 %v8093_v12  ;;  %vm8113_vm15 = vmor %vm2385_vm6, %vm2386_vm13 }
 0x173   : > { %v2358_v24 = vsel %vm8089_vm11, %v5606_v45, %v2354_v19  ;;  %v2383_v4 = vmul.f32 %v5610_v7, %v2382_v20  ;;  %v2406_v27 = vand.u32 2147483648, %v8071_v1  ;;  %v510_v31 = vmul.f32 %v254_v17, %v254_v17  ;;  %v255_v45 = vld [vmem:[%s6175_s28 + $0x2a8] sm:$0xff] }
 0x174   : > { %v5612_v32 = vpop.eup %5611  ;;  %v2363_v26 = vsel %vm8051_vm4, %v2362_v42, %v2358_v24  ;;  %v2369_v28 = vadd.f32 %v5608_v6, %v2368_v22  ;;  %v8117_v33 = vadd.f32 1.0, %v765_v16  ;;  %v8119_v30 = vadd.f32 1.0, %v766_v21 }
 0x175   : > { %5112 = vst [vmem:[%s6292_s21 + $0x268] sm:$0xff] %v2363_v26  ;;  %v2384_v34 = vadd.f32 %v5610_v7, %v2383_v4  ;;  %v2396_v36 = vmul.f32 %v5612_v32, %v8071_v1  ;;  %vm2400_vm0 = vweird.f32 %v8071_v1  ;;  %v2419_v37 = vand.u32 2147483647, %v8093_v12  ;;  %v258_v26 = vld [vmem:[%s6175_s28 + $0x2c0] sm:$0xff] }
 0x176   : > { %v2373_v38 = vsel %vm8104_vm14, %v5608_v6, %v2369_v28  ;;  %vm8127_vm8 = vcmp.eq.f32.partialorder %v2404_v18, 8.507059e+37  ;;  %v2421_v41 = vand.u32 2147483648, %v8093_v12  ;;  %5615 = vrcp.f32 %v8117_v33 }
 0x177   : > { %v2378_v40 = vsel %vm8076_vm9, %v2377_v3, %v2373_v38  ;;  %v2388_v43 = vsel %vm8113_vm15, %v5610_v7, %v2384_v34  ;;  %v2397_v44 = vsub.f32 1.0, %v2396_v36  ;;  %vm2401_vm1 = vweird.f32 %v5612_v32 }
 0x178   : > { %v5614_v35 = vpop.eup %5613  ;;  %5113 = vst [vmem:[%s6292_s21 + $0x270] sm:$0xff] %v2378_v40  ;;  %v2393_v46 = vsel %vm8083_vm10, %v2392_v23, %v2388_v43  ;;  %v2407_v47 = vor.u32 1.1754944e-38, %v2406_v27  ;;  %v2434_v49 = vand.u32 2147483647, %v8117_v33  ;;  %5617 = vrcp.f32 %v8119_v30  ;;  %vm8153_vm4 = vmor %vm2400_vm0, %vm2401_vm1 }
 0x179   : > { %5114 = vst [vmem:[%s6292_s21 + $0x278] sm:$0xff] %v2393_v46  ;;  %v2398_v48 = vmul.f32 %v5612_v32, %v2397_v44  ;;  %v2411_v50 = vmul.f32 %v5614_v35, %v8093_v12  ;;  %vm2415_vm2 = vweird.f32 %v8093_v12  ;;  %vm8145_vm3 = vcmp.eq.f32.partialorder %v2419_v37, 8.507059e+37  ;;  %v259_v46 = vld [vmem:[%s6175_s28 + $0x2c8] sm:$0xff] }
 0x17a   : > { %v2422_v53 = vor.u32 1.1754944e-38, %v2421_v41  ;;  %vm2430_vm5 = vweird.f32 %v8117_v33  ;;  %v2436_v54 = vand.u32 2147483648, %v8117_v33  ;;  %v767_v55 = vmul.f32 %v6187_v9, %v510_v31 }
 0x17b   : > { %v2399_v57 = vadd.f32 %v5612_v32, %v2398_v48  ;;  %v2412_v58 = vsub.f32 1.0, %v2411_v50  ;;  %vm2416_vm6 = vweird.f32 %v5614_v35  ;;  %vm2445_vm7 = vweird.f32 %v8119_v30 }
 0x17c   : > { %v5616_v59 = vpop.eup %5615  ;;  %vm8162_vm9 = vcmp.eq.f32.partialorder %v2434_v49, 8.507059e+37  ;;  %v8166_v1 = vadd.f32 1.0, %v767_v55  ;;  %v511_v2 = vmul.f32 %v255_v45, %v255_v45  ;;  %v512_v6 = vmul.f32 %v256_v51, %v256_v51  ;;  %vm8175_vm10 = vmor %vm2415_vm2, %vm2416_vm6 }
 0x17d   : > { %v2403_v62 = vsel %vm8153_vm4, %v5612_v32, %v2399_v57  ;;  %v2413_v63 = vmul.f32 %v5614_v35, %v2412_v58  ;;  %v2426_v5 = vmul.f32 %v5616_v59, %v8117_v33  ;;  %v513_v7 = vmul.f32 %v257_v56, %v257_v56 }
 0x17e   : > { %v5618_v8 = vpop.eup %5617  ;;  %v2408_v60 = vsel %vm8127_vm8, %v2407_v47, %v2403_v62  ;;  %v2449_v0 = vand.u32 2147483647, %v8119_v30  ;;  %v2451_v3 = vand.u32 2147483648, %v8119_v30  ;;  %5619 = vrcp.f32 %v8166_v1  ;;  %v260_v47 = vld [vmem:[%s6175_s28 + $0x2d0] sm:$0xff] }
 0x17f   : > { %5115 = vst [vmem:[%s6292_s21 + $0x280] sm:$0xff] %v2408_v60  ;;  %v2414_v10 = vadd.f32 %v5614_v35, %v2413_v63  ;;  %v2427_v13 = vsub.f32 1.0, %v2426_v5  ;;  %vm2431_vm11 = vweird.f32 %v5616_v59  ;;  %v2441_v14 = vmul.f32 %v5618_v8, %v8119_v30 }
 0x180   : > { %v2437_v15 = vor.u32 1.1754944e-38, %v2436_v54  ;;  %vm2446_vm12 = vweird.f32 %v5618_v8  ;;  %v768_v12 = vmul.f32 %v6187_v9, %v511_v2  ;;  %v769_v16 = vmul.f32 %v6187_v9, %v512_v6  ;;  %vm8193_vm13 = vmor %vm2430_vm5, %vm2431_vm11 }
 0x181   : > { %v2418_v17 = vsel %vm8175_vm10, %v5614_v35, %v2414_v10  ;;  %v2428_v19 = vmul.f32 %v5616_v59, %v2427_v13  ;;  %v2442_v20 = vsub.f32 1.0, %v2441_v14  ;;  %v770_v21 = vmul.f32 %v6187_v9, %v513_v7  ;;  %vm8211_vm15 = vmor %vm2445_vm7, %vm2446_vm12 }
 0x182   : > { %v2423_v22 = vsel %vm8145_vm3, %v2422_v53, %v2418_v17  ;;  %vm8197_vm14 = vcmp.eq.f32.partialorder %v2449_v0, 8.507059e+37  ;;  %v8201_v24 = vadd.f32 1.0, %v768_v12  ;;  %v8203_v25 = vadd.f32 1.0, %v769_v16 }
 0x183   : > { %5116 = vst [vmem:[%s6292_s21 + $0x288] sm:$0xff] %v2423_v22  ;;  %v2429_v4 = vadd.f32 %v5616_v59, %v2428_v19  ;;  %v2443_v27 = vmul.f32 %v5618_v8, %v2442_v20  ;;  %v2452_v31 = vor.u32 1.1754944e-38, %v2451_v3  ;;  %v2464_v32 = vand.u32 2147483647, %v8166_v1  ;;  %v261_v19 = vld [vmem:[%s6175_s28 + $0x2d8] sm:$0xff] }
 0x184   : > { %v5620_v28 = vpop.eup %5619  ;;  %v2466_v33 = vand.u32 2147483648, %v8166_v1  ;;  %5621 = vrcp.f32 %v8201_v24  ;;  %v2479_v34 = vand.u32 2147483647, %v8201_v24  ;;  %v8218_v36 = vadd.f32 1.0, %v770_v21 }
 0x185   : > { %v2433_v37 = vsel %vm8193_vm13, %v5616_v59, %v2429_v4  ;;  %v2444_v38 = vadd.f32 %v5618_v8, %v2443_v27  ;;  %v2456_v30 = vmul.f32 %v5620_v28, %v8166_v1  ;;  %v2481_v39 = vand.u32 2147483648, %v8201_v24 }
 0x186   : > { %v2438_v41 = vsel %vm8162_vm9, %v2437_v15, %v2433_v37  ;;  %vm2460_vm0 = vweird.f32 %v8166_v1  ;;  %5623 = vrcp.f32 %v8203_v25  ;;  %v514_v40 = vmul.f32 %v258_v26, %v258_v26 }
 0x187   : > { %5117 = vst [vmem:[%s6292_s21 + $0x290] sm:$0xff] %v2438_v41  ;;  %v2448_v43 = vsel %vm8211_vm15, %v5618_v8, %v2444_v38  ;;  %v2457_v44 = vsub.f32 1.0, %v2456_v30  ;;  %vm2461_vm8 = vweird.f32 %v5620_v28  ;;  %vm8231_vm1 = vcmp.eq.f32.partialorder %v2464_v32, 8.507059e+37 }
 0x188   : > { %v2453_v49 = vsel %vm8197_vm14, %v2452_v31, %v2448_v43  ;;  %v2467_v48 = vor.u32 1.1754944e-38, %v2466_v33  ;;  %v2494_v50 = vand.u32 2147483647, %v8203_v25  ;;  %5625 = vrcp.f32 %v8218_v36  ;;  %vm8249_vm4 = vmor %vm2460_vm0, %vm2461_vm8 }
 0x189   : > { %5118 = vst [vmem:[%s6292_s21 + $0x298] sm:$0xff] %v2453_v49  ;;  %v2458_v42 = vmul.f32 %v5620_v28, %v2457_v44  ;;  %vm2475_vm2 = vweird.f32 %v8201_v24  ;;  %vm8243_vm3 = vcmp.eq.f32.partialorder %v2479_v34, 8.507059e+37  ;;  %v2482_v51 = vor.u32 1.1754944e-38, %v2481_v39  ;;  %v262_v34 = vld [vmem:[%s6175_s28 + $0x2e0] sm:$0xff]  ;;  %v263_v39 = vld [vmem:[%s6175_s28 + $0x2e8] sm:$0xff] }
 0x18a   : > { %v5622_v52 = vpop.eup %5621  ;;  %vm2490_vm5 = vweird.f32 %v8203_v25  ;;  %v771_v54 = vmul.f32 %v6187_v9, %v514_v40  ;;  %v515_v55 = vmul.f32 %v259_v46, %v259_v46  ;;  %v516_v56 = vmul.f32 %v260_v47, %v260_v47 }
 0x18b   : > { %v2459_v57 = vadd.f32 %v5620_v28, %v2458_v42  ;;  %v2471_v58 = vmul.f32 %v5622_v52, %v8201_v24  ;;  %v2496_v59 = vand.u32 2147483648, %v8203_v25  ;;  %vm2505_vm6 = vweird.f32 %v8218_v36 }
 0x18c   : > { %v5624_v61 = vpop.eup %5623  ;;  %vm8258_vm7 = vcmp.eq.f32.partialorder %v2494_v50, 8.507059e+37  ;;  %v8262_v2 = vadd.f32 1.0, %v771_v54  ;;  %v772_v6 = vmul.f32 %v6187_v9, %v515_v55  ;;  %v773_v62 = vmul.f32 %v6187_v9, %v516_v56 }
 0x18d   : > { %v2463_v63 = vsel %vm8249_vm4, %v5620_v28, %v2459_v57  ;;  %v2472_v5 = vsub.f32 1.0, %v2471_v58  ;;  %vm2476_vm9 = vweird.f32 %v5622_v52  ;;  %v2486_v7 = vmul.f32 %v5624_v61, %v8203_v25 }
 0x18e   : > { %v5626_v8 = vpop.eup %5625  ;;  %v2468_v60 = vsel %vm8231_vm1, %v2467_v48, %v2463_v63  ;;  %v2509_v11 = vand.u32 2147483647, %v8218_v36  ;;  %v2511_v0 = vand.u32 2147483648, %v8218_v36  ;;  %5627 = vrcp.f32 %v8262_v2  ;;  %vm8278_vm11 = vmor %vm2475_vm2, %vm2476_vm9 }
 0x18f   : > { %5119 = vst [vmem:[%s6292_s21 + $0x2a0] sm:$0xff] %v2468_v60  ;;  %v2473_v3 = vmul.f32 %v5622_v52, %v2472_v5  ;;  %v2487_v10 = vsub.f32 1.0, %v2486_v7  ;;  %vm2491_vm10 = vweird.f32 %v5624_v61  ;;  %v2501_v13 = vmul.f32 %v5626_v8, %v8218_v36  ;;  %v265_v60 = vld [vmem:[%s6175_s28 + $0x2f8] sm:$0xff] }
 0x190   : > { %v2497_v15 = vor.u32 1.1754944e-38, %v2496_v59  ;;  %v2524_v12 = vand.u32 2147483647, %v8262_v2  ;;  %v8283_v16 = vadd.f32 1.0, %v772_v6  ;;  %v8285_v17 = vadd.f32 1.0, %v773_v62  ;;  %vm8290_vm13 = vmor %vm2490_vm5, %vm2491_vm10 }
 0x191   : > { %v2474_v20 = vadd.f32 %v5622_v52, %v2473_v3  ;;  %v2488_v21 = vmul.f32 %v5624_v61, %v2487_v10  ;;  %v2502_v22 = vsub.f32 1.0, %v2501_v13  ;;  %vm2506_vm12 = vweird.f32 %v5626_v8 }
 0x192   : > { %vm8294_vm14 = vcmp.eq.f32.partialorder %v2509_v11, 8.507059e+37  ;;  %v2512_v24 = vor.u32 1.1754944e-38, %v2511_v0  ;;  %v2526_v4 = vand.u32 2147483648, %v8262_v2  ;;  %5629 = vrcp.f32 %v8283_v16  ;;  %vm8306_vm15 = vmor %vm2505_vm6, %vm2506_vm12 }
 0x193   : > { %v2478_v27 = vsel %vm8278_vm11, %v5622_v52, %v2474_v20  ;;  %v2489_v25 = vadd.f32 %v5624_v61, %v2488_v21  ;;  %v2503_v31 = vmul.f32 %v5626_v8, %v2502_v22  ;;  %v517_v32 = vmul.f32 %v261_v19, %v261_v19 }
 0x194   : > { %v5628_v26 = vpop.eup %5627  ;;  %v2483_v28 = vsel %vm8243_vm3, %v2482_v51, %v2478_v27  ;;  %vm2520_vm0 = vweird.f32 %v8262_v2  ;;  %v2539_v33 = vand.u32 2147483647, %v8283_v16  ;;  %5631 = vrcp.f32 %v8285_v17 }
 0x195   : > { %5120 = vst [vmem:[%s6292_s21 + $0x2a8] sm:$0xff] %v2483_v28  ;;  %v2493_v37 = vsel %vm8290_vm13, %v5624_v61, %v2489_v25  ;;  %v2504_v38 = vadd.f32 %v5626_v8, %v2503_v31  ;;  %v2516_v30 = vmul.f32 %v5628_v26, %v8262_v2  ;;  %vm8318_vm8 = vcmp.eq.f32.partialorder %v2524_v12, 8.507059e+37  ;;  %v264_v2 = vld [vmem:[%s6175_s28 + $0x2f0] sm:$0xff]  ;;  %v266_v25 = vld [vmem:[%s6175_s28 + $0x300] sm:$0xff]  ;;  %v267_v31 = vld [vmem:[%s6175_s28 + $0x308] sm:$0xff] }
 0x196   : > { %v2498_v41 = vsel %vm8258_vm7, %v2497_v15, %v2493_v37  ;;  %vm2521_vm1 = vweird.f32 %v5628_v26  ;;  %v2527_v40 = vor.u32 1.1754944e-38, %v2526_v4  ;;  %vm2535_vm2 = vweird.f32 %v8283_v16 }
 0x197   : > { %5121 = vst [vmem:[%s6292_s21 + $0x2b0] sm:$0xff] %v2498_v41  ;;  %v2508_v43 = vsel %vm8306_vm15, %v5626_v8, %v2504_v38  ;;  %v2517_v44 = vsub.f32 1.0, %v2516_v30  ;;  %v774_v35 = vmul.f32 %v6187_v9, %v517_v32  ;;  %v518_v46 = vmul.f32 %v262_v34, %v262_v34  ;;  %vm8345_vm5 = vmor %vm2520_vm0, %vm2521_vm1 }
 0x198   : > { %v5630_v47 = vpop.eup %5629  ;;  %v2513_v49 = vsel %vm8294_vm14, %v2512_v24, %v2508_v43  ;;  %vm8332_vm3 = vcmp.eq.f32.partialorder %v2539_v33, 8.507059e+37  ;;  %v2541_v50 = vand.u32 2147483648, %v8283_v16  ;;  %v519_v42 = vmul.f32 %v263_v39, %v263_v39 }
 0x199   : > { %5122 = vst [vmem:[%s6292_s21 + $0x2b8] sm:$0xff] %v2513_v49  ;;  %v2518_v45 = vmul.f32 %v5628_v26, %v2517_v44  ;;  %v2531_v51 = vmul.f32 %v5630_v47, %v8283_v16  ;;  %vm2550_vm4 = vweird.f32 %v8285_v17  ;;  %v8340_v52 = vadd.f32 1.0, %v774_v35 }
 0x19a   : > { %v5632_v53 = vpop.eup %5631  ;;  %v2554_v55 = vand.u32 2147483647, %v8285_v17  ;;  %v2556_v56 = vand.u32 2147483648, %v8285_v17  ;;  %v775_v57 = vmul.f32 %v6187_v9, %v518_v46  ;;  %v776_v58 = vmul.f32 %v6187_v9, %v519_v42 }
 0x19b   : > { %v2519_v59 = vadd.f32 %v5628_v26, %v2518_v45  ;;  %v2532_v61 = vsub.f32 1.0, %v2531_v51  ;;  %vm2536_vm6 = vweird.f32 %v5630_v47  ;;  %v2546_v1 = vmul.f32 %v5632_v53, %v8285_v17  ;;  %v268_v51 = vld [vmem:[%s6175_s28 + $0x310] sm:$0xff] }
 0x19c   : > { %vm2551_vm7 = vweird.f32 %v5632_v53  ;;  %5633 = vrcp.f32 %v8340_v52  ;;  %v2569_v6 = vand.u32 2147483647, %v8340_v52  ;;  %v2571_v62 = vand.u32 2147483648, %v8340_v52  ;;  %vm8367_vm9 = vmor %vm2535_vm2, %vm2536_vm6 }
 0x19d   : > { %v2523_v63 = vsel %vm8345_vm5, %v5628_v26, %v2519_v59  ;;  %v2533_v5 = vmul.f32 %v5630_v47, %v2532_v61  ;;  %v2547_v7 = vsub.f32 1.0, %v2546_v1  ;;  %v8360_v8 = vadd.f32 1.0, %v775_v57  ;;  %vm8382_vm11 = vmor %vm2550_vm4, %vm2551_vm7 }
 0x19e   : > { %v2528_v11 = vsel %vm8318_vm8, %v2527_v40, %v2523_v63  ;;  %v2542_v3 = vor.u32 1.1754944e-38, %v2541_v50  ;;  %v8371_v10 = vadd.f32 1.0, %v776_v58  ;;  %v520_v13 = vmul.f32 %v264_v2, %v264_v2 }
 0x19f   : > { %5123 = vst [vmem:[%s6292_s21 + $0x2c0] sm:$0xff] %v2528_v11  ;;  %v2534_v14 = vadd.f32 %v5630_v47, %v2533_v5  ;;  %v2548_v15 = vmul.f32 %v5632_v53, %v2547_v7  ;;  %vm8374_vm10 = vcmp.eq.f32.partialorder %v2554_v55, 8.507059e+37  ;;  %5635 = vrcp.f32 %v8360_v8 }
 0x1a0   : > { %v2557_v19 = vor.u32 1.1754944e-38, %v2556_v56  ;;  %vm2565_vm12 = vweird.f32 %v8340_v52  ;;  %5637 = vrcp.f32 %v8371_v10  ;;  %v521_v20 = vmul.f32 %v265_v60, %v265_v60 }
 0x1a1   : > { %v2538_v21 = vsel %vm8367_vm9, %v5630_v47, %v2534_v14  ;;  %v2549_v22 = vadd.f32 %v5632_v53, %v2548_v15  ;;  %vm8390_vm13 = vcmp.eq.f32.partialorder %v2569_v6, 8.507059e+37  ;;  %v2572_v17 = vor.u32 1.1754944e-38, %v2571_v62 }
 0x1a2   : > { %v5634_v18 = vpop.eup %5633  ;;  %v2543_v24 = vsel %vm8332_vm3, %v2542_v3, %v2538_v21  ;;  %vm2580_vm14 = vweird.f32 %v8360_v8  ;;  %v2584_v4 = vand.u32 2147483647, %v8360_v8  ;;  %v777_v27 = vmul.f32 %v6187_v9, %v520_v13 }
 0x1a3   : > { %5124 = vst [vmem:[%s6292_s21 + $0x2c8] sm:$0xff] %v2543_v24  ;;  %v2553_v32 = vsel %vm8382_vm11, %v5632_v53, %v2549_v22  ;;  %v2561_v26 = vmul.f32 %v5634_v18, %v8340_v52  ;;  %v2586_v28 = vand.u32 2147483648, %v8360_v8  ;;  %v2599_v29 = vand.u32 2147483647, %v8371_v10  ;;  %v270_v24 = vld [vmem:[%s6175_s28 + $0x320] sm:$0xff] }
 0x1a4   : > { %v2558_v33 = vsel %vm8374_vm10, %v2557_v19, %v2553_v32  ;;  %vm2595_vm15 = vweird.f32 %v8371_v10  ;;  %v8410_v34 = vadd.f32 1.0, %v777_v27  ;;  %v778_v37 = vmul.f32 %v6187_v9, %v521_v20  ;;  %v271_v32 = vld [vmem:[%s6175_s28 + $0x328] sm:$0xff] }
 0x1a5   : > { %v5636_v38 = vpop.eup %5635  ;;  %5125 = vst [vmem:[%s6292_s21 + $0x2d0] sm:$0xff] %v2558_v33  ;;  %v2562_v30 = vsub.f32 1.0, %v2561_v26  ;;  %vm2566_vm0 = vweird.f32 %v5634_v18  ;;  %v522_v36 = vmul.f32 %v266_v25, %v266_v25  ;;  %v523_v39 = vmul.f32 %v267_v31, %v267_v31 }
 0x1a6   : > { %v5638_v41 = vpop.eup %5637  ;;  %v2576_v40 = vmul.f32 %v5636_v38, %v8360_v8  ;;  %vm8415_vm8 = vcmp.eq.f32.partialorder %v2584_v4, 8.507059e+37  ;;  %v2601_v44 = vand.u32 2147483648, %v8371_v10  ;;  %5639 = vrcp.f32 %v8410_v34  ;;  %vm8428_vm2 = vmor %vm2565_vm12, %vm2566_vm0 }
 0x1a7   : > { %v2563_v35 = vmul.f32 %v5634_v18, %v2562_v30  ;;  %v2587_v46 = vor.u32 1.1754944e-38, %v2586_v28  ;;  %v2591_v47 = vmul.f32 %v5638_v41, %v8371_v10  ;;  %vm8422_vm1 = vcmp.eq.f32.partialorder %v2599_v29, 8.507059e+37 }
 0x1a8   : > { %v2577_v50 = vsub.f32 1.0, %v2576_v40  ;;  %vm2581_vm3 = vweird.f32 %v5636_v38  ;;  %v8432_v42 = vadd.f32 1.0, %v778_v37  ;;  %v779_v45 = vmul.f32 %v6187_v9, %v522_v36 }
 0x1a9   : > { %v2564_v53 = vadd.f32 %v5634_v18, %v2563_v35  ;;  %v2592_v54 = vsub.f32 1.0, %v2591_v47  ;;  %vm2596_vm4 = vweird.f32 %v5638_v41  ;;  %v780_v55 = vmul.f32 %v6187_v9, %v523_v39  ;;  %vm8443_vm5 = vmor %vm2580_vm14, %vm2581_vm3 }
 0x1aa   : > { %v2578_v56 = vmul.f32 %v5636_v38, %v2577_v50  ;;  %v2602_v57 = vor.u32 1.1754944e-38, %v2601_v44  ;;  %v2614_v52 = vand.u32 2147483647, %v8410_v34  ;;  %5641 = vrcp.f32 %v8432_v42  ;;  %vm8452_vm6 = vmor %vm2595_vm15, %vm2596_vm4 }
 0x1ab   : > { %v2568_v58 = vsel %vm8428_vm2, %v5634_v18, %v2564_v53  ;;  %v2593_v61 = vmul.f32 %v5638_v41, %v2592_v54  ;;  %v2616_v1 = vand.u32 2147483648, %v8410_v34  ;;  %v524_v2 = vmul.f32 %v268_v51, %v268_v51  ;;  %v269_v18 = vld [vmem:[%s6175_s28 + $0x318] sm:$0xff] }
 0x1ac   : > { %v5640_v6 = vpop.eup %5639  ;;  %v2573_v62 = vsel %vm8390_vm13, %v2572_v17, %v2568_v58  ;;  %v2579_v63 = vadd.f32 %v5636_v38, %v2578_v56  ;;  %v8456_v7 = vadd.f32 1.0, %v779_v45  ;;  %v8458_v8 = vadd.f32 1.0, %v780_v55 }
 0x1ad   : > { %5126 = vst [vmem:[%s6292_s21 + $0x2d8] sm:$0xff] %v2573_v62  ;;  %v2594_v60 = vadd.f32 %v5638_v41, %v2593_v61  ;;  %v2606_v11 = vmul.f32 %v5640_v6, %v8410_v34  ;;  %vm2610_vm7 = vweird.f32 %v8410_v34  ;;  %v2629_v0 = vand.u32 2147483647, %v8432_v42  ;;  %v272_v62 = vld [vmem:[%s6175_s28 + $0x330] sm:$0xff] }
 0x1ae   : > { %v2583_v3 = vsel %vm8443_vm5, %v5636_v38, %v2579_v63  ;;  %vm8466_vm9 = vcmp.eq.f32.partialorder %v2614_v52, 8.507059e+37  ;;  %v2631_v13 = vand.u32 2147483648, %v8432_v42  ;;  %5643 = vrcp.f32 %v8456_v7 }
 0x1af   : > { %v2588_v14 = vsel %vm8415_vm8, %v2587_v46, %v2583_v3  ;;  %v2598_v15 = vsel %vm8452_vm6, %v5638_v41, %v2594_v60  ;;  %v2607_v12 = vsub.f32 1.0, %v2606_v11  ;;  %vm2611_vm10 = vweird.f32 %v5640_v6 }
 0x1b0   : > { %v5642_v16 = vpop.eup %5641  ;;  %5127 = vst [vmem:[%s6292_s21 + $0x2e0] sm:$0xff] %v2588_v14  ;;  %v2603_v19 = vsel %vm8422_vm1, %v2602_v57, %v2598_v15  ;;  %v2617_v20 = vor.u32 1.1754944e-38, %v2616_v1  ;;  %v2644_v21 = vand.u32 2147483647, %v8456_v7  ;;  %5645 = vrcp.f32 %v8458_v8  ;;  %vm8492_vm13 = vmor %vm2610_vm7, %vm2611_vm10 }
 0x1b1   : > { %5128 = vst [vmem:[%s6292_s21 + $0x2e8] sm:$0xff] %v2603_v19  ;;  %v2608_v22 = vmul.f32 %v5640_v6, %v2607_v12  ;;  %v2621_v23 = vmul.f32 %v5642_v16, %v8432_v42  ;;  %vm2625_vm11 = vweird.f32 %v8432_v42  ;;  %vm8484_vm12 = vcmp.eq.f32.partialorder %v2629_v0, 8.507059e+37  ;;  %v273_v19 = vld [vmem:[%s6175_s28 + $0x338] sm:$0xff] }
 0x1b2   : > { %v2632_v27 = vor.u32 1.1754944e-38, %v2631_v13  ;;  %vm2640_vm14 = vweird.f32 %v8456_v7  ;;  %v2646_v25 = vand.u32 2147483648, %v8456_v7  ;;  %v781_v31 = vmul.f32 %v6187_v9, %v524_v2 }
 0x1b3   : > { %v2609_v26 = vadd.f32 %v5640_v6, %v2608_v22  ;;  %v2622_v28 = vsub.f32 1.0, %v2621_v23  ;;  %vm2626_vm15 = vweird.f32 %v5642_v16  ;;  %vm2655_vm0 = vweird.f32 %v8458_v8 }
 0x1b4   : > { %v5644_v29 = vpop.eup %5643  ;;  %vm8501_vm8 = vcmp.eq.f32.partialorder %v2644_v21, 8.507059e+37  ;;  %v8505_v34 = vadd.f32 1.0, %v781_v31  ;;  %v525_v37 = vmul.f32 %v269_v18, %v269_v18  ;;  %v526_v38 = vmul.f32 %v270_v24, %v270_v24  ;;  %vm8514_vm1 = vmor %vm2625_vm11, %vm2626_vm15 }
 0x1b5   : > { %v2613_v30 = vsel %vm8492_vm13, %v5640_v6, %v2609_v26  ;;  %v2623_v36 = vmul.f32 %v5642_v16, %v2622_v28  ;;  %v2636_v39 = vmul.f32 %v5644_v29, %v8456_v7  ;;  %v527_v41 = vmul.f32 %v271_v32, %v271_v32 }
 0x1b6   : > { %v5646_v40 = vpop.eup %5645  ;;  %v2618_v43 = vsel %vm8466_vm9, %v2617_v20, %v2613_v30  ;;  %v2659_v35 = vand.u32 2147483647, %v8458_v8  ;;  %v2661_v46 = vand.u32 2147483648, %v8458_v8  ;;  %5647 = vrcp.f32 %v8505_v34  ;;  %v274_v20 = vld [vmem:[%s6175_s28 + $0x340] sm:$0xff] }
 0x1b7   : > { %5129 = vst [vmem:[%s6292_s21 + $0x2f0] sm:$0xff] %v2618_v43  ;;  %v2624_v47 = vadd.f32 %v5642_v16, %v2623_v36  ;;  %v2637_v49 = vsub.f32 1.0, %v2636_v39  ;;  %vm2641_vm2 = vweird.f32 %v5644_v29  ;;  %v2651_v48 = vmul.f32 %v5646_v40, %v8458_v8 }
 0x1b8   : > { %v2647_v50 = vor.u32 1.1754944e-38, %v2646_v25  ;;  %vm2656_vm3 = vweird.f32 %v5646_v40  ;;  %v782_v42 = vmul.f32 %v6187_v9, %v525_v37  ;;  %v783_v45 = vmul.f32 %v6187_v9, %v526_v38  ;;  %vm8532_vm4 = vmor %vm2640_vm14, %vm2641_vm2 }
 0x1b9   : > { %v2628_v51 = vsel %vm8514_vm1, %v5642_v16, %v2624_v47  ;;  %v2638_v53 = vmul.f32 %v5644_v29, %v2637_v49  ;;  %v2652_v54 = vsub.f32 1.0, %v2651_v48  ;;  %v784_v55 = vmul.f32 %v6187_v9, %v527_v41  ;;  %vm8550_vm6 = vmor %vm2655_vm0, %vm2656_vm3 }
 0x1ba   : > { %v2633_v56 = vsel %vm8484_vm12, %v2632_v27, %v2628_v51  ;;  %vm8536_vm5 = vcmp.eq.f32.partialorder %v2659_v35, 8.507059e+37  ;;  %v8540_v58 = vadd.f32 1.0, %v782_v42  ;;  %v8542_v59 = vadd.f32 1.0, %v783_v45 }
 0x1bb   : > { %5130 = vst [vmem:[%s6292_s21 + $0x2f8] sm:$0xff] %v2633_v56  ;;  %v2639_v61 = vadd.f32 %v5644_v29, %v2638_v53  ;;  %v2653_v1 = vmul.f32 %v5646_v40, %v2652_v54  ;;  %v2662_v2 = vor.u32 1.1754944e-38, %v2661_v46  ;;  %v2674_v6 = vand.u32 2147483647, %v8505_v34  ;;  %v275_v53 = vld [vmem:[%s6175_s28 + $0x348] sm:$0xff] }
 0x1bc   : > { %v5648_v63 = vpop.eup %5647  ;;  %v2676_v7 = vand.u32 2147483648, %v8505_v34  ;;  %5649 = vrcp.f32 %v8540_v58  ;;  %v2689_v60 = vand.u32 2147483647, %v8540_v58  ;;  %v8557_v11 = vadd.f32 1.0, %v784_v55 }
 0x1bd   : > { %v2643_v0 = vsel %vm8532_vm4, %v5644_v29, %v2639_v61  ;;  %v2654_v3 = vadd.f32 %v5646_v40, %v2653_v1  ;;  %v2666_v8 = vmul.f32 %v5648_v63, %v8505_v34  ;;  %v2691_v10 = vand.u32 2147483648, %v8540_v58 }
 0x1be   : > { %v2648_v13 = vsel %vm8501_vm8, %v2647_v50, %v2643_v0  ;;  %vm2670_vm7 = vweird.f32 %v8505_v34  ;;  %5651 = vrcp.f32 %v8542_v59  ;;  %v528_v14 = vmul.f32 %v272_v62, %v272_v62 }
 0x1bf   : > { %5131 = vst [vmem:[%s6292_s21 + $0x300] sm:$0xff] %v2648_v13  ;;  %v2658_v15 = vsel %vm8550_vm6, %v5646_v40, %v2654_v3  ;;  %v2667_v12 = vsub.f32 1.0, %v2666_v8  ;;  %vm2671_vm9 = vweird.f32 %v5648_v63  ;;  %vm8570_vm10 = vcmp.eq.f32.partialorder %v2674_v6, 8.507059e+37 }
 0x1c0   : > { %v2663_v21 = vsel %vm8536_vm5, %v2662_v2, %v2658_v15  ;;  %v2677_v22 = vor.u32 1.1754944e-38, %v2676_v7  ;;  %v2704_v23 = vand.u32 2147483647, %v8542_v59  ;;  %5653 = vrcp.f32 %v8557_v11  ;;  %vm8588_vm13 = vmor %vm2670_vm7, %vm2671_vm9 }
 0x1c1   : > { %5132 = vst [vmem:[%s6292_s21 + $0x308] sm:$0xff] %v2663_v21  ;;  %v2668_v17 = vmul.f32 %v5648_v63, %v2667_v12  ;;  %vm2685_vm11 = vweird.f32 %v8540_v58  ;;  %vm8582_vm12 = vcmp.eq.f32.partialorder %v2689_v60, 8.507059e+37  ;;  %v2692_v24 = vor.u32 1.1754944e-38, %v2691_v10  ;;  %v276_v60 = vld [vmem:[%s6175_s28 + $0x350] sm:$0xff]  ;;  %v277_v10 = vld [vmem:[%s6175_s28 + $0x358] sm:$0xff] }
 0x1c2   : > { %v5650_v4 = vpop.eup %5649  ;;  %vm2700_vm14 = vweird.f32 %v8542_v59  ;;  %v785_v25 = vmul.f32 %v6187_v9, %v528_v14  ;;  %v529_v31 = vmul.f32 %v273_v19, %v273_v19  ;;  %v530_v32 = vmul.f32 %v274_v20, %v274_v20 }
 0x1c3   : > { %v2669_v26 = vadd.f32 %v5648_v63, %v2668_v17  ;;  %v2681_v28 = vmul.f32 %v5650_v4, %v8540_v58  ;;  %v2706_v29 = vand.u32 2147483648, %v8542_v59  ;;  %vm2715_vm15 = vweird.f32 %v8557_v11 }
 0x1c4   : > { %v5652_v33 = vpop.eup %5651  ;;  %vm8597_vm0 = vcmp.eq.f32.partialorder %v2704_v23, 8.507059e+37  ;;  %v8601_v37 = vadd.f32 1.0, %v785_v25  ;;  %v786_v38 = vmul.f32 %v6187_v9, %v529_v31  ;;  %v787_v30 = vmul.f32 %v6187_v9, %v530_v32 }
 0x1c5   : > { %v2673_v36 = vsel %vm8588_vm13, %v5648_v63, %v2669_v26  ;;  %v2682_v39 = vsub.f32 1.0, %v2681_v28  ;;  %vm2686_vm8 = vweird.f32 %v5650_v4  ;;  %v2696_v41 = vmul.f32 %v5652_v33, %v8542_v59 }
 0x1c6   : > { %v5654_v40 = vpop.eup %5653  ;;  %v2678_v43 = vsel %vm8570_vm10, %v2677_v22, %v2673_v36  ;;  %v2719_v44 = vand.u32 2147483647, %v8557_v11  ;;  %v2721_v35 = vand.u32 2147483648, %v8557_v11  ;;  %5655 = vrcp.f32 %v8601_v37  ;;  %vm8617_vm2 = vmor %vm2685_vm11, %vm2686_vm8 }
 0x1c7   : > { %5133 = vst [vmem:[%s6292_s21 + $0x310] sm:$0xff] %v2678_v43  ;;  %v2683_v46 = vmul.f32 %v5650_v4, %v2682_v39  ;;  %v2697_v47 = vsub.f32 1.0, %v2696_v41  ;;  %vm2701_vm1 = vweird.f32 %v5652_v33  ;;  %v2711_v49 = vmul.f32 %v5654_v40, %v8557_v11  ;;  %v279_v43 = vld [vmem:[%s6175_s28 + $0x368] sm:$0xff] }
 0x1c8   : > { %v2707_v50 = vor.u32 1.1754944e-38, %v2706_v29  ;;  %v2734_v42 = vand.u32 2147483647, %v8601_v37  ;;  %v8622_v45 = vadd.f32 1.0, %v786_v38  ;;  %v8624_v51 = vadd.f32 1.0, %v787_v30  ;;  %vm8629_vm4 = vmor %vm2700_vm14, %vm2701_vm1 }
 0x1c9   : > { %v2684_v54 = vadd.f32 %v5650_v4, %v2683_v46  ;;  %v2698_v55 = vmul.f32 %v5652_v33, %v2697_v47  ;;  %v2712_v56 = vsub.f32 1.0, %v2711_v49  ;;  %vm2716_vm3 = vweird.f32 %v5654_v40 }
 0x1ca   : > { %vm8633_vm5 = vcmp.eq.f32.partialorder %v2719_v44, 8.507059e+37  ;;  %v2722_v58 = vor.u32 1.1754944e-38, %v2721_v35  ;;  %v2736_v61 = vand.u32 2147483648, %v8601_v37  ;;  %5657 = vrcp.f32 %v8622_v45  ;;  %vm8645_vm6 = vmor %vm2715_vm15, %vm2716_vm3 }
 0x1cb   : > { %v2688_v1 = vsel %vm8617_vm2, %v5650_v4, %v2684_v54  ;;  %v2699_v59 = vadd.f32 %v5652_v33, %v2698_v55  ;;  %v2713_v2 = vmul.f32 %v5654_v40, %v2712_v56  ;;  %v531_v6 = vmul.f32 %v275_v53, %v275_v53 }
 0x1cc   : > { %v5656_v62 = vpop.eup %5655  ;;  %v2693_v63 = vsel %vm8582_vm12, %v2692_v24, %v2688_v1  ;;  %vm2730_vm7 = vweird.f32 %v8601_v37  ;;  %v2749_v7 = vand.u32 2147483647, %v8622_v45  ;;  %5659 = vrcp.f32 %v8624_v51 }
 0x1cd   : > { %5134 = vst [vmem:[%s6292_s21 + $0x318] sm:$0xff] %v2693_v63  ;;  %v2703_v0 = vsel %vm8629_vm4, %v5652_v33, %v2699_v59  ;;  %v2714_v3 = vadd.f32 %v5654_v40, %v2713_v2  ;;  %v2726_v8 = vmul.f32 %v5656_v62, %v8601_v37  ;;  %vm8657_vm9 = vcmp.eq.f32.partialorder %v2734_v42, 8.507059e+37  ;;  %v278_v37 = vld [vmem:[%s6175_s28 + $0x360] sm:$0xff]  ;;  %v280_v59 = vld [vmem:[%s6175_s28 + $0x370] sm:$0xff]  ;;  %v281_v2 = vld [vmem:[%s6175_s28 + $0x378] sm:$0xff] }
 0x1ce   : > { %v2708_v13 = vsel %vm8597_vm0, %v2707_v50, %v2703_v0  ;;  %vm2731_vm10 = vweird.f32 %v5656_v62  ;;  %v2737_v14 = vor.u32 1.1754944e-38, %v2736_v61  ;;  %vm2745_vm11 = vweird.f32 %v8622_v45 }
 0x1cf   : > { %5135 = vst [vmem:[%s6292_s21 + $0x320] sm:$0xff] %v2708_v13  ;;  %v2718_v15 = vsel %vm8645_vm6, %v5654_v40, %v2714_v3  ;;  %v2727_v12 = vsub.f32 1.0, %v2726_v8  ;;  %v788_v16 = vmul.f32 %v6187_v9, %v531_v6  ;;  %v532_v19 = vmul.f32 %v276_v60, %v276_v60  ;;  %vm8684_vm14 = vmor %vm2730_vm7, %vm2731_vm10 }
 0x1d0   : > { %v5658_v20 = vpop.eup %5657  ;;  %v2723_v21 = vsel %vm8633_vm5, %v2722_v58, %v2718_v15  ;;  %vm8671_vm12 = vcmp.eq.f32.partialorder %v2749_v7, 8.507059e+37  ;;  %v2751_v23 = vand.u32 2147483648, %v8622_v45  ;;  %v533_v17 = vmul.f32 %v277_v10, %v277_v10 }
 0x1d1   : > { %5136 = vst [vmem:[%s6292_s21 + $0x328] sm:$0xff] %v2723_v21  ;;  %v2728_v18 = vmul.f32 %v5656_v62, %v2727_v12  ;;  %v2741_v24 = vmul.f32 %v5658_v20, %v8622_v45  ;;  %vm2760_vm13 = vweird.f32 %v8624_v51  ;;  %v8679_v4 = vadd.f32 1.0, %v788_v16 }
 0x1d2   : > { %v5660_v27 = vpop.eup %5659  ;;  %v2764_v31 = vand.u32 2147483647, %v8624_v51  ;;  %v2766_v32 = vand.u32 2147483648, %v8624_v51  ;;  %v789_v26 = vmul.f32 %v6187_v9, %v532_v19  ;;  %v790_v28 = vmul.f32 %v6187_v9, %v533_v17 }
 0x1d3   : > { %v2729_v29 = vadd.f32 %v5656_v62, %v2728_v18  ;;  %v2742_v33 = vsub.f32 1.0, %v2741_v24  ;;  %vm2746_vm15 = vweird.f32 %v5658_v20  ;;  %v2756_v34 = vmul.f32 %v5660_v27, %v8624_v51  ;;  %v282_v24 = vld [vmem:[%s6175_s28 + $0x380] sm:$0xff] }
 0x1d4   : > { %vm2761_vm0 = vweird.f32 %v5660_v27  ;;  %5661 = vrcp.f32 %v8679_v4  ;;  %v2779_v38 = vand.u32 2147483647, %v8679_v4  ;;  %v2781_v30 = vand.u32 2147483648, %v8679_v4  ;;  %vm8706_vm8 = vmor %vm2745_vm11, %vm2746_vm15 }
 0x1d5   : > { %v2733_v36 = vsel %vm8684_vm14, %v5656_v62, %v2729_v29  ;;  %v2743_v39 = vmul.f32 %v5658_v20, %v2742_v33  ;;  %v2757_v41 = vsub.f32 1.0, %v2756_v34  ;;  %v8699_v40 = vadd.f32 1.0, %v789_v26  ;;  %vm8721_vm2 = vmor %vm2760_vm13, %vm2761_vm0 }
 0x1d6   : > { %v2738_v44 = vsel %vm8657_vm9, %v2737_v14, %v2733_v36  ;;  %v2752_v46 = vor.u32 1.1754944e-38, %v2751_v23  ;;  %v8710_v47 = vadd.f32 1.0, %v790_v28  ;;  %v534_v49 = vmul.f32 %v278_v37, %v278_v37 }
 0x1d7   : > { %5137 = vst [vmem:[%s6292_s21 + $0x330] sm:$0xff] %v2738_v44  ;;  %v2744_v48 = vadd.f32 %v5658_v20, %v2743_v39  ;;  %v2758_v50 = vmul.f32 %v5660_v27, %v2757_v41  ;;  %vm8713_vm1 = vcmp.eq.f32.partialorder %v2764_v31, 8.507059e+37  ;;  %5663 = vrcp.f32 %v8699_v40 }
 0x1d8   : > { %v2767_v53 = vor.u32 1.1754944e-38, %v2766_v32  ;;  %vm2775_vm3 = vweird.f32 %v8679_v4  ;;  %5665 = vrcp.f32 %v8710_v47  ;;  %v535_v54 = vmul.f32 %v279_v43, %v279_v43 }
 0x1d9   : > { %v2748_v55 = vsel %vm8706_vm8, %v5658_v20, %v2744_v48  ;;  %v2759_v56 = vadd.f32 %v5660_v27, %v2758_v50  ;;  %vm8729_vm4 = vcmp.eq.f32.partialorder %v2779_v38, 8.507059e+37  ;;  %v2782_v51 = vor.u32 1.1754944e-38, %v2781_v30 }
 0x1da   : > { %v5662_v52 = vpop.eup %5661  ;;  %v2753_v58 = vsel %vm8671_vm12, %v2752_v46, %v2748_v55  ;;  %vm2790_vm5 = vweird.f32 %v8699_v40  ;;  %v2794_v61 = vand.u32 2147483647, %v8699_v40  ;;  %v791_v1 = vmul.f32 %v6187_v9, %v534_v49 }
 0x1db   : > { %5138 = vst [vmem:[%s6292_s21 + $0x338] sm:$0xff] %v2753_v58  ;;  %v2763_v6 = vsel %vm8721_vm2, %v5660_v27, %v2759_v56  ;;  %v2771_v62 = vmul.f32 %v5662_v52, %v8679_v4  ;;  %v2796_v63 = vand.u32 2147483648, %v8699_v40  ;;  %v2809_v5 = vand.u32 2147483647, %v8710_v47  ;;  %v284_v58 = vld [vmem:[%s6175_s28 + $0x390] sm:$0xff] }
 0x1dc   : > { %v2768_v7 = vsel %vm8713_vm1, %v2767_v53, %v2763_v6  ;;  %vm2805_vm6 = vweird.f32 %v8710_v47  ;;  %v8749_v60 = vadd.f32 1.0, %v791_v1  ;;  %v792_v0 = vmul.f32 %v6187_v9, %v535_v54  ;;  %v285_v6 = vld [vmem:[%s6175_s28 + $0x398] sm:$0xff] }
 0x1dd   : > { %v5664_v3 = vpop.eup %5663  ;;  %5139 = vst [vmem:[%s6292_s21 + $0x340] sm:$0xff] %v2768_v7  ;;  %v2772_v8 = vsub.f32 1.0, %v2771_v62  ;;  %vm2776_vm7 = vweird.f32 %v5662_v52  ;;  %v536_v11 = vmul.f32 %v280_v59, %v280_v59  ;;  %v537_v10 = vmul.f32 %v281_v2, %v281_v2 }
 0x1de   : > { %v5666_v13 = vpop.eup %5665  ;;  %v2786_v14 = vmul.f32 %v5664_v3, %v8699_v40  ;;  %vm8754_vm9 = vcmp.eq.f32.partialorder %v2794_v61, 8.507059e+37  ;;  %v2811_v12 = vand.u32 2147483648, %v8710_v47  ;;  %5667 = vrcp.f32 %v8749_v60  ;;  %vm8767_vm11 = vmor %vm2775_vm3, %vm2776_vm7 }
 0x1df   : > { %v2773_v16 = vmul.f32 %v5662_v52, %v2772_v8  ;;  %v2797_v19 = vor.u32 1.1754944e-38, %v2796_v63  ;;  %v2801_v20 = vmul.f32 %v5666_v13, %v8710_v47  ;;  %vm8761_vm10 = vcmp.eq.f32.partialorder %v2809_v5, 8.507059e+37 }
 0x1e0   : > { %v2787_v23 = vsub.f32 1.0, %v2786_v14  ;;  %vm2791_vm12 = vweird.f32 %v5664_v3  ;;  %v8771_v17 = vadd.f32 1.0, %v792_v0  ;;  %v793_v18 = vmul.f32 %v6187_v9, %v536_v11 }
 0x1e1   : > { %v2774_v27 = vadd.f32 %v5662_v52, %v2773_v16  ;;  %v2802_v25 = vsub.f32 1.0, %v2801_v20  ;;  %vm2806_vm13 = vweird.f32 %v5666_v13  ;;  %v794_v31 = vmul.f32 %v6187_v9, %v537_v10  ;;  %vm8782_vm14 = vmor %vm2790_vm5, %vm2791_vm12 }
 0x1e2   : > { %v2788_v32 = vmul.f32 %v5664_v3, %v2787_v23  ;;  %v2812_v26 = vor.u32 1.1754944e-38, %v2811_v12  ;;  %v2824_v4 = vand.u32 2147483647, %v8749_v60  ;;  %5669 = vrcp.f32 %v8771_v17  ;;  %vm8791_vm15 = vmor %vm2805_vm6, %vm2806_vm13 }
 0x1e3   : > { %v2778_v28 = vsel %vm8767_vm11, %v5662_v52, %v2774_v27  ;;  %v2803_v33 = vmul.f32 %v5666_v13, %v2802_v25  ;;  %v2826_v34 = vand.u32 2147483648, %v8749_v60  ;;  %v538_v37 = vmul.f32 %v282_v24, %v282_v24  ;;  %v283_v52 = vld [vmem:[%s6175_s28 + $0x388] sm:$0xff] }
 0x1e4   : > { %v5668_v38 = vpop.eup %5667  ;;  %v2783_v30 = vsel %vm8729_vm4, %v2782_v51, %v2778_v28  ;;  %v2789_v36 = vadd.f32 %v5664_v3, %v2788_v32  ;;  %v8795_v41 = vadd.f32 1.0, %v793_v18  ;;  %v8797_v40 = vadd.f32 1.0, %v794_v31 }
 0x1e5   : > { %5140 = vst [vmem:[%s6292_s21 + $0x348] sm:$0xff] %v2783_v30  ;;  %v2804_v43 = vadd.f32 %v5666_v13, %v2803_v33  ;;  %v2816_v44 = vmul.f32 %v5668_v38, %v8749_v60  ;;  %vm2820_vm0 = vweird.f32 %v8749_v60  ;;  %v2839_v35 = vand.u32 2147483647, %v8771_v17  ;;  %v286_v30 = vld [vmem:[%s6175_s28 + $0x3a0] sm:$0xff] }
 0x1e6   : > { %v2793_v46 = vsel %vm8782_vm14, %v5664_v3, %v2789_v36  ;;  %vm8805_vm8 = vcmp.eq.f32.partialorder %v2824_v4, 8.507059e+37  ;;  %v2841_v49 = vand.u32 2147483648, %v8771_v17  ;;  %5671 = vrcp.f32 %v8795_v41 }
 0x1e7   : > { %v2798_v48 = vsel %vm8754_vm9, %v2797_v19, %v2793_v46  ;;  %v2808_v50 = vsel %vm8791_vm15, %v5666_v13, %v2804_v43  ;;  %v2817_v42 = vsub.f32 1.0, %v2816_v44  ;;  %vm2821_vm1 = vweird.f32 %v5668_v38 }
 0x1e8   : > { %v5670_v45 = vpop.eup %5669  ;;  %5141 = vst [vmem:[%s6292_s21 + $0x350] sm:$0xff] %v2798_v48  ;;  %v2813_v53 = vsel %vm8761_vm10, %v2812_v26, %v2808_v50  ;;  %v2827_v54 = vor.u32 1.1754944e-38, %v2826_v34  ;;  %v2854_v55 = vand.u32 2147483647, %v8795_v41  ;;  %5673 = vrcp.f32 %v8797_v40  ;;  %vm8831_vm4 = vmor %vm2820_vm0, %vm2821_vm1 }
 0x1e9   : > { %5142 = vst [vmem:[%s6292_s21 + $0x358] sm:$0xff] %v2813_v53  ;;  %v2818_v56 = vmul.f32 %v5668_v38, %v2817_v42  ;;  %v2831_v57 = vmul.f32 %v5670_v45, %v8771_v17  ;;  %vm2835_vm2 = vweird.f32 %v8771_v17  ;;  %vm8823_vm3 = vcmp.eq.f32.partialorder %v2839_v35, 8.507059e+37  ;;  %v287_v53 = vld [vmem:[%s6175_s28 + $0x3a8] sm:$0xff] }
 0x1ea   : > { %v2842_v1 = vor.u32 1.1754944e-38, %v2841_v49  ;;  %vm2850_vm5 = vweird.f32 %v8795_v41  ;;  %v2856_v59 = vand.u32 2147483648, %v8795_v41  ;;  %v795_v2 = vmul.f32 %v6187_v9, %v538_v37 }
 0x1eb   : > { %v2819_v62 = vadd.f32 %v5668_v38, %v2818_v56  ;;  %v2832_v63 = vsub.f32 1.0, %v2831_v57  ;;  %vm2836_vm6 = vweird.f32 %v5670_v45  ;;  %vm2865_vm7 = vweird.f32 %v8797_v40 }
 0x1ec   : > { %v5672_v5 = vpop.eup %5671  ;;  %vm8840_vm9 = vcmp.eq.f32.partialorder %v2854_v55, 8.507059e+37  ;;  %v8844_v60 = vadd.f32 1.0, %v795_v2  ;;  %v539_v0 = vmul.f32 %v283_v52, %v283_v52  ;;  %v540_v3 = vmul.f32 %v284_v58, %v284_v58  ;;  %vm8853_vm10 = vmor %vm2835_vm2, %vm2836_vm6 }
 0x1ed   : > { %v2823_v8 = vsel %vm8831_vm4, %v5668_v38, %v2819_v62  ;;  %v2833_v11 = vmul.f32 %v5670_v45, %v2832_v63  ;;  %v2846_v10 = vmul.f32 %v5672_v5, %v8795_v41  ;;  %v541_v13 = vmul.f32 %v285_v6, %v285_v6 }
 0x1ee   : > { %v5674_v14 = vpop.eup %5673  ;;  %v2828_v15 = vsel %vm8805_vm8, %v2827_v54, %v2823_v8  ;;  %v2869_v16 = vand.u32 2147483647, %v8797_v40  ;;  %v2871_v19 = vand.u32 2147483648, %v8797_v40  ;;  %5675 = vrcp.f32 %v8844_v60  ;;  %v288_v54 = vld [vmem:[%s6175_s28 + $0x3b0] sm:$0xff] }
 0x1ef   : > { %5143 = vst [vmem:[%s6292_s21 + $0x360] sm:$0xff] %v2828_v15  ;;  %v2834_v20 = vadd.f32 %v5670_v45, %v2833_v11  ;;  %v2847_v21 = vsub.f32 1.0, %v2846_v10  ;;  %vm2851_vm11 = vweird.f32 %v5672_v5  ;;  %v2861_v22 = vmul.f32 %v5674_v14, %v8797_v40 }
 0x1f0   : > { %v2857_v23 = vor.u32 1.1754944e-38, %v2856_v59  ;;  %vm2866_vm12 = vweird.f32 %v5674_v14  ;;  %v796_v17 = vmul.f32 %v6187_v9, %v539_v0  ;;  %v797_v18 = vmul.f32 %v6187_v9, %v540_v3  ;;  %vm8871_vm13 = vmor %vm2850_vm5, %vm2851_vm11 }
 0x1f1   : > { %v2838_v24 = vsel %vm8853_vm10, %v5670_v45, %v2834_v20  ;;  %v2848_v27 = vmul.f32 %v5672_v5, %v2847_v21  ;;  %v2862_v25 = vsub.f32 1.0, %v2861_v22  ;;  %v798_v31 = vmul.f32 %v6187_v9, %v541_v13  ;;  %vm8889_vm15 = vmor %vm2865_vm7, %vm2866_vm12 }
 0x1f2   : > { %v2843_v32 = vsel %vm8823_vm3, %v2842_v1, %v2838_v24  ;;  %vm8875_vm14 = vcmp.eq.f32.partialorder %v2869_v16, 8.507059e+37  ;;  %v8879_v28 = vadd.f32 1.0, %v796_v17  ;;  %v8881_v29 = vadd.f32 1.0, %v797_v18 }
 0x1f3   : > { %5144 = vst [vmem:[%s6292_s21 + $0x368] sm:$0xff] %v2843_v32  ;;  %v2849_v33 = vadd.f32 %v5672_v5, %v2848_v27  ;;  %v2863_v34 = vmul.f32 %v5674_v14, %v2862_v25  ;;  %v2872_v37 = vor.u32 1.1754944e-38, %v2871_v19  ;;  %v2884_v38 = vand.u32 2147483647, %v8844_v60  ;;  %v289_v27 = vld [vmem:[%s6175_s28 + $0x3b8] sm:$0xff] }
 0x1f4   : > { %v5676_v36 = vpop.eup %5675  ;;  %v2886_v41 = vand.u32 2147483648, %v8844_v60  ;;  %5677 = vrcp.f32 %v8879_v28  ;;  %v2899_v43 = vand.u32 2147483647, %v8879_v28  ;;  %v8896_v44 = vadd.f32 1.0, %v798_v31 }
 0x1f5   : > { %v2853_v35 = vsel %vm8871_vm13, %v5672_v5, %v2849_v33  ;;  %v2864_v46 = vadd.f32 %v5674_v14, %v2863_v34  ;;  %v2876_v40 = vmul.f32 %v5676_v36, %v8844_v60  ;;  %v2901_v47 = vand.u32 2147483648, %v8879_v28 }
 0x1f6   : > { %v2858_v49 = vsel %vm8840_vm9, %v2857_v23, %v2853_v35  ;;  %vm2880_vm0 = vweird.f32 %v8844_v60  ;;  %5679 = vrcp.f32 %v8881_v29  ;;  %v542_v48 = vmul.f32 %v286_v30, %v286_v30 }
 0x1f7   : > { %5145 = vst [vmem:[%s6292_s21 + $0x370] sm:$0xff] %v2858_v49  ;;  %v2868_v50 = vsel %vm8889_vm15, %v5674_v14, %v2864_v46  ;;  %v2877_v42 = vsub.f32 1.0, %v2876_v40  ;;  %vm2881_vm8 = vweird.f32 %v5676_v36  ;;  %vm8909_vm1 = vcmp.eq.f32.partialorder %v2884_v38, 8.507059e+37 }
 0x1f8   : > { %v2873_v55 = vsel %vm8875_vm14, %v2872_v37, %v2868_v50  ;;  %v2887_v56 = vor.u32 1.1754944e-38, %v2886_v41  ;;  %v2914_v57 = vand.u32 2147483647, %v8881_v29  ;;  %5681 = vrcp.f32 %v8896_v44  ;;  %vm8927_vm4 = vmor %vm2880_vm0, %vm2881_vm8 }
 0x1f9   : > { %5146 = vst [vmem:[%s6292_s21 + $0x378] sm:$0xff] %v2873_v55  ;;  %v2878_v51 = vmul.f32 %v5676_v36, %v2877_v42  ;;  %vm2895_vm2 = vweird.f32 %v8879_v28  ;;  %vm8921_vm3 = vcmp.eq.f32.partialorder %v2899_v43, 8.507059e+37  ;;  %v2902_v58 = vor.u32 1.1754944e-38, %v2901_v47  ;;  %v290_v43 = vld [vmem:[%s6175_s28 + $0x3c0] sm:$0xff]  ;;  %v291_v47 = vld [vmem:[%s6175_s28 + $0x3c8] sm:$0xff] }
 0x1fa   : > { %v5678_v61 = vpop.eup %5677  ;;  %vm2910_vm5 = vweird.f32 %v8881_v29  ;;  %v799_v59 = vmul.f32 %v6187_v9, %v542_v48  ;;  %v543_v2 = vmul.f32 %v287_v53, %v287_v53  ;;  %v544_v6 = vmul.f32 %v288_v54, %v288_v54 }
 0x1fb   : > { %v2879_v62 = vadd.f32 %v5676_v36, %v2878_v51  ;;  %v2891_v63 = vmul.f32 %v5678_v61, %v8879_v28  ;;  %v2916_v5 = vand.u32 2147483648, %v8881_v29  ;;  %vm2925_vm6 = vweird.f32 %v8896_v44 }
 0x1fc   : > { %v5680_v7 = vpop.eup %5679  ;;  %vm8936_vm7 = vcmp.eq.f32.partialorder %v2914_v57, 8.507059e+37  ;;  %v8940_v0 = vadd.f32 1.0, %v799_v59  ;;  %v800_v3 = vmul.f32 %v6187_v9, %v543_v2  ;;  %v801_v8 = vmul.f32 %v6187_v9, %v544_v6 }
 0x1fd   : > { %v2883_v11 = vsel %vm8927_vm4, %v5676_v36, %v2879_v62  ;;  %v2892_v10 = vsub.f32 1.0, %v2891_v63  ;;  %vm2896_vm9 = vweird.f32 %v5678_v61  ;;  %v2906_v13 = vmul.f32 %v5680_v7, %v8881_v29 }
 0x1fe   : > { %v5682_v14 = vpop.eup %5681  ;;  %v2888_v15 = vsel %vm8909_vm1, %v2887_v56, %v2883_v11  ;;  %v2929_v12 = vand.u32 2147483647, %v8896_v44  ;;  %v2931_v16 = vand.u32 2147483648, %v8896_v44  ;;  %5683 = vrcp.f32 %v8940_v0  ;;  %vm8956_vm11 = vmor %vm2895_vm2, %vm2896_vm9 }
 0x1ff   : > { %5147 = vst [vmem:[%s6292_s21 + $0x380] sm:$0xff] %v2888_v15  ;;  %v2893_v19 = vmul.f32 %v5678_v61, %v2892_v10  ;;  %v2907_v20 = vsub.f32 1.0, %v2906_v13  ;;  %vm2911_vm10 = vweird.f32 %v5680_v7  ;;  %v2921_v21 = vmul.f32 %v5682_v14, %v8896_v44  ;;  %v293_v15 = vld [vmem:[%s6175_s28 + $0x3d8] sm:$0xff] }
 0x200   : > { %v2917_v23 = vor.u32 1.1754944e-38, %v2916_v5  ;;  %v2944_v17 = vand.u32 2147483647, %v8940_v0  ;;  %v8961_v18 = vadd.f32 1.0, %v800_v3  ;;  %v8963_v24 = vadd.f32 1.0, %v801_v8  ;;  %vm8968_vm13 = vmor %vm2910_vm5, %vm2911_vm10 }
 0x201   : > { %v2894_v25 = vadd.f32 %v5678_v61, %v2893_v19  ;;  %v2908_v31 = vmul.f32 %v5680_v7, %v2907_v20  ;;  %v2922_v32 = vsub.f32 1.0, %v2921_v21  ;;  %vm2926_vm12 = vweird.f32 %v5682_v14 }
 0x202   : > { %vm8972_vm14 = vcmp.eq.f32.partialorder %v2929_v12, 8.507059e+37  ;;  %v2932_v28 = vor.u32 1.1754944e-38, %v2931_v16  ;;  %v2946_v33 = vand.u32 2147483648, %v8940_v0  ;;  %5685 = vrcp.f32 %v8961_v18  ;;  %vm8984_vm15 = vmor %vm2925_vm6, %vm2926_vm12 }
 0x203   : > { %v2898_v34 = vsel %vm8956_vm11, %v5678_v61, %v2894_v25  ;;  %v2909_v29 = vadd.f32 %v5680_v7, %v2908_v31  ;;  %v2923_v37 = vmul.f32 %v5682_v14, %v2922_v32  ;;  %v545_v38 = vmul.f32 %v289_v27, %v289_v27 }
 0x204   : > { %v5684_v30 = vpop.eup %5683  ;;  %v2903_v36 = vsel %vm8921_vm3, %v2902_v58, %v2898_v34  ;;  %vm2940_vm0 = vweird.f32 %v8940_v0  ;;  %v2959_v41 = vand.u32 2147483647, %v8961_v18  ;;  %5687 = vrcp.f32 %v8963_v24 }
 0x205   : > { %5148 = vst [vmem:[%s6292_s21 + $0x388] sm:$0xff] %v2903_v36  ;;  %v2913_v35 = vsel %vm8968_vm13, %v5680_v7, %v2909_v29  ;;  %v2924_v46 = vadd.f32 %v5682_v14, %v2923_v37  ;;  %v2936_v40 = vmul.f32 %v5684_v30, %v8940_v0  ;;  %vm8996_vm8 = vcmp.eq.f32.partialorder %v2944_v17, 8.507059e+37  ;;  %v292_v0 = vld [vmem:[%s6175_s28 + $0x3d0] sm:$0xff]  ;;  %v294_v29 = vld [vmem:[%s6175_s28 + $0x3e0] sm:$0xff]  ;;  %v295_v37 = vld [vmem:[%s6175_s28 + $0x3e8] sm:$0xff] }
 0x206   : > { %v2918_v49 = vsel %vm8936_vm7, %v2917_v23, %v2913_v35  ;;  %vm2941_vm1 = vweird.f32 %v5684_v30  ;;  %v2947_v48 = vor.u32 1.1754944e-38, %v2946_v33  ;;  %vm2955_vm2 = vweird.f32 %v8961_v18 }
 0x207   : > { %5149 = vst [vmem:[%s6292_s21 + $0x390] sm:$0xff] %v2918_v49  ;;  %v2928_v50 = vsel %vm8984_vm15, %v5682_v14, %v2924_v46  ;;  %v2937_v42 = vsub.f32 1.0, %v2936_v40  ;;  %v802_v45 = vmul.f32 %v6187_v9, %v545_v38  ;;  %v546_v53 = vmul.f32 %v290_v43, %v290_v43  ;;  %vm9023_vm5 = vmor %vm2940_vm0, %vm2941_vm1 }
 0x208   : > { %v5686_v54 = vpop.eup %5685  ;;  %v2933_v55 = vsel %vm8972_vm14, %v2932_v28, %v2928_v50  ;;  %vm9010_vm3 = vcmp.eq.f32.partialorder %v2959_v41, 8.507059e+37  ;;  %v2961_v57 = vand.u32 2147483648, %v8961_v18  ;;  %v547_v51 = vmul.f32 %v291_v47, %v291_v47 }
 0x209   : > { %5150 = vst [vmem:[%s6292_s21 + $0x398] sm:$0xff] %v2933_v55  ;;  %v2938_v52 = vmul.f32 %v5684_v30, %v2937_v42  ;;  %v2951_v58 = vmul.f32 %v5686_v54, %v8961_v18  ;;  %vm2970_vm4 = vweird.f32 %v8963_v24  ;;  %v9018_v61 = vadd.f32 1.0, %v802_v45 }
 0x20a   : > { %v5688_v1 = vpop.eup %5687  ;;  %v2974_v2 = vand.u32 2147483647, %v8963_v24  ;;  %v2976_v6 = vand.u32 2147483648, %v8963_v24  ;;  %v803_v62 = vmul.f32 %v6187_v9, %v546_v53  ;;  %v804_v63 = vmul.f32 %v6187_v9, %v547_v51 }
 0x20b   : > { %v2939_v5 = vadd.f32 %v5684_v30, %v2938_v52  ;;  %v2952_v7 = vsub.f32 1.0, %v2951_v58  ;;  %vm2956_vm6 = vweird.f32 %v5686_v54  ;;  %v2966_v60 = vmul.f32 %v5688_v1, %v8963_v24  ;;  %v296_v58 = vld [vmem:[%s6175_s28 + $0x3f0] sm:$0xff] }
 0x20c   : > { %vm2971_vm7 = vweird.f32 %v5688_v1  ;;  %5689 = vrcp.f32 %v9018_v61  ;;  %v2989_v3 = vand.u32 2147483647, %v9018_v61  ;;  %v2991_v8 = vand.u32 2147483648, %v9018_v61  ;;  %vm9045_vm9 = vmor %vm2955_vm2, %vm2956_vm6 }
 0x20d   : > { %v2943_v11 = vsel %vm9023_vm5, %v5684_v30, %v2939_v5  ;;  %v2953_v10 = vmul.f32 %v5686_v54, %v2952_v7  ;;  %v2967_v13 = vsub.f32 1.0, %v2966_v60  ;;  %v9038_v14 = vadd.f32 1.0, %v803_v62  ;;  %vm9060_vm11 = vmor %vm2970_vm4, %vm2971_vm7 }
 0x20e   : > { %v2948_v12 = vsel %vm8996_vm8, %v2947_v48, %v2943_v11  ;;  %v2962_v19 = vor.u32 1.1754944e-38, %v2961_v57  ;;  %v9049_v20 = vadd.f32 1.0, %v804_v63  ;;  %v548_v21 = vmul.f32 %v292_v0, %v292_v0 }
 0x20f   : > { %5151 = vst [vmem:[%s6292_s21 + $0x3a0] sm:$0xff] %v2948_v12  ;;  %v2954_v22 = vadd.f32 %v5686_v54, %v2953_v10  ;;  %v2968_v23 = vmul.f32 %v5688_v1, %v2967_v13  ;;  %vm9052_vm10 = vcmp.eq.f32.partialorder %v2974_v2, 8.507059e+37  ;;  %5691 = vrcp.f32 %v9038_v14 }
 0x210   : > { %v2977_v27 = vor.u32 1.1754944e-38, %v2976_v6  ;;  %vm2985_vm12 = vweird.f32 %v9018_v61  ;;  %5693 = vrcp.f32 %v9049_v20  ;;  %v549_v25 = vmul.f32 %v293_v15, %v293_v15 }
 0x211   : > { %v2958_v31 = vsel %vm9045_vm9, %v5686_v54, %v2954_v22  ;;  %v2969_v32 = vadd.f32 %v5688_v1, %v2968_v23  ;;  %vm9068_vm13 = vcmp.eq.f32.partialorder %v2989_v3, 8.507059e+37  ;;  %v2992_v24 = vor.u32 1.1754944e-38, %v2991_v8 }
 0x212   : > { %v5690_v4 = vpop.eup %5689  ;;  %v2963_v28 = vsel %vm9010_vm3, %v2962_v19, %v2958_v31  ;;  %vm3000_vm14 = vweird.f32 %v9038_v14  ;;  %v3004_v33 = vand.u32 2147483647, %v9038_v14  ;;  %v805_v34 = vmul.f32 %v6187_v9, %v548_v21 }
 0x213   : > { %5152 = vst [vmem:[%s6292_s21 + $0x3a8] sm:$0xff] %v2963_v28  ;;  %v2973_v38 = vsel %vm9060_vm11, %v5688_v1, %v2969_v32  ;;  %v2981_v30 = vmul.f32 %v5690_v4, %v9018_v61  ;;  %v3006_v36 = vand.u32 2147483648, %v9038_v14  ;;  %v3019_v39 = vand.u32 2147483647, %v9049_v20  ;;  %v298_v28 = vld [vmem:[%s6175_s28 + $0x400] sm:$0xff] }
 0x214   : > { %v2978_v41 = vsel %vm9052_vm10, %v2977_v27, %v2973_v38  ;;  %vm3015_vm15 = vweird.f32 %v9049_v20  ;;  %v9088_v43 = vadd.f32 1.0, %v805_v34  ;;  %v806_v35 = vmul.f32 %v6187_v9, %v549_v25  ;;  %v299_v38 = vld [vmem:[%s6175_s28 + $0x408] sm:$0xff] }
 0x215   : > { %v5692_v46 = vpop.eup %5691  ;;  %5153 = vst [vmem:[%s6292_s21 + $0x3b0] sm:$0xff] %v2978_v41  ;;  %v2982_v40 = vsub.f32 1.0, %v2981_v30  ;;  %vm2986_vm0 = vweird.f32 %v5690_v4  ;;  %v550_v44 = vmul.f32 %v294_v29, %v294_v29  ;;  %v551_v47 = vmul.f32 %v295_v37, %v295_v37 }
 0x216   : > { %v5694_v49 = vpop.eup %5693  ;;  %v2996_v48 = vmul.f32 %v5692_v46, %v9038_v14  ;;  %vm9093_vm8 = vcmp.eq.f32.partialorder %v3004_v33, 8.507059e+37  ;;  %v3021_v42 = vand.u32 2147483648, %v9049_v20  ;;  %5695 = vrcp.f32 %v9088_v43  ;;  %vm9106_vm2 = vmor %vm2985_vm12, %vm2986_vm0 }
 0x217   : > { %v2983_v45 = vmul.f32 %v5690_v4, %v2982_v40  ;;  %v3007_v53 = vor.u32 1.1754944e-38, %v3006_v36  ;;  %v3011_v54 = vmul.f32 %v5694_v49, %v9049_v20  ;;  %vm9100_vm1 = vcmp.eq.f32.partialorder %v3019_v39, 8.507059e+37 }
 0x218   : > { %v2997_v57 = vsub.f32 1.0, %v2996_v48  ;;  %vm3001_vm3 = vweird.f32 %v5692_v46  ;;  %v9110_v51 = vadd.f32 1.0, %v806_v35  ;;  %v807_v52 = vmul.f32 %v6187_v9, %v550_v44 }
 0x219   : > { %v2984_v1 = vadd.f32 %v5690_v4, %v2983_v45  ;;  %v3012_v59 = vsub.f32 1.0, %v3011_v54  ;;  %vm3016_vm4 = vweird.f32 %v5694_v49  ;;  %v808_v2 = vmul.f32 %v6187_v9, %v551_v47  ;;  %vm9121_vm5 = vmor %vm3000_vm14, %vm3001_vm3 }
 0x21a   : > { %v2998_v6 = vmul.f32 %v5692_v46, %v2997_v57  ;;  %v3022_v62 = vor.u32 1.1754944e-38, %v3021_v42  ;;  %v3034_v61 = vand.u32 2147483647, %v9088_v43  ;;  %5697 = vrcp.f32 %v9110_v51  ;;  %vm9130_vm6 = vmor %vm3015_vm15, %vm3016_vm4 }
 0x21b   : > { %v2988_v63 = vsel %vm9106_vm2, %v5690_v4, %v2984_v1  ;;  %v3013_v7 = vmul.f32 %v5694_v49, %v3012_v59  ;;  %v3036_v60 = vand.u32 2147483648, %v9088_v43  ;;  %v552_v0 = vmul.f32 %v296_v58, %v296_v58  ;;  %v297_v4 = vld [vmem:[%s6175_s28 + $0x3f8] sm:$0xff] }
 0x21c   : > { %v5696_v3 = vpop.eup %5695  ;;  %v2993_v8 = vsel %vm9068_vm13, %v2992_v24, %v2988_v63  ;;  %v2999_v11 = vadd.f32 %v5692_v46, %v2998_v6  ;;  %v9134_v13 = vadd.f32 1.0, %v807_v52  ;;  %v9136_v14 = vadd.f32 1.0, %v808_v2 }
 0x21d   : > { %5154 = vst [vmem:[%s6292_s21 + $0x3b8] sm:$0xff] %v2993_v8  ;;  %v3014_v15 = vadd.f32 %v5694_v49, %v3013_v7  ;;  %v3026_v12 = vmul.f32 %v5696_v3, %v9088_v43  ;;  %vm3030_vm7 = vweird.f32 %v9088_v43  ;;  %v3049_v16 = vand.u32 2147483647, %v9110_v51  ;;  %v300_v8 = vld [vmem:[%s6175_s28 + $0x410] sm:$0xff] }
 0x21e   : > { %v3003_v19 = vsel %vm9121_vm5, %v5692_v46, %v2999_v11  ;;  %vm9144_vm9 = vcmp.eq.f32.partialorder %v3034_v61, 8.507059e+37  ;;  %v3051_v21 = vand.u32 2147483648, %v9110_v51  ;;  %5699 = vrcp.f32 %v9134_v13 }
 0x21f   : > { %v3008_v22 = vsel %vm9093_vm8, %v3007_v53, %v3003_v19  ;;  %v3018_v23 = vsel %vm9130_vm6, %v5694_v49, %v3014_v15  ;;  %v3027_v17 = vsub.f32 1.0, %v3026_v12  ;;  %vm3031_vm10 = vweird.f32 %v5696_v3 }
 0x220   : > { %v5698_v18 = vpop.eup %5697  ;;  %5155 = vst [vmem:[%s6292_s21 + $0x3c0] sm:$0xff] %v3008_v22  ;;  %v3023_v27 = vsel %vm9100_vm1, %v3022_v62, %v3018_v23  ;;  %v3037_v25 = vor.u32 1.1754944e-38, %v3036_v60  ;;  %v3064_v31 = vand.u32 2147483647, %v9134_v13  ;;  %5701 = vrcp.f32 %v9136_v14  ;;  %vm9170_vm13 = vmor %vm3030_vm7, %vm3031_vm10 }
 0x221   : > { %5156 = vst [vmem:[%s6292_s21 + $0x3c8] sm:$0xff] %v3023_v27  ;;  %v3028_v32 = vmul.f32 %v5696_v3, %v3027_v17  ;;  %v3041_v26 = vmul.f32 %v5698_v18, %v9110_v51  ;;  %vm3045_vm11 = vweird.f32 %v9110_v51  ;;  %vm9162_vm12 = vcmp.eq.f32.partialorder %v3049_v16, 8.507059e+37  ;;  %v301_v27 = vld [vmem:[%s6175_s28 + $0x418] sm:$0xff] }
 0x222   : > { %v3052_v34 = vor.u32 1.1754944e-38, %v3051_v21  ;;  %vm3060_vm14 = vweird.f32 %v9134_v13  ;;  %v3066_v29 = vand.u32 2147483648, %v9134_v13  ;;  %v809_v37 = vmul.f32 %v6187_v9, %v552_v0 }
 0x223   : > { %v3029_v30 = vadd.f32 %v5696_v3, %v3028_v32  ;;  %v3042_v36 = vsub.f32 1.0, %v3041_v26  ;;  %vm3046_vm15 = vweird.f32 %v5698_v18  ;;  %vm3075_vm0 = vweird.f32 %v9136_v14 }
 0x224   : > { %v5700_v39 = vpop.eup %5699  ;;  %vm9179_vm8 = vcmp.eq.f32.partialorder %v3064_v31, 8.507059e+37  ;;  %v9183_v43 = vadd.f32 1.0, %v809_v37  ;;  %v553_v35 = vmul.f32 %v297_v4, %v297_v4  ;;  %v554_v46 = vmul.f32 %v298_v28, %v298_v28  ;;  %vm9192_vm1 = vmor %vm3045_vm11, %vm3046_vm15 }
 0x225   : > { %v3033_v40 = vsel %vm9170_vm13, %v5696_v3, %v3029_v30  ;;  %v3043_v44 = vmul.f32 %v5698_v18, %v3042_v36  ;;  %v3056_v47 = vmul.f32 %v5700_v39, %v9134_v13  ;;  %v555_v49 = vmul.f32 %v299_v38, %v299_v38 }
 0x226   : > { %v5702_v48 = vpop.eup %5701  ;;  %v3038_v50 = vsel %vm9144_vm9, %v3037_v25, %v3033_v40  ;;  %v3079_v45 = vand.u32 2147483647, %v9136_v14  ;;  %v3081_v53 = vand.u32 2147483648, %v9136_v14  ;;  %5703 = vrcp.f32 %v9183_v43  ;;  %v302_v25 = vld [vmem:[%s6175_s28 + $0x420] sm:$0xff] }
 0x227   : > { %5157 = vst [vmem:[%s6292_s21 + $0x3d0] sm:$0xff] %v3038_v50  ;;  %v3044_v54 = vadd.f32 %v5698_v18, %v3043_v44  ;;  %v3057_v55 = vsub.f32 1.0, %v3056_v47  ;;  %vm3061_vm2 = vweird.f32 %v5700_v39  ;;  %v3071_v56 = vmul.f32 %v5702_v48, %v9136_v14 }
 0x228   : > { %v3067_v57 = vor.u32 1.1754944e-38, %v3066_v29  ;;  %vm3076_vm3 = vweird.f32 %v5702_v48  ;;  %v810_v51 = vmul.f32 %v6187_v9, %v553_v35  ;;  %v811_v52 = vmul.f32 %v6187_v9, %v554_v46  ;;  %vm9210_vm4 = vmor %vm3060_vm14, %vm3061_vm2 }
 0x229   : > { %v3048_v58 = vsel %vm9192_vm1, %v5698_v18, %v3044_v54  ;;  %v3058_v1 = vmul.f32 %v5700_v39, %v3057_v55  ;;  %v3072_v59 = vsub.f32 1.0, %v3071_v56  ;;  %v812_v2 = vmul.f32 %v6187_v9, %v555_v49  ;;  %vm9228_vm6 = vmor %vm3075_vm0, %vm3076_vm3 }
 0x22a   : > { %v3053_v6 = vsel %vm9162_vm12, %v3052_v34, %v3048_v58  ;;  %vm9214_vm5 = vcmp.eq.f32.partialorder %v3079_v45, 8.507059e+37  ;;  %v9218_v63 = vadd.f32 1.0, %v810_v51  ;;  %v9220_v5 = vadd.f32 1.0, %v811_v52 }
 0x22b   : > { %5158 = vst [vmem:[%s6292_s21 + $0x3d8] sm:$0xff] %v3053_v6  ;;  %v3059_v7 = vadd.f32 %v5700_v39, %v3058_v1  ;;  %v3073_v60 = vmul.f32 %v5702_v48, %v3072_v59  ;;  %v3082_v0 = vor.u32 1.1754944e-38, %v3081_v53  ;;  %v3094_v3 = vand.u32 2147483647, %v9183_v43  ;;  %v303_v1 = vld [vmem:[%s6175_s28 + $0x428] sm:$0xff] }
 0x22c   : > { %v5704_v11 = vpop.eup %5703  ;;  %v3096_v13 = vand.u32 2147483648, %v9183_v43  ;;  %5705 = vrcp.f32 %v9218_v63  ;;  %v3109_v15 = vand.u32 2147483647, %v9218_v63  ;;  %v9235_v12 = vadd.f32 1.0, %v812_v2 }
 0x22d   : > { %v3063_v16 = vsel %vm9210_vm4, %v5700_v39, %v3059_v7  ;;  %v3074_v19 = vadd.f32 %v5702_v48, %v3073_v60  ;;  %v3086_v14 = vmul.f32 %v5704_v11, %v9183_v43  ;;  %v3111_v20 = vand.u32 2147483648, %v9218_v63 }
 0x22e   : > { %v3068_v21 = vsel %vm9179_vm8, %v3067_v57, %v3063_v16  ;;  %vm3090_vm7 = vweird.f32 %v9183_v43  ;;  %5707 = vrcp.f32 %v9220_v5  ;;  %v556_v22 = vmul.f32 %v300_v8, %v300_v8 }
 0x22f   : > { %5159 = vst [vmem:[%s6292_s21 + $0x3e0] sm:$0xff] %v3068_v21  ;;  %v3078_v23 = vsel %vm9228_vm6, %v5702_v48, %v3074_v19  ;;  %v3087_v17 = vsub.f32 1.0, %v3086_v14  ;;  %vm3091_vm9 = vweird.f32 %v5704_v11  ;;  %vm9248_vm10 = vcmp.eq.f32.partialorder %v3094_v3, 8.507059e+37 }
 0x230   : > { %v3083_v31 = vsel %vm9214_vm5, %v3082_v0, %v3078_v23  ;;  %v3097_v32 = vor.u32 1.1754944e-38, %v3096_v13  ;;  %v3124_v26 = vand.u32 2147483647, %v9220_v5  ;;  %5709 = vrcp.f32 %v9235_v12  ;;  %vm9266_vm13 = vmor %vm3090_vm7, %vm3091_vm9 }
 0x231   : > { %5160 = vst [vmem:[%s6292_s21 + $0x3e8] sm:$0xff] %v3083_v31  ;;  %v3088_v24 = vmul.f32 %v5704_v11, %v3087_v17  ;;  %vm3105_vm11 = vweird.f32 %v9218_v63  ;;  %vm9260_vm12 = vcmp.eq.f32.partialorder %v3109_v15, 8.507059e+37  ;;  %v3112_v28 = vor.u32 1.1754944e-38, %v3111_v20  ;;  %v304_v15 = vld [vmem:[%s6175_s28 + $0x430] sm:$0xff]  ;;  %v305_v20 = vld [vmem:[%s6175_s28 + $0x438] sm:$0xff] }
 0x232   : > { %v5706_v33 = vpop.eup %5705  ;;  %vm3120_vm14 = vweird.f32 %v9220_v5  ;;  %v813_v29 = vmul.f32 %v6187_v9, %v556_v22  ;;  %v557_v37 = vmul.f32 %v301_v27, %v301_v27  ;;  %v558_v38 = vmul.f32 %v302_v25, %v302_v25 }
 0x233   : > { %v3089_v30 = vadd.f32 %v5704_v11, %v3088_v24  ;;  %v3101_v36 = vmul.f32 %v5706_v33, %v9218_v63  ;;  %v3126_v39 = vand.u32 2147483648, %v9220_v5  ;;  %vm3135_vm15 = vweird.f32 %v9235_v12 }
 0x234   : > { %v5708_v41 = vpop.eup %5707  ;;  %vm9275_vm0 = vcmp.eq.f32.partialorder %v3124_v26, 8.507059e+37  ;;  %v9279_v35 = vadd.f32 1.0, %v813_v29  ;;  %v814_v46 = vmul.f32 %v6187_v9, %v557_v37  ;;  %v815_v40 = vmul.f32 %v6187_v9, %v558_v38 }
 0x235   : > { %v3093_v44 = vsel %vm9266_vm13, %v5704_v11, %v3089_v30  ;;  %v3102_v47 = vsub.f32 1.0, %v3101_v36  ;;  %vm3106_vm8 = vweird.f32 %v5706_v33  ;;  %v3116_v49 = vmul.f32 %v5708_v41, %v9220_v5 }
 0x236   : > { %v5710_v48 = vpop.eup %5709  ;;  %v3098_v50 = vsel %vm9248_vm10, %v3097_v32, %v3093_v44  ;;  %v3139_v42 = vand.u32 2147483647, %v9235_v12  ;;  %v3141_v45 = vand.u32 2147483648, %v9235_v12  ;;  %5711 = vrcp.f32 %v9279_v35  ;;  %vm9295_vm2 = vmor %vm3105_vm11, %vm3106_vm8 }
 0x237   : > { %5161 = vst [vmem:[%s6292_s21 + $0x3f0] sm:$0xff] %v3098_v50  ;;  %v3103_v53 = vmul.f32 %v5706_v33, %v3102_v47  ;;  %v3117_v54 = vsub.f32 1.0, %v3116_v49  ;;  %vm3121_vm1 = vweird.f32 %v5708_v41  ;;  %v3131_v55 = vmul.f32 %v5710_v48, %v9235_v12  ;;  %v307_v50 = vld [vmem:[%s6175_s28 + $0x448] sm:$0xff] }
 0x238   : > { %v3127_v57 = vor.u32 1.1754944e-38, %v3126_v39  ;;  %v3154_v51 = vand.u32 2147483647, %v9279_v35  ;;  %v9300_v52 = vadd.f32 1.0, %v814_v46  ;;  %v9302_v58 = vadd.f32 1.0, %v815_v40  ;;  %vm9307_vm4 = vmor %vm3120_vm14, %vm3121_vm1 }
 0x239   : > { %v3104_v59 = vadd.f32 %v5706_v33, %v3103_v53  ;;  %v3118_v2 = vmul.f32 %v5708_v41, %v3117_v54  ;;  %v3132_v6 = vsub.f32 1.0, %v3131_v55  ;;  %vm3136_vm3 = vweird.f32 %v5710_v48 }
 0x23a   : > { %vm9311_vm5 = vcmp.eq.f32.partialorder %v3139_v42, 8.507059e+37  ;;  %v3142_v63 = vor.u32 1.1754944e-38, %v3141_v45  ;;  %v3156_v7 = vand.u32 2147483648, %v9279_v35  ;;  %5713 = vrcp.f32 %v9300_v52  ;;  %vm9323_vm6 = vmor %vm3135_vm15, %vm3136_vm3 }
 0x23b   : > { %v3108_v60 = vsel %vm9295_vm2, %v5706_v33, %v3104_v59  ;;  %v3119_v5 = vadd.f32 %v5708_v41, %v3118_v2  ;;  %v3133_v0 = vmul.f32 %v5710_v48, %v3132_v6  ;;  %v559_v3 = vmul.f32 %v303_v1, %v303_v1 }
 0x23c   : > { %v5712_v8 = vpop.eup %5711  ;;  %v3113_v11 = vsel %vm9260_vm12, %v3112_v28, %v3108_v60  ;;  %vm3150_vm7 = vweird.f32 %v9279_v35  ;;  %v3169_v13 = vand.u32 2147483647, %v9300_v52  ;;  %5715 = vrcp.f32 %v9302_v58 }
 0x23d   : > { %5162 = vst [vmem:[%s6292_s21 + $0x3f8] sm:$0xff] %v3113_v11  ;;  %v3123_v16 = vsel %vm9307_vm4, %v5708_v41, %v3119_v5  ;;  %v3134_v19 = vadd.f32 %v5710_v48, %v3133_v0  ;;  %v3146_v14 = vmul.f32 %v5712_v8, %v9279_v35  ;;  %vm9335_vm9 = vcmp.eq.f32.partialorder %v3154_v51, 8.507059e+37  ;;  %v306_v35 = vld [vmem:[%s6175_s28 + $0x440] sm:$0xff]  ;;  %v308_v5 = vld [vmem:[%s6175_s28 + $0x450] sm:$0xff]  ;;  %v309_v0 = vld [vmem:[%s6175_s28 + $0x458] sm:$0xff] }
 0x23e   : > { %v3128_v21 = vsel %vm9275_vm0, %v3127_v57, %v3123_v16  ;;  %vm3151_vm10 = vweird.f32 %v5712_v8  ;;  %v3157_v22 = vor.u32 1.1754944e-38, %v3156_v7  ;;  %vm3165_vm11 = vweird.f32 %v9300_v52 }
 0x23f   : > { %5163 = vst [vmem:[%s6292_s21 + $0x400] sm:$0xff] %v3128_v21  ;;  %v3138_v23 = vsel %vm9323_vm6, %v5710_v48, %v3134_v19  ;;  %v3147_v17 = vsub.f32 1.0, %v3146_v14  ;;  %v816_v18 = vmul.f32 %v6187_v9, %v559_v3  ;;  %v560_v27 = vmul.f32 %v304_v15, %v304_v15  ;;  %vm9362_vm14 = vmor %vm3150_vm7, %vm3151_vm10 }
 0x240   : > { %v5714_v25 = vpop.eup %5713  ;;  %v3143_v31 = vsel %vm9311_vm5, %v3142_v63, %v3138_v23  ;;  %vm9349_vm12 = vcmp.eq.f32.partialorder %v3169_v13, 8.507059e+37  ;;  %v3171_v26 = vand.u32 2147483648, %v9300_v52  ;;  %v561_v24 = vmul.f32 %v305_v20, %v305_v20 }
 0x241   : > { %5164 = vst [vmem:[%s6292_s21 + $0x408] sm:$0xff] %v3143_v31  ;;  %v3148_v4 = vmul.f32 %v5712_v8, %v3147_v17  ;;  %v3161_v28 = vmul.f32 %v5714_v25, %v9300_v52  ;;  %vm3180_vm13 = vweird.f32 %v9302_v58  ;;  %v9357_v33 = vadd.f32 1.0, %v816_v18 }
 0x242   : > { %v5716_v34 = vpop.eup %5715  ;;  %v3184_v37 = vand.u32 2147483647, %v9302_v58  ;;  %v3186_v38 = vand.u32 2147483648, %v9302_v58  ;;  %v817_v30 = vmul.f32 %v6187_v9, %v560_v27  ;;  %v818_v36 = vmul.f32 %v6187_v9, %v561_v24 }
 0x243   : > { %v3149_v39 = vadd.f32 %v5712_v8, %v3148_v4  ;;  %v3162_v41 = vsub.f32 1.0, %v3161_v28  ;;  %vm3166_vm15 = vweird.f32 %v5714_v25  ;;  %v3176_v43 = vmul.f32 %v5716_v34, %v9302_v58  ;;  %v310_v28 = vld [vmem:[%s6175_s28 + $0x460] sm:$0xff] }
 0x244   : > { %vm3181_vm0 = vweird.f32 %v5716_v34  ;;  %5717 = vrcp.f32 %v9357_v33  ;;  %v3199_v46 = vand.u32 2147483647, %v9357_v33  ;;  %v3201_v40 = vand.u32 2147483648, %v9357_v33  ;;  %vm9384_vm8 = vmor %vm3165_vm11, %vm3166_vm15 }
 0x245   : > { %v3153_v44 = vsel %vm9362_vm14, %v5712_v8, %v3149_v39  ;;  %v3163_v47 = vmul.f32 %v5714_v25, %v3162_v41  ;;  %v3177_v49 = vsub.f32 1.0, %v3176_v43  ;;  %v9377_v48 = vadd.f32 1.0, %v817_v30  ;;  %vm9399_vm2 = vmor %vm3180_vm13, %vm3181_vm0 }
 0x246   : > { %v3158_v42 = vsel %vm9335_vm9, %v3157_v22, %v3153_v44  ;;  %v3172_v53 = vor.u32 1.1754944e-38, %v3171_v26  ;;  %v9388_v54 = vadd.f32 1.0, %v818_v36  ;;  %v562_v55 = vmul.f32 %v306_v35, %v306_v35 }
 0x247   : > { %5165 = vst [vmem:[%s6292_s21 + $0x410] sm:$0xff] %v3158_v42  ;;  %v3164_v56 = vadd.f32 %v5714_v25, %v3163_v47  ;;  %v3178_v57 = vmul.f32 %v5716_v34, %v3177_v49  ;;  %vm9391_vm1 = vcmp.eq.f32.partialorder %v3184_v37, 8.507059e+37  ;;  %5719 = vrcp.f32 %v9377_v48 }
 0x248   : > { %v3187_v1 = vor.u32 1.1754944e-38, %v3186_v38  ;;  %vm3195_vm3 = vweird.f32 %v9357_v33  ;;  %5721 = vrcp.f32 %v9388_v54  ;;  %v563_v59 = vmul.f32 %v307_v50, %v307_v50 }
 0x249   : > { %v3168_v2 = vsel %vm9384_vm8, %v5714_v25, %v3164_v56  ;;  %v3179_v6 = vadd.f32 %v5716_v34, %v3178_v57  ;;  %vm9407_vm4 = vcmp.eq.f32.partialorder %v3199_v46, 8.507059e+37  ;;  %v3202_v58 = vor.u32 1.1754944e-38, %v3201_v40 }
 0x24a   : > { %v5718_v61 = vpop.eup %5717  ;;  %v3173_v63 = vsel %vm9349_vm12, %v3172_v53, %v3168_v2  ;;  %vm3210_vm5 = vweird.f32 %v9377_v48  ;;  %v3214_v7 = vand.u32 2147483647, %v9377_v48  ;;  %v819_v60 = vmul.f32 %v6187_v9, %v562_v55 }
 0x24b   : > { %5166 = vst [vmem:[%s6292_s21 + $0x418] sm:$0xff] %v3173_v63  ;;  %v3183_v3 = vsel %vm9399_vm2, %v5716_v34, %v3179_v6  ;;  %v3191_v8 = vmul.f32 %v5718_v61, %v9357_v33  ;;  %v3216_v11 = vand.u32 2147483648, %v9377_v48  ;;  %v3229_v10 = vand.u32 2147483647, %v9388_v54  ;;  %v312_v63 = vld [vmem:[%s6175_s28 + $0x470] sm:$0xff] }
 0x24c   : > { %v3188_v13 = vsel %vm9391_vm1, %v3187_v1, %v3183_v3  ;;  %vm3225_vm6 = vweird.f32 %v9388_v54  ;;  %v9427_v15 = vadd.f32 1.0, %v819_v60  ;;  %v820_v16 = vmul.f32 %v6187_v9, %v563_v59  ;;  %v313_v3 = vld [vmem:[%s6175_s28 + $0x478] sm:$0xff] }
 0x24d   : > { %v5720_v19 = vpop.eup %5719  ;;  %5167 = vst [vmem:[%s6292_s21 + $0x420] sm:$0xff] %v3188_v13  ;;  %v3192_v14 = vsub.f32 1.0, %v3191_v8  ;;  %vm3196_vm7 = vweird.f32 %v5718_v61  ;;  %v564_v12 = vmul.f32 %v308_v5, %v308_v5  ;;  %v565_v20 = vmul.f32 %v309_v0, %v309_v0 }
 0x24e   : > { %v5722_v21 = vpop.eup %5721  ;;  %v3206_v22 = vmul.f32 %v5720_v19, %v9377_v48  ;;  %vm9432_vm9 = vcmp.eq.f32.partialorder %v3214_v7, 8.507059e+37  ;;  %v3231_v17 = vand.u32 2147483648, %v9388_v54  ;;  %5723 = vrcp.f32 %v9427_v15  ;;  %vm9445_vm11 = vmor %vm3195_vm3, %vm3196_vm7 }
 0x24f   : > { %v3193_v18 = vmul.f32 %v5718_v61, %v3192_v14  ;;  %v3217_v27 = vor.u32 1.1754944e-38, %v3216_v11  ;;  %v3221_v25 = vmul.f32 %v5722_v21, %v9388_v54  ;;  %vm9439_vm10 = vcmp.eq.f32.partialorder %v3229_v10, 8.507059e+37 }
 0x250   : > { %v3207_v26 = vsub.f32 1.0, %v3206_v22  ;;  %vm3211_vm12 = vweird.f32 %v5720_v19  ;;  %v9449_v24 = vadd.f32 1.0, %v820_v16  ;;  %v821_v4 = vmul.f32 %v6187_v9, %v564_v12 }
 0x251   : > { %v3194_v34 = vadd.f32 %v5718_v61, %v3193_v18  ;;  %v3222_v29 = vsub.f32 1.0, %v3221_v25  ;;  %vm3226_vm13 = vweird.f32 %v5722_v21  ;;  %v822_v37 = vmul.f32 %v6187_v9, %v565_v20  ;;  %vm9460_vm14 = vmor %vm3210_vm5, %vm3211_vm12 }
 0x252   : > { %v3208_v38 = vmul.f32 %v5720_v19, %v3207_v26  ;;  %v3232_v30 = vor.u32 1.1754944e-38, %v3231_v17  ;;  %v3244_v33 = vand.u32 2147483647, %v9427_v15  ;;  %5725 = vrcp.f32 %v9449_v24  ;;  %vm9469_vm15 = vmor %vm3225_vm6, %vm3226_vm13 }
 0x253   : > { %v3198_v36 = vsel %vm9445_vm11, %v5718_v61, %v3194_v34  ;;  %v3223_v41 = vmul.f32 %v5722_v21, %v3222_v29  ;;  %v3246_v43 = vand.u32 2147483648, %v9427_v15  ;;  %v566_v35 = vmul.f32 %v310_v28, %v310_v28  ;;  %v311_v61 = vld [vmem:[%s6175_s28 + $0x468] sm:$0xff] }
 0x254   : > { %v5724_v46 = vpop.eup %5723  ;;  %v3203_v40 = vsel %vm9407_vm4, %v3202_v58, %v3198_v36  ;;  %v3209_v44 = vadd.f32 %v5720_v19, %v3208_v38  ;;  %v9473_v49 = vadd.f32 1.0, %v821_v4  ;;  %v9475_v48 = vadd.f32 1.0, %v822_v37 }
 0x255   : > { %5168 = vst [vmem:[%s6292_s21 + $0x428] sm:$0xff] %v3203_v40  ;;  %v3224_v50 = vadd.f32 %v5722_v21, %v3223_v41  ;;  %v3236_v42 = vmul.f32 %v5724_v46, %v9427_v15  ;;  %vm3240_vm0 = vweird.f32 %v9427_v15  ;;  %v3259_v45 = vand.u32 2147483647, %v9449_v24  ;;  %v314_v40 = vld [vmem:[%s6175_s28 + $0x480] sm:$0xff] }
 0x256   : > { %v3213_v53 = vsel %vm9460_vm14, %v5720_v19, %v3209_v44  ;;  %vm9483_vm8 = vcmp.eq.f32.partialorder %v3244_v33, 8.507059e+37  ;;  %v3261_v55 = vand.u32 2147483648, %v9449_v24  ;;  %5727 = vrcp.f32 %v9473_v49 }
 0x257   : > { %v3218_v56 = vsel %vm9432_vm9, %v3217_v27, %v3213_v53  ;;  %v3228_v57 = vsel %vm9469_vm15, %v5722_v21, %v3224_v50  ;;  %v3237_v51 = vsub.f32 1.0, %v3236_v42  ;;  %vm3241_vm1 = vweird.f32 %v5724_v46 }
 0x258   : > { %v5726_v52 = vpop.eup %5725  ;;  %5169 = vst [vmem:[%s6292_s21 + $0x430] sm:$0xff] %v3218_v56  ;;  %v3233_v1 = vsel %vm9439_vm10, %v3232_v30, %v3228_v57  ;;  %v3247_v59 = vor.u32 1.1754944e-38, %v3246_v43  ;;  %v3274_v2 = vand.u32 2147483647, %v9473_v49  ;;  %5729 = vrcp.f32 %v9475_v48  ;;  %vm9509_vm4 = vmor %vm3240_vm0, %vm3241_vm1 }
 0x259   : > { %5170 = vst [vmem:[%s6292_s21 + $0x438] sm:$0xff] %v3233_v1  ;;  %v3238_v6 = vmul.f32 %v5724_v46, %v3237_v51  ;;  %v3251_v62 = vmul.f32 %v5726_v52, %v9449_v24  ;;  %vm3255_vm2 = vweird.f32 %v9449_v24  ;;  %vm9501_vm3 = vcmp.eq.f32.partialorder %v3259_v45, 8.507059e+37  ;;  %v315_v1 = vld [vmem:[%s6175_s28 + $0x488] sm:$0xff] }
 0x25a   : > { %v3262_v60 = vor.u32 1.1754944e-38, %v3261_v55  ;;  %vm3270_vm5 = vweird.f32 %v9473_v49  ;;  %v3276_v5 = vand.u32 2147483648, %v9473_v49  ;;  %v823_v0 = vmul.f32 %v6187_v9, %v566_v35 }
 0x25b   : > { %v3239_v8 = vadd.f32 %v5724_v46, %v3238_v6  ;;  %v3252_v11 = vsub.f32 1.0, %v3251_v62  ;;  %vm3256_vm6 = vweird.f32 %v5726_v52  ;;  %vm3285_vm7 = vweird.f32 %v9475_v48 }
 0x25c   : > { %v5728_v10 = vpop.eup %5727  ;;  %vm9518_vm9 = vcmp.eq.f32.partialorder %v3274_v2, 8.507059e+37  ;;  %v9522_v15 = vadd.f32 1.0, %v823_v0  ;;  %v567_v16 = vmul.f32 %v311_v61, %v311_v61  ;;  %v568_v19 = vmul.f32 %v312_v63, %v312_v63  ;;  %vm9531_vm10 = vmor %vm3255_vm2, %vm3256_vm6 }
 0x25d   : > { %v3243_v14 = vsel %vm9509_vm4, %v5724_v46, %v3239_v8  ;;  %v3253_v12 = vmul.f32 %v5726_v52, %v3252_v11  ;;  %v3266_v20 = vmul.f32 %v5728_v10, %v9473_v49  ;;  %v569_v21 = vmul.f32 %v313_v3, %v313_v3 }
 0x25e   : > { %v5730_v22 = vpop.eup %5729  ;;  %v3248_v23 = vsel %vm9483_vm8, %v3247_v59, %v3243_v14  ;;  %v3289_v18 = vand.u32 2147483647, %v9475_v48  ;;  %v3291_v27 = vand.u32 2147483648, %v9475_v48  ;;  %5731 = vrcp.f32 %v9522_v15  ;;  %v316_v59 = vld [vmem:[%s6175_s28 + $0x490] sm:$0xff] }
 0x25f   : > { %5171 = vst [vmem:[%s6292_s21 + $0x440] sm:$0xff] %v3248_v23  ;;  %v3254_v25 = vadd.f32 %v5726_v52, %v3253_v12  ;;  %v3267_v31 = vsub.f32 1.0, %v3266_v20  ;;  %vm3271_vm11 = vweird.f32 %v5728_v10  ;;  %v3281_v32 = vmul.f32 %v5730_v22, %v9475_v48 }
 0x260   : > { %v3277_v26 = vor.u32 1.1754944e-38, %v3276_v5  ;;  %vm3286_vm12 = vweird.f32 %v5730_v22  ;;  %v824_v24 = vmul.f32 %v6187_v9, %v567_v16  ;;  %v825_v4 = vmul.f32 %v6187_v9, %v568_v19  ;;  %vm9549_vm13 = vmor %vm3270_vm5, %vm3271_vm11 }
 0x261   : > { %v3258_v28 = vsel %vm9531_vm10, %v5726_v52, %v3254_v25  ;;  %v3268_v34 = vmul.f32 %v5728_v10, %v3267_v31  ;;  %v3282_v29 = vsub.f32 1.0, %v3281_v32  ;;  %v826_v37 = vmul.f32 %v6187_v9, %v569_v21  ;;  %vm9567_vm15 = vmor %vm3285_vm7, %vm3286_vm12 }
 0x262   : > { %v3263_v38 = vsel %vm9501_vm3, %v3262_v60, %v3258_v28  ;;  %vm9553_vm14 = vcmp.eq.f32.partialorder %v3289_v18, 8.507059e+37  ;;  %v9557_v36 = vadd.f32 1.0, %v824_v24  ;;  %v9559_v39 = vadd.f32 1.0, %v825_v4 }
 0x263   : > { %5172 = vst [vmem:[%s6292_s21 + $0x448] sm:$0xff] %v3263_v38  ;;  %v3269_v41 = vadd.f32 %v5728_v10, %v3268_v34  ;;  %v3283_v43 = vmul.f32 %v5730_v22, %v3282_v29  ;;  %v3292_v35 = vor.u32 1.1754944e-38, %v3291_v27  ;;  %v3304_v46 = vand.u32 2147483647, %v9522_v15  ;;  %v317_v34 = vld [vmem:[%s6175_s28 + $0x498] sm:$0xff] }
 0x264   : > { %v5732_v44 = vpop.eup %5731  ;;  %v3306_v49 = vand.u32 2147483648, %v9522_v15  ;;  %5733 = vrcp.f32 %v9557_v36  ;;  %v3319_v50 = vand.u32 2147483647, %v9557_v36  ;;  %v9574_v42 = vadd.f32 1.0, %v826_v37 }
 0x265   : > { %v3273_v45 = vsel %vm9549_vm13, %v5728_v10, %v3269_v41  ;;  %v3284_v53 = vadd.f32 %v5730_v22, %v3283_v43  ;;  %v3296_v48 = vmul.f32 %v5732_v44, %v9522_v15  ;;  %v3321_v54 = vand.u32 2147483648, %v9557_v36 }
 0x266   : > { %v3278_v55 = vsel %vm9518_vm9, %v3277_v26, %v3273_v45  ;;  %vm3300_vm0 = vweird.f32 %v9522_v15  ;;  %5735 = vrcp.f32 %v9559_v39  ;;  %v570_v56 = vmul.f32 %v314_v40, %v314_v40 }
 0x267   : > { %5173 = vst [vmem:[%s6292_s21 + $0x450] sm:$0xff] %v3278_v55  ;;  %v3288_v57 = vsel %vm9567_vm15, %v5730_v22, %v3284_v53  ;;  %v3297_v51 = vsub.f32 1.0, %v3296_v48  ;;  %vm3301_vm8 = vweird.f32 %v5732_v44  ;;  %vm9587_vm1 = vcmp.eq.f32.partialorder %v3304_v46, 8.507059e+37 }
 0x268   : > { %v3293_v2 = vsel %vm9553_vm14, %v3292_v35, %v3288_v57  ;;  %v3307_v6 = vor.u32 1.1754944e-38, %v3306_v49  ;;  %v3334_v62 = vand.u32 2147483647, %v9559_v39  ;;  %5737 = vrcp.f32 %v9574_v42  ;;  %vm9605_vm4 = vmor %vm3300_vm0, %vm3301_vm8 }
 0x269   : > { %5174 = vst [vmem:[%s6292_s21 + $0x458] sm:$0xff] %v3293_v2  ;;  %v3298_v58 = vmul.f32 %v5732_v44, %v3297_v51  ;;  %vm3315_vm2 = vweird.f32 %v9557_v36  ;;  %vm9599_vm3 = vcmp.eq.f32.partialorder %v3319_v50, 8.507059e+37  ;;  %v3322_v63 = vor.u32 1.1754944e-38, %v3321_v54  ;;  %v318_v50 = vld [vmem:[%s6175_s28 + $0x4a0] sm:$0xff]  ;;  %v319_v54 = vld [vmem:[%s6175_s28 + $0x4a8] sm:$0xff] }
 0x26a   : > { %v5734_v7 = vpop.eup %5733  ;;  %vm3330_vm5 = vweird.f32 %v9559_v39  ;;  %v827_v5 = vmul.f32 %v6187_v9, %v570_v56  ;;  %v571_v0 = vmul.f32 %v315_v1, %v315_v1  ;;  %v572_v3 = vmul.f32 %v316_v59, %v316_v59 }
 0x26b   : > { %v3299_v8 = vadd.f32 %v5732_v44, %v3298_v58  ;;  %v3311_v11 = vmul.f32 %v5734_v7, %v9557_v36  ;;  %v3336_v10 = vand.u32 2147483648, %v9559_v39  ;;  %vm3345_vm6 = vweird.f32 %v9574_v42 }
 0x26c   : > { %v5736_v13 = vpop.eup %5735  ;;  %vm9614_vm7 = vcmp.eq.f32.partialorder %v3334_v62, 8.507059e+37  ;;  %v9618_v16 = vadd.f32 1.0, %v827_v5  ;;  %v828_v19 = vmul.f32 %v6187_v9, %v571_v0  ;;  %v829_v14 = vmul.f32 %v6187_v9, %v572_v3 }
 0x26d   : > { %v3303_v12 = vsel %vm9605_vm4, %v5732_v44, %v3299_v8  ;;  %v3312_v20 = vsub.f32 1.0, %v3311_v11  ;;  %vm3316_vm9 = vweird.f32 %v5734_v7  ;;  %v3326_v21 = vmul.f32 %v5736_v13, %v9559_v39 }
 0x26e   : > { %v5738_v22 = vpop.eup %5737  ;;  %v3308_v23 = vsel %vm9587_vm1, %v3307_v6, %v3303_v12  ;;  %v3349_v17 = vand.u32 2147483647, %v9574_v42  ;;  %v3351_v18 = vand.u32 2147483648, %v9574_v42  ;;  %5739 = vrcp.f32 %v9618_v16  ;;  %vm9634_vm11 = vmor %vm3315_vm2, %vm3316_vm9 }
 0x26f   : > { %5175 = vst [vmem:[%s6292_s21 + $0x460] sm:$0xff] %v3308_v23  ;;  %v3313_v27 = vmul.f32 %v5734_v7, %v3312_v20  ;;  %v3327_v25 = vsub.f32 1.0, %v3326_v21  ;;  %vm3331_vm10 = vweird.f32 %v5736_v13  ;;  %v3341_v31 = vmul.f32 %v5738_v22, %v9574_v42  ;;  %v321_v23 = vld [vmem:[%s6175_s28 + $0x4b8] sm:$0xff] }
 0x270   : > { %v3337_v26 = vor.u32 1.1754944e-38, %v3336_v10  ;;  %v3364_v24 = vand.u32 2147483647, %v9618_v16  ;;  %v9639_v4 = vadd.f32 1.0, %v828_v19  ;;  %v9641_v28 = vadd.f32 1.0, %v829_v14  ;;  %vm9646_vm13 = vmor %vm3330_vm5, %vm3331_vm10 }
 0x271   : > { %v3314_v29 = vadd.f32 %v5734_v7, %v3313_v27  ;;  %v3328_v37 = vmul.f32 %v5736_v13, %v3327_v25  ;;  %v3342_v38 = vsub.f32 1.0, %v3341_v31  ;;  %vm3346_vm12 = vweird.f32 %v5738_v22 }
 0x272   : > { %vm9650_vm14 = vcmp.eq.f32.partialorder %v3349_v17, 8.507059e+37  ;;  %v3352_v36 = vor.u32 1.1754944e-38, %v3351_v18  ;;  %v3366_v41 = vand.u32 2147483648, %v9618_v16  ;;  %5741 = vrcp.f32 %v9639_v4  ;;  %vm9662_vm15 = vmor %vm3345_vm6, %vm3346_vm12 }
 0x273   : > { %v3318_v43 = vsel %vm9634_vm11, %v5734_v7, %v3314_v29  ;;  %v3329_v39 = vadd.f32 %v5736_v13, %v3328_v37  ;;  %v3343_v35 = vmul.f32 %v5738_v22, %v3342_v38  ;;  %v573_v46 = vmul.f32 %v317_v34, %v317_v34 }
 0x274   : > { %v5740_v40 = vpop.eup %5739  ;;  %v3323_v44 = vsel %vm9599_vm3, %v3322_v63, %v3318_v43  ;;  %vm3360_vm0 = vweird.f32 %v9618_v16  ;;  %v3379_v49 = vand.u32 2147483647, %v9639_v4  ;;  %5743 = vrcp.f32 %v9641_v28 }
 0x275   : > { %5176 = vst [vmem:[%s6292_s21 + $0x468] sm:$0xff] %v3323_v44  ;;  %v3333_v45 = vsel %vm9646_vm13, %v5736_v13, %v3329_v39  ;;  %v3344_v53 = vadd.f32 %v5738_v22, %v3343_v35  ;;  %v3356_v48 = vmul.f32 %v5740_v40, %v9618_v16  ;;  %vm9674_vm8 = vcmp.eq.f32.partialorder %v3364_v24, 8.507059e+37  ;;  %v320_v16 = vld [vmem:[%s6175_s28 + $0x4b0] sm:$0xff]  ;;  %v322_v39 = vld [vmem:[%s6175_s28 + $0x4c0] sm:$0xff]  ;;  %v323_v35 = vld [vmem:[%s6175_s28 + $0x4c8] sm:$0xff] }
 0x276   : > { %v3338_v55 = vsel %vm9614_vm7, %v3337_v26, %v3333_v45  ;;  %vm3361_vm1 = vweird.f32 %v5740_v40  ;;  %v3367_v56 = vor.u32 1.1754944e-38, %v3366_v41  ;;  %vm3375_vm2 = vweird.f32 %v9639_v4 }
 0x277   : > { %5177 = vst [vmem:[%s6292_s21 + $0x470] sm:$0xff] %v3338_v55  ;;  %v3348_v57 = vsel %vm9662_vm15, %v5738_v22, %v3344_v53  ;;  %v3357_v51 = vsub.f32 1.0, %v3356_v48  ;;  %v830_v52 = vmul.f32 %v6187_v9, %v573_v46  ;;  %v574_v1 = vmul.f32 %v318_v50, %v318_v50  ;;  %vm9701_vm5 = vmor %vm3360_vm0, %vm3361_vm1 }
 0x278   : > { %v5742_v59 = vpop.eup %5741  ;;  %v3353_v2 = vsel %vm9650_vm14, %v3352_v36, %v3348_v57  ;;  %vm9688_vm3 = vcmp.eq.f32.partialorder %v3379_v49, 8.507059e+37  ;;  %v3381_v62 = vand.u32 2147483648, %v9639_v4  ;;  %v575_v58 = vmul.f32 %v319_v54, %v319_v54 }
 0x279   : > { %5178 = vst [vmem:[%s6292_s21 + $0x478] sm:$0xff] %v3353_v2  ;;  %v3358_v61 = vmul.f32 %v5740_v40, %v3357_v51  ;;  %v3371_v63 = vmul.f32 %v5742_v59, %v9639_v4  ;;  %vm3390_vm4 = vweird.f32 %v9641_v28  ;;  %v9696_v7 = vadd.f32 1.0, %v830_v52 }
 0x27a   : > { %v5744_v60 = vpop.eup %5743  ;;  %v3394_v0 = vand.u32 2147483647, %v9641_v28  ;;  %v3396_v3 = vand.u32 2147483648, %v9641_v28  ;;  %v831_v8 = vmul.f32 %v6187_v9, %v574_v1  ;;  %v832_v11 = vmul.f32 %v6187_v9, %v575_v58 }
 0x27b   : > { %v3359_v10 = vadd.f32 %v5740_v40, %v3358_v61  ;;  %v3372_v13 = vsub.f32 1.0, %v3371_v63  ;;  %vm3376_vm6 = vweird.f32 %v5742_v59  ;;  %v3386_v15 = vmul.f32 %v5744_v60, %v9641_v28  ;;  %v324_v63 = vld [vmem:[%s6175_s28 + $0x4d0] sm:$0xff] }
 0x27c   : > { %vm3391_vm7 = vweird.f32 %v5744_v60  ;;  %5745 = vrcp.f32 %v9696_v7  ;;  %v3409_v19 = vand.u32 2147483647, %v9696_v7  ;;  %v3411_v14 = vand.u32 2147483648, %v9696_v7  ;;  %vm9723_vm9 = vmor %vm3375_vm2, %vm3376_vm6 }
 0x27d   : > { %v3363_v12 = vsel %vm9701_vm5, %v5740_v40, %v3359_v10  ;;  %v3373_v20 = vmul.f32 %v5742_v59, %v3372_v13  ;;  %v3387_v21 = vsub.f32 1.0, %v3386_v15  ;;  %v9716_v22 = vadd.f32 1.0, %v831_v8  ;;  %vm9738_vm11 = vmor %vm3390_vm4, %vm3391_vm7 }
 0x27e   : > { %v3368_v17 = vsel %vm9674_vm8, %v3367_v56, %v3363_v12  ;;  %v3382_v27 = vor.u32 1.1754944e-38, %v3381_v62  ;;  %v9727_v25 = vadd.f32 1.0, %v832_v11  ;;  %v576_v31 = vmul.f32 %v320_v16, %v320_v16 }
 0x27f   : > { %5179 = vst [vmem:[%s6292_s21 + $0x480] sm:$0xff] %v3368_v17  ;;  %v3374_v32 = vadd.f32 %v5742_v59, %v3373_v20  ;;  %v3388_v26 = vmul.f32 %v5744_v60, %v3387_v21  ;;  %vm9730_vm10 = vcmp.eq.f32.partialorder %v3394_v0, 8.507059e+37  ;;  %5747 = vrcp.f32 %v9716_v22 }
 0x280   : > { %v3397_v34 = vor.u32 1.1754944e-38, %v3396_v3  ;;  %vm3405_vm12 = vweird.f32 %v9696_v7  ;;  %5749 = vrcp.f32 %v9727_v25  ;;  %v577_v29 = vmul.f32 %v321_v23, %v321_v23 }
 0x281   : > { %v3378_v37 = vsel %vm9723_vm9, %v5742_v59, %v3374_v32  ;;  %v3389_v38 = vadd.f32 %v5744_v60, %v3388_v26  ;;  %vm9746_vm13 = vcmp.eq.f32.partialorder %v3409_v19, 8.507059e+37  ;;  %v3412_v28 = vor.u32 1.1754944e-38, %v3411_v14 }
 0x282   : > { %v5746_v33 = vpop.eup %5745  ;;  %v3383_v36 = vsel %vm9688_vm3, %v3382_v27, %v3378_v37  ;;  %vm3420_vm14 = vweird.f32 %v9716_v22  ;;  %v3424_v41 = vand.u32 2147483647, %v9716_v22  ;;  %v833_v43 = vmul.f32 %v6187_v9, %v576_v31 }
 0x283   : > { %5180 = vst [vmem:[%s6292_s21 + $0x488] sm:$0xff] %v3383_v36  ;;  %v3393_v46 = vsel %vm9738_vm11, %v5744_v60, %v3389_v38  ;;  %v3401_v40 = vmul.f32 %v5746_v33, %v9696_v7  ;;  %v3426_v44 = vand.u32 2147483648, %v9716_v22  ;;  %v3439_v47 = vand.u32 2147483647, %v9727_v25  ;;  %v326_v36 = vld [vmem:[%s6175_s28 + $0x4e0] sm:$0xff] }
 0x284   : > { %v3398_v49 = vsel %vm9730_vm10, %v3397_v34, %v3393_v46  ;;  %vm3435_vm15 = vweird.f32 %v9727_v25  ;;  %v9766_v50 = vadd.f32 1.0, %v833_v43  ;;  %v834_v45 = vmul.f32 %v6187_v9, %v577_v29  ;;  %v327_v46 = vld [vmem:[%s6175_s28 + $0x4e8] sm:$0xff] }
 0x285   : > { %v5748_v53 = vpop.eup %5747  ;;  %5181 = vst [vmem:[%s6292_s21 + $0x490] sm:$0xff] %v3398_v49  ;;  %v3402_v48 = vsub.f32 1.0, %v3401_v40  ;;  %vm3406_vm0 = vweird.f32 %v5746_v33  ;;  %v578_v42 = vmul.f32 %v322_v39, %v322_v39  ;;  %v579_v54 = vmul.f32 %v323_v35, %v323_v35 }
 0x286   : > { %v5750_v55 = vpop.eup %5749  ;;  %v3416_v56 = vmul.f32 %v5748_v53, %v9716_v22  ;;  %vm9771_vm8 = vcmp.eq.f32.partialorder %v3424_v41, 8.507059e+37  ;;  %v3441_v51 = vand.u32 2147483648, %v9727_v25  ;;  %5751 = vrcp.f32 %v9766_v50  ;;  %vm9784_vm2 = vmor %vm3405_vm12, %vm3406_vm0 }
 0x287   : > { %v3403_v52 = vmul.f32 %v5746_v33, %v3402_v48  ;;  %v3427_v1 = vor.u32 1.1754944e-38, %v3426_v44  ;;  %v3431_v59 = vmul.f32 %v5750_v55, %v9727_v25  ;;  %vm9778_vm1 = vcmp.eq.f32.partialorder %v3439_v47, 8.507059e+37 }
 0x288   : > { %v3417_v62 = vsub.f32 1.0, %v3416_v56  ;;  %vm3421_vm3 = vweird.f32 %v5748_v53  ;;  %v9788_v58 = vadd.f32 1.0, %v834_v45  ;;  %v835_v61 = vmul.f32 %v6187_v9, %v578_v42 }
 0x289   : > { %v3404_v60 = vadd.f32 %v5746_v33, %v3403_v52  ;;  %v3432_v5 = vsub.f32 1.0, %v3431_v59  ;;  %vm3436_vm4 = vweird.f32 %v5750_v55  ;;  %v836_v0 = vmul.f32 %v6187_v9, %v579_v54  ;;  %vm9799_vm5 = vmor %vm3420_vm14, %vm3421_vm3 }
 0x28a   : > { %v3418_v3 = vmul.f32 %v5748_v53, %v3417_v62  ;;  %v3442_v8 = vor.u32 1.1754944e-38, %v3441_v51  ;;  %v3454_v7 = vand.u32 2147483647, %v9766_v50  ;;  %5753 = vrcp.f32 %v9788_v58  ;;  %vm9808_vm6 = vmor %vm3435_vm15, %vm3436_vm4 }
 0x28b   : > { %v3408_v11 = vsel %vm9784_vm2, %v5746_v33, %v3404_v60  ;;  %v3433_v13 = vmul.f32 %v5750_v55, %v3432_v5  ;;  %v3456_v15 = vand.u32 2147483648, %v9766_v50  ;;  %v580_v16 = vmul.f32 %v324_v63, %v324_v63  ;;  %v325_v33 = vld [vmem:[%s6175_s28 + $0x4d8] sm:$0xff] }
 0x28c   : > { %v5752_v19 = vpop.eup %5751  ;;  %v3413_v14 = vsel %vm9746_vm13, %v3412_v28, %v3408_v11  ;;  %v3419_v12 = vadd.f32 %v5748_v53, %v3418_v3  ;;  %v9812_v21 = vadd.f32 1.0, %v835_v61  ;;  %v9814_v22 = vadd.f32 1.0, %v836_v0 }
 0x28d   : > { %5182 = vst [vmem:[%s6292_s21 + $0x498] sm:$0xff] %v3413_v14  ;;  %v3434_v23 = vadd.f32 %v5750_v55, %v3433_v13  ;;  %v3446_v17 = vmul.f32 %v5752_v19, %v9766_v50  ;;  %vm3450_vm7 = vweird.f32 %v9766_v50  ;;  %v3469_v18 = vand.u32 2147483647, %v9788_v58  ;;  %v328_v14 = vld [vmem:[%s6175_s28 + $0x4f0] sm:$0xff] }
 0x28e   : > { %v3423_v27 = vsel %vm9799_vm5, %v5748_v53, %v3419_v12  ;;  %vm9822_vm9 = vcmp.eq.f32.partialorder %v3454_v7, 8.507059e+37  ;;  %v3471_v31 = vand.u32 2147483648, %v9788_v58  ;;  %5755 = vrcp.f32 %v9812_v21 }
 0x28f   : > { %v3428_v32 = vsel %vm9771_vm8, %v3427_v1, %v3423_v27  ;;  %v3438_v26 = vsel %vm9808_vm6, %v5750_v55, %v3434_v23  ;;  %v3447_v24 = vsub.f32 1.0, %v3446_v17  ;;  %vm3451_vm10 = vweird.f32 %v5752_v19 }
 0x290   : > { %v5754_v4 = vpop.eup %5753  ;;  %5183 = vst [vmem:[%s6292_s21 + $0x4a0] sm:$0xff] %v3428_v32  ;;  %v3443_v34 = vsel %vm9778_vm1, %v3442_v8, %v3438_v26  ;;  %v3457_v29 = vor.u32 1.1754944e-38, %v3456_v15  ;;  %v3484_v37 = vand.u32 2147483647, %v9812_v21  ;;  %5757 = vrcp.f32 %v9814_v22  ;;  %vm9848_vm13 = vmor %vm3450_vm7, %vm3451_vm10 }
 0x291   : > { %5184 = vst [vmem:[%s6292_s21 + $0x4a8] sm:$0xff] %v3443_v34  ;;  %v3448_v38 = vmul.f32 %v5752_v19, %v3447_v24  ;;  %v3461_v30 = vmul.f32 %v5754_v4, %v9788_v58  ;;  %vm3465_vm11 = vweird.f32 %v9788_v58  ;;  %vm9840_vm12 = vcmp.eq.f32.partialorder %v3469_v18, 8.507059e+37  ;;  %v329_v34 = vld [vmem:[%s6175_s28 + $0x4f8] sm:$0xff] }
 0x292   : > { %v3472_v43 = vor.u32 1.1754944e-38, %v3471_v31  ;;  %vm3480_vm14 = vweird.f32 %v9812_v21  ;;  %v3486_v39 = vand.u32 2147483648, %v9812_v21  ;;  %v837_v35 = vmul.f32 %v6187_v9, %v580_v16 }
 0x293   : > { %v3449_v40 = vadd.f32 %v5752_v19, %v3448_v38  ;;  %v3462_v44 = vsub.f32 1.0, %v3461_v30  ;;  %vm3466_vm15 = vweird.f32 %v5754_v4  ;;  %vm3495_vm0 = vweird.f32 %v9814_v22 }
 0x294   : > { %v5756_v47 = vpop.eup %5755  ;;  %vm9857_vm8 = vcmp.eq.f32.partialorder %v3484_v37, 8.507059e+37  ;;  %v9861_v50 = vadd.f32 1.0, %v837_v35  ;;  %v581_v45 = vmul.f32 %v325_v33, %v325_v33  ;;  %v582_v53 = vmul.f32 %v326_v36, %v326_v36  ;;  %vm9870_vm1 = vmor %vm3465_vm11, %vm3466_vm15 }
 0x295   : > { %v3453_v48 = vsel %vm9848_vm13, %v5752_v19, %v3449_v40  ;;  %v3463_v42 = vmul.f32 %v5754_v4, %v3462_v44  ;;  %v3476_v54 = vmul.f32 %v5756_v47, %v9812_v21  ;;  %v583_v55 = vmul.f32 %v327_v46, %v327_v46 }
 0x296   : > { %v5758_v56 = vpop.eup %5757  ;;  %v3458_v57 = vsel %vm9822_vm9, %v3457_v29, %v3453_v48  ;;  %v3499_v52 = vand.u32 2147483647, %v9814_v22  ;;  %v3501_v1 = vand.u32 2147483648, %v9814_v22  ;;  %5759 = vrcp.f32 %v9861_v50  ;;  %v330_v29 = vld [vmem:[%s6175_s28 + $0x500] sm:$0xff] }
 0x297   : > { %5185 = vst [vmem:[%s6292_s21 + $0x4b0] sm:$0xff] %v3458_v57  ;;  %v3464_v59 = vadd.f32 %v5754_v4, %v3463_v42  ;;  %v3477_v2 = vsub.f32 1.0, %v3476_v54  ;;  %vm3481_vm2 = vweird.f32 %v5756_v47  ;;  %v3491_v6 = vmul.f32 %v5758_v56, %v9814_v22 }
 0x298   : > { %v3487_v62 = vor.u32 1.1754944e-38, %v3486_v39  ;;  %vm3496_vm3 = vweird.f32 %v5758_v56  ;;  %v838_v58 = vmul.f32 %v6187_v9, %v581_v45  ;;  %v839_v61 = vmul.f32 %v6187_v9, %v582_v53  ;;  %vm9888_vm4 = vmor %vm3480_vm14, %vm3481_vm2 }
 0x299   : > { %v3468_v63 = vsel %vm9870_vm1, %v5754_v4, %v3464_v59  ;;  %v3478_v60 = vmul.f32 %v5756_v47, %v3477_v2  ;;  %v3492_v5 = vsub.f32 1.0, %v3491_v6  ;;  %v840_v0 = vmul.f32 %v6187_v9, %v583_v55  ;;  %vm9906_vm6 = vmor %vm3495_vm0, %vm3496_vm3 }
 0x29a   : > { %v3473_v3 = vsel %vm9840_vm12, %v3472_v43, %v3468_v63  ;;  %vm9892_vm5 = vcmp.eq.f32.partialorder %v3499_v52, 8.507059e+37  ;;  %v9896_v11 = vadd.f32 1.0, %v838_v58  ;;  %v9898_v10 = vadd.f32 1.0, %v839_v61 }
 0x29b   : > { %5186 = vst [vmem:[%s6292_s21 + $0x4b8] sm:$0xff] %v3473_v3  ;;  %v3479_v13 = vadd.f32 %v5756_v47, %v3478_v60  ;;  %v3493_v15 = vmul.f32 %v5758_v56, %v3492_v5  ;;  %v3502_v16 = vor.u32 1.1754944e-38, %v3501_v1  ;;  %v3514_v19 = vand.u32 2147483647, %v9861_v50  ;;  %v331_v60 = vld [vmem:[%s6175_s28 + $0x508] sm:$0xff] }
 0x29c   : > { %v5760_v12 = vpop.eup %5759  ;;  %v3516_v21 = vand.u32 2147483648, %v9861_v50  ;;  %5761 = vrcp.f32 %v9896_v11  ;;  %v3529_v23 = vand.u32 2147483647, %v9896_v11  ;;  %v9913_v17 = vadd.f32 1.0, %v840_v0 }
 0x29d   : > { %v3483_v18 = vsel %vm9888_vm4, %v5756_v47, %v3479_v13  ;;  %v3494_v27 = vadd.f32 %v5758_v56, %v3493_v15  ;;  %v3506_v22 = vmul.f32 %v5760_v12, %v9861_v50  ;;  %v3531_v25 = vand.u32 2147483648, %v9896_v11 }
 0x29e   : > { %v3488_v31 = vsel %vm9857_vm8, %v3487_v62, %v3483_v18  ;;  %vm3510_vm7 = vweird.f32 %v9861_v50  ;;  %5763 = vrcp.f32 %v9898_v10  ;;  %v584_v32 = vmul.f32 %v328_v14, %v328_v14 }
 0x29f   : > { %5187 = vst [vmem:[%s6292_s21 + $0x4c0] sm:$0xff] %v3488_v31  ;;  %v3498_v26 = vsel %vm9906_vm6, %v5758_v56, %v3494_v27  ;;  %v3507_v24 = vsub.f32 1.0, %v3506_v22  ;;  %vm3511_vm9 = vweird.f32 %v5760_v12  ;;  %vm9926_vm10 = vcmp.eq.f32.partialorder %v3514_v19, 8.507059e+37 }
 0x2a0   : > { %v3503_v37 = vsel %vm9892_vm5, %v3502_v16, %v3498_v26  ;;  %v3517_v38 = vor.u32 1.1754944e-38, %v3516_v21  ;;  %v3544_v30 = vand.u32 2147483647, %v9898_v10  ;;  %5765 = vrcp.f32 %v9913_v17  ;;  %vm9944_vm13 = vmor %vm3510_vm7, %vm3511_vm9 }
 0x2a1   : > { %5188 = vst [vmem:[%s6292_s21 + $0x4c8] sm:$0xff] %v3503_v37  ;;  %v3508_v28 = vmul.f32 %v5760_v12, %v3507_v24  ;;  %vm3525_vm11 = vweird.f32 %v9896_v11  ;;  %vm9938_vm12 = vcmp.eq.f32.partialorder %v3529_v23, 8.507059e+37  ;;  %v3532_v36 = vor.u32 1.1754944e-38, %v3531_v25  ;;  %v332_v23 = vld [vmem:[%s6175_s28 + $0x510] sm:$0xff]  ;;  %v333_v25 = vld [vmem:[%s6175_s28 + $0x518] sm:$0xff] }
 0x2a2   : > { %v5762_v41 = vpop.eup %5761  ;;  %vm3540_vm14 = vweird.f32 %v9898_v10  ;;  %v841_v39 = vmul.f32 %v6187_v9, %v584_v32  ;;  %v585_v35 = vmul.f32 %v329_v34, %v329_v34  ;;  %v586_v46 = vmul.f32 %v330_v29, %v330_v29 }
 0x2a3   : > { %v3509_v40 = vadd.f32 %v5760_v12, %v3508_v28  ;;  %v3521_v44 = vmul.f32 %v5762_v41, %v9896_v11  ;;  %v3546_v47 = vand.u32 2147483648, %v9898_v10  ;;  %vm3555_vm15 = vweird.f32 %v9913_v17 }
 0x2a4   : > { %v5764_v49 = vpop.eup %5763  ;;  %vm9953_vm0 = vcmp.eq.f32.partialorder %v3544_v30, 8.507059e+37  ;;  %v9957_v45 = vadd.f32 1.0, %v841_v39  ;;  %v842_v53 = vmul.f32 %v6187_v9, %v585_v35  ;;  %v843_v48 = vmul.f32 %v6187_v9, %v586_v46 }
 0x2a5   : > { %v3513_v42 = vsel %vm9944_vm13, %v5760_v12, %v3509_v40  ;;  %v3522_v54 = vsub.f32 1.0, %v3521_v44  ;;  %vm3526_vm8 = vweird.f32 %v5762_v41  ;;  %v3536_v55 = vmul.f32 %v5764_v49, %v9898_v10 }
 0x2a6   : > { %v5766_v56 = vpop.eup %5765  ;;  %v3518_v57 = vsel %vm9926_vm10, %v3517_v38, %v3513_v42  ;;  %v3559_v51 = vand.u32 2147483647, %v9913_v17  ;;  %v3561_v52 = vand.u32 2147483648, %v9913_v17  ;;  %5767 = vrcp.f32 %v9957_v45  ;;  %vm9973_vm2 = vmor %vm3525_vm11, %vm3526_vm8 }
 0x2a7   : > { %5189 = vst [vmem:[%s6292_s21 + $0x4d0] sm:$0xff] %v3518_v57  ;;  %v3523_v1 = vmul.f32 %v5762_v41, %v3522_v54  ;;  %v3537_v59 = vsub.f32 1.0, %v3536_v55  ;;  %vm3541_vm1 = vweird.f32 %v5764_v49  ;;  %v3551_v2 = vmul.f32 %v5766_v56, %v9913_v17  ;;  %v335_v57 = vld [vmem:[%s6175_s28 + $0x528] sm:$0xff] }
 0x2a8   : > { %v3547_v62 = vor.u32 1.1754944e-38, %v3546_v47  ;;  %v3574_v58 = vand.u32 2147483647, %v9957_v45  ;;  %v9978_v61 = vadd.f32 1.0, %v842_v53  ;;  %v9980_v63 = vadd.f32 1.0, %v843_v48  ;;  %vm9985_vm4 = vmor %vm3540_vm14, %vm3541_vm1 }
 0x2a9   : > { %v3524_v5 = vadd.f32 %v5762_v41, %v3523_v1  ;;  %v3538_v0 = vmul.f32 %v5764_v49, %v3537_v59  ;;  %v3552_v3 = vsub.f32 1.0, %v3551_v2  ;;  %vm3556_vm3 = vweird.f32 %v5766_v56 }
 0x2aa   : > { %vm9989_vm5 = vcmp.eq.f32.partialorder %v3559_v51, 8.507059e+37  ;;  %v3562_v11 = vor.u32 1.1754944e-38, %v3561_v52  ;;  %v3576_v13 = vand.u32 2147483648, %v9957_v45  ;;  %5769 = vrcp.f32 %v9978_v61  ;;  %vm10001_vm6 = vmor %vm3555_vm15, %vm3556_vm3 }
 0x2ab   : > { %v3528_v15 = vsel %vm9973_vm2, %v5762_v41, %v3524_v5  ;;  %v3539_v10 = vadd.f32 %v5764_v49, %v3538_v0  ;;  %v3553_v16 = vmul.f32 %v5766_v56, %v3552_v3  ;;  %v587_v19 = vmul.f32 %v331_v60, %v331_v60 }
 0x2ac   : > { %v5768_v14 = vpop.eup %5767  ;;  %v3533_v12 = vsel %vm9938_vm12, %v3532_v36, %v3528_v15  ;;  %vm3570_vm7 = vweird.f32 %v9957_v45  ;;  %v3589_v21 = vand.u32 2147483647, %v9978_v61  ;;  %5771 = vrcp.f32 %v9980_v63 }
 0x2ad   : > { %5190 = vst [vmem:[%s6292_s21 + $0x4d8] sm:$0xff] %v3533_v12  ;;  %v3543_v18 = vsel %vm9985_vm4, %v5764_v49, %v3539_v10  ;;  %v3554_v27 = vadd.f32 %v5766_v56, %v3553_v16  ;;  %v3566_v22 = vmul.f32 %v5768_v14, %v9957_v45  ;;  %vm10013_vm9 = vcmp.eq.f32.partialorder %v3574_v58, 8.507059e+37  ;;  %v334_v45 = vld [vmem:[%s6175_s28 + $0x520] sm:$0xff]  ;;  %v336_v10 = vld [vmem:[%s6175_s28 + $0x530] sm:$0xff]  ;;  %v337_v16 = vld [vmem:[%s6175_s28 + $0x538] sm:$0xff] }
 0x2ae   : > { %v3548_v31 = vsel %vm9953_vm0, %v3547_v62, %v3543_v18  ;;  %vm3571_vm10 = vweird.f32 %v5768_v14  ;;  %v3577_v32 = vor.u32 1.1754944e-38, %v3576_v13  ;;  %vm3585_vm11 = vweird.f32 %v9978_v61 }
 0x2af   : > { %5191 = vst [vmem:[%s6292_s21 + $0x4e0] sm:$0xff] %v3548_v31  ;;  %v3558_v26 = vsel %vm10001_vm6, %v5766_v56, %v3554_v27  ;;  %v3567_v24 = vsub.f32 1.0, %v3566_v22  ;;  %v844_v4 = vmul.f32 %v6187_v9, %v587_v19  ;;  %v588_v34 = vmul.f32 %v332_v23, %v332_v23  ;;  %vm10040_vm14 = vmor %vm3570_vm7, %vm3571_vm10 }
 0x2b0   : > { %v5770_v29 = vpop.eup %5769  ;;  %v3563_v37 = vsel %vm9989_vm5, %v3562_v11, %v3558_v26  ;;  %vm10027_vm12 = vcmp.eq.f32.partialorder %v3589_v21, 8.507059e+37  ;;  %v3591_v30 = vand.u32 2147483648, %v9978_v61  ;;  %v589_v28 = vmul.f32 %v333_v25, %v333_v25 }
 0x2b1   : > { %5192 = vst [vmem:[%s6292_s21 + $0x4e8] sm:$0xff] %v3563_v37  ;;  %v3568_v33 = vmul.f32 %v5768_v14, %v3567_v24  ;;  %v3581_v36 = vmul.f32 %v5770_v29, %v9978_v61  ;;  %vm3600_vm13 = vweird.f32 %v9980_v63  ;;  %v10035_v41 = vadd.f32 1.0, %v844_v4 }
 0x2b2   : > { %v5772_v43 = vpop.eup %5771  ;;  %v3604_v35 = vand.u32 2147483647, %v9980_v63  ;;  %v3606_v46 = vand.u32 2147483648, %v9980_v63  ;;  %v845_v40 = vmul.f32 %v6187_v9, %v588_v34  ;;  %v846_v44 = vmul.f32 %v6187_v9, %v589_v28 }
 0x2b3   : > { %v3569_v47 = vadd.f32 %v5768_v14, %v3568_v33  ;;  %v3582_v49 = vsub.f32 1.0, %v3581_v36  ;;  %vm3586_vm15 = vweird.f32 %v5770_v29  ;;  %v3596_v50 = vmul.f32 %v5772_v43, %v9980_v63  ;;  %v338_v36 = vld [vmem:[%s6175_s28 + $0x540] sm:$0xff] }
 0x2b4   : > { %vm3601_vm0 = vweird.f32 %v5772_v43  ;;  %5773 = vrcp.f32 %v10035_v41  ;;  %v3619_v53 = vand.u32 2147483647, %v10035_v41  ;;  %v3621_v48 = vand.u32 2147483648, %v10035_v41  ;;  %vm10062_vm8 = vmor %vm3585_vm11, %vm3586_vm15 }
 0x2b5   : > { %v3573_v42 = vsel %vm10040_vm14, %v5768_v14, %v3569_v47  ;;  %v3583_v54 = vmul.f32 %v5770_v29, %v3582_v49  ;;  %v3597_v55 = vsub.f32 1.0, %v3596_v50  ;;  %v10055_v56 = vadd.f32 1.0, %v845_v40  ;;  %vm10077_vm2 = vmor %vm3600_vm13, %vm3601_vm0 }
 0x2b6   : > { %v3578_v51 = vsel %vm10013_vm9, %v3577_v32, %v3573_v42  ;;  %v3592_v1 = vor.u32 1.1754944e-38, %v3591_v30  ;;  %v10066_v59 = vadd.f32 1.0, %v846_v44  ;;  %v590_v2 = vmul.f32 %v334_v45, %v334_v45 }
 0x2b7   : > { %5193 = vst [vmem:[%s6292_s21 + $0x4f0] sm:$0xff] %v3578_v51  ;;  %v3584_v6 = vadd.f32 %v5770_v29, %v3583_v54  ;;  %v3598_v62 = vmul.f32 %v5772_v43, %v3597_v55  ;;  %vm10069_vm1 = vcmp.eq.f32.partialorder %v3604_v35, 8.507059e+37  ;;  %5775 = vrcp.f32 %v10055_v56 }
 0x2b8   : > { %v3607_v60 = vor.u32 1.1754944e-38, %v3606_v46  ;;  %vm3615_vm3 = vweird.f32 %v10035_v41  ;;  %5777 = vrcp.f32 %v10066_v59  ;;  %v591_v5 = vmul.f32 %v335_v57, %v335_v57 }
 0x2b9   : > { %v3588_v0 = vsel %vm10062_vm8, %v5770_v29, %v3584_v6  ;;  %v3599_v3 = vadd.f32 %v5772_v43, %v3598_v62  ;;  %vm10085_vm4 = vcmp.eq.f32.partialorder %v3619_v53, 8.507059e+37  ;;  %v3622_v63 = vor.u32 1.1754944e-38, %v3621_v48 }
 0x2ba   : > { %v5774_v7 = vpop.eup %5773  ;;  %v3593_v11 = vsel %vm10027_vm12, %v3592_v1, %v3588_v0  ;;  %vm3630_vm5 = vweird.f32 %v10055_v56  ;;  %v3634_v13 = vand.u32 2147483647, %v10055_v56  ;;  %v847_v15 = vmul.f32 %v6187_v9, %v590_v2 }
 0x2bb   : > { %5194 = vst [vmem:[%s6292_s21 + $0x4f8] sm:$0xff] %v3593_v11  ;;  %v3603_v19 = vsel %vm10077_vm2, %v5772_v43, %v3599_v3  ;;  %v3611_v14 = vmul.f32 %v5774_v7, %v10035_v41  ;;  %v3636_v12 = vand.u32 2147483648, %v10055_v56  ;;  %v3649_v20 = vand.u32 2147483647, %v10066_v59  ;;  %v340_v11 = vld [vmem:[%s6175_s28 + $0x550] sm:$0xff] }
 0x2bc   : > { %v3608_v21 = vsel %vm10069_vm1, %v3607_v60, %v3603_v19  ;;  %vm3645_vm6 = vweird.f32 %v10066_v59  ;;  %v10105_v23 = vadd.f32 1.0, %v847_v15  ;;  %v848_v18 = vmul.f32 %v6187_v9, %v591_v5  ;;  %v341_v19 = vld [vmem:[%s6175_s28 + $0x558] sm:$0xff] }
 0x2bd   : > { %v5776_v27 = vpop.eup %5775  ;;  %5195 = vst [vmem:[%s6292_s21 + $0x500] sm:$0xff] %v3608_v21  ;;  %v3612_v22 = vsub.f32 1.0, %v3611_v14  ;;  %vm3616_vm7 = vweird.f32 %v5774_v7  ;;  %v592_v17 = vmul.f32 %v336_v10, %v336_v10  ;;  %v593_v25 = vmul.f32 %v337_v16, %v337_v16 }
 0x2be   : > { %v5778_v31 = vpop.eup %5777  ;;  %v3626_v32 = vmul.f32 %v5776_v27, %v10055_v56  ;;  %vm10110_vm9 = vcmp.eq.f32.partialorder %v3634_v13, 8.507059e+37  ;;  %v3651_v24 = vand.u32 2147483648, %v10066_v59  ;;  %5779 = vrcp.f32 %v10105_v23  ;;  %vm10123_vm11 = vmor %vm3615_vm3, %vm3616_vm7 }
 0x2bf   : > { %v3613_v4 = vmul.f32 %v5774_v7, %v3612_v22  ;;  %v3637_v34 = vor.u32 1.1754944e-38, %v3636_v12  ;;  %v3641_v29 = vmul.f32 %v5778_v31, %v10066_v59  ;;  %vm10117_vm10 = vcmp.eq.f32.partialorder %v3649_v20, 8.507059e+37 }
 0x2c0   : > { %v3627_v30 = vsub.f32 1.0, %v3626_v32  ;;  %vm3631_vm12 = vweird.f32 %v5776_v27  ;;  %v10127_v28 = vadd.f32 1.0, %v848_v18  ;;  %v849_v33 = vmul.f32 %v6187_v9, %v592_v17 }
 0x2c1   : > { %v3614_v43 = vadd.f32 %v5774_v7, %v3613_v4  ;;  %v3642_v39 = vsub.f32 1.0, %v3641_v29  ;;  %vm3646_vm13 = vweird.f32 %v5778_v31  ;;  %v850_v35 = vmul.f32 %v6187_v9, %v593_v25  ;;  %vm10138_vm14 = vmor %vm3630_vm5, %vm3631_vm12 }
 0x2c2   : > { %v3628_v46 = vmul.f32 %v5776_v27, %v3627_v30  ;;  %v3652_v40 = vor.u32 1.1754944e-38, %v3651_v24  ;;  %v3664_v41 = vand.u32 2147483647, %v10105_v23  ;;  %5781 = vrcp.f32 %v10127_v28  ;;  %vm10147_vm15 = vmor %vm3645_vm6, %vm3646_vm13 }
 0x2c3   : > { %v3618_v44 = vsel %vm10123_vm11, %v5774_v7, %v3614_v43  ;;  %v3643_v49 = vmul.f32 %v5778_v31, %v3642_v39  ;;  %v3666_v50 = vand.u32 2147483648, %v10105_v23  ;;  %v594_v45 = vmul.f32 %v338_v36, %v338_v36  ;;  %v339_v7 = vld [vmem:[%s6175_s28 + $0x548] sm:$0xff] }
 0x2c4   : > { %v5780_v53 = vpop.eup %5779  ;;  %v3623_v48 = vsel %vm10085_vm4, %v3622_v63, %v3618_v44  ;;  %v3629_v42 = vadd.f32 %v5776_v27, %v3628_v46  ;;  %v10151_v55 = vadd.f32 1.0, %v849_v33  ;;  %v10153_v56 = vadd.f32 1.0, %v850_v35 }
 0x2c5   : > { %5196 = vst [vmem:[%s6292_s21 + $0x508] sm:$0xff] %v3623_v48  ;;  %v3644_v57 = vadd.f32 %v5778_v31, %v3643_v49  ;;  %v3656_v51 = vmul.f32 %v5780_v53, %v10105_v23  ;;  %vm3660_vm0 = vweird.f32 %v10105_v23  ;;  %v3679_v52 = vand.u32 2147483647, %v10127_v28  ;;  %v342_v48 = vld [vmem:[%s6175_s28 + $0x560] sm:$0xff] }
 0x2c6   : > { %v3633_v1 = vsel %vm10138_vm14, %v5776_v27, %v3629_v42  ;;  %vm10161_vm8 = vcmp.eq.f32.partialorder %v3664_v41, 8.507059e+37  ;;  %v3681_v2 = vand.u32 2147483648, %v10127_v28  ;;  %5783 = vrcp.f32 %v10151_v55 }
 0x2c7   : > { %v3638_v6 = vsel %vm10110_vm9, %v3637_v34, %v3633_v1  ;;  %v3648_v62 = vsel %vm10147_vm15, %v5778_v31, %v3644_v57  ;;  %v3657_v58 = vsub.f32 1.0, %v3656_v51  ;;  %vm3661_vm1 = vweird.f32 %v5780_v53 }
 0x2c8   : > { %v5782_v61 = vpop.eup %5781  ;;  %5197 = vst [vmem:[%s6292_s21 + $0x510] sm:$0xff] %v3638_v6  ;;  %v3653_v60 = vsel %vm10117_vm10, %v3652_v40, %v3648_v62  ;;  %v3667_v5 = vor.u32 1.1754944e-38, %v3666_v50  ;;  %v3694_v0 = vand.u32 2147483647, %v10151_v55  ;;  %5785 = vrcp.f32 %v10153_v56  ;;  %vm10187_vm4 = vmor %vm3660_vm0, %vm3661_vm1 }
 0x2c9   : > { %5198 = vst [vmem:[%s6292_s21 + $0x518] sm:$0xff] %v3653_v60  ;;  %v3658_v3 = vmul.f32 %v5780_v53, %v3657_v58  ;;  %v3671_v8 = vmul.f32 %v5782_v61, %v10127_v28  ;;  %vm3675_vm2 = vweird.f32 %v10127_v28  ;;  %vm10179_vm3 = vcmp.eq.f32.partialorder %v3679_v52, 8.507059e+37  ;;  %v343_v60 = vld [vmem:[%s6175_s28 + $0x568] sm:$0xff] }
 0x2ca   : > { %v3682_v15 = vor.u32 1.1754944e-38, %v3681_v2  ;;  %vm3690_vm5 = vweird.f32 %v10151_v55  ;;  %v3696_v10 = vand.u32 2147483648, %v10151_v55  ;;  %v851_v16 = vmul.f32 %v6187_v9, %v594_v45 }
 0x2cb   : > { %v3659_v14 = vadd.f32 %v5780_v53, %v3658_v3  ;;  %v3672_v12 = vsub.f32 1.0, %v3671_v8  ;;  %vm3676_vm6 = vweird.f32 %v5782_v61  ;;  %vm3705_vm7 = vweird.f32 %v10153_v56 }
 0x2cc   : > { %v5784_v20 = vpop.eup %5783  ;;  %vm10196_vm9 = vcmp.eq.f32.partialorder %v3694_v0, 8.507059e+37  ;;  %v10200_v23 = vadd.f32 1.0, %v851_v16  ;;  %v595_v18 = vmul.f32 %v339_v7, %v339_v7  ;;  %v596_v27 = vmul.f32 %v340_v11, %v340_v11  ;;  %vm10209_vm10 = vmor %vm3675_vm2, %vm3676_vm6 }
 0x2cd   : > { %v3663_v22 = vsel %vm10187_vm4, %v5780_v53, %v3659_v14  ;;  %v3673_v17 = vmul.f32 %v5782_v61, %v3672_v12  ;;  %v3686_v25 = vmul.f32 %v5784_v20, %v10151_v55  ;;  %v597_v31 = vmul.f32 %v341_v19, %v341_v19 }
 0x2ce   : > { %v5786_v32 = vpop.eup %5785  ;;  %v3668_v26 = vsel %vm10161_vm8, %v3667_v5, %v3663_v22  ;;  %v3709_v4 = vand.u32 2147483647, %v10153_v56  ;;  %v3711_v34 = vand.u32 2147483648, %v10153_v56  ;;  %5787 = vrcp.f32 %v10200_v23  ;;  %v344_v5 = vld [vmem:[%s6175_s28 + $0x570] sm:$0xff] }
 0x2cf   : > { %5199 = vst [vmem:[%s6292_s21 + $0x520] sm:$0xff] %v3668_v26  ;;  %v3674_v29 = vadd.f32 %v5782_v61, %v3673_v17  ;;  %v3687_v37 = vsub.f32 1.0, %v3686_v25  ;;  %vm3691_vm11 = vweird.f32 %v5784_v20  ;;  %v3701_v38 = vmul.f32 %v5786_v32, %v10153_v56 }
 0x2d0   : > { %v3697_v30 = vor.u32 1.1754944e-38, %v3696_v10  ;;  %vm3706_vm12 = vweird.f32 %v5786_v32  ;;  %v852_v28 = vmul.f32 %v6187_v9, %v595_v18  ;;  %v853_v33 = vmul.f32 %v6187_v9, %v596_v27  ;;  %vm10227_vm13 = vmor %vm3690_vm5, %vm3691_vm11 }
 0x2d1   : > { %v3678_v36 = vsel %vm10209_vm10, %v5782_v61, %v3674_v29  ;;  %v3688_v43 = vmul.f32 %v5784_v20, %v3687_v37  ;;  %v3702_v39 = vsub.f32 1.0, %v3701_v38  ;;  %v854_v35 = vmul.f32 %v6187_v9, %v597_v31  ;;  %vm10245_vm15 = vmor %vm3705_vm7, %vm3706_vm12 }
 0x2d2   : > { %v3683_v46 = vsel %vm10179_vm3, %v3682_v15, %v3678_v36  ;;  %vm10231_vm14 = vcmp.eq.f32.partialorder %v3709_v4, 8.507059e+37  ;;  %v10235_v44 = vadd.f32 1.0, %v852_v28  ;;  %v10237_v47 = vadd.f32 1.0, %v853_v33 }
 0x2d3   : > { %5200 = vst [vmem:[%s6292_s21 + $0x528] sm:$0xff] %v3683_v46  ;;  %v3689_v49 = vadd.f32 %v5784_v20, %v3688_v43  ;;  %v3703_v50 = vmul.f32 %v5786_v32, %v3702_v39  ;;  %v3712_v45 = vor.u32 1.1754944e-38, %v3711_v34  ;;  %v3724_v53 = vand.u32 2147483647, %v10200_v23  ;;  %v345_v43 = vld [vmem:[%s6175_s28 + $0x578] sm:$0xff] }
 0x2d4   : > { %v5788_v42 = vpop.eup %5787  ;;  %v3726_v55 = vand.u32 2147483648, %v10200_v23  ;;  %5789 = vrcp.f32 %v10235_v44  ;;  %v3739_v57 = vand.u32 2147483647, %v10235_v44  ;;  %v10252_v51 = vadd.f32 1.0, %v854_v35 }
 0x2d5   : > { %v3693_v52 = vsel %vm10227_vm13, %v5784_v20, %v3689_v49  ;;  %v3704_v1 = vadd.f32 %v5786_v32, %v3703_v50  ;;  %v3716_v56 = vmul.f32 %v5788_v42, %v10200_v23  ;;  %v3741_v59 = vand.u32 2147483648, %v10235_v44 }
 0x2d6   : > { %v3698_v2 = vsel %vm10196_vm9, %v3697_v30, %v3693_v52  ;;  %vm3720_vm0 = vweird.f32 %v10200_v23  ;;  %5791 = vrcp.f32 %v10237_v47  ;;  %v598_v6 = vmul.f32 %v342_v48, %v342_v48 }
 0x2d7   : > { %5201 = vst [vmem:[%s6292_s21 + $0x530] sm:$0xff] %v3698_v2  ;;  %v3708_v62 = vsel %vm10245_vm15, %v5786_v32, %v3704_v1  ;;  %v3717_v58 = vsub.f32 1.0, %v3716_v56  ;;  %vm3721_vm8 = vweird.f32 %v5788_v42  ;;  %vm10265_vm1 = vcmp.eq.f32.partialorder %v3724_v53, 8.507059e+37 }
 0x2d8   : > { %v3713_v0 = vsel %vm10231_vm14, %v3712_v45, %v3708_v62  ;;  %v3727_v3 = vor.u32 1.1754944e-38, %v3726_v55  ;;  %v3754_v8 = vand.u32 2147483647, %v10237_v47  ;;  %5793 = vrcp.f32 %v10252_v51  ;;  %vm10283_vm4 = vmor %vm3720_vm0, %vm3721_vm8 }
 0x2d9   : > { %5202 = vst [vmem:[%s6292_s21 + $0x538] sm:$0xff] %v3713_v0  ;;  %v3718_v63 = vmul.f32 %v5788_v42, %v3717_v58  ;;  %vm3735_vm2 = vweird.f32 %v10235_v44  ;;  %vm10277_vm3 = vcmp.eq.f32.partialorder %v3739_v57, 8.507059e+37  ;;  %v3742_v11 = vor.u32 1.1754944e-38, %v3741_v59  ;;  %v346_v57 = vld [vmem:[%s6175_s28 + $0x580] sm:$0xff]  ;;  %v347_v59 = vld [vmem:[%s6175_s28 + $0x588] sm:$0xff] }
 0x2da   : > { %v5790_v13 = vpop.eup %5789  ;;  %vm3750_vm5 = vweird.f32 %v10237_v47  ;;  %v855_v10 = vmul.f32 %v6187_v9, %v598_v6  ;;  %v599_v16 = vmul.f32 %v343_v60, %v343_v60  ;;  %v600_v19 = vmul.f32 %v344_v5, %v344_v5 }
 0x2db   : > { %v3719_v14 = vadd.f32 %v5788_v42, %v3718_v63  ;;  %v3731_v12 = vmul.f32 %v5790_v13, %v10235_v44  ;;  %v3756_v20 = vand.u32 2147483648, %v10237_v47  ;;  %vm3765_vm6 = vweird.f32 %v10252_v51 }
 0x2dc   : > { %v5792_v21 = vpop.eup %5791  ;;  %vm10292_vm7 = vcmp.eq.f32.partialorder %v3754_v8, 8.507059e+37  ;;  %v10296_v18 = vadd.f32 1.0, %v855_v10  ;;  %v856_v27 = vmul.f32 %v6187_v9, %v599_v16  ;;  %v857_v22 = vmul.f32 %v6187_v9, %v600_v19 }
 0x2dd   : > { %v3723_v17 = vsel %vm10283_vm4, %v5788_v42, %v3719_v14  ;;  %v3732_v25 = vsub.f32 1.0, %v3731_v12  ;;  %vm3736_vm9 = vweird.f32 %v5790_v13  ;;  %v3746_v31 = vmul.f32 %v5792_v21, %v10237_v47 }
 0x2de   : > { %v5794_v32 = vpop.eup %5793  ;;  %v3728_v26 = vsel %vm10265_vm1, %v3727_v3, %v3723_v17  ;;  %v3769_v24 = vand.u32 2147483647, %v10252_v51  ;;  %v3771_v4 = vand.u32 2147483648, %v10252_v51  ;;  %5795 = vrcp.f32 %v10296_v18  ;;  %vm10312_vm11 = vmor %vm3735_vm2, %vm3736_vm9 }
 0x2df   : > { %5203 = vst [vmem:[%s6292_s21 + $0x540] sm:$0xff] %v3728_v26  ;;  %v3733_v34 = vmul.f32 %v5790_v13, %v3732_v25  ;;  %v3747_v29 = vsub.f32 1.0, %v3746_v31  ;;  %vm3751_vm10 = vweird.f32 %v5792_v21  ;;  %v3761_v37 = vmul.f32 %v5794_v32, %v10252_v51  ;;  %v349_v26 = vld [vmem:[%s6175_s28 + $0x598] sm:$0xff] }
 0x2e0   : > { %v3757_v30 = vor.u32 1.1754944e-38, %v3756_v20  ;;  %v3784_v28 = vand.u32 2147483647, %v10296_v18  ;;  %v10317_v33 = vadd.f32 1.0, %v856_v27  ;;  %v10319_v36 = vadd.f32 1.0, %v857_v22  ;;  %vm10324_vm13 = vmor %vm3750_vm5, %vm3751_vm10 }
 0x2e1   : > { %v3734_v39 = vadd.f32 %v5790_v13, %v3733_v34  ;;  %v3748_v35 = vmul.f32 %v5792_v21, %v3747_v29  ;;  %v3762_v46 = vsub.f32 1.0, %v3761_v37  ;;  %vm3766_vm12 = vweird.f32 %v5794_v32 }
 0x2e2   : > { %vm10328_vm14 = vcmp.eq.f32.partialorder %v3769_v24, 8.507059e+37  ;;  %v3772_v44 = vor.u32 1.1754944e-38, %v3771_v4  ;;  %v3786_v49 = vand.u32 2147483648, %v10296_v18  ;;  %5797 = vrcp.f32 %v10317_v33  ;;  %vm10340_vm15 = vmor %vm3765_vm6, %vm3766_vm12 }
 0x2e3   : > { %v3738_v50 = vsel %vm10312_vm11, %v5790_v13, %v3734_v39  ;;  %v3749_v47 = vadd.f32 %v5792_v21, %v3748_v35  ;;  %v3763_v45 = vmul.f32 %v5794_v32, %v3762_v46  ;;  %v601_v53 = vmul.f32 %v345_v43, %v345_v43 }
 0x2e4   : > { %v5796_v48 = vpop.eup %5795  ;;  %v3743_v42 = vsel %vm10277_vm3, %v3742_v11, %v3738_v50  ;;  %vm3780_vm0 = vweird.f32 %v10296_v18  ;;  %v3799_v55 = vand.u32 2147483647, %v10317_v33  ;;  %5799 = vrcp.f32 %v10319_v36 }
 0x2e5   : > { %5204 = vst [vmem:[%s6292_s21 + $0x548] sm:$0xff] %v3743_v42  ;;  %v3753_v52 = vsel %vm10324_vm13, %v5792_v21, %v3749_v47  ;;  %v3764_v1 = vadd.f32 %v5794_v32, %v3763_v45  ;;  %v3776_v56 = vmul.f32 %v5796_v48, %v10296_v18  ;;  %vm10352_vm8 = vcmp.eq.f32.partialorder %v3784_v28, 8.507059e+37  ;;  %v348_v18 = vld [vmem:[%s6175_s28 + $0x590] sm:$0xff]  ;;  %v350_v47 = vld [vmem:[%s6175_s28 + $0x5a0] sm:$0xff]  ;;  %v351_v45 = vld [vmem:[%s6175_s28 + $0x5a8] sm:$0xff] }
 0x2e6   : > { %v3758_v2 = vsel %vm10292_vm7, %v3757_v30, %v3753_v52  ;;  %vm3781_vm1 = vweird.f32 %v5796_v48  ;;  %v3787_v6 = vor.u32 1.1754944e-38, %v3786_v49  ;;  %vm3795_vm2 = vweird.f32 %v10317_v33 }
 0x2e7   : > { %5205 = vst [vmem:[%s6292_s21 + $0x550] sm:$0xff] %v3758_v2  ;;  %v3768_v62 = vsel %vm10340_vm15, %v5794_v32, %v3764_v1  ;;  %v3777_v58 = vsub.f32 1.0, %v3776_v56  ;;  %v858_v61 = vmul.f32 %v6187_v9, %v601_v53  ;;  %v602_v60 = vmul.f32 %v346_v57, %v346_v57  ;;  %vm10379_vm5 = vmor %vm3780_vm0, %vm3781_vm1 }
 0x2e8   : > { %v5798_v5 = vpop.eup %5797  ;;  %v3773_v0 = vsel %vm10328_vm14, %v3772_v44, %v3768_v62  ;;  %vm10366_vm3 = vcmp.eq.f32.partialorder %v3799_v55, 8.507059e+37  ;;  %v3801_v8 = vand.u32 2147483648, %v10317_v33  ;;  %v603_v63 = vmul.f32 %v347_v59, %v347_v59 }
 0x2e9   : > { %5206 = vst [vmem:[%s6292_s21 + $0x558] sm:$0xff] %v3773_v0  ;;  %v3778_v7 = vmul.f32 %v5796_v48, %v3777_v58  ;;  %v3791_v11 = vmul.f32 %v5798_v5, %v10317_v33  ;;  %vm3810_vm4 = vweird.f32 %v10319_v36  ;;  %v10374_v13 = vadd.f32 1.0, %v858_v61 }
 0x2ea   : > { %v5800_v15 = vpop.eup %5799  ;;  %v3814_v16 = vand.u32 2147483647, %v10319_v36  ;;  %v3816_v19 = vand.u32 2147483648, %v10319_v36  ;;  %v859_v14 = vmul.f32 %v6187_v9, %v602_v60  ;;  %v860_v12 = vmul.f32 %v6187_v9, %v603_v63 }
 0x2eb   : > { %v3779_v20 = vadd.f32 %v5796_v48, %v3778_v7  ;;  %v3792_v21 = vsub.f32 1.0, %v3791_v11  ;;  %vm3796_vm6 = vweird.f32 %v5798_v5  ;;  %v3806_v23 = vmul.f32 %v5800_v15, %v10319_v36  ;;  %v352_v11 = vld [vmem:[%s6175_s28 + $0x5b0] sm:$0xff] }
 0x2ec   : > { %vm3811_vm7 = vweird.f32 %v5800_v15  ;;  %5801 = vrcp.f32 %v10374_v13  ;;  %v3829_v27 = vand.u32 2147483647, %v10374_v13  ;;  %v3831_v22 = vand.u32 2147483648, %v10374_v13  ;;  %vm10401_vm9 = vmor %vm3795_vm2, %vm3796_vm6 }
 0x2ed   : > { %v3783_v17 = vsel %vm10379_vm5, %v5796_v48, %v3779_v20  ;;  %v3793_v25 = vmul.f32 %v5798_v5, %v3792_v21  ;;  %v3807_v31 = vsub.f32 1.0, %v3806_v23  ;;  %v10394_v32 = vadd.f32 1.0, %v859_v14  ;;  %vm10416_vm11 = vmor %vm3810_vm4, %vm3811_vm7 }
 0x2ee   : > { %v3788_v24 = vsel %vm10352_vm8, %v3787_v6, %v3783_v17  ;;  %v3802_v34 = vor.u32 1.1754944e-38, %v3801_v8  ;;  %v10405_v29 = vadd.f32 1.0, %v860_v12  ;;  %v604_v37 = vmul.f32 %v348_v18, %v348_v18 }
 0x2ef   : > { %5207 = vst [vmem:[%s6292_s21 + $0x560] sm:$0xff] %v3788_v24  ;;  %v3794_v38 = vadd.f32 %v5798_v5, %v3793_v25  ;;  %v3808_v30 = vmul.f32 %v5800_v15, %v3807_v31  ;;  %vm10408_vm10 = vcmp.eq.f32.partialorder %v3814_v16, 8.507059e+37  ;;  %5803 = vrcp.f32 %v10394_v32 }
 0x2f0   : > { %v3817_v43 = vor.u32 1.1754944e-38, %v3816_v19  ;;  %vm3825_vm12 = vweird.f32 %v10374_v13  ;;  %5805 = vrcp.f32 %v10405_v29  ;;  %v605_v39 = vmul.f32 %v349_v26, %v349_v26 }
 0x2f1   : > { %v3798_v35 = vsel %vm10401_vm9, %v5798_v5, %v3794_v38  ;;  %v3809_v46 = vadd.f32 %v5800_v15, %v3808_v30  ;;  %vm10424_vm13 = vcmp.eq.f32.partialorder %v3829_v27, 8.507059e+37  ;;  %v3832_v36 = vor.u32 1.1754944e-38, %v3831_v22 }
 0x2f2   : > { %v5802_v41 = vpop.eup %5801  ;;  %v3803_v44 = vsel %vm10366_vm3, %v3802_v34, %v3798_v35  ;;  %vm3840_vm14 = vweird.f32 %v10394_v32  ;;  %v3844_v49 = vand.u32 2147483647, %v10394_v32  ;;  %v861_v50 = vmul.f32 %v6187_v9, %v604_v37 }
 0x2f3   : > { %5208 = vst [vmem:[%s6292_s21 + $0x568] sm:$0xff] %v3803_v44  ;;  %v3813_v53 = vsel %vm10416_vm11, %v5800_v15, %v3809_v46  ;;  %v3821_v48 = vmul.f32 %v5802_v41, %v10374_v13  ;;  %v3846_v42 = vand.u32 2147483648, %v10394_v32  ;;  %v3859_v54 = vand.u32 2147483647, %v10405_v29  ;;  %v354_v44 = vld [vmem:[%s6175_s28 + $0x5c0] sm:$0xff] }
 0x2f4   : > { %v3818_v55 = vsel %vm10408_vm10, %v3817_v43, %v3813_v53  ;;  %vm3855_vm15 = vweird.f32 %v10405_v29  ;;  %v10444_v57 = vadd.f32 1.0, %v861_v50  ;;  %v862_v52 = vmul.f32 %v6187_v9, %v605_v39  ;;  %v355_v53 = vld [vmem:[%s6175_s28 + $0x5c8] sm:$0xff] }
 0x2f5   : > { %v5804_v1 = vpop.eup %5803  ;;  %5209 = vst [vmem:[%s6292_s21 + $0x570] sm:$0xff] %v3818_v55  ;;  %v3822_v56 = vsub.f32 1.0, %v3821_v48  ;;  %vm3826_vm0 = vweird.f32 %v5802_v41  ;;  %v606_v51 = vmul.f32 %v350_v47, %v350_v47  ;;  %v607_v59 = vmul.f32 %v351_v45, %v351_v45 }
 0x2f6   : > { %v5806_v2 = vpop.eup %5805  ;;  %v3836_v6 = vmul.f32 %v5804_v1, %v10394_v32  ;;  %vm10449_vm8 = vcmp.eq.f32.partialorder %v3844_v49, 8.507059e+37  ;;  %v3861_v58 = vand.u32 2147483648, %v10405_v29  ;;  %5807 = vrcp.f32 %v10444_v57  ;;  %vm10462_vm2 = vmor %vm3825_vm12, %vm3826_vm0 }
 0x2f7   : > { %v3823_v61 = vmul.f32 %v5802_v41, %v3822_v56  ;;  %v3847_v60 = vor.u32 1.1754944e-38, %v3846_v42  ;;  %v3851_v5 = vmul.f32 %v5806_v2, %v10405_v29  ;;  %vm10456_vm1 = vcmp.eq.f32.partialorder %v3859_v54, 8.507059e+37 }
 0x2f8   : > { %v3837_v8 = vsub.f32 1.0, %v3836_v6  ;;  %vm3841_vm3 = vweird.f32 %v5804_v1  ;;  %v10466_v63 = vadd.f32 1.0, %v862_v52  ;;  %v863_v7 = vmul.f32 %v6187_v9, %v606_v51 }
 0x2f9   : > { %v3824_v15 = vadd.f32 %v5802_v41, %v3823_v61  ;;  %v3852_v10 = vsub.f32 1.0, %v3851_v5  ;;  %vm3856_vm4 = vweird.f32 %v5806_v2  ;;  %v864_v16 = vmul.f32 %v6187_v9, %v607_v59  ;;  %vm10477_vm5 = vmor %vm3840_vm14, %vm3841_vm3 }
 0x2fa   : > { %v3838_v19 = vmul.f32 %v5804_v1, %v3837_v8  ;;  %v3862_v14 = vor.u32 1.1754944e-38, %v3861_v58  ;;  %v3874_v13 = vand.u32 2147483647, %v10444_v57  ;;  %5809 = vrcp.f32 %v10466_v63  ;;  %vm10486_vm6 = vmor %vm3855_vm15, %vm3856_vm4 }
 0x2fb   : > { %v3828_v12 = vsel %vm10462_vm2, %v5802_v41, %v3824_v15  ;;  %v3853_v21 = vmul.f32 %v5806_v2, %v3852_v10  ;;  %v3876_v23 = vand.u32 2147483648, %v10444_v57  ;;  %v608_v18 = vmul.f32 %v352_v11, %v352_v11  ;;  %v353_v41 = vld [vmem:[%s6175_s28 + $0x5b8] sm:$0xff] }
 0x2fc   : > { %v5808_v27 = vpop.eup %5807  ;;  %v3833_v22 = vsel %vm10424_vm13, %v3832_v36, %v3828_v12  ;;  %v3839_v17 = vadd.f32 %v5804_v1, %v3838_v19  ;;  %v10490_v31 = vadd.f32 1.0, %v863_v7  ;;  %v10492_v32 = vadd.f32 1.0, %v864_v16 }
 0x2fd   : > { %5210 = vst [vmem:[%s6292_s21 + $0x578] sm:$0xff] %v3833_v22  ;;  %v3854_v26 = vadd.f32 %v5806_v2, %v3853_v21  ;;  %v3866_v24 = vmul.f32 %v5808_v27, %v10444_v57  ;;  %vm3870_vm7 = vweird.f32 %v10444_v57  ;;  %v3889_v4 = vand.u32 2147483647, %v10466_v63  ;;  %v356_v22 = vld [vmem:[%s6175_s28 + $0x5d0] sm:$0xff] }
 0x2fe   : > { %v3843_v34 = vsel %vm10477_vm5, %v5804_v1, %v3839_v17  ;;  %vm10500_vm9 = vcmp.eq.f32.partialorder %v3874_v13, 8.507059e+37  ;;  %v3891_v37 = vand.u32 2147483648, %v10466_v63  ;;  %5811 = vrcp.f32 %v10490_v31 }
 0x2ff   : > { %v3848_v38 = vsel %vm10449_vm8, %v3847_v60, %v3843_v34  ;;  %v3858_v30 = vsel %vm10486_vm6, %v5806_v2, %v3854_v26  ;;  %v3867_v28 = vsub.f32 1.0, %v3866_v24  ;;  %vm3871_vm10 = vweird.f32 %v5808_v27 }
 0x300   : > { %v5810_v33 = vpop.eup %5809  ;;  %5211 = vst [vmem:[%s6292_s21 + $0x580] sm:$0xff] %v3848_v38  ;;  %v3863_v43 = vsel %vm10456_vm1, %v3862_v14, %v3858_v30  ;;  %v3877_v39 = vor.u32 1.1754944e-38, %v3876_v23  ;;  %v3904_v35 = vand.u32 2147483647, %v10490_v31  ;;  %5813 = vrcp.f32 %v10492_v32  ;;  %vm10526_vm13 = vmor %vm3870_vm7, %vm3871_vm10 }
 0x301   : > { %5212 = vst [vmem:[%s6292_s21 + $0x588] sm:$0xff] %v3863_v43  ;;  %v3868_v46 = vmul.f32 %v5808_v27, %v3867_v28  ;;  %v3881_v40 = vmul.f32 %v5810_v33, %v10466_v63  ;;  %vm3885_vm11 = vweird.f32 %v10466_v63  ;;  %vm10518_vm12 = vcmp.eq.f32.partialorder %v3889_v4, 8.507059e+37  ;;  %v357_v43 = vld [vmem:[%s6175_s28 + $0x5d8] sm:$0xff] }
 0x302   : > { %v3892_v50 = vor.u32 1.1754944e-38, %v3891_v37  ;;  %vm3900_vm14 = vweird.f32 %v10490_v31  ;;  %v3906_v47 = vand.u32 2147483648, %v10490_v31  ;;  %v865_v45 = vmul.f32 %v6187_v9, %v608_v18 }
 0x303   : > { %v3869_v48 = vadd.f32 %v5808_v27, %v3868_v46  ;;  %v3882_v42 = vsub.f32 1.0, %v3881_v40  ;;  %vm3886_vm15 = vweird.f32 %v5810_v33  ;;  %vm3915_vm0 = vweird.f32 %v10492_v32 }
 0x304   : > { %v5812_v54 = vpop.eup %5811  ;;  %vm10535_vm8 = vcmp.eq.f32.partialorder %v3904_v35, 8.507059e+37  ;;  %v10539_v57 = vadd.f32 1.0, %v865_v45  ;;  %v609_v52 = vmul.f32 %v353_v41, %v353_v41  ;;  %v610_v1 = vmul.f32 %v354_v44, %v354_v44  ;;  %vm10548_vm1 = vmor %vm3885_vm11, %vm3886_vm15 }
 0x305   : > { %v3873_v56 = vsel %vm10526_vm13, %v5808_v27, %v3869_v48  ;;  %v3883_v51 = vmul.f32 %v5810_v33, %v3882_v42  ;;  %v3896_v59 = vmul.f32 %v5812_v54, %v10490_v31  ;;  %v611_v2 = vmul.f32 %v355_v53, %v355_v53 }
 0x306   : > { %v5814_v6 = vpop.eup %5813  ;;  %v3878_v62 = vsel %vm10500_vm9, %v3877_v39, %v3873_v56  ;;  %v3919_v61 = vand.u32 2147483647, %v10492_v32  ;;  %v3921_v60 = vand.u32 2147483648, %v10492_v32  ;;  %5815 = vrcp.f32 %v10539_v57  ;;  %v358_v39 = vld [vmem:[%s6175_s28 + $0x5e0] sm:$0xff] }
 0x307   : > { %5213 = vst [vmem:[%s6292_s21 + $0x590] sm:$0xff] %v3878_v62  ;;  %v3884_v5 = vadd.f32 %v5810_v33, %v3883_v51  ;;  %v3897_v0 = vsub.f32 1.0, %v3896_v59  ;;  %vm3901_vm2 = vweird.f32 %v5812_v54  ;;  %v3911_v3 = vmul.f32 %v5814_v6, %v10492_v32 }
 0x308   : > { %v3907_v8 = vor.u32 1.1754944e-38, %v3906_v47  ;;  %vm3916_vm3 = vweird.f32 %v5814_v6  ;;  %v866_v63 = vmul.f32 %v6187_v9, %v609_v52  ;;  %v867_v7 = vmul.f32 %v6187_v9, %v610_v1  ;;  %vm10566_vm4 = vmor %vm3900_vm14, %vm3901_vm2 }
 0x309   : > { %v3888_v11 = vsel %vm10548_vm1, %v5810_v33, %v3884_v5  ;;  %v3898_v15 = vmul.f32 %v5812_v54, %v3897_v0  ;;  %v3912_v10 = vsub.f32 1.0, %v3911_v3  ;;  %v868_v16 = vmul.f32 %v6187_v9, %v611_v2  ;;  %vm10584_vm6 = vmor %vm3915_vm0, %vm3916_vm3 }
 0x30a   : > { %v3893_v19 = vsel %vm10518_vm12, %v3892_v50, %v3888_v11  ;;  %vm10570_vm5 = vcmp.eq.f32.partialorder %v3919_v61, 8.507059e+37  ;;  %v10574_v12 = vadd.f32 1.0, %v866_v63  ;;  %v10576_v20 = vadd.f32 1.0, %v867_v7 }
 0x30b   : > { %5214 = vst [vmem:[%s6292_s21 + $0x598] sm:$0xff] %v3893_v19  ;;  %v3899_v21 = vadd.f32 %v5812_v54, %v3898_v15  ;;  %v3913_v23 = vmul.f32 %v5814_v6, %v3912_v10  ;;  %v3922_v18 = vor.u32 1.1754944e-38, %v3921_v60  ;;  %v3934_v27 = vand.u32 2147483647, %v10539_v57  ;;  %v359_v15 = vld [vmem:[%s6175_s28 + $0x5e8] sm:$0xff] }
 0x30c   : > { %v5816_v17 = vpop.eup %5815  ;;  %v3936_v31 = vand.u32 2147483648, %v10539_v57  ;;  %5817 = vrcp.f32 %v10574_v12  ;;  %v3949_v26 = vand.u32 2147483647, %v10574_v12  ;;  %v10591_v24 = vadd.f32 1.0, %v868_v16 }
 0x30d   : > { %v3903_v4 = vsel %vm10566_vm4, %v5812_v54, %v3899_v21  ;;  %v3914_v34 = vadd.f32 %v5814_v6, %v3913_v23  ;;  %v3926_v32 = vmul.f32 %v5816_v17, %v10539_v57  ;;  %v3951_v29 = vand.u32 2147483648, %v10574_v12 }
 0x30e   : > { %v3908_v37 = vsel %vm10535_vm8, %v3907_v8, %v3903_v4  ;;  %vm3930_vm7 = vweird.f32 %v10539_v57  ;;  %5819 = vrcp.f32 %v10576_v20  ;;  %v612_v38 = vmul.f32 %v356_v22, %v356_v22 }
 0x30f   : > { %5215 = vst [vmem:[%s6292_s21 + $0x5a0] sm:$0xff] %v3908_v37  ;;  %v3918_v30 = vsel %vm10584_vm6, %v5814_v6, %v3914_v34  ;;  %v3927_v28 = vsub.f32 1.0, %v3926_v32  ;;  %vm3931_vm9 = vweird.f32 %v5816_v17  ;;  %vm10604_vm10 = vcmp.eq.f32.partialorder %v3934_v27, 8.507059e+37 }
 0x310   : > { %v3923_v35 = vsel %vm10570_vm5, %v3922_v18, %v3918_v30  ;;  %v3937_v46 = vor.u32 1.1754944e-38, %v3936_v31  ;;  %v3964_v40 = vand.u32 2147483647, %v10576_v20  ;;  %5821 = vrcp.f32 %v10591_v24  ;;  %vm10622_vm13 = vmor %vm3930_vm7, %vm3931_vm9 }
 0x311   : > { %5216 = vst [vmem:[%s6292_s21 + $0x5a8] sm:$0xff] %v3923_v35  ;;  %v3928_v36 = vmul.f32 %v5816_v17, %v3927_v28  ;;  %vm3945_vm11 = vweird.f32 %v10574_v12  ;;  %vm10616_vm12 = vcmp.eq.f32.partialorder %v3949_v26, 8.507059e+37  ;;  %v3952_v44 = vor.u32 1.1754944e-38, %v3951_v29  ;;  %v360_v26 = vld [vmem:[%s6175_s28 + $0x5f0] sm:$0xff]  ;;  %v361_v29 = vld [vmem:[%s6175_s28 + $0x5f8] sm:$0xff] }
 0x312   : > { %v5818_v49 = vpop.eup %5817  ;;  %vm3960_vm14 = vweird.f32 %v10576_v20  ;;  %v869_v47 = vmul.f32 %v6187_v9, %v612_v38  ;;  %v613_v45 = vmul.f32 %v357_v43, %v357_v43  ;;  %v614_v53 = vmul.f32 %v358_v39, %v358_v39 }
 0x313   : > { %v3929_v48 = vadd.f32 %v5816_v17, %v3928_v36  ;;  %v3941_v42 = vmul.f32 %v5818_v49, %v10574_v12  ;;  %v3966_v54 = vand.u32 2147483648, %v10576_v20  ;;  %vm3975_vm15 = vweird.f32 %v10591_v24 }
 0x314   : > { %v5820_v55 = vpop.eup %5819  ;;  %vm10631_vm0 = vcmp.eq.f32.partialorder %v3964_v40, 8.507059e+37  ;;  %v10635_v52 = vadd.f32 1.0, %v869_v47  ;;  %v870_v1 = vmul.f32 %v6187_v9, %v613_v45  ;;  %v871_v56 = vmul.f32 %v6187_v9, %v614_v53 }
 0x315   : > { %v3933_v51 = vsel %vm10622_vm13, %v5816_v17, %v3929_v48  ;;  %v3942_v59 = vsub.f32 1.0, %v3941_v42  ;;  %vm3946_vm8 = vweird.f32 %v5818_v49  ;;  %v3956_v2 = vmul.f32 %v5820_v55, %v10576_v20 }
 0x316   : > { %v5822_v6 = vpop.eup %5821  ;;  %v3938_v62 = vsel %vm10604_vm10, %v3937_v46, %v3933_v51  ;;  %v3979_v58 = vand.u32 2147483647, %v10591_v24  ;;  %v3981_v61 = vand.u32 2147483648, %v10591_v24  ;;  %5823 = vrcp.f32 %v10635_v52  ;;  %vm10651_vm2 = vmor %vm3945_vm11, %vm3946_vm8 }
 0x317   : > { %5217 = vst [vmem:[%s6292_s21 + $0x5b0] sm:$0xff] %v3938_v62  ;;  %v3943_v60 = vmul.f32 %v5818_v49, %v3942_v59  ;;  %v3957_v5 = vsub.f32 1.0, %v3956_v2  ;;  %vm3961_vm1 = vweird.f32 %v5820_v55  ;;  %v3971_v0 = vmul.f32 %v5822_v6, %v10591_v24  ;;  %v363_v62 = vld [vmem:[%s6175_s28 + $0x608] sm:$0xff] }
 0x318   : > { %v3967_v8 = vor.u32 1.1754944e-38, %v3966_v54  ;;  %v3994_v63 = vand.u32 2147483647, %v10635_v52  ;;  %v10656_v7 = vadd.f32 1.0, %v870_v1  ;;  %v10658_v11 = vadd.f32 1.0, %v871_v56  ;;  %vm10663_vm4 = vmor %vm3960_vm14, %vm3961_vm1 }
 0x319   : > { %v3944_v10 = vadd.f32 %v5818_v49, %v3943_v60  ;;  %v3958_v16 = vmul.f32 %v5820_v55, %v3957_v5  ;;  %v3972_v19 = vsub.f32 1.0, %v3971_v0  ;;  %vm3976_vm3 = vweird.f32 %v5822_v6 }
 0x31a   : > { %vm10667_vm5 = vcmp.eq.f32.partialorder %v3979_v58, 8.507059e+37  ;;  %v3982_v12 = vor.u32 1.1754944e-38, %v3981_v61  ;;  %v3996_v21 = vand.u32 2147483648, %v10635_v52  ;;  %5825 = vrcp.f32 %v10656_v7  ;;  %vm10679_vm6 = vmor %vm3975_vm15, %vm3976_vm3 }
 0x31b   : > { %v3948_v23 = vsel %vm10651_vm2, %v5818_v49, %v3944_v10  ;;  %v3959_v20 = vadd.f32 %v5820_v55, %v3958_v16  ;;  %v3973_v18 = vmul.f32 %v5822_v6, %v3972_v19  ;;  %v615_v27 = vmul.f32 %v359_v15, %v359_v15 }
 0x31c   : > { %v5824_v22 = vpop.eup %5823  ;;  %v3953_v17 = vsel %vm10616_vm12, %v3952_v44, %v3948_v23  ;;  %vm3990_vm7 = vweird.f32 %v10635_v52  ;;  %v4009_v31 = vand.u32 2147483647, %v10656_v7  ;;  %5827 = vrcp.f32 %v10658_v11 }
 0x31d   : > { %5218 = vst [vmem:[%s6292_s21 + $0x5b8] sm:$0xff] %v3953_v17  ;;  %v3963_v4 = vsel %vm10663_vm4, %v5820_v55, %v3959_v20  ;;  %v3974_v34 = vadd.f32 %v5822_v6, %v3973_v18  ;;  %v3986_v32 = vmul.f32 %v5824_v22, %v10635_v52  ;;  %vm10691_vm9 = vcmp.eq.f32.partialorder %v3994_v63, 8.507059e+37  ;;  %v362_v52 = vld [vmem:[%s6175_s28 + $0x600] sm:$0xff]  ;;  %v364_v20 = vld [vmem:[%s6175_s28 + $0x610] sm:$0xff]  ;;  %v365_v18 = vld [vmem:[%s6175_s28 + $0x618] sm:$0xff] }
 0x31e   : > { %v3968_v37 = vsel %vm10631_vm0, %v3967_v8, %v3963_v4  ;;  %vm3991_vm10 = vweird.f32 %v5824_v22  ;;  %v3997_v38 = vor.u32 1.1754944e-38, %v3996_v21  ;;  %vm4005_vm11 = vweird.f32 %v10656_v7 }
 0x31f   : > { %5219 = vst [vmem:[%s6292_s21 + $0x5c0] sm:$0xff] %v3968_v37  ;;  %v3978_v30 = vsel %vm10679_vm6, %v5822_v6, %v3974_v34  ;;  %v3987_v28 = vsub.f32 1.0, %v3986_v32  ;;  %v872_v33 = vmul.f32 %v6187_v9, %v615_v27  ;;  %v616_v43 = vmul.f32 %v360_v26, %v360_v26  ;;  %vm10718_vm14 = vmor %vm3990_vm7, %vm3991_vm10 }
 0x320   : > { %v5826_v39 = vpop.eup %5825  ;;  %v3983_v35 = vsel %vm10667_vm5, %v3982_v12, %v3978_v30  ;;  %vm10705_vm12 = vcmp.eq.f32.partialorder %v4009_v31, 8.507059e+37  ;;  %v4011_v40 = vand.u32 2147483648, %v10656_v7  ;;  %v617_v36 = vmul.f32 %v361_v29, %v361_v29 }
 0x321   : > { %5220 = vst [vmem:[%s6292_s21 + $0x5c8] sm:$0xff] %v3983_v35  ;;  %v3988_v41 = vmul.f32 %v5824_v22, %v3987_v28  ;;  %v4001_v44 = vmul.f32 %v5826_v39, %v10656_v7  ;;  %vm4020_vm13 = vweird.f32 %v10658_v11  ;;  %v10713_v49 = vadd.f32 1.0, %v872_v33 }
 0x322   : > { %v5828_v50 = vpop.eup %5827  ;;  %v4024_v45 = vand.u32 2147483647, %v10658_v11  ;;  %v4026_v53 = vand.u32 2147483648, %v10658_v11  ;;  %v873_v48 = vmul.f32 %v6187_v9, %v616_v43  ;;  %v874_v42 = vmul.f32 %v6187_v9, %v617_v36 }
 0x323   : > { %v3989_v54 = vadd.f32 %v5824_v22, %v3988_v41  ;;  %v4002_v55 = vsub.f32 1.0, %v4001_v44  ;;  %vm4006_vm15 = vweird.f32 %v5826_v39  ;;  %v4016_v57 = vmul.f32 %v5828_v50, %v10658_v11  ;;  %v366_v44 = vld [vmem:[%s6175_s28 + $0x620] sm:$0xff] }
 0x324   : > { %vm4021_vm0 = vweird.f32 %v5828_v50  ;;  %5829 = vrcp.f32 %v10713_v49  ;;  %v4039_v1 = vand.u32 2147483647, %v10713_v49  ;;  %v4041_v56 = vand.u32 2147483648, %v10713_v49  ;;  %vm10740_vm8 = vmor %vm4005_vm11, %vm4006_vm15 }
 0x325   : > { %v3993_v51 = vsel %vm10718_vm14, %v5824_v22, %v3989_v54  ;;  %v4003_v59 = vmul.f32 %v5826_v39, %v4002_v55  ;;  %v4017_v2 = vsub.f32 1.0, %v4016_v57  ;;  %v10733_v6 = vadd.f32 1.0, %v873_v48  ;;  %vm10755_vm2 = vmor %vm4020_vm13, %vm4021_vm0 }
 0x326   : > { %v3998_v58 = vsel %vm10691_vm9, %v3997_v38, %v3993_v51  ;;  %v4012_v60 = vor.u32 1.1754944e-38, %v4011_v40  ;;  %v10744_v5 = vadd.f32 1.0, %v874_v42  ;;  %v618_v0 = vmul.f32 %v362_v52, %v362_v52 }
 0x327   : > { %5221 = vst [vmem:[%s6292_s21 + $0x5d0] sm:$0xff] %v3998_v58  ;;  %v4004_v3 = vadd.f32 %v5826_v39, %v4003_v59  ;;  %v4018_v8 = vmul.f32 %v5828_v50, %v4017_v2  ;;  %vm10747_vm1 = vcmp.eq.f32.partialorder %v4024_v45, 8.507059e+37  ;;  %5831 = vrcp.f32 %v10733_v6 }
 0x328   : > { %v4027_v15 = vor.u32 1.1754944e-38, %v4026_v53  ;;  %vm4035_vm3 = vweird.f32 %v10713_v49  ;;  %5833 = vrcp.f32 %v10744_v5  ;;  %v619_v10 = vmul.f32 %v363_v62, %v363_v62 }
 0x329   : > { %v4008_v16 = vsel %vm10740_vm8, %v5826_v39, %v4004_v3  ;;  %v4019_v19 = vadd.f32 %v5828_v50, %v4018_v8  ;;  %vm10763_vm4 = vcmp.eq.f32.partialorder %v4039_v1, 8.507059e+37  ;;  %v4042_v11 = vor.u32 1.1754944e-38, %v4041_v56 }
 0x32a   : > { %v5830_v13 = vpop.eup %5829  ;;  %v4013_v12 = vsel %vm10705_vm12, %v4012_v60, %v4008_v16  ;;  %vm4050_vm5 = vweird.f32 %v10733_v6  ;;  %v4054_v21 = vand.u32 2147483647, %v10733_v6  ;;  %v875_v23 = vmul.f32 %v6187_v9, %v618_v0 }
 0x32b   : > { %5222 = vst [vmem:[%s6292_s21 + $0x5d8] sm:$0xff] %v4013_v12  ;;  %v4023_v27 = vsel %vm10755_vm2, %v5828_v50, %v4019_v19  ;;  %v4031_v22 = vmul.f32 %v5830_v13, %v10713_v49  ;;  %v4056_v17 = vand.u32 2147483648, %v10733_v6  ;;  %v4069_v25 = vand.u32 2147483647, %v10744_v5  ;;  %v368_v12 = vld [vmem:[%s6175_s28 + $0x630] sm:$0xff] }
 0x32c   : > { %v4028_v31 = vsel %vm10747_vm1, %v4027_v15, %v4023_v27  ;;  %vm4065_vm6 = vweird.f32 %v10744_v5  ;;  %v10783_v26 = vadd.f32 1.0, %v875_v23  ;;  %v876_v4 = vmul.f32 %v6187_v9, %v619_v10  ;;  %v369_v27 = vld [vmem:[%s6175_s28 + $0x638] sm:$0xff] }
 0x32d   : > { %v5832_v34 = vpop.eup %5831  ;;  %5223 = vst [vmem:[%s6292_s21 + $0x5e0] sm:$0xff] %v4028_v31  ;;  %v4032_v32 = vsub.f32 1.0, %v4031_v22  ;;  %vm4036_vm7 = vweird.f32 %v5830_v13  ;;  %v620_v24 = vmul.f32 %v364_v20, %v364_v20  ;;  %v621_v29 = vmul.f32 %v365_v18, %v365_v18 }
 0x32e   : > { %v5834_v37 = vpop.eup %5833  ;;  %v4046_v38 = vmul.f32 %v5832_v34, %v10733_v6  ;;  %vm10788_vm9 = vcmp.eq.f32.partialorder %v4054_v21, 8.507059e+37  ;;  %v4071_v28 = vand.u32 2147483648, %v10744_v5  ;;  %5835 = vrcp.f32 %v10783_v26  ;;  %vm10801_vm11 = vmor %vm4035_vm3, %vm4036_vm7 }
 0x32f   : > { %v4033_v33 = vmul.f32 %v5830_v13, %v4032_v32  ;;  %v4057_v43 = vor.u32 1.1754944e-38, %v4056_v17  ;;  %v4061_v39 = vmul.f32 %v5834_v37, %v10744_v5  ;;  %vm10795_vm10 = vcmp.eq.f32.partialorder %v4069_v25, 8.507059e+37 }
 0x330   : > { %v4047_v40 = vsub.f32 1.0, %v4046_v38  ;;  %vm4051_vm12 = vweird.f32 %v5832_v34  ;;  %v10805_v36 = vadd.f32 1.0, %v876_v4  ;;  %v877_v41 = vmul.f32 %v6187_v9, %v620_v24 }
 0x331   : > { %v4034_v50 = vadd.f32 %v5830_v13, %v4033_v33  ;;  %v4062_v47 = vsub.f32 1.0, %v4061_v39  ;;  %vm4066_vm13 = vweird.f32 %v5834_v37  ;;  %v878_v45 = vmul.f32 %v6187_v9, %v621_v29  ;;  %vm10816_vm14 = vmor %vm4050_vm5, %vm4051_vm12 }
 0x332   : > { %v4048_v53 = vmul.f32 %v5832_v34, %v4047_v40  ;;  %v4072_v48 = vor.u32 1.1754944e-38, %v4071_v28  ;;  %v4084_v49 = vand.u32 2147483647, %v10783_v26  ;;  %5837 = vrcp.f32 %v10805_v36  ;;  %vm10825_vm15 = vmor %vm4065_vm6, %vm4066_vm13 }
 0x333   : > { %v4038_v42 = vsel %vm10801_vm11, %v5830_v13, %v4034_v50  ;;  %v4063_v55 = vmul.f32 %v5834_v37, %v4062_v47  ;;  %v4086_v57 = vand.u32 2147483648, %v10783_v26  ;;  %v622_v52 = vmul.f32 %v366_v44, %v366_v44  ;;  %v367_v13 = vld [vmem:[%s6175_s28 + $0x628] sm:$0xff] }
 0x334   : > { %v5836_v1 = vpop.eup %5835  ;;  %v4043_v56 = vsel %vm10763_vm4, %v4042_v11, %v4038_v42  ;;  %v4049_v51 = vadd.f32 %v5832_v34, %v4048_v53  ;;  %v10829_v2 = vadd.f32 1.0, %v877_v41  ;;  %v10831_v6 = vadd.f32 1.0, %v878_v45 }
 0x335   : > { %5224 = vst [vmem:[%s6292_s21 + $0x5e8] sm:$0xff] %v4043_v56  ;;  %v4064_v62 = vadd.f32 %v5834_v37, %v4063_v55  ;;  %v4076_v58 = vmul.f32 %v5836_v1, %v10783_v26  ;;  %vm4080_vm0 = vweird.f32 %v10783_v26  ;;  %v4099_v61 = vand.u32 2147483647, %v10805_v36  ;;  %v370_v56 = vld [vmem:[%s6175_s28 + $0x640] sm:$0xff] }
 0x336   : > { %v4053_v60 = vsel %vm10816_vm14, %v5832_v34, %v4049_v51  ;;  %vm10839_vm8 = vcmp.eq.f32.partialorder %v4084_v49, 8.507059e+37  ;;  %v4101_v0 = vand.u32 2147483648, %v10805_v36  ;;  %5839 = vrcp.f32 %v10829_v2 }
 0x337   : > { %v4058_v3 = vsel %vm10788_vm9, %v4057_v43, %v4053_v60  ;;  %v4068_v8 = vsel %vm10825_vm15, %v5834_v37, %v4064_v62  ;;  %v4077_v63 = vsub.f32 1.0, %v4076_v58  ;;  %vm4081_vm1 = vweird.f32 %v5836_v1 }
 0x338   : > { %v5838_v7 = vpop.eup %5837  ;;  %5225 = vst [vmem:[%s6292_s21 + $0x5f0] sm:$0xff] %v4058_v3  ;;  %v4073_v15 = vsel %vm10795_vm10, %v4072_v48, %v4068_v8  ;;  %v4087_v10 = vor.u32 1.1754944e-38, %v4086_v57  ;;  %v4114_v16 = vand.u32 2147483647, %v10829_v2  ;;  %5841 = vrcp.f32 %v10831_v6  ;;  %vm10865_vm4 = vmor %vm4080_vm0, %vm4081_vm1 }
 0x339   : > { %5226 = vst [vmem:[%s6292_s21 + $0x5f8] sm:$0xff] %v4073_v15  ;;  %v4078_v19 = vmul.f32 %v5836_v1, %v4077_v63  ;;  %v4091_v14 = vmul.f32 %v5838_v7, %v10805_v36  ;;  %vm4095_vm2 = vweird.f32 %v10805_v36  ;;  %vm10857_vm3 = vcmp.eq.f32.partialorder %v4099_v61, 8.507059e+37  ;;  %v371_v15 = vld [vmem:[%s6175_s28 + $0x648] sm:$0xff] }
 0x33a   : > { %v4102_v23 = vor.u32 1.1754944e-38, %v4101_v0  ;;  %vm4110_vm5 = vweird.f32 %v10829_v2  ;;  %v4116_v20 = vand.u32 2147483648, %v10829_v2  ;;  %v879_v18 = vmul.f32 %v6187_v9, %v622_v52 }
 0x33b   : > { %v4079_v22 = vadd.f32 %v5836_v1, %v4078_v19  ;;  %v4092_v17 = vsub.f32 1.0, %v4091_v14  ;;  %vm4096_vm6 = vweird.f32 %v5838_v7  ;;  %vm4125_vm7 = vweird.f32 %v10831_v6 }
 0x33c   : > { %v5840_v25 = vpop.eup %5839  ;;  %vm10874_vm9 = vcmp.eq.f32.partialorder %v4114_v16, 8.507059e+37  ;;  %v10878_v26 = vadd.f32 1.0, %v879_v18  ;;  %v623_v4 = vmul.f32 %v367_v13, %v367_v13  ;;  %v624_v34 = vmul.f32 %v368_v12, %v368_v12  ;;  %vm10887_vm10 = vmor %vm4095_vm2, %vm4096_vm6 }
 0x33d   : > { %v4083_v32 = vsel %vm10865_vm4, %v5836_v1, %v4079_v22  ;;  %v4093_v24 = vmul.f32 %v5838_v7, %v4092_v17  ;;  %v4106_v29 = vmul.f32 %v5840_v25, %v10829_v2  ;;  %v625_v37 = vmul.f32 %v369_v27, %v369_v27 }
 0x33e   : > { %v5842_v38 = vpop.eup %5841  ;;  %v4088_v30 = vsel %vm10839_vm8, %v4087_v10, %v4083_v32  ;;  %v4129_v33 = vand.u32 2147483647, %v10831_v6  ;;  %v4131_v43 = vand.u32 2147483648, %v10831_v6  ;;  %5843 = vrcp.f32 %v10878_v26  ;;  %v372_v10 = vld [vmem:[%s6175_s28 + $0x650] sm:$0xff] }
 0x33f   : > { %5227 = vst [vmem:[%s6292_s21 + $0x600] sm:$0xff] %v4088_v30  ;;  %v4094_v39 = vadd.f32 %v5838_v7, %v4093_v24  ;;  %v4107_v35 = vsub.f32 1.0, %v4106_v29  ;;  %vm4111_vm11 = vweird.f32 %v5840_v25  ;;  %v4121_v46 = vmul.f32 %v5842_v38, %v10831_v6 }
 0x340   : > { %v4117_v40 = vor.u32 1.1754944e-38, %v4116_v20  ;;  %vm4126_vm12 = vweird.f32 %v5842_v38  ;;  %v880_v36 = vmul.f32 %v6187_v9, %v623_v4  ;;  %v881_v41 = vmul.f32 %v6187_v9, %v624_v34  ;;  %vm10905_vm13 = vmor %vm4110_vm5, %vm4111_vm11 }
 0x341   : > { %v4098_v44 = vsel %vm10887_vm10, %v5838_v7, %v4094_v39  ;;  %v4108_v50 = vmul.f32 %v5840_v25, %v4107_v35  ;;  %v4122_v47 = vsub.f32 1.0, %v4121_v46  ;;  %v882_v45 = vmul.f32 %v6187_v9, %v625_v37  ;;  %vm10923_vm15 = vmor %vm4125_vm7, %vm4126_vm12 }
 0x342   : > { %v4103_v53 = vsel %vm10857_vm3, %v4102_v23, %v4098_v44  ;;  %vm10909_vm14 = vcmp.eq.f32.partialorder %v4129_v33, 8.507059e+37  ;;  %v10913_v42 = vadd.f32 1.0, %v880_v36  ;;  %v10915_v54 = vadd.f32 1.0, %v881_v41 }
 0x343   : > { %5228 = vst [vmem:[%s6292_s21 + $0x608] sm:$0xff] %v4103_v53  ;;  %v4109_v55 = vadd.f32 %v5840_v25, %v4108_v50  ;;  %v4123_v57 = vmul.f32 %v5842_v38, %v4122_v47  ;;  %v4132_v52 = vor.u32 1.1754944e-38, %v4131_v43  ;;  %v4144_v1 = vand.u32 2147483647, %v10878_v26  ;;  %v373_v50 = vld [vmem:[%s6175_s28 + $0x658] sm:$0xff] }
 0x344   : > { %v5844_v51 = vpop.eup %5843  ;;  %v4146_v2 = vand.u32 2147483648, %v10878_v26  ;;  %5845 = vrcp.f32 %v10913_v42  ;;  %v4159_v62 = vand.u32 2147483647, %v10913_v42  ;;  %v10930_v58 = vadd.f32 1.0, %v882_v45 }
 0x345   : > { %v4113_v61 = vsel %vm10905_vm13, %v5840_v25, %v4109_v55  ;;  %v4124_v60 = vadd.f32 %v5842_v38, %v4123_v57  ;;  %v4136_v6 = vmul.f32 %v5844_v51, %v10878_v26  ;;  %v4161_v5 = vand.u32 2147483648, %v10913_v42 }
 0x346   : > { %v4118_v0 = vsel %vm10874_vm9, %v4117_v40, %v4113_v61  ;;  %vm4140_vm0 = vweird.f32 %v10878_v26  ;;  %5847 = vrcp.f32 %v10915_v54  ;;  %v626_v3 = vmul.f32 %v370_v56, %v370_v56 }
 0x347   : > { %5229 = vst [vmem:[%s6292_s21 + $0x610] sm:$0xff] %v4118_v0  ;;  %v4128_v8 = vsel %vm10923_vm15, %v5842_v38, %v4124_v60  ;;  %v4137_v63 = vsub.f32 1.0, %v4136_v6  ;;  %vm4141_vm8 = vweird.f32 %v5844_v51  ;;  %vm10943_vm1 = vcmp.eq.f32.partialorder %v4144_v1, 8.507059e+37 }
 0x348   : > { %v4133_v16 = vsel %vm10909_vm14, %v4132_v52, %v4128_v8  ;;  %v4147_v19 = vor.u32 1.1754944e-38, %v4146_v2  ;;  %v4174_v14 = vand.u32 2147483647, %v10915_v54  ;;  %5849 = vrcp.f32 %v10930_v58  ;;  %vm10961_vm4 = vmor %vm4140_vm0, %vm4141_vm8 }
 0x349   : > { %5230 = vst [vmem:[%s6292_s21 + $0x618] sm:$0xff] %v4133_v16  ;;  %v4138_v11 = vmul.f32 %v5844_v51, %v4137_v63  ;;  %vm4155_vm2 = vweird.f32 %v10913_v42  ;;  %vm10955_vm3 = vcmp.eq.f32.partialorder %v4159_v62, 8.507059e+37  ;;  %v4162_v12 = vor.u32 1.1754944e-38, %v4161_v5  ;;  %v374_v62 = vld [vmem:[%s6175_s28 + $0x660] sm:$0xff]  ;;  %v375_v5 = vld [vmem:[%s6175_s28 + $0x668] sm:$0xff] }
 0x34a   : > { %v5846_v21 = vpop.eup %5845  ;;  %vm4170_vm5 = vweird.f32 %v10915_v54  ;;  %v883_v20 = vmul.f32 %v6187_v9, %v626_v3  ;;  %v627_v18 = vmul.f32 %v371_v15, %v371_v15  ;;  %v628_v27 = vmul.f32 %v372_v10, %v372_v10 }
 0x34b   : > { %v4139_v22 = vadd.f32 %v5844_v51, %v4138_v11  ;;  %v4151_v17 = vmul.f32 %v5846_v21, %v10913_v42  ;;  %v4176_v25 = vand.u32 2147483648, %v10915_v54  ;;  %vm4185_vm6 = vweird.f32 %v10930_v58 }
 0x34c   : > { %v5848_v31 = vpop.eup %5847  ;;  %vm10970_vm7 = vcmp.eq.f32.partialorder %v4174_v14, 8.507059e+37  ;;  %v10974_v4 = vadd.f32 1.0, %v883_v20  ;;  %v884_v34 = vmul.f32 %v6187_v9, %v627_v18  ;;  %v885_v32 = vmul.f32 %v6187_v9, %v628_v27 }
 0x34d   : > { %v4143_v24 = vsel %vm10961_vm4, %v5844_v51, %v4139_v22  ;;  %v4152_v29 = vsub.f32 1.0, %v4151_v17  ;;  %vm4156_vm9 = vweird.f32 %v5846_v21  ;;  %v4166_v37 = vmul.f32 %v5848_v31, %v10915_v54 }
 0x34e   : > { %v5850_v38 = vpop.eup %5849  ;;  %v4148_v30 = vsel %vm10943_vm1, %v4147_v19, %v4143_v24  ;;  %v4189_v28 = vand.u32 2147483647, %v10930_v58  ;;  %v4191_v33 = vand.u32 2147483648, %v10930_v58  ;;  %5851 = vrcp.f32 %v10974_v4  ;;  %vm10990_vm11 = vmor %vm4155_vm2, %vm4156_vm9 }
 0x34f   : > { %5231 = vst [vmem:[%s6292_s21 + $0x620] sm:$0xff] %v4148_v30  ;;  %v4153_v43 = vmul.f32 %v5846_v21, %v4152_v29  ;;  %v4167_v39 = vsub.f32 1.0, %v4166_v37  ;;  %vm4171_vm10 = vweird.f32 %v5848_v31  ;;  %v4181_v35 = vmul.f32 %v5850_v38, %v10930_v58  ;;  %v377_v30 = vld [vmem:[%s6175_s28 + $0x678] sm:$0xff] }
 0x350   : > { %v4177_v40 = vor.u32 1.1754944e-38, %v4176_v25  ;;  %v4204_v36 = vand.u32 2147483647, %v10974_v4  ;;  %v10995_v41 = vadd.f32 1.0, %v884_v34  ;;  %v10997_v44 = vadd.f32 1.0, %v885_v32  ;;  %vm11002_vm13 = vmor %vm4170_vm5, %vm4171_vm10 }
 0x351   : > { %v4154_v47 = vadd.f32 %v5846_v21, %v4153_v43  ;;  %v4168_v45 = vmul.f32 %v5848_v31, %v4167_v39  ;;  %v4182_v53 = vsub.f32 1.0, %v4181_v35  ;;  %vm4186_vm12 = vweird.f32 %v5850_v38 }
 0x352   : > { %vm11006_vm14 = vcmp.eq.f32.partialorder %v4189_v28, 8.507059e+37  ;;  %v4192_v42 = vor.u32 1.1754944e-38, %v4191_v33  ;;  %v4206_v55 = vand.u32 2147483648, %v10974_v4  ;;  %5853 = vrcp.f32 %v10995_v41  ;;  %vm11018_vm15 = vmor %vm4185_vm6, %vm4186_vm12 }
 0x353   : > { %v4158_v57 = vsel %vm10990_vm11, %v5846_v21, %v4154_v47  ;;  %v4169_v54 = vadd.f32 %v5848_v31, %v4168_v45  ;;  %v4183_v52 = vmul.f32 %v5850_v38, %v4182_v53  ;;  %v629_v1 = vmul.f32 %v373_v50, %v373_v50 }
 0x354   : > { %v5852_v56 = vpop.eup %5851  ;;  %v4163_v51 = vsel %vm10955_vm3, %v4162_v12, %v4158_v57  ;;  %vm4200_vm0 = vweird.f32 %v10974_v4  ;;  %v4219_v2 = vand.u32 2147483647, %v10995_v41  ;;  %5855 = vrcp.f32 %v10997_v44 }
 0x355   : > { %5232 = vst [vmem:[%s6292_s21 + $0x628] sm:$0xff] %v4163_v51  ;;  %v4173_v61 = vsel %vm11002_vm13, %v5848_v31, %v4169_v54  ;;  %v4184_v60 = vadd.f32 %v5850_v38, %v4183_v52  ;;  %v4196_v6 = vmul.f32 %v5852_v56, %v10974_v4  ;;  %vm11030_vm8 = vcmp.eq.f32.partialorder %v4204_v36, 8.507059e+37  ;;  %v376_v4 = vld [vmem:[%s6175_s28 + $0x670] sm:$0xff]  ;;  %v378_v54 = vld [vmem:[%s6175_s28 + $0x680] sm:$0xff]  ;;  %v379_v52 = vld [vmem:[%s6175_s28 + $0x688] sm:$0xff] }
 0x356   : > { %v4178_v0 = vsel %vm10970_vm7, %v4177_v40, %v4173_v61  ;;  %vm4201_vm1 = vweird.f32 %v5852_v56  ;;  %v4207_v3 = vor.u32 1.1754944e-38, %v4206_v55  ;;  %vm4215_vm2 = vweird.f32 %v10995_v41 }
 0x357   : > { %5233 = vst [vmem:[%s6292_s21 + $0x630] sm:$0xff] %v4178_v0  ;;  %v4188_v8 = vsel %vm11018_vm15, %v5850_v38, %v4184_v60  ;;  %v4197_v63 = vsub.f32 1.0, %v4196_v6  ;;  %v886_v7 = vmul.f32 %v6187_v9, %v629_v1  ;;  %v630_v15 = vmul.f32 %v374_v62, %v374_v62  ;;  %vm11057_vm5 = vmor %vm4200_vm0, %vm4201_vm1 }
 0x358   : > { %v5854_v10 = vpop.eup %5853  ;;  %v4193_v16 = vsel %vm11006_vm14, %v4192_v42, %v4188_v8  ;;  %vm11044_vm3 = vcmp.eq.f32.partialorder %v4219_v2, 8.507059e+37  ;;  %v4221_v14 = vand.u32 2147483648, %v10995_v41  ;;  %v631_v11 = vmul.f32 %v375_v5, %v375_v5 }
 0x359   : > { %5234 = vst [vmem:[%s6292_s21 + $0x638] sm:$0xff] %v4193_v16  ;;  %v4198_v13 = vmul.f32 %v5852_v56, %v4197_v63  ;;  %v4211_v12 = vmul.f32 %v5854_v10, %v10995_v41  ;;  %vm4230_vm4 = vweird.f32 %v10997_v44  ;;  %v11052_v21 = vadd.f32 1.0, %v886_v7 }
 0x35a   : > { %v5856_v23 = vpop.eup %5855  ;;  %v4234_v18 = vand.u32 2147483647, %v10997_v44  ;;  %v4236_v27 = vand.u32 2147483648, %v10997_v44  ;;  %v887_v22 = vmul.f32 %v6187_v9, %v630_v15  ;;  %v888_v17 = vmul.f32 %v6187_v9, %v631_v11 }
 0x35b   : > { %v4199_v25 = vadd.f32 %v5852_v56, %v4198_v13  ;;  %v4212_v31 = vsub.f32 1.0, %v4211_v12  ;;  %vm4216_vm6 = vweird.f32 %v5854_v10  ;;  %v4226_v26 = vmul.f32 %v5856_v23, %v10997_v44  ;;  %v380_v12 = vld [vmem:[%s6175_s28 + $0x690] sm:$0xff] }
 0x35c   : > { %vm4231_vm7 = vweird.f32 %v5856_v23  ;;  %5857 = vrcp.f32 %v11052_v21  ;;  %v4249_v34 = vand.u32 2147483647, %v11052_v21  ;;  %v4251_v32 = vand.u32 2147483648, %v11052_v21  ;;  %vm11079_vm9 = vmor %vm4215_vm2, %vm4216_vm6 }
 0x35d   : > { %v4203_v24 = vsel %vm11057_vm5, %v5852_v56, %v4199_v25  ;;  %v4213_v29 = vmul.f32 %v5854_v10, %v4212_v31  ;;  %v4227_v37 = vsub.f32 1.0, %v4226_v26  ;;  %v11072_v38 = vadd.f32 1.0, %v887_v22  ;;  %vm11094_vm11 = vmor %vm4230_vm4, %vm4231_vm7 }
 0x35e   : > { %v4208_v28 = vsel %vm11030_vm8, %v4207_v3, %v4203_v24  ;;  %v4222_v43 = vor.u32 1.1754944e-38, %v4221_v14  ;;  %v11083_v39 = vadd.f32 1.0, %v888_v17  ;;  %v632_v35 = vmul.f32 %v376_v4, %v376_v4 }
 0x35f   : > { %5235 = vst [vmem:[%s6292_s21 + $0x640] sm:$0xff] %v4208_v28  ;;  %v4214_v46 = vadd.f32 %v5854_v10, %v4213_v29  ;;  %v4228_v40 = vmul.f32 %v5856_v23, %v4227_v37  ;;  %vm11086_vm10 = vcmp.eq.f32.partialorder %v4234_v18, 8.507059e+37  ;;  %5859 = vrcp.f32 %v11072_v38 }
 0x360   : > { %v4237_v50 = vor.u32 1.1754944e-38, %v4236_v27  ;;  %vm4245_vm12 = vweird.f32 %v11052_v21  ;;  %5861 = vrcp.f32 %v11083_v39  ;;  %v633_v47 = vmul.f32 %v377_v30, %v377_v30 }
 0x361   : > { %v4218_v45 = vsel %vm11079_vm9, %v5854_v10, %v4214_v46  ;;  %v4229_v53 = vadd.f32 %v5856_v23, %v4228_v40  ;;  %vm11102_vm13 = vcmp.eq.f32.partialorder %v4249_v34, 8.507059e+37  ;;  %v4252_v44 = vor.u32 1.1754944e-38, %v4251_v32 }
 0x362   : > { %v5858_v49 = vpop.eup %5857  ;;  %v4223_v42 = vsel %vm11044_vm3, %v4222_v43, %v4218_v45  ;;  %vm4260_vm14 = vweird.f32 %v11072_v38  ;;  %v4264_v55 = vand.u32 2147483647, %v11072_v38  ;;  %v889_v57 = vmul.f32 %v6187_v9, %v632_v35 }
 0x363   : > { %5236 = vst [vmem:[%s6292_s21 + $0x648] sm:$0xff] %v4223_v42  ;;  %v4233_v1 = vsel %vm11094_vm11, %v5856_v23, %v4229_v53  ;;  %v4241_v56 = vmul.f32 %v5858_v49, %v11052_v21  ;;  %v4266_v51 = vand.u32 2147483648, %v11072_v38  ;;  %v4279_v59 = vand.u32 2147483647, %v11083_v39  ;;  %v382_v42 = vld [vmem:[%s6175_s28 + $0x6a0] sm:$0xff] }
 0x364   : > { %v4238_v2 = vsel %vm11086_vm10, %v4237_v50, %v4233_v1  ;;  %vm4275_vm15 = vweird.f32 %v11083_v39  ;;  %v11122_v62 = vadd.f32 1.0, %v889_v57  ;;  %v890_v61 = vmul.f32 %v6187_v9, %v633_v47  ;;  %v383_v1 = vld [vmem:[%s6175_s28 + $0x6a8] sm:$0xff] }
 0x365   : > { %v5860_v60 = vpop.eup %5859  ;;  %5237 = vst [vmem:[%s6292_s21 + $0x650] sm:$0xff] %v4238_v2  ;;  %v4242_v6 = vsub.f32 1.0, %v4241_v56  ;;  %vm4246_vm0 = vweird.f32 %v5858_v49  ;;  %v634_v58 = vmul.f32 %v378_v54, %v378_v54  ;;  %v635_v5 = vmul.f32 %v379_v52, %v379_v52 }
 0x366   : > { %v5862_v0 = vpop.eup %5861  ;;  %v4256_v3 = vmul.f32 %v5860_v60, %v11072_v38  ;;  %vm11127_vm8 = vcmp.eq.f32.partialorder %v4264_v55, 8.507059e+37  ;;  %v4281_v63 = vand.u32 2147483648, %v11083_v39  ;;  %5863 = vrcp.f32 %v11122_v62  ;;  %vm11140_vm2 = vmor %vm4245_vm12, %vm4246_vm0 }
 0x367   : > { %v4243_v7 = vmul.f32 %v5858_v49, %v4242_v6  ;;  %v4267_v15 = vor.u32 1.1754944e-38, %v4266_v51  ;;  %v4271_v10 = vmul.f32 %v5862_v0, %v11083_v39  ;;  %vm11134_vm1 = vcmp.eq.f32.partialorder %v4279_v59, 8.507059e+37 }
 0x368   : > { %v4257_v14 = vsub.f32 1.0, %v4256_v3  ;;  %vm4261_vm3 = vweird.f32 %v5860_v60  ;;  %v11144_v11 = vadd.f32 1.0, %v890_v61  ;;  %v891_v13 = vmul.f32 %v6187_v9, %v634_v58 }
 0x369   : > { %v4244_v23 = vadd.f32 %v5858_v49, %v4243_v7  ;;  %v4272_v20 = vsub.f32 1.0, %v4271_v10  ;;  %vm4276_vm4 = vweird.f32 %v5862_v0  ;;  %v892_v18 = vmul.f32 %v6187_v9, %v635_v5  ;;  %vm11155_vm5 = vmor %vm4260_vm14, %vm4261_vm3 }
 0x36a   : > { %v4258_v27 = vmul.f32 %v5860_v60, %v4257_v14  ;;  %v4282_v22 = vor.u32 1.1754944e-38, %v4281_v63  ;;  %v4294_v21 = vand.u32 2147483647, %v11122_v62  ;;  %5865 = vrcp.f32 %v11144_v11  ;;  %vm11164_vm6 = vmor %vm4275_vm15, %vm4276_vm4 }
 0x36b   : > { %v4248_v17 = vsel %vm11140_vm2, %v5858_v49, %v4244_v23  ;;  %v4273_v31 = vmul.f32 %v5862_v0, %v4272_v20  ;;  %v4296_v26 = vand.u32 2147483648, %v11122_v62  ;;  %v636_v4 = vmul.f32 %v380_v12, %v380_v12  ;;  %v381_v49 = vld [vmem:[%s6175_s28 + $0x698] sm:$0xff] }
 0x36c   : > { %v5864_v34 = vpop.eup %5863  ;;  %v4253_v32 = vsel %vm11102_vm13, %v4252_v44, %v4248_v17  ;;  %v4259_v24 = vadd.f32 %v5860_v60, %v4258_v27  ;;  %v11168_v37 = vadd.f32 1.0, %v891_v13  ;;  %v11170_v38 = vadd.f32 1.0, %v892_v18 }
 0x36d   : > { %5238 = vst [vmem:[%s6292_s21 + $0x658] sm:$0xff] %v4253_v32  ;;  %v4274_v30 = vadd.f32 %v5862_v0, %v4273_v31  ;;  %v4286_v28 = vmul.f32 %v5864_v34, %v11122_v62  ;;  %vm4290_vm7 = vweird.f32 %v11122_v62  ;;  %v4309_v33 = vand.u32 2147483647, %v11144_v11  ;;  %v384_v32 = vld [vmem:[%s6175_s28 + $0x6b0] sm:$0xff] }
 0x36e   : > { %v4263_v43 = vsel %vm11155_vm5, %v5860_v60, %v4259_v24  ;;  %vm11178_vm9 = vcmp.eq.f32.partialorder %v4294_v21, 8.507059e+37  ;;  %v4311_v35 = vand.u32 2147483648, %v11144_v11  ;;  %5867 = vrcp.f32 %v11168_v37 }
 0x36f   : > { %v4268_v46 = vsel %vm11127_vm8, %v4267_v15, %v4263_v43  ;;  %v4278_v40 = vsel %vm11164_vm6, %v5862_v0, %v4274_v30  ;;  %v4287_v36 = vsub.f32 1.0, %v4286_v28  ;;  %vm4291_vm10 = vweird.f32 %v5864_v34 }
 0x370   : > { %v5866_v41 = vpop.eup %5865  ;;  %5239 = vst [vmem:[%s6292_s21 + $0x660] sm:$0xff] %v4268_v46  ;;  %v4283_v50 = vsel %vm11134_vm1, %v4282_v22, %v4278_v40  ;;  %v4297_v47 = vor.u32 1.1754944e-38, %v4296_v26  ;;  %v4324_v45 = vand.u32 2147483647, %v11168_v37  ;;  %5869 = vrcp.f32 %v11170_v38  ;;  %vm11204_vm13 = vmor %vm4290_vm7, %vm4291_vm10 }
 0x371   : > { %5240 = vst [vmem:[%s6292_s21 + $0x668] sm:$0xff] %v4283_v50  ;;  %v4288_v53 = vmul.f32 %v5864_v34, %v4287_v36  ;;  %v4301_v48 = vmul.f32 %v5866_v41, %v11144_v11  ;;  %vm4305_vm11 = vweird.f32 %v11144_v11  ;;  %vm11196_vm12 = vcmp.eq.f32.partialorder %v4309_v33, 8.507059e+37  ;;  %v385_v50 = vld [vmem:[%s6175_s28 + $0x6b8] sm:$0xff] }
 0x372   : > { %v4312_v57 = vor.u32 1.1754944e-38, %v4311_v35  ;;  %vm4320_vm14 = vweird.f32 %v11168_v37  ;;  %v4326_v54 = vand.u32 2147483648, %v11168_v37  ;;  %v893_v52 = vmul.f32 %v6187_v9, %v636_v4 }
 0x373   : > { %v4289_v56 = vadd.f32 %v5864_v34, %v4288_v53  ;;  %v4302_v51 = vsub.f32 1.0, %v4301_v48  ;;  %vm4306_vm15 = vweird.f32 %v5866_v41  ;;  %vm4335_vm0 = vweird.f32 %v11170_v38 }
 0x374   : > { %v5868_v59 = vpop.eup %5867  ;;  %vm11213_vm8 = vcmp.eq.f32.partialorder %v4324_v45, 8.507059e+37  ;;  %v11217_v62 = vadd.f32 1.0, %v893_v52  ;;  %v637_v61 = vmul.f32 %v381_v49, %v381_v49  ;;  %v638_v60 = vmul.f32 %v382_v42, %v382_v42  ;;  %vm11226_vm1 = vmor %vm4305_vm11, %vm4306_vm15 }
 0x375   : > { %v4293_v6 = vsel %vm11204_vm13, %v5864_v34, %v4289_v56  ;;  %v4303_v58 = vmul.f32 %v5866_v41, %v4302_v51  ;;  %v4316_v5 = vmul.f32 %v5868_v59, %v11168_v37  ;;  %v639_v0 = vmul.f32 %v383_v1, %v383_v1 }
 0x376   : > { %v5870_v3 = vpop.eup %5869  ;;  %v4298_v8 = vsel %vm11178_vm9, %v4297_v47, %v4293_v6  ;;  %v4339_v7 = vand.u32 2147483647, %v11170_v38  ;;  %v4341_v15 = vand.u32 2147483648, %v11170_v38  ;;  %5871 = vrcp.f32 %v11217_v62  ;;  %v386_v47 = vld [vmem:[%s6175_s28 + $0x6c0] sm:$0xff] }
 0x377   : > { %5241 = vst [vmem:[%s6292_s21 + $0x670] sm:$0xff] %v4298_v8  ;;  %v4304_v10 = vadd.f32 %v5866_v41, %v4303_v58  ;;  %v4317_v16 = vsub.f32 1.0, %v4316_v5  ;;  %vm4321_vm2 = vweird.f32 %v5868_v59  ;;  %v4331_v19 = vmul.f32 %v5870_v3, %v11170_v38 }
 0x378   : > { %v4327_v14 = vor.u32 1.1754944e-38, %v4326_v54  ;;  %vm4336_vm3 = vweird.f32 %v5870_v3  ;;  %v894_v11 = vmul.f32 %v6187_v9, %v637_v61  ;;  %v895_v13 = vmul.f32 %v6187_v9, %v638_v60  ;;  %vm11244_vm4 = vmor %vm4320_vm14, %vm4321_vm2 }
 0x379   : > { %v4308_v12 = vsel %vm11226_vm1, %v5866_v41, %v4304_v10  ;;  %v4318_v23 = vmul.f32 %v5868_v59, %v4317_v16  ;;  %v4332_v20 = vsub.f32 1.0, %v4331_v19  ;;  %v896_v18 = vmul.f32 %v6187_v9, %v639_v0  ;;  %vm11262_vm6 = vmor %vm4335_vm0, %vm4336_vm3 }
 0x37a   : > { %v4313_v27 = vsel %vm11196_vm12, %v4312_v57, %v4308_v12  ;;  %vm11248_vm5 = vcmp.eq.f32.partialorder %v4339_v7, 8.507059e+37  ;;  %v11252_v17 = vadd.f32 1.0, %v894_v11  ;;  %v11254_v25 = vadd.f32 1.0, %v895_v13 }
 0x37b   : > { %5242 = vst [vmem:[%s6292_s21 + $0x678] sm:$0xff] %v4313_v27  ;;  %v4319_v31 = vadd.f32 %v5868_v59, %v4318_v23  ;;  %v4333_v26 = vmul.f32 %v5870_v3, %v4332_v20  ;;  %v4342_v4 = vor.u32 1.1754944e-38, %v4341_v15  ;;  %v4354_v34 = vand.u32 2147483647, %v11217_v62  ;;  %v387_v23 = vld [vmem:[%s6175_s28 + $0x6c8] sm:$0xff] }
 0x37c   : > { %v5872_v24 = vpop.eup %5871  ;;  %v4356_v37 = vand.u32 2147483648, %v11217_v62  ;;  %5873 = vrcp.f32 %v11252_v17  ;;  %v4369_v30 = vand.u32 2147483647, %v11252_v17  ;;  %v11269_v28 = vadd.f32 1.0, %v896_v18 }
 0x37d   : > { %v4323_v33 = vsel %vm11244_vm4, %v5868_v59, %v4319_v31  ;;  %v4334_v43 = vadd.f32 %v5870_v3, %v4333_v26  ;;  %v4346_v38 = vmul.f32 %v5872_v24, %v11217_v62  ;;  %v4371_v39 = vand.u32 2147483648, %v11252_v17 }
 0x37e   : > { %v4328_v35 = vsel %vm11213_vm8, %v4327_v14, %v4323_v33  ;;  %vm4350_vm7 = vweird.f32 %v11217_v62  ;;  %5875 = vrcp.f32 %v11254_v25  ;;  %v640_v46 = vmul.f32 %v384_v32, %v384_v32 }
 0x37f   : > { %5243 = vst [vmem:[%s6292_s21 + $0x680] sm:$0xff] %v4328_v35  ;;  %v4338_v40 = vsel %vm11262_vm6, %v5870_v3, %v4334_v43  ;;  %v4347_v36 = vsub.f32 1.0, %v4346_v38  ;;  %vm4351_vm9 = vweird.f32 %v5872_v24  ;;  %vm11282_vm10 = vcmp.eq.f32.partialorder %v4354_v34, 8.507059e+37 }
 0x380   : > { %v4343_v45 = vsel %vm11248_vm5, %v4342_v4, %v4338_v40  ;;  %v4357_v53 = vor.u32 1.1754944e-38, %v4356_v37  ;;  %v4384_v48 = vand.u32 2147483647, %v11254_v25  ;;  %5877 = vrcp.f32 %v11269_v28  ;;  %vm11300_vm13 = vmor %vm4350_vm7, %vm4351_vm9 }
 0x381   : > { %5244 = vst [vmem:[%s6292_s21 + $0x688] sm:$0xff] %v4343_v45  ;;  %v4348_v44 = vmul.f32 %v5872_v24, %v4347_v36  ;;  %vm4365_vm11 = vweird.f32 %v11252_v17  ;;  %vm11294_vm12 = vcmp.eq.f32.partialorder %v4369_v30, 8.507059e+37  ;;  %v4372_v42 = vor.u32 1.1754944e-38, %v4371_v39  ;;  %v388_v30 = vld [vmem:[%s6175_s28 + $0x6d0] sm:$0xff]  ;;  %v389_v39 = vld [vmem:[%s6175_s28 + $0x6d8] sm:$0xff] }
 0x382   : > { %v5874_v55 = vpop.eup %5873  ;;  %vm4380_vm14 = vweird.f32 %v11254_v25  ;;  %v897_v54 = vmul.f32 %v6187_v9, %v640_v46  ;;  %v641_v52 = vmul.f32 %v385_v50, %v385_v50  ;;  %v642_v1 = vmul.f32 %v386_v47, %v386_v47 }
 0x383   : > { %v4349_v56 = vadd.f32 %v5872_v24, %v4348_v44  ;;  %v4361_v51 = vmul.f32 %v5874_v55, %v11252_v17  ;;  %v4386_v59 = vand.u32 2147483648, %v11254_v25  ;;  %vm4395_vm15 = vweird.f32 %v11269_v28 }
 0x384   : > { %v5876_v2 = vpop.eup %5875  ;;  %vm11309_vm0 = vcmp.eq.f32.partialorder %v4384_v48, 8.507059e+37  ;;  %v11313_v61 = vadd.f32 1.0, %v897_v54  ;;  %v898_v60 = vmul.f32 %v6187_v9, %v641_v52  ;;  %v899_v6 = vmul.f32 %v6187_v9, %v642_v1 }
 0x385   : > { %v4353_v58 = vsel %vm11300_vm13, %v5872_v24, %v4349_v56  ;;  %v4362_v5 = vsub.f32 1.0, %v4361_v51  ;;  %vm4366_vm8 = vweird.f32 %v5874_v55  ;;  %v4376_v0 = vmul.f32 %v5876_v2, %v11254_v25 }
 0x386   : > { %v5878_v3 = vpop.eup %5877  ;;  %v4358_v8 = vsel %vm11282_vm10, %v4357_v53, %v4353_v58  ;;  %v4399_v63 = vand.u32 2147483647, %v11269_v28  ;;  %v4401_v7 = vand.u32 2147483648, %v11269_v28  ;;  %5879 = vrcp.f32 %v11313_v61  ;;  %vm11329_vm2 = vmor %vm4365_vm11, %vm4366_vm8 }
 0x387   : > { %5245 = vst [vmem:[%s6292_s21 + $0x690] sm:$0xff] %v4358_v8  ;;  %v4363_v15 = vmul.f32 %v5874_v55, %v4362_v5  ;;  %v4377_v10 = vsub.f32 1.0, %v4376_v0  ;;  %vm4381_vm1 = vweird.f32 %v5876_v2  ;;  %v4391_v16 = vmul.f32 %v5878_v3, %v11269_v28  ;;  %v391_v8 = vld [vmem:[%s6175_s28 + $0x6e8] sm:$0xff] }
 0x388   : > { %v4387_v14 = vor.u32 1.1754944e-38, %v4386_v59  ;;  %v4414_v11 = vand.u32 2147483647, %v11313_v61  ;;  %v11334_v13 = vadd.f32 1.0, %v898_v60  ;;  %v11336_v12 = vadd.f32 1.0, %v899_v6  ;;  %vm11341_vm4 = vmor %vm4380_vm14, %vm4381_vm1 }
 0x389   : > { %v4364_v20 = vadd.f32 %v5874_v55, %v4363_v15  ;;  %v4378_v18 = vmul.f32 %v5876_v2, %v4377_v10  ;;  %v4392_v27 = vsub.f32 1.0, %v4391_v16  ;;  %vm4396_vm3 = vweird.f32 %v5878_v3 }
 0x38a   : > { %vm11345_vm5 = vcmp.eq.f32.partialorder %v4399_v63, 8.507059e+37  ;;  %v4402_v17 = vor.u32 1.1754944e-38, %v4401_v7  ;;  %v4416_v31 = vand.u32 2147483648, %v11313_v61  ;;  %5881 = vrcp.f32 %v11334_v13  ;;  %vm11357_vm6 = vmor %vm4395_vm15, %vm4396_vm3 }
 0x38b   : > { %v4368_v26 = vsel %vm11329_vm2, %v5874_v55, %v4364_v20  ;;  %v4379_v25 = vadd.f32 %v5876_v2, %v4378_v18  ;;  %v4393_v4 = vmul.f32 %v5878_v3, %v4392_v27  ;;  %v643_v34 = vmul.f32 %v387_v23, %v387_v23 }
 0x38c   : > { %v5880_v32 = vpop.eup %5879  ;;  %v4373_v24 = vsel %vm11294_vm12, %v4372_v42, %v4368_v26  ;;  %vm4410_vm7 = vweird.f32 %v11313_v61  ;;  %v4429_v37 = vand.u32 2147483647, %v11334_v13  ;;  %5883 = vrcp.f32 %v11336_v12 }
 0x38d   : > { %5246 = vst [vmem:[%s6292_s21 + $0x698] sm:$0xff] %v4373_v24  ;;  %v4383_v33 = vsel %vm11341_vm4, %v5876_v2, %v4379_v25  ;;  %v4394_v43 = vadd.f32 %v5878_v3, %v4393_v4  ;;  %v4406_v38 = vmul.f32 %v5880_v32, %v11313_v61  ;;  %vm11369_vm9 = vcmp.eq.f32.partialorder %v4414_v11, 8.507059e+37  ;;  %v390_v61 = vld [vmem:[%s6175_s28 + $0x6e0] sm:$0xff]  ;;  %v392_v25 = vld [vmem:[%s6175_s28 + $0x6f0] sm:$0xff]  ;;  %v393_v4 = vld [vmem:[%s6175_s28 + $0x6f8] sm:$0xff] }
 0x38e   : > { %v4388_v35 = vsel %vm11309_vm0, %v4387_v14, %v4383_v33  ;;  %vm4411_vm10 = vweird.f32 %v5880_v32  ;;  %v4417_v46 = vor.u32 1.1754944e-38, %v4416_v31  ;;  %vm4425_vm11 = vweird.f32 %v11334_v13 }
 0x38f   : > { %5247 = vst [vmem:[%s6292_s21 + $0x6a0] sm:$0xff] %v4388_v35  ;;  %v4398_v40 = vsel %vm11357_vm6, %v5878_v3, %v4394_v43  ;;  %v4407_v36 = vsub.f32 1.0, %v4406_v38  ;;  %v900_v41 = vmul.f32 %v6187_v9, %v643_v34  ;;  %v644_v50 = vmul.f32 %v388_v30, %v388_v30  ;;  %vm11396_vm14 = vmor %vm4410_vm7, %vm4411_vm10 }
 0x390   : > { %v5882_v47 = vpop.eup %5881  ;;  %v4403_v45 = vsel %vm11345_vm5, %v4402_v17, %v4398_v40  ;;  %vm11383_vm12 = vcmp.eq.f32.partialorder %v4429_v37, 8.507059e+37  ;;  %v4431_v48 = vand.u32 2147483648, %v11334_v13  ;;  %v645_v44 = vmul.f32 %v389_v39, %v389_v39 }
 0x391   : > { %5248 = vst [vmem:[%s6292_s21 + $0x6a8] sm:$0xff] %v4403_v45  ;;  %v4408_v49 = vmul.f32 %v5880_v32, %v4407_v36  ;;  %v4421_v42 = vmul.f32 %v5882_v47, %v11334_v13  ;;  %vm4440_vm13 = vweird.f32 %v11336_v12  ;;  %v11391_v55 = vadd.f32 1.0, %v900_v41 }
 0x392   : > { %v5884_v57 = vpop.eup %5883  ;;  %v4444_v52 = vand.u32 2147483647, %v11336_v12  ;;  %v4446_v1 = vand.u32 2147483648, %v11336_v12  ;;  %v901_v56 = vmul.f32 %v6187_v9, %v644_v50  ;;  %v902_v51 = vmul.f32 %v6187_v9, %v645_v44 }
 0x393   : > { %v4409_v59 = vadd.f32 %v5880_v32, %v4408_v49  ;;  %v4422_v2 = vsub.f32 1.0, %v4421_v42  ;;  %vm4426_vm15 = vweird.f32 %v5882_v47  ;;  %v4436_v62 = vmul.f32 %v5884_v57, %v11336_v12  ;;  %v394_v42 = vld [vmem:[%s6175_s28 + $0x700] sm:$0xff] }
 0x394   : > { %vm4441_vm0 = vweird.f32 %v5884_v57  ;;  %5885 = vrcp.f32 %v11391_v55  ;;  %v4459_v60 = vand.u32 2147483647, %v11391_v55  ;;  %v4461_v6 = vand.u32 2147483648, %v11391_v55  ;;  %vm11418_vm8 = vmor %vm4425_vm11, %vm4426_vm15 }
 0x395   : > { %v4413_v58 = vsel %vm11396_vm14, %v5880_v32, %v4409_v59  ;;  %v4423_v5 = vmul.f32 %v5882_v47, %v4422_v2  ;;  %v4437_v0 = vsub.f32 1.0, %v4436_v62  ;;  %v11411_v3 = vadd.f32 1.0, %v901_v56  ;;  %vm11433_vm2 = vmor %vm4440_vm13, %vm4441_vm0 }
 0x396   : > { %v4418_v63 = vsel %vm11369_vm9, %v4417_v46, %v4413_v58  ;;  %v4432_v15 = vor.u32 1.1754944e-38, %v4431_v48  ;;  %v11422_v10 = vadd.f32 1.0, %v902_v51  ;;  %v646_v16 = vmul.f32 %v390_v61, %v390_v61 }
 0x397   : > { %5249 = vst [vmem:[%s6292_s21 + $0x6b0] sm:$0xff] %v4418_v63  ;;  %v4424_v19 = vadd.f32 %v5882_v47, %v4423_v5  ;;  %v4438_v14 = vmul.f32 %v5884_v57, %v4437_v0  ;;  %vm11425_vm1 = vcmp.eq.f32.partialorder %v4444_v52, 8.507059e+37  ;;  %5887 = vrcp.f32 %v11411_v3 }
 0x398   : > { %v4447_v23 = vor.u32 1.1754944e-38, %v4446_v1  ;;  %vm4455_vm3 = vweird.f32 %v11391_v55  ;;  %5889 = vrcp.f32 %v11422_v10  ;;  %v647_v20 = vmul.f32 %v391_v8, %v391_v8 }
 0x399   : > { %v4428_v18 = vsel %vm11418_vm8, %v5882_v47, %v4424_v19  ;;  %v4439_v27 = vadd.f32 %v5884_v57, %v4438_v14  ;;  %vm11441_vm4 = vcmp.eq.f32.partialorder %v4459_v60, 8.507059e+37  ;;  %v4462_v12 = vor.u32 1.1754944e-38, %v4461_v6 }
 0x39a   : > { %v5886_v21 = vpop.eup %5885  ;;  %v4433_v17 = vsel %vm11383_vm12, %v4432_v15, %v4428_v18  ;;  %vm4470_vm5 = vweird.f32 %v11411_v3  ;;  %v4474_v31 = vand.u32 2147483647, %v11411_v3  ;;  %v903_v26 = vmul.f32 %v6187_v9, %v646_v16 }
 0x39b   : > { %5250 = vst [vmem:[%s6292_s21 + $0x6b8] sm:$0xff] %v4433_v17  ;;  %v4443_v34 = vsel %vm11433_vm2, %v5884_v57, %v4439_v27  ;;  %v4451_v32 = vmul.f32 %v5886_v21, %v11391_v55  ;;  %v4476_v24 = vand.u32 2147483648, %v11411_v3  ;;  %v4489_v29 = vand.u32 2147483647, %v11422_v10  ;;  %v396_v17 = vld [vmem:[%s6175_s28 + $0x710] sm:$0xff] }
 0x39c   : > { %v4448_v37 = vsel %vm11425_vm1, %v4447_v23, %v4443_v34  ;;  %vm4485_vm6 = vweird.f32 %v11422_v10  ;;  %v11461_v30 = vadd.f32 1.0, %v903_v26  ;;  %v904_v33 = vmul.f32 %v6187_v9, %v647_v20  ;;  %v397_v34 = vld [vmem:[%s6175_s28 + $0x718] sm:$0xff] }
 0x39d   : > { %v5888_v43 = vpop.eup %5887  ;;  %5251 = vst [vmem:[%s6292_s21 + $0x6c0] sm:$0xff] %v4448_v37  ;;  %v4452_v38 = vsub.f32 1.0, %v4451_v32  ;;  %vm4456_vm7 = vweird.f32 %v5886_v21  ;;  %v648_v28 = vmul.f32 %v392_v25, %v392_v25  ;;  %v649_v39 = vmul.f32 %v393_v4, %v393_v4 }
 0x39e   : > { %v5890_v35 = vpop.eup %5889  ;;  %v4466_v46 = vmul.f32 %v5888_v43, %v11411_v3  ;;  %vm11466_vm9 = vcmp.eq.f32.partialorder %v4474_v31, 8.507059e+37  ;;  %v4491_v36 = vand.u32 2147483648, %v11422_v10  ;;  %5891 = vrcp.f32 %v11461_v30  ;;  %vm11479_vm11 = vmor %vm4455_vm3, %vm4456_vm7 }
 0x39f   : > { %v4453_v41 = vmul.f32 %v5886_v21, %v4452_v38  ;;  %v4477_v50 = vor.u32 1.1754944e-38, %v4476_v24  ;;  %v4481_v47 = vmul.f32 %v5890_v35, %v11422_v10  ;;  %vm11473_vm10 = vcmp.eq.f32.partialorder %v4489_v29, 8.507059e+37 }
 0x3a0   : > { %v4467_v48 = vsub.f32 1.0, %v4466_v46  ;;  %vm4471_vm12 = vweird.f32 %v5888_v43  ;;  %v11483_v44 = vadd.f32 1.0, %v904_v33  ;;  %v905_v49 = vmul.f32 %v6187_v9, %v648_v28 }
 0x3a1   : > { %v4454_v57 = vadd.f32 %v5886_v21, %v4453_v41  ;;  %v4482_v54 = vsub.f32 1.0, %v4481_v47  ;;  %vm4486_vm13 = vweird.f32 %v5890_v35  ;;  %v906_v52 = vmul.f32 %v6187_v9, %v649_v39  ;;  %vm11494_vm14 = vmor %vm4470_vm5, %vm4471_vm12 }
 0x3a2   : > { %v4468_v1 = vmul.f32 %v5888_v43, %v4467_v48  ;;  %v4492_v56 = vor.u32 1.1754944e-38, %v4491_v36  ;;  %v4504_v55 = vand.u32 2147483647, %v11461_v30  ;;  %5893 = vrcp.f32 %v11483_v44  ;;  %vm11503_vm15 = vmor %vm4485_vm6, %vm4486_vm13 }
 0x3a3   : > { %v4458_v51 = vsel %vm11479_vm11, %v5886_v21, %v4454_v57  ;;  %v4483_v2 = vmul.f32 %v5890_v35, %v4482_v54  ;;  %v4506_v62 = vand.u32 2147483648, %v11461_v30  ;;  %v650_v61 = vmul.f32 %v394_v42, %v394_v42  ;;  %v395_v21 = vld [vmem:[%s6175_s28 + $0x708] sm:$0xff] }
 0x3a4   : > { %v5892_v60 = vpop.eup %5891  ;;  %v4463_v6 = vsel %vm11441_vm4, %v4462_v12, %v4458_v51  ;;  %v4469_v58 = vadd.f32 %v5888_v43, %v4468_v1  ;;  %v11507_v0 = vadd.f32 1.0, %v905_v49  ;;  %v11509_v3 = vadd.f32 1.0, %v906_v52 }
 0x3a5   : > { %5252 = vst [vmem:[%s6292_s21 + $0x6c8] sm:$0xff] %v4463_v6  ;;  %v4484_v8 = vadd.f32 %v5890_v35, %v4483_v2  ;;  %v4496_v63 = vmul.f32 %v5892_v60, %v11461_v30  ;;  %vm4500_vm0 = vweird.f32 %v11461_v30  ;;  %v4519_v7 = vand.u32 2147483647, %v11483_v44  ;;  %v398_v6 = vld [vmem:[%s6175_s28 + $0x720] sm:$0xff] }
 0x3a6   : > { %v4473_v15 = vsel %vm11494_vm14, %v5888_v43, %v4469_v58  ;;  %vm11517_vm8 = vcmp.eq.f32.partialorder %v4504_v55, 8.507059e+37  ;;  %v4521_v16 = vand.u32 2147483648, %v11483_v44  ;;  %5895 = vrcp.f32 %v11507_v0 }
 0x3a7   : > { %v4478_v19 = vsel %vm11466_vm9, %v4477_v50, %v4473_v15  ;;  %v4488_v14 = vsel %vm11503_vm15, %v5890_v35, %v4484_v8  ;;  %v4497_v11 = vsub.f32 1.0, %v4496_v63  ;;  %vm4501_vm1 = vweird.f32 %v5892_v60 }
 0x3a8   : > { %v5894_v13 = vpop.eup %5893  ;;  %5253 = vst [vmem:[%s6292_s21 + $0x6d0] sm:$0xff] %v4478_v19  ;;  %v4493_v23 = vsel %vm11473_vm10, %v4492_v56, %v4488_v14  ;;  %v4507_v20 = vor.u32 1.1754944e-38, %v4506_v62  ;;  %v4534_v18 = vand.u32 2147483647, %v11507_v0  ;;  %5897 = vrcp.f32 %v11509_v3  ;;  %vm11543_vm4 = vmor %vm4500_vm0, %vm4501_vm1 }
 0x3a9   : > { %5254 = vst [vmem:[%s6292_s21 + $0x6d8] sm:$0xff] %v4493_v23  ;;  %v4498_v27 = vmul.f32 %v5892_v60, %v4497_v11  ;;  %v4511_v22 = vmul.f32 %v5894_v13, %v11483_v44  ;;  %vm4515_vm2 = vweird.f32 %v11483_v44  ;;  %vm11535_vm3 = vcmp.eq.f32.partialorder %v4519_v7, 8.507059e+37  ;;  %v399_v23 = vld [vmem:[%s6175_s28 + $0x728] sm:$0xff] }
 0x3aa   : > { %v4522_v26 = vor.u32 1.1754944e-38, %v4521_v16  ;;  %vm4530_vm5 = vweird.f32 %v11507_v0  ;;  %v4536_v25 = vand.u32 2147483648, %v11507_v0  ;;  %v907_v4 = vmul.f32 %v6187_v9, %v650_v61 }
 0x3ab   : > { %v4499_v32 = vadd.f32 %v5892_v60, %v4498_v27  ;;  %v4512_v24 = vsub.f32 1.0, %v4511_v22  ;;  %vm4516_vm6 = vweird.f32 %v5894_v13  ;;  %vm4545_vm7 = vweird.f32 %v11509_v3 }
 0x3ac   : > { %v5896_v29 = vpop.eup %5895  ;;  %vm11552_vm9 = vcmp.eq.f32.partialorder %v4534_v18, 8.507059e+37  ;;  %v11556_v30 = vadd.f32 1.0, %v907_v4  ;;  %v651_v33 = vmul.f32 %v395_v21, %v395_v21  ;;  %v652_v43 = vmul.f32 %v396_v17, %v396_v17  ;;  %vm11565_vm10 = vmor %vm4515_vm2, %vm4516_vm6 }
 0x3ad   : > { %v4503_v38 = vsel %vm11543_vm4, %v5892_v60, %v4499_v32  ;;  %v4513_v28 = vmul.f32 %v5894_v13, %v4512_v24  ;;  %v4526_v39 = vmul.f32 %v5896_v29, %v11507_v0  ;;  %v653_v35 = vmul.f32 %v397_v34, %v397_v34 }
 0x3ae   : > { %v5898_v46 = vpop.eup %5897  ;;  %v4508_v40 = vsel %vm11517_vm8, %v4507_v20, %v4503_v38  ;;  %v4549_v41 = vand.u32 2147483647, %v11509_v3  ;;  %v4551_v50 = vand.u32 2147483648, %v11509_v3  ;;  %5899 = vrcp.f32 %v11556_v30  ;;  %v400_v20 = vld [vmem:[%s6175_s28 + $0x730] sm:$0xff] }
 0x3af   : > { %5255 = vst [vmem:[%s6292_s21 + $0x6e0] sm:$0xff] %v4508_v40  ;;  %v4514_v47 = vadd.f32 %v5894_v13, %v4513_v28  ;;  %v4527_v45 = vsub.f32 1.0, %v4526_v39  ;;  %vm4531_vm11 = vweird.f32 %v5896_v29  ;;  %v4541_v53 = vmul.f32 %v5898_v46, %v11509_v3 }
 0x3b0   : > { %v4537_v48 = vor.u32 1.1754944e-38, %v4536_v25  ;;  %vm4546_vm12 = vweird.f32 %v5898_v46  ;;  %v908_v44 = vmul.f32 %v6187_v9, %v651_v33  ;;  %v909_v49 = vmul.f32 %v6187_v9, %v652_v43  ;;  %vm11583_vm13 = vmor %vm4530_vm5, %vm4531_vm11 }
 0x3b1   : > { %v4518_v42 = vsel %vm11565_vm10, %v5894_v13, %v4514_v47  ;;  %v4528_v57 = vmul.f32 %v5896_v29, %v4527_v45  ;;  %v4542_v54 = vsub.f32 1.0, %v4541_v53  ;;  %v910_v52 = vmul.f32 %v6187_v9, %v653_v35  ;;  %vm11601_vm15 = vmor %vm4545_vm7, %vm4546_vm12 }
 0x3b2   : > { %v4523_v1 = vsel %vm11535_vm3, %v4522_v26, %v4518_v42  ;;  %vm11587_vm14 = vcmp.eq.f32.partialorder %v4549_v41, 8.507059e+37  ;;  %v11591_v51 = vadd.f32 1.0, %v908_v44  ;;  %v11593_v59 = vadd.f32 1.0, %v909_v49 }
 0x3b3   : > { %5256 = vst [vmem:[%s6292_s21 + $0x6e8] sm:$0xff] %v4523_v1  ;;  %v4529_v2 = vadd.f32 %v5896_v29, %v4528_v57  ;;  %v4543_v62 = vmul.f32 %v5898_v46, %v4542_v54  ;;  %v4552_v61 = vor.u32 1.1754944e-38, %v4551_v50  ;;  %v4564_v60 = vand.u32 2147483647, %v11556_v30  ;;  %v401_v57 = vld [vmem:[%s6175_s28 + $0x738] sm:$0xff] }
 0x3b4   : > { %v5900_v58 = vpop.eup %5899  ;;  %v4566_v0 = vand.u32 2147483648, %v11556_v30  ;;  %5901 = vrcp.f32 %v11591_v51  ;;  %v4579_v8 = vand.u32 2147483647, %v11591_v51  ;;  %v11608_v63 = vadd.f32 1.0, %v910_v52 }
 0x3b5   : > { %v4533_v7 = vsel %vm11583_vm13, %v5896_v29, %v4529_v2  ;;  %v4544_v15 = vadd.f32 %v5898_v46, %v4543_v62  ;;  %v4556_v3 = vmul.f32 %v5900_v58, %v11556_v30  ;;  %v4581_v10 = vand.u32 2147483648, %v11591_v51 }
 0x3b6   : > { %v4538_v16 = vsel %vm11552_vm9, %v4537_v48, %v4533_v7  ;;  %vm4560_vm0 = vweird.f32 %v11556_v30  ;;  %5903 = vrcp.f32 %v11593_v59  ;;  %v654_v19 = vmul.f32 %v398_v6, %v398_v6 }
 0x3b7   : > { %5257 = vst [vmem:[%s6292_s21 + $0x6f0] sm:$0xff] %v4538_v16  ;;  %v4548_v14 = vsel %vm11601_vm15, %v5898_v46, %v4544_v15  ;;  %v4557_v11 = vsub.f32 1.0, %v4556_v3  ;;  %vm4561_vm8 = vweird.f32 %v5900_v58  ;;  %vm11621_vm1 = vcmp.eq.f32.partialorder %v4564_v60, 8.507059e+37 }
 0x3b8   : > { %v4553_v18 = vsel %vm11587_vm14, %v4552_v61, %v4548_v14  ;;  %v4567_v27 = vor.u32 1.1754944e-38, %v4566_v0  ;;  %v4594_v22 = vand.u32 2147483647, %v11593_v59  ;;  %5905 = vrcp.f32 %v11608_v63  ;;  %vm11639_vm4 = vmor %vm4560_vm0, %vm4561_vm8 }
 0x3b9   : > { %5258 = vst [vmem:[%s6292_s21 + $0x6f8] sm:$0xff] %v4553_v18  ;;  %v4558_v12 = vmul.f32 %v5900_v58, %v4557_v11  ;;  %vm4575_vm2 = vweird.f32 %v11591_v51  ;;  %vm11633_vm3 = vcmp.eq.f32.partialorder %v4579_v8, 8.507059e+37  ;;  %v4582_v17 = vor.u32 1.1754944e-38, %v4581_v10  ;;  %v402_v8 = vld [vmem:[%s6175_s28 + $0x740] sm:$0xff]  ;;  %v403_v10 = vld [vmem:[%s6175_s28 + $0x748] sm:$0xff] }
 0x3ba   : > { %v5902_v31 = vpop.eup %5901  ;;  %vm4590_vm5 = vweird.f32 %v11593_v59  ;;  %v911_v25 = vmul.f32 %v6187_v9, %v654_v19  ;;  %v655_v4 = vmul.f32 %v399_v23, %v399_v23  ;;  %v656_v34 = vmul.f32 %v400_v20, %v400_v20 }
 0x3bb   : > { %v4559_v32 = vadd.f32 %v5900_v58, %v4558_v12  ;;  %v4571_v24 = vmul.f32 %v5902_v31, %v11591_v51  ;;  %v4596_v29 = vand.u32 2147483648, %v11593_v59  ;;  %vm4605_vm6 = vweird.f32 %v11608_v63 }
 0x3bc   : > { %v5904_v37 = vpop.eup %5903  ;;  %vm11648_vm7 = vcmp.eq.f32.partialorder %v4594_v22, 8.507059e+37  ;;  %v11652_v33 = vadd.f32 1.0, %v911_v25  ;;  %v912_v43 = vmul.f32 %v6187_v9, %v655_v4  ;;  %v913_v38 = vmul.f32 %v6187_v9, %v656_v34 }
 0x3bd   : > { %v4563_v28 = vsel %vm11639_vm4, %v5900_v58, %v4559_v32  ;;  %v4572_v39 = vsub.f32 1.0, %v4571_v24  ;;  %vm4576_vm9 = vweird.f32 %v5902_v31  ;;  %v4586_v35 = vmul.f32 %v5904_v37, %v11593_v59 }
 0x3be   : > { %v5906_v46 = vpop.eup %5905  ;;  %v4568_v40 = vsel %vm11621_vm1, %v4567_v27, %v4563_v28  ;;  %v4609_v36 = vand.u32 2147483647, %v11608_v63  ;;  %v4611_v41 = vand.u32 2147483648, %v11608_v63  ;;  %5907 = vrcp.f32 %v11652_v33  ;;  %vm11668_vm11 = vmor %vm4575_vm2, %vm4576_vm9 }
 0x3bf   : > { %5259 = vst [vmem:[%s6292_s21 + $0x700] sm:$0xff] %v4568_v40  ;;  %v4573_v50 = vmul.f32 %v5902_v31, %v4572_v39  ;;  %v4587_v47 = vsub.f32 1.0, %v4586_v35  ;;  %vm4591_vm10 = vweird.f32 %v5904_v37  ;;  %v4601_v45 = vmul.f32 %v5906_v46, %v11608_v63  ;;  %v405_v40 = vld [vmem:[%s6175_s28 + $0x758] sm:$0xff] }
 0x3c0   : > { %v4597_v48 = vor.u32 1.1754944e-38, %v4596_v29  ;;  %v4624_v44 = vand.u32 2147483647, %v11652_v33  ;;  %v11673_v49 = vadd.f32 1.0, %v912_v43  ;;  %v11675_v42 = vadd.f32 1.0, %v913_v38  ;;  %vm11680_vm13 = vmor %vm4590_vm5, %vm4591_vm10 }
 0x3c1   : > { %v4574_v54 = vadd.f32 %v5902_v31, %v4573_v50  ;;  %v4588_v52 = vmul.f32 %v5904_v37, %v4587_v47  ;;  %v4602_v1 = vsub.f32 1.0, %v4601_v45  ;;  %vm4606_vm12 = vweird.f32 %v5906_v46 }
 0x3c2   : > { %vm11684_vm14 = vcmp.eq.f32.partialorder %v4609_v36, 8.507059e+37  ;;  %v4612_v51 = vor.u32 1.1754944e-38, %v4611_v41  ;;  %v4626_v2 = vand.u32 2147483648, %v11652_v33  ;;  %5909 = vrcp.f32 %v11673_v49  ;;  %vm11696_vm15 = vmor %vm4605_vm6, %vm4606_vm12 }
 0x3c3   : > { %v4578_v62 = vsel %vm11668_vm11, %v5902_v31, %v4574_v54  ;;  %v4589_v59 = vadd.f32 %v5904_v37, %v4588_v52  ;;  %v4603_v61 = vmul.f32 %v5906_v46, %v4602_v1  ;;  %v657_v60 = vmul.f32 %v401_v57, %v401_v57 }
 0x3c4   : > { %v5908_v6 = vpop.eup %5907  ;;  %v4583_v58 = vsel %vm11633_vm3, %v4582_v17, %v4578_v62  ;;  %vm4620_vm0 = vweird.f32 %v11652_v33  ;;  %v4639_v0 = vand.u32 2147483647, %v11673_v49  ;;  %5911 = vrcp.f32 %v11675_v42 }
 0x3c5   : > { %5260 = vst [vmem:[%s6292_s21 + $0x708] sm:$0xff] %v4583_v58  ;;  %v4593_v7 = vsel %vm11680_vm13, %v5904_v37, %v4589_v59  ;;  %v4604_v15 = vadd.f32 %v5906_v46, %v4603_v61  ;;  %v4616_v3 = vmul.f32 %v5908_v6, %v11652_v33  ;;  %vm11708_vm8 = vcmp.eq.f32.partialorder %v4624_v44, 8.507059e+37  ;;  %v404_v33 = vld [vmem:[%s6175_s28 + $0x750] sm:$0xff]  ;;  %v406_v59 = vld [vmem:[%s6175_s28 + $0x760] sm:$0xff]  ;;  %v407_v61 = vld [vmem:[%s6175_s28 + $0x768] sm:$0xff] }
 0x3c6   : > { %v4598_v16 = vsel %vm11648_vm7, %v4597_v48, %v4593_v7  ;;  %vm4621_vm1 = vweird.f32 %v5908_v6  ;;  %v4627_v19 = vor.u32 1.1754944e-38, %v4626_v2  ;;  %vm4635_vm2 = vweird.f32 %v11673_v49 }
 0x3c7   : > { %5261 = vst [vmem:[%s6292_s21 + $0x710] sm:$0xff] %v4598_v16  ;;  %v4608_v14 = vsel %vm11696_vm15, %v5906_v46, %v4604_v15  ;;  %v4617_v11 = vsub.f32 1.0, %v4616_v3  ;;  %v914_v13 = vmul.f32 %v6187_v9, %v657_v60  ;;  %v658_v23 = vmul.f32 %v402_v8, %v402_v8  ;;  %vm11735_vm5 = vmor %vm4620_vm0, %vm4621_vm1 }
 0x3c8   : > { %v5910_v20 = vpop.eup %5909  ;;  %v4613_v18 = vsel %vm11684_vm14, %v4612_v51, %v4608_v14  ;;  %vm11722_vm3 = vcmp.eq.f32.partialorder %v4639_v0, 8.507059e+37  ;;  %v4641_v22 = vand.u32 2147483648, %v11673_v49  ;;  %v659_v12 = vmul.f32 %v403_v10, %v403_v10 }
 0x3c9   : > { %5262 = vst [vmem:[%s6292_s21 + $0x718] sm:$0xff] %v4613_v18  ;;  %v4618_v21 = vmul.f32 %v5908_v6, %v4617_v11  ;;  %v4631_v17 = vmul.f32 %v5910_v20, %v11673_v49  ;;  %vm4650_vm4 = vweird.f32 %v11675_v42  ;;  %v11730_v31 = vadd.f32 1.0, %v914_v13 }
 0x3ca   : > { %v5912_v26 = vpop.eup %5911  ;;  %v4654_v4 = vand.u32 2147483647, %v11675_v42  ;;  %v4656_v34 = vand.u32 2147483648, %v11675_v42  ;;  %v915_v32 = vmul.f32 %v6187_v9, %v658_v23  ;;  %v916_v24 = vmul.f32 %v6187_v9, %v659_v12 }
 0x3cb   : > { %v4619_v29 = vadd.f32 %v5908_v6, %v4618_v21  ;;  %v4632_v37 = vsub.f32 1.0, %v4631_v17  ;;  %vm4636_vm6 = vweird.f32 %v5910_v20  ;;  %v4646_v30 = vmul.f32 %v5912_v26, %v11675_v42  ;;  %v408_v17 = vld [vmem:[%s6175_s28 + $0x770] sm:$0xff] }
 0x3cc   : > { %vm4651_vm7 = vweird.f32 %v5912_v26  ;;  %5913 = vrcp.f32 %v11730_v31  ;;  %v4669_v43 = vand.u32 2147483647, %v11730_v31  ;;  %v4671_v38 = vand.u32 2147483648, %v11730_v31  ;;  %vm11757_vm9 = vmor %vm4635_vm2, %vm4636_vm6 }
 0x3cd   : > { %v4623_v28 = vsel %vm11735_vm5, %v5908_v6, %v4619_v29  ;;  %v4633_v39 = vmul.f32 %v5910_v20, %v4632_v37  ;;  %v4647_v35 = vsub.f32 1.0, %v4646_v30  ;;  %v11750_v46 = vadd.f32 1.0, %v915_v32  ;;  %vm11772_vm11 = vmor %vm4650_vm4, %vm4651_vm7 }
 0x3ce   : > { %v4628_v36 = vsel %vm11708_vm8, %v4627_v19, %v4623_v28  ;;  %v4642_v50 = vor.u32 1.1754944e-38, %v4641_v22  ;;  %v11761_v47 = vadd.f32 1.0, %v916_v24  ;;  %v660_v45 = vmul.f32 %v404_v33, %v404_v33 }
 0x3cf   : > { %5263 = vst [vmem:[%s6292_s21 + $0x720] sm:$0xff] %v4628_v36  ;;  %v4634_v53 = vadd.f32 %v5910_v20, %v4633_v39  ;;  %v4648_v48 = vmul.f32 %v5912_v26, %v4647_v35  ;;  %vm11764_vm10 = vcmp.eq.f32.partialorder %v4654_v4, 8.507059e+37  ;;  %5915 = vrcp.f32 %v11750_v46 }
 0x3d0   : > { %v4657_v57 = vor.u32 1.1754944e-38, %v4656_v34  ;;  %vm4665_vm12 = vweird.f32 %v11730_v31  ;;  %5917 = vrcp.f32 %v11761_v47  ;;  %v661_v54 = vmul.f32 %v405_v40, %v405_v40 }
 0x3d1   : > { %v4638_v52 = vsel %vm11757_vm9, %v5910_v20, %v4634_v53  ;;  %v4649_v1 = vadd.f32 %v5912_v26, %v4648_v48  ;;  %vm11780_vm13 = vcmp.eq.f32.partialorder %v4669_v43, 8.507059e+37  ;;  %v4672_v42 = vor.u32 1.1754944e-38, %v4671_v38 }
 0x3d2   : > { %v5914_v55 = vpop.eup %5913  ;;  %v4643_v51 = vsel %vm11722_vm3, %v4642_v50, %v4638_v52  ;;  %vm4680_vm14 = vweird.f32 %v11750_v46  ;;  %v4684_v2 = vand.u32 2147483647, %v11750_v46  ;;  %v917_v62 = vmul.f32 %v6187_v9, %v660_v45 }
 0x3d3   : > { %5264 = vst [vmem:[%s6292_s21 + $0x728] sm:$0xff] %v4643_v51  ;;  %v4653_v60 = vsel %vm11772_vm11, %v5912_v26, %v4649_v1  ;;  %v4661_v6 = vmul.f32 %v5914_v55, %v11730_v31  ;;  %v4686_v58 = vand.u32 2147483648, %v11750_v46  ;;  %v4699_v5 = vand.u32 2147483647, %v11761_v47  ;;  %v410_v51 = vld [vmem:[%s6175_s28 + $0x780] sm:$0xff] }
 0x3d4   : > { %v4658_v0 = vsel %vm11764_vm10, %v4657_v57, %v4653_v60  ;;  %vm4695_vm15 = vweird.f32 %v11761_v47  ;;  %v11800_v8 = vadd.f32 1.0, %v917_v62  ;;  %v918_v7 = vmul.f32 %v6187_v9, %v661_v54  ;;  %v411_v60 = vld [vmem:[%s6175_s28 + $0x788] sm:$0xff] }
 0x3d5   : > { %v5916_v15 = vpop.eup %5915  ;;  %5265 = vst [vmem:[%s6292_s21 + $0x730] sm:$0xff] %v4658_v0  ;;  %v4662_v3 = vsub.f32 1.0, %v4661_v6  ;;  %vm4666_vm0 = vweird.f32 %v5914_v55  ;;  %v662_v63 = vmul.f32 %v406_v59, %v406_v59  ;;  %v663_v10 = vmul.f32 %v407_v61, %v407_v61 }
 0x3d6   : > { %v5918_v16 = vpop.eup %5917  ;;  %v4676_v19 = vmul.f32 %v5916_v15, %v11750_v46  ;;  %vm11805_vm8 = vcmp.eq.f32.partialorder %v4684_v2, 8.507059e+37  ;;  %v4701_v11 = vand.u32 2147483648, %v11761_v47  ;;  %5919 = vrcp.f32 %v11800_v8  ;;  %vm11818_vm2 = vmor %vm4665_vm12, %vm4666_vm0 }
 0x3d7   : > { %v4663_v13 = vmul.f32 %v5914_v55, %v4662_v3  ;;  %v4687_v23 = vor.u32 1.1754944e-38, %v4686_v58  ;;  %v4691_v20 = vmul.f32 %v5918_v16, %v11761_v47  ;;  %vm11812_vm1 = vcmp.eq.f32.partialorder %v4699_v5, 8.507059e+37 }
 0x3d8   : > { %v4677_v22 = vsub.f32 1.0, %v4676_v19  ;;  %vm4681_vm3 = vweird.f32 %v5916_v15  ;;  %v11822_v12 = vadd.f32 1.0, %v918_v7  ;;  %v919_v21 = vmul.f32 %v6187_v9, %v662_v63 }
 0x3d9   : > { %v4664_v26 = vadd.f32 %v5914_v55, %v4663_v13  ;;  %v4692_v25 = vsub.f32 1.0, %v4691_v20  ;;  %vm4696_vm4 = vweird.f32 %v5918_v16  ;;  %v920_v4 = vmul.f32 %v6187_v9, %v663_v10  ;;  %vm11833_vm5 = vmor %vm4680_vm14, %vm4681_vm3 }
 0x3da   : > { %v4678_v34 = vmul.f32 %v5916_v15, %v4677_v22  ;;  %v4702_v32 = vor.u32 1.1754944e-38, %v4701_v11  ;;  %v4714_v31 = vand.u32 2147483647, %v11800_v8  ;;  %5921 = vrcp.f32 %v11822_v12  ;;  %vm11842_vm6 = vmor %vm4695_vm15, %vm4696_vm4 }
 0x3db   : > { %v4668_v24 = vsel %vm11818_vm2, %v5914_v55, %v4664_v26  ;;  %v4693_v37 = vmul.f32 %v5918_v16, %v4692_v25  ;;  %v4716_v30 = vand.u32 2147483648, %v11800_v8  ;;  %v664_v33 = vmul.f32 %v408_v17, %v408_v17  ;;  %v409_v55 = vld [vmem:[%s6175_s28 + $0x778] sm:$0xff] }
 0x3dc   : > { %v5920_v43 = vpop.eup %5919  ;;  %v4673_v38 = vsel %vm11780_vm13, %v4672_v42, %v4668_v24  ;;  %v4679_v28 = vadd.f32 %v5916_v15, %v4678_v34  ;;  %v11846_v35 = vadd.f32 1.0, %v919_v21  ;;  %v11848_v46 = vadd.f32 1.0, %v920_v4 }
 0x3dd   : > { %5266 = vst [vmem:[%s6292_s21 + $0x738] sm:$0xff] %v4673_v38  ;;  %v4694_v40 = vadd.f32 %v5918_v16, %v4693_v37  ;;  %v4706_v36 = vmul.f32 %v5920_v43, %v11800_v8  ;;  %vm4710_vm7 = vweird.f32 %v11800_v8  ;;  %v4729_v41 = vand.u32 2147483647, %v11822_v12  ;;  %v412_v38 = vld [vmem:[%s6175_s28 + $0x790] sm:$0xff] }
 0x3de   : > { %v4683_v50 = vsel %vm11833_vm5, %v5916_v15, %v4679_v28  ;;  %vm11856_vm9 = vcmp.eq.f32.partialorder %v4714_v31, 8.507059e+37  ;;  %v4731_v45 = vand.u32 2147483648, %v11822_v12  ;;  %5923 = vrcp.f32 %v11846_v35 }
 0x3df   : > { %v4688_v53 = vsel %vm11805_vm8, %v4687_v23, %v4683_v50  ;;  %v4698_v48 = vsel %vm11842_vm6, %v5918_v16, %v4694_v40  ;;  %v4707_v44 = vsub.f32 1.0, %v4706_v36  ;;  %vm4711_vm10 = vweird.f32 %v5920_v43 }
 0x3e0   : > { %v5922_v49 = vpop.eup %5921  ;;  %5267 = vst [vmem:[%s6292_s21 + $0x740] sm:$0xff] %v4688_v53  ;;  %v4703_v57 = vsel %vm11812_vm1, %v4702_v32, %v4698_v48  ;;  %v4717_v54 = vor.u32 1.1754944e-38, %v4716_v30  ;;  %v4744_v52 = vand.u32 2147483647, %v11846_v35  ;;  %5925 = vrcp.f32 %v11848_v46  ;;  %vm11882_vm13 = vmor %vm4710_vm7, %vm4711_vm10 }
 0x3e1   : > { %5268 = vst [vmem:[%s6292_s21 + $0x748] sm:$0xff] %v4703_v57  ;;  %v4708_v1 = vmul.f32 %v5920_v43, %v4707_v44  ;;  %v4721_v56 = vmul.f32 %v5922_v49, %v11822_v12  ;;  %vm4725_vm11 = vweird.f32 %v11822_v12  ;;  %vm11874_vm12 = vcmp.eq.f32.partialorder %v4729_v41, 8.507059e+37  ;;  %v414_v57 = vld [vmem:[%s6175_s28 + $0x7a0] sm:$0xff] }
 0x3e2   : > { %v4732_v62 = vor.u32 1.1754944e-38, %v4731_v45  ;;  %vm4740_vm14 = vweird.f32 %v11846_v35  ;;  %v4746_v59 = vand.u32 2147483648, %v11846_v35  ;;  %v921_v61 = vmul.f32 %v6187_v9, %v664_v33 }
 0x3e3   : > { %v4709_v6 = vadd.f32 %v5920_v43, %v4708_v1  ;;  %v4722_v58 = vsub.f32 1.0, %v4721_v56  ;;  %vm4726_vm15 = vweird.f32 %v5922_v49  ;;  %vm4755_vm0 = vweird.f32 %v11848_v46 }
 0x3e4   : > { %v5924_v5 = vpop.eup %5923  ;;  %vm11891_vm8 = vcmp.eq.f32.partialorder %v4744_v52, 8.507059e+37  ;;  %v11895_v8 = vadd.f32 1.0, %v921_v61  ;;  %v665_v7 = vmul.f32 %v409_v55, %v409_v55  ;;  %v666_v15 = vmul.f32 %v410_v51, %v410_v51  ;;  %vm11904_vm1 = vmor %vm4725_vm11, %vm4726_vm15 }
 0x3e5   : > { %v4713_v3 = vsel %vm11882_vm13, %v5920_v43, %v4709_v6  ;;  %v4723_v63 = vmul.f32 %v5922_v49, %v4722_v58  ;;  %v4736_v10 = vmul.f32 %v5924_v5, %v11846_v35  ;;  %v667_v16 = vmul.f32 %v411_v60, %v411_v60 }
 0x3e6   : > { %v5926_v19 = vpop.eup %5925  ;;  %v4718_v14 = vsel %vm11856_vm9, %v4717_v54, %v4713_v3  ;;  %v4759_v13 = vand.u32 2147483647, %v11848_v46  ;;  %v4761_v23 = vand.u32 2147483648, %v11848_v46  ;;  %5927 = vrcp.f32 %v11895_v8 }
 0x3e7   : > { %5269 = vst [vmem:[%s6292_s21 + $0x750] sm:$0xff] %v4718_v14  ;;  %v4724_v20 = vadd.f32 %v5922_v49, %v4723_v63  ;;  %v4737_v18 = vsub.f32 1.0, %v4736_v10  ;;  %vm4741_vm2 = vweird.f32 %v5924_v5  ;;  %v4751_v27 = vmul.f32 %v5926_v19, %v11848_v46 }
 0x3e8   : > { %v4747_v22 = vor.u32 1.1754944e-38, %v4746_v59  ;;  %vm4756_vm3 = vweird.f32 %v5926_v19  ;;  %v922_v12 = vmul.f32 %v6187_v9, %v665_v7  ;;  %v923_v21 = vmul.f32 %v6187_v9, %v666_v15  ;;  %vm11922_vm4 = vmor %vm4740_vm14, %vm4741_vm2 }
 0x3e9   : > { %v4728_v17 = vsel %vm11904_vm1, %v5922_v49, %v4724_v20  ;;  %v4738_v26 = vmul.f32 %v5924_v5, %v4737_v18  ;;  %v4752_v25 = vsub.f32 1.0, %v4751_v27  ;;  %v924_v4 = vmul.f32 %v6187_v9, %v667_v16  ;;  %vm11940_vm6 = vmor %vm4755_vm0, %vm4756_vm3  ;;  %v413_v49 = vld [vmem:[%s6175_s28 + $0x798] sm:$0xff] }
 0x3ea   : > { %v4733_v34 = vsel %vm11874_vm12, %v4732_v62, %v4728_v17  ;;  %vm11926_vm5 = vcmp.eq.f32.partialorder %v4759_v13, 8.507059e+37  ;;  %v11930_v24 = vadd.f32 1.0, %v922_v12  ;;  %v11932_v29 = vadd.f32 1.0, %v923_v21  ;;  %v415_v17 = vld [vmem:[%s6175_s28 + $0x7a8] sm:$0xff] }
 0x3eb   : > { %5270 = vst [vmem:[%s6292_s21 + $0x758] sm:$0xff] %v4733_v34  ;;  %v4739_v37 = vadd.f32 %v5924_v5, %v4738_v26  ;;  %v4753_v30 = vmul.f32 %v5926_v19, %v4752_v25  ;;  %v4762_v33 = vor.u32 1.1754944e-38, %v4761_v23  ;;  %v4774_v43 = vand.u32 2147483647, %v11895_v8 }
 0x3ec   : > { %v5928_v28 = vpop.eup %5927  ;;  %v4776_v35 = vand.u32 2147483648, %v11895_v8  ;;  %5929 = vrcp.f32 %v11930_v24  ;;  %v4789_v40 = vand.u32 2147483647, %v11930_v24  ;;  %v11947_v36 = vadd.f32 1.0, %v924_v4 }
 0x3ed   : > { %v4743_v41 = vsel %vm11922_vm4, %v5924_v5, %v4739_v37  ;;  %v4754_v50 = vadd.f32 %v5926_v19, %v4753_v30  ;;  %v4766_v46 = vmul.f32 %v5928_v28, %v11895_v8  ;;  %v4791_v47 = vand.u32 2147483648, %v11930_v24 }
 0x3ee   : > { %v4748_v45 = vsel %vm11891_vm8, %v4747_v22, %v4743_v41  ;;  %5931 = vrcp.f32 %v11932_v29  ;;  %v668_v53 = vmul.f32 %v412_v38, %v412_v38  ;;  %vm4770_vm7 = vweird.f32 %v11895_v8 }
 0x3ef   : > { %5271 = vst [vmem:[%s6292_s21 + $0x760] sm:$0xff] %v4748_v45  ;;  %v4758_v48 = vsel %vm11940_vm6, %v5926_v19, %v4754_v50  ;;  %v4767_v44 = vsub.f32 1.0, %v4766_v46  ;;  %vm4771_vm9 = vweird.f32 %v5928_v28  ;;  %vm11964_vm10 = vcmp.eq.f32.partialorder %v4774_v43, 8.507059e+37  ;;  %v417_v46 = vld [vmem:[%s6175_s28 + $0x7b8] sm:$0xff] }
 0x3f0   : > { %v4763_v54 = vsel %vm11926_vm5, %v4762_v33, %v4758_v48  ;;  %v4777_v1 = vor.u32 1.1754944e-38, %v4776_v35  ;;  %5933 = vrcp.f32 %v11947_v36  ;;  %vm4785_vm11 = vweird.f32 %v11930_v24  ;;  %vm11975_vm13 = vmor %vm4770_vm7, %vm4771_vm9  ;;  %v416_v35 = vld [vmem:[%s6175_s28 + $0x7b0] sm:$0xff] }
 0x3f1   : > { %5272 = vst [vmem:[%s6292_s21 + $0x768] sm:$0xff] %v4763_v54  ;;  %v4768_v56 = vmul.f32 %v5928_v28, %v4767_v44  ;;  %vm11971_vm12 = vcmp.eq.f32.partialorder %v4789_v40, 8.507059e+37  ;;  %v4792_v55 = vor.u32 1.1754944e-38, %v4791_v47  ;;  %v4804_v62 = vand.u32 2147483647, %v11932_v29 }
 0x3f2   : > { %v5930_v51 = vpop.eup %5929  ;;  %v925_v59 = vmul.f32 %v6187_v9, %v668_v53  ;;  %v669_v61 = vmul.f32 %v413_v49, %v413_v49  ;;  %v670_v60 = vmul.f32 %v414_v57, %v414_v57  ;;  %vm4800_vm14 = vweird.f32 %v11932_v29 }
 0x3f3   : > { %v4769_v6 = vadd.f32 %v5928_v28, %v4768_v56  ;;  %v4781_v58 = vmul.f32 %v5930_v51, %v11930_v24  ;;  %v4806_v5 = vand.u32 2147483648, %v11932_v29  ;;  %vm4815_vm15 = vweird.f32 %v11947_v36 }
 0x3f4   : > { %v5932_v0 = vpop.eup %5931  ;;  %v11985_v8 = vadd.f32 1.0, %v925_v59  ;;  %v926_v7 = vmul.f32 %v6187_v9, %v669_v61  ;;  %v927_v15 = vmul.f32 %v6187_v9, %v670_v60  ;;  %vm4786_vm0 = vweird.f32 %v5930_v51 }
 0x3f5   : > { %v4773_v3 = vsel %vm11975_vm13, %v5928_v28, %v4769_v6  ;;  %v4782_v63 = vsub.f32 1.0, %v4781_v58  ;;  %v4796_v10 = vmul.f32 %v5932_v0, %v11932_v29  ;;  %vm11994_vm8 = vcmp.eq.f32.partialorder %v4804_v62, 8.507059e+37  ;;  %vm12004_vm2 = vmor %vm4785_vm11, %vm4786_vm0 }
 0x3f6   : > { %v5934_v16 = vpop.eup %5933  ;;  %v4778_v19 = vsel %vm11964_vm10, %v4777_v1, %v4773_v3  ;;  %v4819_v11 = vand.u32 2147483647, %v11947_v36  ;;  %5935 = vrcp.f32 %v11985_v8  ;;  %vm4801_vm1 = vweird.f32 %v5932_v0 }
 0x3f7   : > { %5273 = vst [vmem:[%s6292_s21 + $0x770] sm:$0xff] %v4778_v19  ;;  %v4783_v13 = vmul.f32 %v5930_v51, %v4782_v63  ;;  %v4797_v23 = vsub.f32 1.0, %v4796_v10  ;;  %v4811_v20 = vmul.f32 %v5934_v16, %v11947_v36  ;;  %v4821_v27 = vand.u32 2147483648, %v11947_v36  ;;  %vm12017_vm4 = vmor %vm4800_vm14, %vm4801_vm1  ;;  %v419_v19 = vld [vmem:[%s6175_s28 + $0x7c8] sm:$0xff] }
 0x3f8   : > { %v4834_v22 = vand.u32 2147483647, %v11985_v8  ;;  %v12010_v12 = vadd.f32 1.0, %v926_v7  ;;  %v12012_v21 = vadd.f32 1.0, %v927_v15  ;;  %vm4816_vm3 = vweird.f32 %v5934_v16  ;;  %v418_v7 = vld [vmem:[%s6175_s28 + $0x7c0] sm:$0xff] }
 0x3f9   : > { %v4784_v26 = vadd.f32 %v5930_v51, %v4783_v13  ;;  %v4798_v25 = vmul.f32 %v5932_v0, %v4797_v23  ;;  %v4812_v4 = vsub.f32 1.0, %v4811_v20  ;;  %v4807_v32 = vor.u32 1.1754944e-38, %v4806_v5  ;;  %vm12033_vm6 = vmor %vm4815_vm15, %vm4816_vm3 }
 0x3fa   : > { %vm12021_vm5 = vcmp.eq.f32.partialorder %v4819_v11, 8.507059e+37  ;;  %v4836_v24 = vand.u32 2147483648, %v11985_v8  ;;  %5937 = vrcp.f32 %v12010_v12  ;;  %v671_v33 = vmul.f32 %v415_v17, %v415_v17 }
 0x3fb   : > { %v4788_v37 = vsel %vm12004_vm2, %v5930_v51, %v4784_v26  ;;  %v4799_v29 = vadd.f32 %v5932_v0, %v4798_v25  ;;  %v4813_v30 = vmul.f32 %v5934_v16, %v4812_v4  ;;  %v4822_v39 = vor.u32 1.1754944e-38, %v4821_v27 }
 0x3fc   : > { %v5936_v43 = vpop.eup %5935  ;;  %v4793_v38 = vsel %vm11971_vm12, %v4792_v55, %v4788_v37  ;;  %vm4830_vm7 = vweird.f32 %v11985_v8  ;;  %5939 = vrcp.f32 %v12012_v21  ;;  %vm12044_vm9 = vcmp.eq.f32.partialorder %v4834_v22, 8.507059e+37  ;;  %v420_v37 = vld [vmem:[%s6175_s28 + $0x7d0] sm:$0xff] }
 0x3fd   : > { %5274 = vst [vmem:[%s6292_s21 + $0x778] sm:$0xff] %v4793_v38  ;;  %v4803_v40 = vsel %vm12017_vm4, %v5932_v0, %v4799_v29  ;;  %v4814_v41 = vadd.f32 %v5934_v16, %v4813_v30  ;;  %v4826_v50 = vmul.f32 %v5936_v43, %v11985_v8  ;;  %vm4831_vm10 = vweird.f32 %v5936_v43  ;;  %v421_v29 = vld [vmem:[%s6175_s28 + $0x7d8] sm:$0xff] }
 0x3fe   : > { %v4808_v47 = vsel %vm11994_vm8, %v4807_v32, %v4803_v40  ;;  %v4837_v45 = vor.u32 1.1754944e-38, %v4836_v24  ;;  %v4851_v53 = vand.u32 2147483648, %v12010_v12  ;;  %v928_v49 = vmul.f32 %v6187_v9, %v671_v33  ;;  %vm12068_vm13 = vmor %vm4830_vm7, %vm4831_vm10 }
 0x3ff   : > { %5275 = vst [vmem:[%s6292_s21 + $0x780] sm:$0xff] %v4808_v47  ;;  %v4818_v48 = vsel %vm12033_vm6, %v5934_v16, %v4814_v41  ;;  %v4827_v44 = vsub.f32 1.0, %v4826_v50  ;;  %v672_v57 = vmul.f32 %v416_v35, %v416_v35  ;;  %vm4845_vm11 = vweird.f32 %v12010_v12 }
 0x400   : > { %v5938_v54 = vpop.eup %5937  ;;  %v4823_v52 = vsel %vm12021_vm5, %v4822_v39, %v4818_v48  ;;  %v4849_v1 = vand.u32 2147483647, %v12010_v12  ;;  %v673_v56 = vmul.f32 %v417_v46, %v417_v46  ;;  %vm4860_vm12 = vweird.f32 %v12012_v21 }
 0x401   : > { %5276 = vst [vmem:[%s6292_s21 + $0x788] sm:$0xff] %v4823_v52  ;;  %v4828_v42 = vmul.f32 %v5936_v43, %v4827_v44  ;;  %v4841_v55 = vmul.f32 %v5938_v54, %v12010_v12  ;;  %v12063_v51 = vadd.f32 1.0, %v928_v49  ;;  %v4852_v59 = vor.u32 1.1754944e-38, %v4851_v53 }
 0x402   : > { %v5940_v2 = vpop.eup %5939  ;;  %v4864_v61 = vand.u32 2147483647, %v12012_v21  ;;  %v929_v60 = vmul.f32 %v6187_v9, %v672_v57  ;;  %v930_v6 = vmul.f32 %v6187_v9, %v673_v56  ;;  %vm4846_vm14 = vweird.f32 %v5938_v54 }
 0x403   : > { %v4829_v58 = vadd.f32 %v5936_v43, %v4828_v42  ;;  %v4842_v5 = vsub.f32 1.0, %v4841_v55  ;;  %v4856_v0 = vmul.f32 %v5940_v2, %v12012_v21  ;;  %vm4861_vm15 = vweird.f32 %v5940_v2  ;;  %vm12089_vm0 = vmor %vm4845_vm11, %vm4846_vm14  ;;  %v422_v42 = vld [vmem:[%s6175_s28 + $0x7e0] sm:$0xff] }
 0x404   : > { %v4866_v8 = vand.u32 2147483648, %v12012_v21  ;;  %5941 = vrcp.f32 %v12063_v51  ;;  %v4879_v15 = vand.u32 2147483647, %v12063_v51  ;;  %v12082_v16 = vadd.f32 1.0, %v929_v60  ;;  %vm12101_vm1 = vmor %vm4860_vm12, %vm4861_vm15  ;;  %v423_v21 = vld [vmem:[%s6175_s28 + $0x7e8] sm:$0xff] }
 0x405   : > { %v4833_v3 = vsel %vm12068_vm13, %v5936_v43, %v4829_v58  ;;  %v4843_v63 = vmul.f32 %v5938_v54, %v4842_v5  ;;  %v4857_v10 = vsub.f32 1.0, %v4856_v0  ;;  %v4881_v13 = vand.u32 2147483648, %v12063_v51 }
 0x406   : > { %v4838_v14 = vsel %vm12044_vm9, %v4837_v45, %v4833_v3  ;;  %v12094_v23 = vadd.f32 1.0, %v930_v6  ;;  %v674_v20 = vmul.f32 %v418_v7, %v418_v7  ;;  %vm4850_vm8 = vcmp.eq.f32.partialorder %v4849_v1, 8.507059e+37 }
 0x407   : > { %5277 = vst [vmem:[%s6292_s21 + $0x790] sm:$0xff] %v4838_v14  ;;  %v4844_v18 = vadd.f32 %v5938_v54, %v4843_v63  ;;  %v4858_v27 = vmul.f32 %v5940_v2, %v4857_v10  ;;  %5943 = vrcp.f32 %v12082_v16  ;;  %vm12105_vm2 = vcmp.eq.f32.partialorder %v4864_v61, 8.507059e+37 }
 0x408   : > { %v4867_v17 = vor.u32 1.1754944e-38, %v4866_v8  ;;  %5945 = vrcp.f32 %v12094_v23  ;;  %v675_v26 = vmul.f32 %v419_v19, %v419_v19  ;;  %vm4875_vm3 = vweird.f32 %v12063_v51 }
 0x409   : > { %v4848_v25 = vsel %vm12089_vm0, %v5938_v54, %v4844_v18  ;;  %v4859_v4 = vadd.f32 %v5940_v2, %v4858_v27  ;;  %vm12113_vm4 = vcmp.eq.f32.partialorder %v4879_v15, 8.507059e+37  ;;  %v4882_v31 = vor.u32 1.1754944e-38, %v4881_v13 }
 0x40a   : > { %v5942_v34 = vpop.eup %5941  ;;  %v4853_v32 = vsel %vm4850_vm8, %v4852_v59, %v4848_v25  ;;  %vm4890_vm5 = vweird.f32 %v12082_v16  ;;  %v931_v24 = vmul.f32 %v6187_v9, %v674_v20  ;;  %v4894_v43 = vand.u32 2147483647, %v12082_v16 }
 0x40b   : > { %5278 = vst [vmem:[%s6292_s21 + $0x798] sm:$0xff] %v4853_v32  ;;  %v4863_v30 = vsel %vm12101_vm1, %v5940_v2, %v4859_v4  ;;  %v4871_v33 = vmul.f32 %v5942_v34, %v12063_v51  ;;  %v4896_v38 = vand.u32 2147483648, %v12082_v16  ;;  %vm4905_vm6 = vweird.f32 %v12094_v23 }
 0x40c   : > { %v4868_v28 = vsel %vm12105_vm2, %v4867_v17, %v4863_v30  ;;  %v12130_v39 = vadd.f32 1.0, %v931_v24  ;;  %v932_v35 = vmul.f32 %v6187_v9, %v675_v26  ;;  %vm4876_vm7 = vweird.f32 %v5942_v34 }
 0x40d   : > { %v5944_v40 = vpop.eup %5943  ;;  %5279 = vst [vmem:[%s6292_s21 + $0x7a0] sm:$0xff] %v4868_v28  ;;  %v4872_v41 = vsub.f32 1.0, %v4871_v33  ;;  %v676_v50 = vmul.f32 %v420_v37, %v420_v37  ;;  %v677_v36 = vmul.f32 %v421_v29, %v421_v29  ;;  %v4909_v45 = vand.u32 2147483647, %v12094_v23  ;;  %vm12145_vm10 = vmor %vm4875_vm3, %vm4876_vm7  ;;  %v425_v29 = vld [vmem:[%s6175_s28 + $0x7f8] sm:$0xff] }
 0x40e   : > { %v5946_v46 = vpop.eup %5945  ;;  %v4886_v47 = vmul.f32 %v5944_v40, %v12082_v16  ;;  %v4911_v53 = vand.u32 2147483648, %v12094_v23  ;;  %5947 = vrcp.f32 %v12130_v39  ;;  %vm12138_vm9 = vcmp.eq.f32.partialorder %v4894_v43, 8.507059e+37 }
 0x40f   : > { %v4873_v48 = vmul.f32 %v5942_v34, %v4872_v41  ;;  %v4897_v49 = vor.u32 1.1754944e-38, %v4896_v38  ;;  %v4901_v57 = vmul.f32 %v5946_v46, %v12094_v23  ;;  %vm4891_vm11 = vweird.f32 %v5944_v40 }
 0x410   : > { %v4887_v52 = vsub.f32 1.0, %v4886_v47  ;;  %v12149_v1 = vadd.f32 1.0, %v932_v35  ;;  %v933_v56 = vmul.f32 %v6187_v9, %v676_v50  ;;  %vm4906_vm12 = vweird.f32 %v5946_v46  ;;  %vm12163_vm14 = vmor %vm4890_vm5, %vm4891_vm11 }
 0x411   : > { %v4874_v55 = vadd.f32 %v5942_v34, %v4873_v48  ;;  %v4902_v2 = vsub.f32 1.0, %v4901_v57  ;;  %v934_v62 = vmul.f32 %v6187_v9, %v677_v36  ;;  %vm12154_vm13 = vcmp.eq.f32.partialorder %v4909_v45, 8.507059e+37  ;;  %vm12172_vm15 = vmor %vm4905_vm6, %vm4906_vm12 }
 0x412   : > { %v4888_v59 = vmul.f32 %v5944_v40, %v4887_v52  ;;  %v4912_v61 = vor.u32 1.1754944e-38, %v4911_v53  ;;  %5949 = vrcp.f32 %v12149_v1  ;;  %v4924_v5 = vand.u32 2147483647, %v12130_v39 }
 0x413   : > { %v4878_v60 = vsel %vm12145_vm10, %v5942_v34, %v4874_v55  ;;  %v4903_v58 = vmul.f32 %v5946_v46, %v4902_v2  ;;  %v678_v0 = vmul.f32 %v422_v42, %v422_v42  ;;  %v12176_v63 = vadd.f32 1.0, %v933_v56  ;;  %v424_v34 = vld [vmem:[%s6175_s28 + $0x7f0] sm:$0xff] }
 0x414   : > { %v5948_v7 = vpop.eup %5947  ;;  %v4883_v8 = vsel %vm12113_vm4, %v4882_v31, %v4878_v60  ;;  %v4889_v15 = vadd.f32 %v5944_v40, %v4888_v59  ;;  %v12178_v10 = vadd.f32 1.0, %v934_v62  ;;  %vm4920_vm0 = vweird.f32 %v12130_v39 }
 0x415   : > { %5280 = vst [vmem:[%s6292_s21 + $0x7a8] sm:$0xff] %v4883_v8  ;;  %v4904_v16 = vadd.f32 %v5946_v46, %v4903_v58  ;;  %v4916_v19 = vmul.f32 %v5948_v7, %v12130_v39  ;;  %v4926_v14 = vand.u32 2147483648, %v12130_v39  ;;  %v4939_v13 = vand.u32 2147483647, %v12149_v1 }
 0x416   : > { %v4893_v11 = vsel %vm12163_vm14, %v5944_v40, %v4889_v15  ;;  %v4941_v23 = vand.u32 2147483648, %v12149_v1  ;;  %5951 = vrcp.f32 %v12176_v63  ;;  %vm4921_vm8 = vweird.f32 %v5948_v7 }
 0x417   : > { %v4898_v20 = vsel %vm12138_vm9, %v4897_v49, %v4893_v11  ;;  %v4908_v18 = vsel %vm12172_vm15, %v5946_v46, %v4904_v16  ;;  %v4917_v27 = vsub.f32 1.0, %v4916_v19  ;;  %vm12196_vm1 = vcmp.eq.f32.partialorder %v4924_v5, 8.507059e+37  ;;  %vm12208_vm3 = vmor %vm4920_vm0, %vm4921_vm8 }
 0x418   : > { %v5950_v22 = vpop.eup %5949  ;;  %5281 = vst [vmem:[%s6292_s21 + $0x7b0] sm:$0xff] %v4898_v20  ;;  %v4913_v12 = vsel %vm12154_vm13, %v4912_v61, %v4908_v18  ;;  %5953 = vrcp.f32 %v12178_v10  ;;  %v4927_v25 = vor.u32 1.1754944e-38, %v4926_v14  ;;  %vm4935_vm2 = vweird.f32 %v12149_v1 }
 0x419   : > { %5282 = vst [vmem:[%s6292_s21 + $0x7b8] sm:$0xff] %v4913_v12  ;;  %v4918_v26 = vmul.f32 %v5948_v7, %v4917_v27  ;;  %v4931_v4 = vmul.f32 %v5950_v22, %v12149_v1  ;;  %vm12212_vm4 = vcmp.eq.f32.partialorder %v4939_v13, 8.507059e+37  ;;  %v4942_v24 = vor.u32 1.1754944e-38, %v4941_v23 }
 0x41a   : > { %vm4950_vm5 = vweird.f32 %v12176_v63  ;;  %v935_v37 = vmul.f32 %v6187_v9, %v678_v0  ;;  %vm4936_vm6 = vweird.f32 %v5950_v22  ;;  %v4954_v43 = vand.u32 2147483647, %v12176_v63 }
 0x41b   : > { %v4919_v30 = vadd.f32 %v5948_v7, %v4918_v26  ;;  %v4932_v33 = vsub.f32 1.0, %v4931_v4  ;;  %v4956_v28 = vand.u32 2147483648, %v12176_v63  ;;  %v679_v35 = vmul.f32 %v423_v21, %v423_v21  ;;  %vm12228_vm7 = vmor %vm4935_vm2, %vm4936_vm6 }
 0x41c   : > { %v5952_v38 = vpop.eup %5951  ;;  %v1191_v39 = vadd.f32 1.0, %v935_v37  ;;  %v680_v40 = vmul.f32 %v424_v34, %v424_v34  ;;  %v681_v46 = vmul.f32 %v425_v29, %v425_v29  ;;  %vm4965_vm9 = vweird.f32 %v12178_v10 }
 0x41d   : > { %v4923_v41 = vsel %vm12208_vm3, %v5948_v7, %v4919_v30  ;;  %v4933_v50 = vmul.f32 %v5950_v22, %v4932_v33  ;;  %v4946_v36 = vmul.f32 %v5952_v38, %v12176_v63  ;;  %v4969_v48 = vand.u32 2147483647, %v12178_v10 }
 0x41e   : > { %v5954_v47 = vpop.eup %5953  ;;  %v4928_v45 = vsel %vm12196_vm1, %v4927_v25, %v4923_v41  ;;  %5955 = vrcp.f32 %v1191_v39  ;;  %vm4951_vm10 = vweird.f32 %v5952_v38  ;;  %v4971_v54 = vand.u32 2147483648, %v12178_v10 }
 0x41f   : > { %5283 = vst [vmem:[%s6292_s21 + $0x7c0] sm:$0xff] %v4928_v45  ;;  %v4934_v44 = vadd.f32 %v5950_v22, %v4933_v50  ;;  %v4947_v49 = vsub.f32 1.0, %v4946_v36  ;;  %v4961_v57 = vmul.f32 %v5954_v47, %v12178_v10  ;;  %vm4966_vm11 = vweird.f32 %v5954_v47  ;;  %vm12246_vm12 = vmor %vm4950_vm5, %vm4951_vm10 }
 0x420   : > { %v936_v52 = vmul.f32 %v6187_v9, %v679_v35  ;;  %v937_v1 = vmul.f32 %v6187_v9, %v680_v40  ;;  %v938_v2 = vmul.f32 %v6187_v9, %v681_v46  ;;  %v4957_v51 = vor.u32 1.1754944e-38, %v4956_v28  ;;  %vm12256_vm14 = vmor %vm4965_vm9, %vm4966_vm11 }
 0x421   : > { %v4938_v56 = vsel %vm12228_vm7, %v5950_v22, %v4934_v44  ;;  %v4948_v42 = vmul.f32 %v5952_v38, %v4947_v49  ;;  %v4962_v55 = vsub.f32 1.0, %v4961_v57  ;;  %vm4955_vm13 = vcmp.eq.f32.partialorder %v4954_v43, 8.507059e+37 }
 0x422   : > { %v4943_v62 = vsel %vm12212_vm4, %v4942_v24, %v4938_v56  ;;  %v1192_v61 = vadd.f32 1.0, %v936_v52  ;;  %v12250_v60 = vadd.f32 1.0, %v937_v1  ;;  %v4972_v0 = vor.u32 1.1754944e-38, %v4971_v54 }
 0x423   : > { %5284 = vst [vmem:[%s6292_s21 + $0x7c8] sm:$0xff] %v4943_v62  ;;  %v4949_v6 = vadd.f32 %v5952_v38, %v4948_v42  ;;  %v4963_v58 = vmul.f32 %v5954_v47, %v4962_v55  ;;  %v12260_v7 = vadd.f32 1.0, %v938_v2  ;;  %vm4970_vm15 = vcmp.eq.f32.partialorder %v4969_v48, 8.507059e+37 }
 0x424   : > { %v5956_v5 = vpop.eup %5955  ;;  %5957 = vrcp.f32 %v1192_v61  ;;  %vm4980_vm0 = vweird.f32 %v1191_v39  ;;  %v4986_v16 = vand.u32 2147483648, %v1191_v39  ;;  %v4984_v14 = vand.u32 2147483647, %v1191_v39 }
 0x425   : > { %v4953_v8 = vsel %vm12246_vm12, %v5952_v38, %v4949_v6  ;;  %v4964_v15 = vadd.f32 %v5954_v47, %v4963_v58  ;;  %v4976_v3 = vmul.f32 %v5956_v5, %v1191_v39  ;;  %5959 = vrcp.f32 %v12250_v60 }
 0x426   : > { %v4958_v63 = vsel %vm4955_vm13, %v4957_v51, %v4953_v8  ;;  %vm4981_vm8 = vweird.f32 %v5956_v5  ;;  %v4999_v13 = vand.u32 2147483647, %v1192_v61  ;;  %5961 = vrcp.f32 %v12260_v7 }
 0x427   : > { %5285 = vst [vmem:[%s6292_s21 + $0x7d0] sm:$0xff] %v4958_v63  ;;  %v4968_v10 = vsel %vm12256_vm14, %v5954_v47, %v4964_v15  ;;  %v4977_v19 = vsub.f32 1.0, %v4976_v3  ;;  %vm12270_vm1 = vmor %vm4980_vm0, %vm4981_vm8  ;;  %v4987_v27 = vor.u32 1.1754944e-38, %v4986_v16  ;;  %vm4985_vm2 = vcmp.eq.f32.partialorder %v4984_v14, 8.507059e+37 }
 0x428   : > { %v4973_v11 = vsel %vm4970_vm15, %v4972_v0, %v4968_v10  ;;  %vm4995_vm3 = vweird.f32 %v1192_v61  ;;  %vm12274_vm4 = vcmp.eq.f32.partialorder %v4999_v13, 8.507059e+37  ;;  %v5001_v25 = vand.u32 2147483648, %v1192_v61 }
 0x429   : > { %5286 = vst [vmem:[%s6292_s21 + $0x7d8] sm:$0xff] %v4973_v11  ;;  %v4978_v23 = vmul.f32 %v5956_v5, %v4977_v19  ;;  %vm5010_vm6 = vweird.f32 %v12250_v60  ;;  %v5014_v24 = vand.u32 2147483647, %v12250_v60  ;;  %v5016_v37 = vand.u32 2147483648, %v12250_v60 }
 0x42a   : > { %v5958_v20 = vpop.eup %5957  ;;  %v5002_v38 = vor.u32 1.1754944e-38, %v5001_v25  ;;  %vm5025_vm10 = vweird.f32 %v12260_v7  ;;  %v5029_v28 = vand.u32 2147483647, %v12260_v7  ;;  %v5031_v39 = vand.u32 2147483648, %v12260_v7 }
 0x42b   : > { %v4979_v22 = vadd.f32 %v5956_v5, %v4978_v23  ;;  %v4991_v12 = vmul.f32 %v5958_v20, %v1192_v61  ;;  %v5960_v17 = vpop.eup %5959  ;;  %vm4996_vm5 = vweird.f32 %v5958_v20  ;;  %v5017_v36 = vor.u32 1.1754944e-38, %v5016_v37 }
 0x42c   : > { %v5006_v34 = vmul.f32 %v5960_v17, %v12250_v60  ;;  %v5962_v32 = vpop.eup %5961  ;;  %vm5011_vm7 = vweird.f32 %v5960_v17  ;;  %vm12288_vm9 = vmor %vm4995_vm3, %vm4996_vm5  ;;  %vm5015_vm13 = vcmp.eq.f32.partialorder %v5014_v24, 8.507059e+37  ;;  %v5032_v48 = vor.u32 1.1754944e-38, %v5031_v39 }
 0x42d   : > { %v4983_v4 = vsel %vm12270_vm1, %v5956_v5, %v4979_v22  ;;  %v4992_v21 = vsub.f32 1.0, %v4991_v12  ;;  %v5021_v33 = vmul.f32 %v5962_v32, %v12260_v7  ;;  %vm5026_vm11 = vweird.f32 %v5962_v32  ;;  %vm12300_vm12 = vmor %vm5010_vm6, %vm5011_vm7 }
 0x42e   : > { %v4988_v31 = vsel %vm4985_vm2, %v4987_v27, %v4983_v4  ;;  %v5007_v30 = vsub.f32 1.0, %v5006_v34  ;;  %vm5027_vm14 = vmor %vm5025_vm10, %vm5026_vm11  ;;  %vm5030_vm15 = vcmp.eq.f32.partialorder %v5029_v28, 8.507059e+37 }
 0x42f   : > { %5287 = vst [vmem:[%s6292_s21 + $0x7e0] sm:$0xff] %v4988_v31  ;;  %v4993_v29 = vmul.f32 %v5958_v20, %v4992_v21  ;;  %v5022_v41 = vsub.f32 1.0, %v5021_v33 }
 0x430   : > { %v5008_v40 = vmul.f32 %v5960_v17, %v5007_v30 }
 0x431   : > { %v4994_v35 = vadd.f32 %v5958_v20, %v4993_v29  ;;  %v5023_v45 = vmul.f32 %v5962_v32, %v5022_v41 }
 0x432   : > { %v5009_v47 = vadd.f32 %v5960_v17, %v5008_v40 }
 0x433   : > { %v4998_v46 = vsel %vm12288_vm9, %v5958_v20, %v4994_v35  ;;  %v5024_v49 = vadd.f32 %v5962_v32, %v5023_v45 }
 0x434   : > { %v5003_v53 = vsel %vm12274_vm4, %v5002_v38, %v4998_v46  ;;  %v5013_v44 = vsel %vm12300_vm12, %v5960_v17, %v5009_v47 }
 0x435   : > { %5288 = vst [vmem:[%s6292_s21 + $0x7e8] sm:$0xff] %v5003_v53  ;;  %v5018_v57 = vsel %vm5015_vm13, %v5017_v36, %v5013_v44  ;;  %v5028_v54 = vsel %vm5027_vm14, %v5962_v32, %v5024_v49 }
 0x436   : > { %5289 = vst [vmem:[%s6292_s21 + $0x7f0] sm:$0xff] %v5018_v57  ;;  %v5033_v52 = vsel %vm5030_vm15, %v5032_v48, %v5028_v54 }
 0x437   : > { %5290 = vst [vmem:[%s6292_s21 + $0x7f8] sm:$0xff] %v5033_v52 }
 0x438   : > { %6020 = shalt.err (!%p6017_p4)
}
 0x439   : > { %s6063_s25 = smov 2048   ;;  %s6064_s26 = smov 128  }
 0x43a   : > { %5403 = dma.vmem_to_hbm [thread:$0]  (%p6133_p11), %s5306_s6, 32768, %s5308_s7, %s5292_s8, %s6063_s25, %s6063_s25, %s6064_s26  }
 0x43b PF: > { %s5322_s27 = sand.u32 1, %s6047_s11   ;;  %p13358_p7 = scmp.ge.s32.totalorder %s6059_s14, 2 }
 0x43c   : > { %s5323_s28 = scalar_lea.sflag [#allocation5], %s5322_s27 }
 0x43d   : > { %p5410_p5 = pnand %p13358_p7, %p6137_p12 }
 0x43f   : > { %p5411_p8 = pneg %p5410_p5 }
 0x441   : > { %6042 = dma.done.wait (%p5411_p8), %s5323_s28, 32768  }
 0x442   : > { %6044 = vsyncadd (%p5411_p8), %s5323_s28, 4294934528  ;;  %p16_p10 = scmp.ge.s32.totalorder %s6108_s16, 4   ;;  %s13359_s11 = smov %s6051_s12 }
 0x443   : > { %s13360_s12 = smov %s6055_s13  ;;  %s13361_s13 = smov %s6120_s19 }
 0x444   : > { %s13362_s14 = smov %s6108_s16  ;;  %18 = sbr.rel (!%p16_p10) target bundleno = 7 (0x7), region = 73 }
 0x449   :  { %5329 = vsyncpa [#allocation4], 1 }
 0x44a   :  { %5331 = vsyncpa [#allocation4 + $0x1], 1 }
 0x44b   :  { %5332 = vsyncpa [#allocation5], 1 }
 0x44c   :  { %5334 = vsyncpa [#allocation5 + $0x1], 1 }

</bundles_post_ra>
